<compile_context>
chip_gen: v7x
topology: tpu7x:2x2x1
jax: 0.10.0
libtpu: 0.0.40
codegen_flags: <defaults>
</compile_context>

<pallas_src>
import functools
import math

import jax
import jax.numpy as jnp
from jax import lax
from jax.experimental import pallas as pl
from jax.experimental.pallas import tpu as pltpu

F32_EPS = float(jnp.finfo(jnp.float32).eps)   # nn.RMSNorm(eps=None) -> finfo eps
VMEM_LIMIT = 32 * 1024 * 1024                 # safe on v5e/v6e/v7x


# ----------------------------------------------------------------------------
# small elementwise helpers (used inside kernels)
# ----------------------------------------------------------------------------
def _sigmoid(x):
    return 1.0 / (1.0 + jnp.exp(-x))


def _softplus(x):
    # numerically stable, matches F.softplus(beta=1) to fp precision
    return jnp.maximum(x, 0.0) + jnp.log(1.0 + jnp.exp(-jnp.abs(x)))


def _gelu_exact(x):
    # matches torch.nn.functional.gelu default (erf-based)
    return 0.5 * x * (1.0 + lax.erf(x * (1.0 / math.sqrt(2.0))))


def _rms(x, w):
    return x * lax.rsqrt(jnp.mean(x * x, axis=-1, keepdims=True) + F32_EPS) * w


def _const_spec(a):
    # full-array block, resident across the grid (constant index map)
    return pl.BlockSpec(a.shape, lambda *_: (0,) * a.ndim)


# ----------------------------------------------------------------------------
# Kernel A: fused pre-recurrence projection stage (one grid step per batch)
#   RMSNorm(norm1) -> packed matmul [k|v|delta_lr|gate] -> softplus/sigmoid
#   -> causal depthwise conv (roll+mask) on k,v -> k LayerNorm
#   -> eta/alpha projected only at chunk-end rows
# ----------------------------------------------------------------------------
def _proj_kernel(x_ref, xl_ref, n1_ref, wp_ref, dw2_ref, eaw1_ref, ew2_ref,
                 aw2_ref, taps_ref, cb_ref,
                 kvd_ref, gate_ref, ea_ref, *, d_head, low_rank):
    x = x_ref[...]                                    # (S, d_model)
    S = x.shape[0]
    n1 = n1_ref[...]

    xn = _rms(x, n1)
    z = jnp.dot(xn, wp_ref[...], preferred_element_type=jnp.float32)
    k_pre = z[:, 0:d_head]
    v_pre = z[:, d_head:2 * d_head]
    d_lr = z[:, 2 * d_head:2 * d_head + low_rank]
    g_pre = z[:, 2 * d_head + low_rank:]

    delta = _softplus(jnp.dot(d_lr, dw2_ref[...],
                              preferred_element_type=jnp.float32))
    gate_ref[...] = _sigmoid(g_pre)

    # depthwise causal conv (k=4, left pad 3), halo handled in-kernel:
    # shifts go to the XLU via pltpu.roll, wrapped rows masked to zero.
    taps = taps_ref[...]                              # (4, d_head)
    cb = cb_ref[...]                                  # (1, d_head)
    row = lax.broadcasted_iota(jnp.int32, (S, 1), 0)

    def causal_conv(u):
        out = jnp.zeros_like(u) + cb
        for j in range(4):                            # static unrolled taps
            s = 3 - j
            if s == 0:
                shifted = u
            else:
                shifted = pltpu.roll(u, shift=s, axis=0)
                shifted = jnp.where(row >= s, shifted, 0.0)
            out = out + shifted * taps[j:j + 1, :]
        return out

    k = causal_conv(k_pre)
    v = causal_conv(v_pre)

    # k_norm: LayerNorm(d_head), default weight=1 / bias=0, eps=1e-5
    mu = jnp.mean(k, axis=-1, keepdims=True)
    var = jnp.mean((k - mu) ** 2, axis=-1, keepdims=True)
    k = (k - mu) * lax.rsqrt(var + 1e-5)

    kvd_ref[:, 0:d_head] = k
    kvd_ref[:, d_head:2 * d_head] = v
    kvd_ref[:, 2 * d_head:3 * d_head] = delta

    # eta / alpha only at chunk-end rows (the recurrence reads only those)
    xl = xl_ref[...]                                  # (num_chunks, d_model)
    xln = _rms(xl, n1)
    ea_lr = jnp.dot(xln, eaw1_ref[...], preferred_element_type=jnp.float32)
    eta_last = _softplus(jnp.dot(ea_lr[:, :low_rank], ew2_ref[...],
                                 preferred_element_type=jnp.float32))
    alpha_last = _sigmoid(jnp.dot(ea_lr[:, low_rank:], aw2_ref[...],
                                  preferred_element_type=jnp.float32))
    ea_ref[:, 0:d_head] = eta_last
    ea_ref[:, d_head:2 * d_head] = alpha_last


def fused_projection(x, x_last, norm1_w, w_packed, delta_w2t, ea_w1,
                     eta_w2t, alpha_w2t, conv_taps, conv_b, *, d_head, low_rank):
    B, S, d_model = x.shape
    nc = x_last.shape[1]
    kernel = functools.partial(_proj_kernel, d_head=d_head, low_rank=low_rank)
    return pl.pallas_call(
        kernel,
        grid=(B,),
        in_specs=[
            pl.BlockSpec((None, S, d_model), lambda b: (b, 0, 0)),
            pl.BlockSpec((None, nc, d_model), lambda b: (b, 0, 0)),
            _const_spec(norm1_w), _const_spec(w_packed), _const_spec(delta_w2t),
            _const_spec(ea_w1), _const_spec(eta_w2t), _const_spec(alpha_w2t),
            _const_spec(conv_taps), _const_spec(conv_b),
        ],
        out_specs=(
            pl.BlockSpec((None, S, 3 * d_head), lambda b: (b, 0, 0)),
            pl.BlockSpec((None, S, d_model), lambda b: (b, 0, 0)),
            pl.BlockSpec((None, nc, 2 * d_head), lambda b: (b, 0, 0)),
        ),
        out_shape=(
            jax.ShapeDtypeStruct((B, S, 3 * d_head), jnp.float32),
            jax.ShapeDtypeStruct((B, S, d_model), jnp.float32),
            jax.ShapeDtypeStruct((B, nc, 2 * d_head), jnp.float32),
        ),
        compiler_params=pltpu.CompilerParams(
            dimension_semantics=("parallel",),
            vmem_limit_bytes=VMEM_LIMIT),
    )(x, x_last, norm1_w, w_packed, delta_w2t, ea_w1, eta_w2t, alpha_w2t,
      conv_taps, conv_b)


# ----------------------------------------------------------------------------
# Kernel B: chunked memory-MLP recurrence.
# grid=(B,) ("parallel"), chunks handled by an in-kernel fori_loop; the memory
# state (w1^T, b1, w2^T, b2) lives in the loop carry (pre-transposed layout).
# ----------------------------------------------------------------------------
def _recurrence_kernel(kvd_ref, ea_ref, w1t_ref, b1_ref, w2t_ref, b2_ref,
                       y_ref, *, chunk_size, d_head):
    num_chunks = ea_ref.shape[0]

    def step(i, carry):
        w1t, b1, w2t, b2 = carry
        start = pl.multiple_of(i * chunk_size, chunk_size)
        blk = kvd_ref[pl.ds(start, chunk_size), :]        # (chunk, 3*d_head)
        k_c = blk[:, 0:d_head]                            # already k-normed
        v_c = blk[:, d_head:2 * d_head]
        delta_c = blk[:, 2 * d_head:3 * d_head]

        ea = ea_ref[pl.ds(i, 1), :]                       # (1, 2*d_head)
        eta_b = ea[:, 0:d_head]
        alpha_b = ea[:, d_head:2 * d_head]

        # memory forward: gelu(k @ w1^T + b1) @ w2^T + b2  (pre-transposed)
        inter = jnp.dot(k_c, w1t, preferred_element_type=jnp.float32) + b1
        act = _gelu_exact(inter)
        out = jnp.dot(act, w2t, preferred_element_type=jnp.float32) + b2
        y_ref[pl.ds(start, chunk_size), :] = out

        # ---- training-mode memory update (the torch.no_grad block) ----
        error = out - v_c
        err_norm = jnp.sqrt(jnp.sum(error * error, axis=-1, keepdims=True))
        grad_l1 = delta_c * (error / (err_norm + 1e-9))
        grad_pred = jnp.where(err_norm > delta_c, grad_l1, error)

        alpha_w = jnp.mean(alpha_b, axis=-1, keepdims=True)        # (1,1)
        eta_w = jnp.mean(eta_b, axis=-1, keepdims=True)            # (1,1)
        update_signal = jnp.mean(grad_pred, axis=0, keepdims=True)  # (1,d_head)
        act_mean = jnp.mean(act, axis=0, keepdims=True)             # (1,d_mlp)

        # transposed-layout updates (outer products via broadcasting)
        w1t_next = alpha_w * w1t - eta_w * (update_signal.T * act_mean)
        w2t_next = alpha_w * w2t - eta_w * (act_mean.T * update_signal)

        b1_update = jnp.mean(
            jnp.dot(grad_pred, w2t.T, preferred_element_type=jnp.float32),
            axis=0, keepdims=True)                                  # (1,d_mlp)
        b2_next = alpha_b * b2 - eta_b * update_signal
        b1_next = alpha_w * b1 - eta_w * b1_update
        return (w1t_next, b1_next, w2t_next, b2_next)

    lax.fori_loop(0, num_chunks, step,
                  (w1t_ref[...], b1_ref[...], w2t_ref[...], b2_ref[...]),
                  unroll=(num_chunks <= 8))


def memory_recurrence(kvd, ea_last, mem_w1t, mem_b1, mem_w2t, mem_b2,
                      *, chunk_size, d_head):
    B, S, _ = kvd.shape
    nc = ea_last.shape[1]
    kernel = functools.partial(_recurrence_kernel,
                               chunk_size=chunk_size, d_head=d_head)
    return pl.pallas_call(
        kernel,
        grid=(B,),
        in_specs=[
            pl.BlockSpec((None, S, 3 * d_head), lambda b: (b, 0, 0)),
            pl.BlockSpec((None, nc, 2 * d_head), lambda b: (b, 0, 0)),
            _const_spec(mem_w1t), _const_spec(mem_b1),
            _const_spec(mem_w2t), _const_spec(mem_b2),
        ],
        out_specs=pl.BlockSpec((None, S, d_head), lambda b: (b, 0, 0)),
        out_shape=jax.ShapeDtypeStruct((B, S, d_head), jnp.float32),
        compiler_params=pltpu.CompilerParams(
            dimension_semantics=("parallel",),
            vmem_limit_bytes=VMEM_LIMIT),
    )(kvd, ea_last, mem_w1t, mem_b1, mem_w2t, mem_b2)


# ----------------------------------------------------------------------------
# Kernel C: fused tail.
#   h   = x + out_proj(y) * gate
#   out = h + GatedMLP(RMSNorm(norm2)(h))      (w1/w3 packed lane-dense)
# tiled over rows (B*S) with a "parallel" grid axis.
# ----------------------------------------------------------------------------
def _tail_kernel(x_ref, y_ref, g_ref, wo_ref, n2_ref, w13_ref, w2_ref, o_ref,
                 *, d_ffn):
    x = x_ref[...]
    h = x + jnp.dot(y_ref[...], wo_ref[...],
                    preferred_element_type=jnp.float32) * g_ref[...]
    hn = _rms(h, n2_ref[...])
    z = jnp.dot(hn, w13_ref[...], preferred_element_type=jnp.float32)
    h1 = z[:, 0:d_ffn]
    h3 = z[:, d_ffn:]
    o_ref[...] = h + jnp.dot(h1 * _sigmoid(h1) * h3, w2_ref[...],
                             preferred_element_type=jnp.float32)


def fused_tail(x2, y2, gate2, out_wt, norm2_w, w13, mlp_w2t):
    M, d_model = x2.shape
    d_head = y2.shape[1]
    d_ffn = mlp_w2t.shape[0]
    # biggest tile that comfortably fits VMEM at real shapes; full-M otherwise
    tm = 512 if M >= 512 else M
    kernel = functools.partial(_tail_kernel, d_ffn=d_ffn)
    return pl.pallas_call(
        kernel,
        grid=(pl.cdiv(M, tm),),
        in_specs=[
            pl.BlockSpec((tm, d_model), lambda m: (m, 0)),
            pl.BlockSpec((tm, d_head), lambda m: (m, 0)),
            pl.BlockSpec((tm, d_model), lambda m: (m, 0)),
            _const_spec(out_wt), _const_spec(norm2_w),
            _const_spec(w13), _const_spec(mlp_w2t),
        ],
        out_specs=pl.BlockSpec((tm, d_model), lambda m: (m, 0)),
        out_shape=jax.ShapeDtypeStruct((M, d_model), jnp.float32),
        compiler_params=pltpu.CompilerParams(
            dimension_semantics=("parallel",),
            vmem_limit_bytes=VMEM_LIMIT),
    )(x2, y2, gate2, out_wt, norm2_w, w13, mlp_w2t)


# ----------------------------------------------------------------------------
# YAAD block forward (weight packing / reshapes are trace-time glue only)
# ----------------------------------------------------------------------------
def yaad_block_forward(x, p, chunk_size=64):
    B, S, d_model = x.shape
    d_head = p["k_w"].shape[0]
    low_rank = p["eta_w1"].shape[0]
    # TODO(synk): ragged final chunk (S % chunk_size != 0) not handled.
    assert S % chunk_size == 0

    # ---- pack / pre-transpose weights (free at trace time) ----
    w_packed = jnp.concatenate(
        [p["k_w"].T, p["v_w"].T, p["delta_w1"].T, p["gate_w"].T], axis=1)
    ea_w1 = jnp.concatenate([p["eta_w1"].T, p["alpha_w1"].T], axis=1)
    delta_w2t = p["delta_w2"].T
    eta_w2t = p["eta_w2"].T
    alpha_w2t = p["alpha_w2"].T
    norm1_w = p["norm1_w"].reshape(1, d_model)
    norm2_w = p["norm2_w"].reshape(1, d_model)
    out_wt = p["out_w"].T                              # (d_head, d_model)
    w13 = jnp.concatenate([p["mlp_w1"].T, p["mlp_w3"].T], axis=1)
    mlp_w2t = p["mlp_w2"].T                            # (d_ffn, d_model)
    mem_w1t = p["mem_w1"].T                            # (d_head, d_mlp)
    mem_w2t = p["mem_w2"].T                            # (d_mlp, d_head)

    # chunk-end rows (only ones the recurrence reads eta/alpha at)
    x_last = x[:, chunk_size - 1::chunk_size, :]       # (B, num_chunks, d_model)

    # q / q_norm are computed in the reference forward but never consumed
    # downstream; omitted here (no effect on the output).
    kvd, gate, ea_last = fused_projection(
        x, x_last, norm1_w, w_packed, delta_w2t, ea_w1, eta_w2t, alpha_w2t,
        p["conv_taps"], p["conv_b"], d_head=d_head, low_rank=low_rank)

    y = memory_recurrence(kvd, ea_last, mem_w1t, p["mem_b1"], mem_w2t,
                          p["mem_b2"], chunk_size=chunk_size, d_head=d_head)

    out = fused_tail(x.reshape(B * S, d_model),
                     y.reshape(B * S, d_head),
                     gate.reshape(B * S, d_model),
                     out_wt, norm2_w, w13, mlp_w2t)
    return out.reshape(B, S, d_model)


# ----------------------------------------------------------------------------
# deterministic synthetic parameters (shapes from YAADBlock.__init__)
# ----------------------------------------------------------------------------
def init_params(key, d_model, d_head, d_ffn, low_rank_dim, d_mlp_inner):
    ks = iter(jax.random.split(key, 24))

    def lin(shape, fan_in):
        return jax.random.normal(next(ks), shape, jnp.float32) * (1.0 / math.sqrt(fan_in))

    return {
        "q_w": lin((d_head, d_model), d_model),          # present but unused downstream
        "k_w": lin((d_head, d_model), d_model),
        "v_w": lin((d_head, d_model), d_model),
        "conv_taps": lin((4, d_head), 4),                # taps[j, c] == conv.weight[c, 0, j]
        "conv_b": lin((1, d_head), 4),
        "eta_w1": lin((low_rank_dim, d_model), d_model),
        "eta_w2": lin((d_head, low_rank_dim), low_rank_dim),
        "delta_w1": lin((low_rank_dim, d_model), d_model),
        "delta_w2": lin((d_head, low_rank_dim), low_rank_dim),
        "alpha_w1": lin((low_rank_dim, d_model), d_model),
        "alpha_w2": lin((d_head, low_rank_dim), low_rank_dim),
        "out_w": lin((d_model, d_head), d_head),
        "gate_w": lin((d_model, d_model), d_model),
        "mem_w1": lin((d_mlp_inner, d_head), d_head),
        "mem_b1": lin((1, d_mlp_inner), d_head),
        "mem_w2": lin((d_head, d_mlp_inner), d_mlp_inner),
        "mem_b2": lin((1, d_head), d_mlp_inner),
        "mlp_w1": lin((d_ffn, d_model), d_model),
        "mlp_w2": lin((d_model, d_ffn), d_ffn),
        "mlp_w3": lin((d_ffn, d_model), d_model),
        "norm1_w": jnp.ones((d_model,), jnp.float32),    # nn.RMSNorm default init
        "norm2_w": jnp.ones((d_model,), jnp.float32),
    }


if __name__ == "__main__":
    B, S = 2, 128                       # 2 chunks of 64 -> exercises memory updates
    d_model, d_head, d_state = 32, 16, 8
    d_ffn, low_rank_dim, expansion_factor = 64, 16, 2
    d_mlp_inner = d_state * expansion_factor

    key = jax.random.PRNGKey(0)
    k_x, k_p = jax.random.split(key)
    x = jax.random.normal(k_x, (B, S, d_model), jnp.float32)
    params = init_params(k_p, d_model, d_head, d_ffn, low_rank_dim, d_mlp_inner)

    fwd = jax.jit(functools.partial(yaad_block_forward, chunk_size=64))
    out = fwd(x, params)
    out = jax.block_until_ready(out)
    assert out.shape == (B, S, d_model) and out.dtype == jnp.float32
    print("KERNEL_OK")
</pallas_src>

<mosaic_0001>
module attributes {stable_mosaic.version = 11 : i64} {
  func.func @_recurrence_kernel(%arg0: i32, %arg1: memref<1x128x48xf32, #tpu.memory_space<vmem>>, %arg2: memref<1x2x32xf32, #tpu.memory_space<vmem>>, %arg3: memref<16x16xf32, #tpu.memory_space<vmem>>, %arg4: memref<1x16xf32, #tpu.memory_space<vmem>>, %arg5: memref<16x16xf32, #tpu.memory_space<vmem>>, %arg6: memref<1x16xf32, #tpu.memory_space<vmem>>, %arg7: memref<1x128x16xf32, #tpu.memory_space<vmem>>) attributes {dimension_semantics = [#tpu.dimension_semantics<parallel>], iteration_bounds = array<i64: 2>, scalar_prefetch = 0 : i64, scratch_operands = 0 : i64, tpu.core_type = #tpu.core_type<tc>, window_params = [{transform_indices = @transform_0, window_bounds = array<i64: 1, 128, 48>}, {transform_indices = @transform_1, window_bounds = array<i64: 1, 2, 32>}, {pipeline_mode = #tpu.pipeline_mode<synchronous>, transform_indices = @transform_2, window_bounds = array<i64: 16, 16>}, {pipeline_mode = #tpu.pipeline_mode<synchronous>, transform_indices = @transform_3, window_bounds = array<i64: 1, 16>}, {pipeline_mode = #tpu.pipeline_mode<synchronous>, transform_indices = @transform_4, window_bounds = array<i64: 16, 16>}, {pipeline_mode = #tpu.pipeline_mode<synchronous>, transform_indices = @transform_5, window_bounds = array<i64: 1, 16>}, {transform_indices = @transform_6, window_bounds = array<i64: 1, 128, 16>}]} {
    %c0 = arith.constant 0 : index
    %c0_0 = arith.constant 0 : index
    %0 = vector.load %arg3[%c0, %c0_0] : memref<16x16xf32, #tpu.memory_space<vmem>>, vector<16x16xf32>
    %c0_1 = arith.constant 0 : index
    %c0_2 = arith.constant 0 : index
    %1 = vector.load %arg4[%c0_1, %c0_2] : memref<1x16xf32, #tpu.memory_space<vmem>>, vector<1x16xf32>
    %c0_3 = arith.constant 0 : index
    %c0_4 = arith.constant 0 : index
    %2 = vector.load %arg5[%c0_3, %c0_4] : memref<16x16xf32, #tpu.memory_space<vmem>>, vector<16x16xf32>
    %c0_5 = arith.constant 0 : index
    %c0_6 = arith.constant 0 : index
    %3 = vector.load %arg6[%c0_5, %c0_6] : memref<1x16xf32, #tpu.memory_space<vmem>>, vector<1x16xf32>
    %c0_i32 = arith.constant 0 : i32
    %c64_i32 = arith.constant 64 : i32
    %4 = arith.muli %c0_i32, %c64_i32 : i32
    %5 = tpu.assume_multiple %4, 64 : i32
    %c0_7 = arith.constant 0 : index
    %6 = arith.index_cast %5 : i32 to index
    %c0_8 = arith.constant 0 : index
    %7 = vector.load %arg1[%c0_7, %6, %c0_8] : memref<1x128x48xf32, #tpu.memory_space<vmem>>, vector<1x64x48xf32>
    %8 = vector.shape_cast %7 : vector<1x64x48xf32> to vector<64x48xf32>
    %9 = vector.extract_strided_slice %8 {offsets = [0, 0], sizes = [64, 16], strides = [1, 1]} : vector<64x48xf32> to vector<64x16xf32>
    %10 = vector.extract_strided_slice %8 {offsets = [0, 16], sizes = [64, 16], strides = [1, 1]} : vector<64x48xf32> to vector<64x16xf32>
    %11 = vector.extract_strided_slice %8 {offsets = [0, 32], sizes = [64, 16], strides = [1, 1]} : vector<64x48xf32> to vector<64x16xf32>
    %c0_9 = arith.constant 0 : index
    %12 = arith.index_cast %c0_i32 : i32 to index
    %c0_10 = arith.constant 0 : index
    %13 = vector.load %arg2[%c0_9, %12, %c0_10] : memref<1x2x32xf32, #tpu.memory_space<vmem>>, vector<1x1x32xf32>
    %14 = vector.shape_cast %13 : vector<1x1x32xf32> to vector<1x32xf32>
    %15 = vector.extract_strided_slice %14 {offsets = [0, 0], sizes = [1, 16], strides = [1, 1]} : vector<1x32xf32> to vector<1x16xf32>
    %16 = vector.extract_strided_slice %14 {offsets = [0, 16], sizes = [1, 16], strides = [1, 1]} : vector<1x32xf32> to vector<1x16xf32>
    %cst = arith.constant dense<0.000000e+00> : vector<64x16xf32>
    %17 = tpu.matmul %9, %0, %cst {dimension_numbers = #tpu.dot_dimension_numbers<[1], [0], [0], [1], [0, 0, 1, 1], [], []>} : vector<64x16xf32>, vector<16x16xf32>, vector<64x16xf32> -> vector<64x16xf32>
    %18 = vector.broadcast %1 : vector<1x16xf32> to vector<64x16xf32>
    %19 = arith.addf %17, %18 : vector<64x16xf32>
    %cst_11 = arith.constant 5.000000e-01 : f32
    %20 = vector.broadcast %cst_11 : f32 to vector<64x16xf32>
    %21 = arith.mulf %20, %19 : vector<64x16xf32>
    %cst_12 = arith.constant 0.707106769 : f32
    %22 = vector.broadcast %cst_12 : f32 to vector<64x16xf32>
    %23 = arith.mulf %19, %22 : vector<64x16xf32>
    %24 = math.erf %23 : vector<64x16xf32>
    %cst_13 = arith.constant 1.000000e+00 : f32
    %25 = vector.broadcast %cst_13 : f32 to vector<64x16xf32>
    %26 = arith.addf %25, %24 : vector<64x16xf32>
    %27 = arith.mulf %21, %26 : vector<64x16xf32>
    %cst_14 = arith.constant dense<0.000000e+00> : vector<64x16xf32>
    %28 = tpu.matmul %27, %2, %cst_14 {dimension_numbers = #tpu.dot_dimension_numbers<[1], [0], [0], [1], [0, 0, 1, 1], [], []>} : vector<64x16xf32>, vector<16x16xf32>, vector<64x16xf32> -> vector<64x16xf32>
    %29 = vector.broadcast %3 : vector<1x16xf32> to vector<64x16xf32>
    %30 = arith.addf %28, %29 : vector<64x16xf32>
    %c0_15 = arith.constant 0 : index
    %31 = arith.index_cast %5 : i32 to index
    %c0_16 = arith.constant 0 : index
    %32 = vector.load %arg7[%c0_15, %31, %c0_16] : memref<1x128x16xf32, #tpu.memory_space<vmem>>, vector<1x64x16xf32>
    %33 = vector.shape_cast %32 : vector<1x64x16xf32> to vector<64x16xf32>
    %34 = vector.shape_cast %30 : vector<64x16xf32> to vector<1x64x16xf32>
    tpu.vector_store %arg7[%c0_15, %31, %c0_16], %34 {strides = array<i32>} : memref<1x128x16xf32, #tpu.memory_space<vmem>>, vector<1x64x16xf32>,
    %35 = arith.subf %30, %10 : vector<64x16xf32>
    %36 = arith.mulf %35, %35 : vector<64x16xf32>
    %cst_17 = arith.constant dense<0.000000e+00> : vector<64xf32>
    %37 = vector.multi_reduction <add>, %36, %cst_17 [1] : vector<64x16xf32> to vector<64xf32>
    %38 = vector.shape_cast %37 : vector<64xf32> to vector<64x1xf32>
    %39 = math.sqrt %38 : vector<64x1xf32>
    %cst_18 = arith.constant 9.99999971E-10 : f32
    %40 = vector.broadcast %cst_18 : f32 to vector<64x1xf32>
    %41 = arith.addf %39, %40 : vector<64x1xf32>
    %42 = vector.broadcast %41 : vector<64x1xf32> to vector<64x16xf32>
    %43 = arith.divf %35, %42 : vector<64x16xf32>
    %44 = arith.mulf %11, %43 : vector<64x16xf32>
    %45 = vector.broadcast %39 : vector<64x1xf32> to vector<64x16xf32>
    %46 = arith.cmpf ogt, %45, %11 : vector<64x16xf32>
    %47 = arith.select %46, %44, %35 : vector<64x16xi1>, vector<64x16xf32>
    %cst_19 = arith.constant dense<0.000000e+00> : vector<1xf32>
    %48 = vector.multi_reduction <add>, %16, %cst_19 [1] : vector<1x16xf32> to vector<1xf32>
    %49 = vector.shape_cast %48 : vector<1xf32> to vector<1x1xf32>
    %cst_20 = arith.constant 1.600000e+01 : f32
    %50 = vector.broadcast %cst_20 : f32 to vector<1x1xf32>
    %51 = arith.divf %49, %50 : vector<1x1xf32>
    %cst_21 = arith.constant dense<0.000000e+00> : vector<1xf32>
    %52 = vector.multi_reduction <add>, %15, %cst_21 [1] : vector<1x16xf32> to vector<1xf32>
    %53 = vector.shape_cast %52 : vector<1xf32> to vector<1x1xf32>
    %cst_22 = arith.constant 1.600000e+01 : f32
    %54 = vector.broadcast %cst_22 : f32 to vector<1x1xf32>
    %55 = arith.divf %53, %54 : vector<1x1xf32>
    %cst_23 = arith.constant dense<0.000000e+00> : vector<16xf32>
    %56 = vector.multi_reduction <add>, %47, %cst_23 [0] : vector<64x16xf32> to vector<16xf32>
    %57 = vector.shape_cast %56 : vector<16xf32> to vector<1x16xf32>
    %cst_24 = arith.constant 6.400000e+01 : f32
    %58 = vector.broadcast %cst_24 : f32 to vector<1x16xf32>
    %59 = arith.divf %57, %58 : vector<1x16xf32>
    %cst_25 = arith.constant dense<0.000000e+00> : vector<16xf32>
    %60 = vector.multi_reduction <add>, %27, %cst_25 [0] : vector<64x16xf32> to vector<16xf32>
    %61 = vector.shape_cast %60 : vector<16xf32> to vector<1x16xf32>
    %cst_26 = arith.constant 6.400000e+01 : f32
    %62 = vector.broadcast %cst_26 : f32 to vector<1x16xf32>
    %63 = arith.divf %61, %62 : vector<1x16xf32>
    %64 = vector.broadcast %51 : vector<1x1xf32> to vector<16x16xf32>
    %65 = arith.mulf %64, %0 : vector<16x16xf32>
    %66 = tpu.transpose %59, [1, 0] : vector<1x16xf32> -> vector<16x1xf32>
    %67 = vector.broadcast %66 : vector<16x1xf32> to vector<16x16xf32>
    %68 = vector.broadcast %63 : vector<1x16xf32> to vector<16x16xf32>
    %69 = arith.mulf %67, %68 : vector<16x16xf32>
    %70 = vector.broadcast %55 : vector<1x1xf32> to vector<16x16xf32>
    %71 = arith.mulf %70, %69 : vector<16x16xf32>
    %72 = arith.subf %65, %71 : vector<16x16xf32>
    %73 = vector.broadcast %51 : vector<1x1xf32> to vector<16x16xf32>
    %74 = arith.mulf %73, %2 : vector<16x16xf32>
    %75 = tpu.transpose %63, [1, 0] : vector<1x16xf32> -> vector<16x1xf32>
    %76 = vector.broadcast %75 : vector<16x1xf32> to vector<16x16xf32>
    %77 = vector.broadcast %59 : vector<1x16xf32> to vector<16x16xf32>
    %78 = arith.mulf %76, %77 : vector<16x16xf32>
    %79 = vector.broadcast %55 : vector<1x1xf32> to vector<16x16xf32>
    %80 = arith.mulf %79, %78 : vector<16x16xf32>
    %81 = arith.subf %74, %80 : vector<16x16xf32>
    %82 = tpu.transpose %2, [1, 0] : vector<16x16xf32> -> vector<16x16xf32>
    %cst_27 = arith.constant dense<0.000000e+00> : vector<64x16xf32>
    %83 = tpu.matmul %47, %82, %cst_27 {dimension_numbers = #tpu.dot_dimension_numbers<[1], [0], [0], [1], [0, 0, 1, 1], [], []>} : vector<64x16xf32>, vector<16x16xf32>, vector<64x16xf32> -> vector<64x16xf32>
    %cst_28 = arith.constant dense<0.000000e+00> : vector<16xf32>
    %84 = vector.multi_reduction <add>, %83, %cst_28 [0] : vector<64x16xf32> to vector<16xf32>
    %85 = vector.shape_cast %84 : vector<16xf32> to vector<1x16xf32>
    %cst_29 = arith.constant 6.400000e+01 : f32
    %86 = vector.broadcast %cst_29 : f32 to vector<1x16xf32>
    %87 = arith.divf %85, %86 : vector<1x16xf32>
    %88 = arith.mulf %16, %3 : vector<1x16xf32>
    %89 = arith.mulf %15, %59 : vector<1x16xf32>
    %90 = arith.subf %88, %89 : vector<1x16xf32>
    %91 = vector.broadcast %51 : vector<1x1xf32> to vector<1x16xf32>
    %92 = arith.mulf %91, %1 : vector<1x16xf32>
    %93 = vector.broadcast %55 : vector<1x1xf32> to vector<1x16xf32>
    %94 = arith.mulf %93, %87 : vector<1x16xf32>
    %95 = arith.subf %92, %94 : vector<1x16xf32>
    %c1_i32 = arith.constant 1 : i32
    %c64_i32_30 = arith.constant 64 : i32
    %96 = arith.muli %c1_i32, %c64_i32_30 : i32
    %97 = tpu.assume_multiple %96, 64 : i32
    %c0_31 = arith.constant 0 : index
    %98 = arith.index_cast %97 : i32 to index
    %c0_32 = arith.constant 0 : index
    %99 = vector.load %arg1[%c0_31, %98, %c0_32] : memref<1x128x48xf32, #tpu.memory_space<vmem>>, vector<1x64x48xf32>
    %100 = vector.shape_cast %99 : vector<1x64x48xf32> to vector<64x48xf32>
    %101 = vector.extract_strided_slice %100 {offsets = [0, 0], sizes = [64, 16], strides = [1, 1]} : vector<64x48xf32> to vector<64x16xf32>
    %102 = vector.extract_strided_slice %100 {offsets = [0, 16], sizes = [64, 16], strides = [1, 1]} : vector<64x48xf32> to vector<64x16xf32>
    %103 = vector.extract_strided_slice %100 {offsets = [0, 32], sizes = [64, 16], strides = [1, 1]} : vector<64x48xf32> to vector<64x16xf32>
    %c0_33 = arith.constant 0 : index
    %104 = arith.index_cast %c1_i32 : i32 to index
    %c0_34 = arith.constant 0 : index
    %105 = vector.load %arg2[%c0_33, %104, %c0_34] : memref<1x2x32xf32, #tpu.memory_space<vmem>>, vector<1x1x32xf32>
    %106 = vector.shape_cast %105 : vector<1x1x32xf32> to vector<1x32xf32>
    %107 = vector.extract_strided_slice %106 {offsets = [0, 0], sizes = [1, 16], strides = [1, 1]} : vector<1x32xf32> to vector<1x16xf32>
    %108 = vector.extract_strided_slice %106 {offsets = [0, 16], sizes = [1, 16], strides = [1, 1]} : vector<1x32xf32> to vector<1x16xf32>
    %cst_35 = arith.constant dense<0.000000e+00> : vector<64x16xf32>
    %109 = tpu.matmul %101, %72, %cst_35 {dimension_numbers = #tpu.dot_dimension_numbers<[1], [0], [0], [1], [0, 0, 1, 1], [], []>} : vector<64x16xf32>, vector<16x16xf32>, vector<64x16xf32> -> vector<64x16xf32>
    %110 = vector.broadcast %95 : vector<1x16xf32> to vector<64x16xf32>
    %111 = arith.addf %109, %110 : vector<64x16xf32>
    %cst_36 = arith.constant 5.000000e-01 : f32
    %112 = vector.broadcast %cst_36 : f32 to vector<64x16xf32>
    %113 = arith.mulf %112, %111 : vector<64x16xf32>
    %cst_37 = arith.constant 0.707106769 : f32
    %114 = vector.broadcast %cst_37 : f32 to vector<64x16xf32>
    %115 = arith.mulf %111, %114 : vector<64x16xf32>
    %116 = math.erf %115 : vector<64x16xf32>
    %cst_38 = arith.constant 1.000000e+00 : f32
    %117 = vector.broadcast %cst_38 : f32 to vector<64x16xf32>
    %118 = arith.addf %117, %116 : vector<64x16xf32>
    %119 = arith.mulf %113, %118 : vector<64x16xf32>
    %cst_39 = arith.constant dense<0.000000e+00> : vector<64x16xf32>
    %120 = tpu.matmul %119, %81, %cst_39 {dimension_numbers = #tpu.dot_dimension_numbers<[1], [0], [0], [1], [0, 0, 1, 1], [], []>} : vector<64x16xf32>, vector<16x16xf32>, vector<64x16xf32> -> vector<64x16xf32>
    %121 = vector.broadcast %90 : vector<1x16xf32> to vector<64x16xf32>
    %122 = arith.addf %120, %121 : vector<64x16xf32>
    %c0_40 = arith.constant 0 : index
    %123 = arith.index_cast %97 : i32 to index
    %c0_41 = arith.constant 0 : index
    %124 = vector.load %arg7[%c0_40, %123, %c0_41] : memref<1x128x16xf32, #tpu.memory_space<vmem>>, vector<1x64x16xf32>
    %125 = vector.shape_cast %124 : vector<1x64x16xf32> to vector<64x16xf32>
    %126 = vector.shape_cast %122 : vector<64x16xf32> to vector<1x64x16xf32>
    tpu.vector_store %arg7[%c0_40, %123, %c0_41], %126 {strides = array<i32>} : memref<1x128x16xf32, #tpu.memory_space<vmem>>, vector<1x64x16xf32>,
    %127 = arith.subf %122, %102 : vector<64x16xf32>
    %128 = arith.mulf %127, %127 : vector<64x16xf32>
    %cst_42 = arith.constant dense<0.000000e+00> : vector<64xf32>
    %129 = vector.multi_reduction <add>, %128, %cst_42 [1] : vector<64x16xf32> to vector<64xf32>
    %130 = vector.shape_cast %129 : vector<64xf32> to vector<64x1xf32>
    %131 = math.sqrt %130 : vector<64x1xf32>
    %cst_43 = arith.constant 9.99999971E-10 : f32
    %132 = vector.broadcast %cst_43 : f32 to vector<64x1xf32>
    %133 = arith.addf %131, %132 : vector<64x1xf32>
    %134 = vector.broadcast %133 : vector<64x1xf32> to vector<64x16xf32>
    %135 = arith.divf %127, %134 : vector<64x16xf32>
    %136 = arith.mulf %103, %135 : vector<64x16xf32>
    %137 = vector.broadcast %131 : vector<64x1xf32> to vector<64x16xf32>
    %138 = arith.cmpf ogt, %137, %103 : vector<64x16xf32>
    %139 = arith.select %138, %136, %127 : vector<64x16xi1>, vector<64x16xf32>
    %cst_44 = arith.constant dense<0.000000e+00> : vector<1xf32>
    %140 = vector.multi_reduction <add>, %108, %cst_44 [1] : vector<1x16xf32> to vector<1xf32>
    %141 = vector.shape_cast %140 : vector<1xf32> to vector<1x1xf32>
    %cst_45 = arith.constant 1.600000e+01 : f32
    %142 = vector.broadcast %cst_45 : f32 to vector<1x1xf32>
    %143 = arith.divf %141, %142 : vector<1x1xf32>
    %cst_46 = arith.constant dense<0.000000e+00> : vector<1xf32>
    %144 = vector.multi_reduction <add>, %107, %cst_46 [1] : vector<1x16xf32> to vector<1xf32>
    %145 = vector.shape_cast %144 : vector<1xf32> to vector<1x1xf32>
    %cst_47 = arith.constant 1.600000e+01 : f32
    %146 = vector.broadcast %cst_47 : f32 to vector<1x1xf32>
    %147 = arith.divf %145, %146 : vector<1x1xf32>
    %cst_48 = arith.constant dense<0.000000e+00> : vector<16xf32>
    %148 = vector.multi_reduction <add>, %139, %cst_48 [0] : vector<64x16xf32> to vector<16xf32>
    %149 = vector.shape_cast %148 : vector<16xf32> to vector<1x16xf32>
    %cst_49 = arith.constant 6.400000e+01 : f32
    %150 = vector.broadcast %cst_49 : f32 to vector<1x16xf32>
    %151 = arith.divf %149, %150 : vector<1x16xf32>
    %cst_50 = arith.constant dense<0.000000e+00> : vector<16xf32>
    %152 = vector.multi_reduction <add>, %119, %cst_50 [0] : vector<64x16xf32> to vector<16xf32>
    %153 = vector.shape_cast %152 : vector<16xf32> to vector<1x16xf32>
    %cst_51 = arith.constant 6.400000e+01 : f32
    %154 = vector.broadcast %cst_51 : f32 to vector<1x16xf32>
    %155 = arith.divf %153, %154 : vector<1x16xf32>
    %156 = vector.broadcast %143 : vector<1x1xf32> to vector<16x16xf32>
    %157 = arith.mulf %156, %72 : vector<16x16xf32>
    %158 = tpu.transpose %151, [1, 0] : vector<1x16xf32> -> vector<16x1xf32>
    %159 = vector.broadcast %158 : vector<16x1xf32> to vector<16x16xf32>
    %160 = vector.broadcast %155 : vector<1x16xf32> to vector<16x16xf32>
    %161 = arith.mulf %159, %160 : vector<16x16xf32>
    %162 = vector.broadcast %147 : vector<1x1xf32> to vector<16x16xf32>
    %163 = arith.mulf %162, %161 : vector<16x16xf32>
    %164 = arith.subf %157, %163 : vector<16x16xf32>
    %165 = vector.broadcast %143 : vector<1x1xf32> to vector<16x16xf32>
    %166 = arith.mulf %165, %81 : vector<16x16xf32>
    %167 = tpu.transpose %155, [1, 0] : vector<1x16xf32> -> vector<16x1xf32>
    %168 = vector.broadcast %167 : vector<16x1xf32> to vector<16x16xf32>
    %169 = vector.broadcast %151 : vector<1x16xf32> to vector<16x16xf32>
    %170 = arith.mulf %168, %169 : vector<16x16xf32>
    %171 = vector.broadcast %147 : vector<1x1xf32> to vector<16x16xf32>
    %172 = arith.mulf %171, %170 : vector<16x16xf32>
    %173 = arith.subf %166, %172 : vector<16x16xf32>
    %174 = tpu.transpose %81, [1, 0] : vector<16x16xf32> -> vector<16x16xf32>
    %cst_52 = arith.constant dense<0.000000e+00> : vector<64x16xf32>
    %175 = tpu.matmul %139, %174, %cst_52 {dimension_numbers = #tpu.dot_dimension_numbers<[1], [0], [0], [1], [0, 0, 1, 1], [], []>} : vector<64x16xf32>, vector<16x16xf32>, vector<64x16xf32> -> vector<64x16xf32>
    %cst_53 = arith.constant dense<0.000000e+00> : vector<16xf32>
    %176 = vector.multi_reduction <add>, %175, %cst_53 [0] : vector<64x16xf32> to vector<16xf32>
    %177 = vector.shape_cast %176 : vector<16xf32> to vector<1x16xf32>
    %cst_54 = arith.constant 6.400000e+01 : f32
    %178 = vector.broadcast %cst_54 : f32 to vector<1x16xf32>
    %179 = arith.divf %177, %178 : vector<1x16xf32>
    %180 = arith.mulf %108, %90 : vector<1x16xf32>
    %181 = arith.mulf %107, %151 : vector<1x16xf32>
    %182 = arith.subf %180, %181 : vector<1x16xf32>
    %183 = vector.broadcast %143 : vector<1x1xf32> to vector<1x16xf32>
    %184 = arith.mulf %183, %95 : vector<1x16xf32>
    %185 = vector.broadcast %147 : vector<1x1xf32> to vector<1x16xf32>
    %186 = arith.mulf %185, %179 : vector<1x16xf32>
    %187 = arith.subf %184, %186 : vector<1x16xf32>
    %c2_i32 = arith.constant 2 : i32
    return
  }
  func.func @transform_0(%arg0: i32) -> (i32, i32, i32) {
    %c0_i32 = arith.constant 0 : i32
    %c0_i32_0 = arith.constant 0 : i32
    %c0_i32_1 = arith.constant 0 : i32
    return %arg0, %c0_i32, %c0_i32_0 : i32, i32, i32
  }
  func.func @transform_1(%arg0: i32) -> (i32, i32, i32) {
    %c0_i32 = arith.constant 0 : i32
    %c0_i32_0 = arith.constant 0 : i32
    %c0_i32_1 = arith.constant 0 : i32
    return %arg0, %c0_i32, %c0_i32_0 : i32, i32, i32
  }
  func.func @transform_2(%arg0: i32) -> (i32, i32) {
    %c0_i32 = arith.constant 0 : i32
    %c0_i32_0 = arith.constant 0 : i32
    %c0_i32_1 = arith.constant 0 : i32
    return %c0_i32, %c0_i32_0 : i32, i32
  }
  func.func @transform_3(%arg0: i32) -> (i32, i32) {
    %c0_i32 = arith.constant 0 : i32
    %c0_i32_0 = arith.constant 0 : i32
    %c0_i32_1 = arith.constant 0 : i32
    return %c0_i32, %c0_i32_0 : i32, i32
  }
  func.func @transform_4(%arg0: i32) -> (i32, i32) {
    %c0_i32 = arith.constant 0 : i32
    %c0_i32_0 = arith.constant 0 : i32
    %c0_i32_1 = arith.constant 0 : i32
    return %c0_i32, %c0_i32_0 : i32, i32
  }
  func.func @transform_5(%arg0: i32) -> (i32, i32) {
    %c0_i32 = arith.constant 0 : i32
    %c0_i32_0 = arith.constant 0 : i32
    %c0_i32_1 = arith.constant 0 : i32
    return %c0_i32, %c0_i32_0 : i32, i32
  }
  func.func @transform_6(%arg0: i32) -> (i32, i32, i32) {
    %c0_i32 = arith.constant 0 : i32
    %c0_i32_0 = arith.constant 0 : i32
    %c0_i32_1 = arith.constant 0 : i32
    return %arg0, %c0_i32, %c0_i32_0 : i32, i32, i32
  }
}

module attributes {stable_mosaic.version = 11 : i64} {
  func.func @_tail_kernel(%arg0: i32, %arg1: memref<256x32xf32, #tpu.memory_space<vmem>>, %arg2: memref<256x16xf32, #tpu.memory_space<vmem>>, %arg3: memref<256x32xf32, #tpu.memory_space<vmem>>, %arg4: memref<16x32xf32, #tpu.memory_space<vmem>>, %arg5: memref<1x32xf32, #tpu.memory_space<vmem>>, %arg6: memref<32x128xf32, #tpu.memory_space<vmem>>, %arg7: memref<64x32xf32, #tpu.memory_space<vmem>>, %arg8: memref<256x32xf32, #tpu.memory_space<vmem>>) attributes {dimension_semantics = [#tpu.dimension_semantics<parallel>], iteration_bounds = array<i64: 1>, scalar_prefetch = 0 : i64, scratch_operands = 0 : i64, tpu.core_type = #tpu.core_type<tc>, window_params = [{transform_indices = @transform_0, window_bounds = array<i64: 256, 32>}, {transform_indices = @transform_1, window_bounds = array<i64: 256, 16>}, {transform_indices = @transform_2, window_bounds = array<i64: 256, 32>}, {pipeline_mode = #tpu.pipeline_mode<synchronous>, transform_indices = @transform_3, window_bounds = array<i64: 16, 32>}, {pipeline_mode = #tpu.pipeline_mode<synchronous>, transform_indices = @transform_4, window_bounds = array<i64: 1, 32>}, {pipeline_mode = #tpu.pipeline_mode<synchronous>, transform_indices = @transform_5, window_bounds = array<i64: 32, 128>}, {pipeline_mode = #tpu.pipeline_mode<synchronous>, transform_indices = @transform_6, window_bounds = array<i64: 64, 32>}, {transform_indices = @transform_7, window_bounds = array<i64: 256, 32>}]} {
    %c0 = arith.constant 0 : index
    %c0_0 = arith.constant 0 : index
    %0 = vector.load %arg1[%c0, %c0_0] : memref<256x32xf32, #tpu.memory_space<vmem>>, vector<256x32xf32>
    %c0_1 = arith.constant 0 : index
    %c0_2 = arith.constant 0 : index
    %1 = vector.load %arg2[%c0_1, %c0_2] : memref<256x16xf32, #tpu.memory_space<vmem>>, vector<256x16xf32>
    %c0_3 = arith.constant 0 : index
    %c0_4 = arith.constant 0 : index
    %2 = vector.load %arg4[%c0_3, %c0_4] : memref<16x32xf32, #tpu.memory_space<vmem>>, vector<16x32xf32>
    %cst = arith.constant dense<0.000000e+00> : vector<256x32xf32>
    %3 = tpu.matmul %1, %2, %cst {dimension_numbers = #tpu.dot_dimension_numbers<[1], [0], [0], [1], [0, 0, 1, 1], [], []>} : vector<256x16xf32>, vector<16x32xf32>, vector<256x32xf32> -> vector<256x32xf32>
    %c0_5 = arith.constant 0 : index
    %c0_6 = arith.constant 0 : index
    %4 = vector.load %arg3[%c0_5, %c0_6] : memref<256x32xf32, #tpu.memory_space<vmem>>, vector<256x32xf32>
    %5 = arith.mulf %3, %4 : vector<256x32xf32>
    %6 = arith.addf %0, %5 : vector<256x32xf32>
    %c0_7 = arith.constant 0 : index
    %c0_8 = arith.constant 0 : index
    %7 = vector.load %arg5[%c0_7, %c0_8] : memref<1x32xf32, #tpu.memory_space<vmem>>, vector<1x32xf32>
    %8 = arith.mulf %6, %6 : vector<256x32xf32>
    %cst_9 = arith.constant dense<0.000000e+00> : vector<256xf32>
    %9 = vector.multi_reduction <add>, %8, %cst_9 [1] : vector<256x32xf32> to vector<256xf32>
    %10 = vector.shape_cast %9 : vector<256xf32> to vector<256x1xf32>
    %cst_10 = arith.constant 3.200000e+01 : f32
    %11 = vector.broadcast %cst_10 : f32 to vector<256x1xf32>
    %12 = arith.divf %10, %11 : vector<256x1xf32>
    %cst_11 = arith.constant 1.1920929E-7 : f32
    %13 = vector.broadcast %cst_11 : f32 to vector<256x1xf32>
    %14 = arith.addf %12, %13 : vector<256x1xf32>
    %15 = math.rsqrt %14 : vector<256x1xf32>
    %16 = vector.broadcast %15 : vector<256x1xf32> to vector<256x32xf32>
    %17 = arith.mulf %6, %16 : vector<256x32xf32>
    %18 = vector.broadcast %7 : vector<1x32xf32> to vector<256x32xf32>
    %19 = arith.mulf %17, %18 : vector<256x32xf32>
    %c0_12 = arith.constant 0 : index
    %c0_13 = arith.constant 0 : index
    %20 = vector.load %arg6[%c0_12, %c0_13] : memref<32x128xf32, #tpu.memory_space<vmem>>, vector<32x128xf32>
    %cst_14 = arith.constant dense<0.000000e+00> : vector<256x128xf32>
    %21 = tpu.matmul %19, %20, %cst_14 {dimension_numbers = #tpu.dot_dimension_numbers<[1], [0], [0], [1], [0, 0, 1, 1], [], []>} : vector<256x32xf32>, vector<32x128xf32>, vector<256x128xf32> -> vector<256x128xf32>
    %22 = vector.extract_strided_slice %21 {offsets = [0, 0], sizes = [256, 64], strides = [1, 1]} : vector<256x128xf32> to vector<256x64xf32>
    %23 = vector.extract_strided_slice %21 {offsets = [0, 64], sizes = [256, 64], strides = [1, 1]} : vector<256x128xf32> to vector<256x64xf32>
    %cst_15 = arith.constant 0.000000e+00 : f32
    %24 = vector.broadcast %cst_15 : f32 to vector<256x64xf32>
    %25 = arith.subf %24, %22 : vector<256x64xf32>
    %26 = math.exp %25 : vector<256x64xf32>
    %cst_16 = arith.constant 1.000000e+00 : f32
    %27 = vector.broadcast %cst_16 : f32 to vector<256x64xf32>
    %28 = arith.addf %27, %26 : vector<256x64xf32>
    %cst_17 = arith.constant 1.000000e+00 : f32
    %29 = vector.broadcast %cst_17 : f32 to vector<256x64xf32>
    %30 = arith.divf %29, %28 : vector<256x64xf32>
    %31 = arith.mulf %22, %30 : vector<256x64xf32>
    %32 = arith.mulf %31, %23 : vector<256x64xf32>
    %c0_18 = arith.constant 0 : index
    %c0_19 = arith.constant 0 : index
    %33 = vector.load %arg7[%c0_18, %c0_19] : memref<64x32xf32, #tpu.memory_space<vmem>>, vector<64x32xf32>
    %cst_20 = arith.constant dense<0.000000e+00> : vector<256x32xf32>
    %34 = tpu.matmul %32, %33, %cst_20 {dimension_numbers = #tpu.dot_dimension_numbers<[1], [0], [0], [1], [0, 0, 1, 1], [], []>} : vector<256x64xf32>, vector<64x32xf32>, vector<256x32xf32> -> vector<256x32xf32>
    %35 = arith.addf %6, %34 : vector<256x32xf32>
    %c0_21 = arith.constant 0 : index
    %c0_22 = arith.constant 0 : index
    %36 = vector.load %arg8[%c0_21, %c0_22] : memref<256x32xf32, #tpu.memory_space<vmem>>, vector<256x32xf32>
    tpu.vector_store %arg8[%c0_21, %c0_22], %35 {strides = array<i32>} : memref<256x32xf32, #tpu.memory_space<vmem>>, vector<256x32xf32>,
    return
  }
  func.func @transform_0(%arg0: i32) -> (i32, i32) {
    %c0_i32 = arith.constant 0 : i32
    %c0_i32_0 = arith.constant 0 : i32
    return %arg0, %c0_i32 : i32, i32
  }
  func.func @transform_1(%arg0: i32) -> (i32, i32) {
    %c0_i32 = arith.constant 0 : i32
    %c0_i32_0 = arith.constant 0 : i32
    return %arg0, %c0_i32 : i32, i32
  }
  func.func @transform_2(%arg0: i32) -> (i32, i32) {
    %c0_i32 = arith.constant 0 : i32
    %c0_i32_0 = arith.constant 0 : i32
    return %arg0, %c0_i32 : i32, i32
  }
  func.func @transform_3(%arg0: i32) -> (i32, i32) {
    %c0_i32 = arith.constant 0 : i32
    %c0_i32_0 = arith.constant 0 : i32
    %c0_i32_1 = arith.constant 0 : i32
    return %c0_i32, %c0_i32_0 : i32, i32
  }
  func.func @transform_4(%arg0: i32) -> (i32, i32) {
    %c0_i32 = arith.constant 0 : i32
    %c0_i32_0 = arith.constant 0 : i32
    %c0_i32_1 = arith.constant 0 : i32
    return %c0_i32, %c0_i32_0 : i32, i32
  }
  func.func @transform_5(%arg0: i32) -> (i32, i32) {
    %c0_i32 = arith.constant 0 : i32
    %c0_i32_0 = arith.constant 0 : i32
    %c0_i32_1 = arith.constant 0 : i32
    return %c0_i32, %c0_i32_0 : i32, i32
  }
  func.func @transform_6(%arg0: i32) -> (i32, i32) {
    %c0_i32 = arith.constant 0 : i32
    %c0_i32_0 = arith.constant 0 : i32
    %c0_i32_1 = arith.constant 0 : i32
    return %c0_i32, %c0_i32_0 : i32, i32
  }
  func.func @transform_7(%arg0: i32) -> (i32, i32) {
    %c0_i32 = arith.constant 0 : i32
    %c0_i32_0 = arith.constant 0 : i32
    return %arg0, %c0_i32 : i32, i32
  }
}

module attributes {stable_mosaic.version = 11 : i64} {
  func.func @_proj_kernel(%arg0: i32, %arg1: memref<1x128x32xf32, #tpu.memory_space<vmem>>, %arg2: memref<1x2x32xf32, #tpu.memory_space<vmem>>, %arg3: memref<1x32xf32, #tpu.memory_space<vmem>>, %arg4: memref<32x80xf32, #tpu.memory_space<vmem>>, %arg5: memref<16x16xf32, #tpu.memory_space<vmem>>, %arg6: memref<32x32xf32, #tpu.memory_space<vmem>>, %arg7: memref<16x16xf32, #tpu.memory_space<vmem>>, %arg8: memref<16x16xf32, #tpu.memory_space<vmem>>, %arg9: memref<4x16xf32, #tpu.memory_space<vmem>>, %arg10: memref<1x16xf32, #tpu.memory_space<vmem>>, %arg11: memref<1x128x48xf32, #tpu.memory_space<vmem>>, %arg12: memref<1x128x32xf32, #tpu.memory_space<vmem>>, %arg13: memref<1x2x32xf32, #tpu.memory_space<vmem>>) attributes {dimension_semantics = [#tpu.dimension_semantics<parallel>], iteration_bounds = array<i64: 2>, scalar_prefetch = 0 : i64, scratch_operands = 0 : i64, tpu.core_type = #tpu.core_type<tc>, window_params = [{transform_indices = @transform_0, window_bounds = array<i64: 1, 128, 32>}, {transform_indices = @transform_1, window_bounds = array<i64: 1, 2, 32>}, {pipeline_mode = #tpu.pipeline_mode<synchronous>, transform_indices = @transform_2, window_bounds = array<i64: 1, 32>}, {pipeline_mode = #tpu.pipeline_mode<synchronous>, transform_indices = @transform_3, window_bounds = array<i64: 32, 80>}, {pipeline_mode = #tpu.pipeline_mode<synchronous>, transform_indices = @transform_4, window_bounds = array<i64: 16, 16>}, {pipeline_mode = #tpu.pipeline_mode<synchronous>, transform_indices = @transform_5, window_bounds = array<i64: 32, 32>}, {pipeline_mode = #tpu.pipeline_mode<synchronous>, transform_indices = @transform_6, window_bounds = array<i64: 16, 16>}, {pipeline_mode = #tpu.pipeline_mode<synchronous>, transform_indices = @transform_7, window_bounds = array<i64: 16, 16>}, {pipeline_mode = #tpu.pipeline_mode<synchronous>, transform_indices = @transform_8, window_bounds = array<i64: 4, 16>}, {pipeline_mode = #tpu.pipeline_mode<synchronous>, transform_indices = @transform_9, window_bounds = array<i64: 1, 16>}, {transform_indices = @transform_10, window_bounds = array<i64: 1, 128, 48>}, {transform_indices = @transform_11, window_bounds = array<i64: 1, 128, 32>}, {transform_indices = @transform_12, window_bounds = array<i64: 1, 2, 32>}]} {
    %c0 = arith.constant 0 : index
    %c0_0 = arith.constant 0 : index
    %c0_1 = arith.constant 0 : index
    %0 = vector.load %arg1[%c0, %c0_0, %c0_1] : memref<1x128x32xf32, #tpu.memory_space<vmem>>, vector<1x128x32xf32>
    %1 = vector.shape_cast %0 : vector<1x128x32xf32> to vector<128x32xf32>
    %c0_2 = arith.constant 0 : index
    %c0_3 = arith.constant 0 : index
    %2 = vector.load %arg3[%c0_2, %c0_3] : memref<1x32xf32, #tpu.memory_space<vmem>>, vector<1x32xf32>
    %3 = arith.mulf %1, %1 : vector<128x32xf32>
    %cst = arith.constant dense<0.000000e+00> : vector<128xf32>
    %4 = vector.multi_reduction <add>, %3, %cst [1] : vector<128x32xf32> to vector<128xf32>
    %5 = vector.shape_cast %4 : vector<128xf32> to vector<128x1xf32>
    %cst_4 = arith.constant 3.200000e+01 : f32
    %6 = vector.broadcast %cst_4 : f32 to vector<128x1xf32>
    %7 = arith.divf %5, %6 : vector<128x1xf32>
    %cst_5 = arith.constant 1.1920929E-7 : f32
    %8 = vector.broadcast %cst_5 : f32 to vector<128x1xf32>
    %9 = arith.addf %7, %8 : vector<128x1xf32>
    %10 = math.rsqrt %9 : vector<128x1xf32>
    %11 = vector.broadcast %10 : vector<128x1xf32> to vector<128x32xf32>
    %12 = arith.mulf %1, %11 : vector<128x32xf32>
    %13 = vector.broadcast %2 : vector<1x32xf32> to vector<128x32xf32>
    %14 = arith.mulf %12, %13 : vector<128x32xf32>
    %c0_6 = arith.constant 0 : index
    %c0_7 = arith.constant 0 : index
    %15 = vector.load %arg4[%c0_6, %c0_7] : memref<32x80xf32, #tpu.memory_space<vmem>>, vector<32x80xf32>
    %cst_8 = arith.constant dense<0.000000e+00> : vector<128x80xf32>
    %16 = tpu.matmul %14, %15, %cst_8 {dimension_numbers = #tpu.dot_dimension_numbers<[1], [0], [0], [1], [0, 0, 1, 1], [], []>} : vector<128x32xf32>, vector<32x80xf32>, vector<128x80xf32> -> vector<128x80xf32>
    %17 = vector.extract_strided_slice %16 {offsets = [0, 0], sizes = [128, 16], strides = [1, 1]} : vector<128x80xf32> to vector<128x16xf32>
    %18 = vector.extract_strided_slice %16 {offsets = [0, 16], sizes = [128, 16], strides = [1, 1]} : vector<128x80xf32> to vector<128x16xf32>
    %19 = vector.extract_strided_slice %16 {offsets = [0, 32], sizes = [128, 16], strides = [1, 1]} : vector<128x80xf32> to vector<128x16xf32>
    %20 = vector.extract_strided_slice %16 {offsets = [0, 48], sizes = [128, 32], strides = [1, 1]} : vector<128x80xf32> to vector<128x32xf32>
    %c0_9 = arith.constant 0 : index
    %c0_10 = arith.constant 0 : index
    %21 = vector.load %arg5[%c0_9, %c0_10] : memref<16x16xf32, #tpu.memory_space<vmem>>, vector<16x16xf32>
    %cst_11 = arith.constant dense<0.000000e+00> : vector<128x16xf32>
    %22 = tpu.matmul %19, %21, %cst_11 {dimension_numbers = #tpu.dot_dimension_numbers<[1], [0], [0], [1], [0, 0, 1, 1], [], []>} : vector<128x16xf32>, vector<16x16xf32>, vector<128x16xf32> -> vector<128x16xf32>
    %cst_12 = arith.constant 0.000000e+00 : f32
    %23 = vector.broadcast %cst_12 : f32 to vector<128x16xf32>
    %24 = arith.maximumf %22, %23 : vector<128x16xf32>
    %25 = math.absf %22 : vector<128x16xf32>
    %cst_13 = arith.constant 0.000000e+00 : f32
    %26 = vector.broadcast %cst_13 : f32 to vector<128x16xf32>
    %27 = arith.subf %26, %25 : vector<128x16xf32>
    %28 = math.exp %27 : vector<128x16xf32>
    %cst_14 = arith.constant 1.000000e+00 : f32
    %29 = vector.broadcast %cst_14 : f32 to vector<128x16xf32>
    %30 = arith.addf %29, %28 : vector<128x16xf32>
    %31 = math.log %30 : vector<128x16xf32>
    %32 = arith.addf %24, %31 : vector<128x16xf32>
    %cst_15 = arith.constant 0.000000e+00 : f32
    %33 = vector.broadcast %cst_15 : f32 to vector<128x32xf32>
    %34 = arith.subf %33, %20 : vector<128x32xf32>
    %35 = math.exp %34 : vector<128x32xf32>
    %cst_16 = arith.constant 1.000000e+00 : f32
    %36 = vector.broadcast %cst_16 : f32 to vector<128x32xf32>
    %37 = arith.addf %36, %35 : vector<128x32xf32>
    %cst_17 = arith.constant 1.000000e+00 : f32
    %38 = vector.broadcast %cst_17 : f32 to vector<128x32xf32>
    %39 = arith.divf %38, %37 : vector<128x32xf32>
    %c0_18 = arith.constant 0 : index
    %c0_19 = arith.constant 0 : index
    %c0_20 = arith.constant 0 : index
    %40 = vector.load %arg12[%c0_18, %c0_19, %c0_20] : memref<1x128x32xf32, #tpu.memory_space<vmem>>, vector<1x128x32xf32>
    %41 = vector.shape_cast %40 : vector<1x128x32xf32> to vector<128x32xf32>
    %42 = vector.shape_cast %39 : vector<128x32xf32> to vector<1x128x32xf32>
    tpu.vector_store %arg12[%c0_18, %c0_19, %c0_20], %42 {strides = array<i32>} : memref<1x128x32xf32, #tpu.memory_space<vmem>>, vector<1x128x32xf32>,
    %c0_21 = arith.constant 0 : index
    %c0_22 = arith.constant 0 : index
    %43 = vector.load %arg9[%c0_21, %c0_22] : memref<4x16xf32, #tpu.memory_space<vmem>>, vector<4x16xf32>
    %c0_23 = arith.constant 0 : index
    %c0_24 = arith.constant 0 : index
    %44 = vector.load %arg10[%c0_23, %c0_24] : memref<1x16xf32, #tpu.memory_space<vmem>>, vector<1x16xf32>
    %45 = tpu.iota {dimensions = array<i32: 0>} : vector<128x1xi32>
    %cst_25 = arith.constant 0.000000e+00 : f32
    %46 = vector.broadcast %cst_25 : f32 to vector<128x16xf32>
    %47 = vector.broadcast %44 : vector<1x16xf32> to vector<128x16xf32>
    %48 = arith.addf %46, %47 : vector<128x16xf32>
    %c3_i32 = arith.constant 3 : i32
    %49 = tpu.dynamic_rotate %17 by %c3_i32 dim 0 : vector<128x16xf32>, i32 -> vector<128x16xf32>
    %c3_i32_26 = arith.constant 3 : i32
    %50 = vector.broadcast %c3_i32_26 : i32 to vector<128x1xi32>
    %51 = arith.cmpi sge, %45, %50 : vector<128x1xi32>
    %cst_27 = arith.constant 0.000000e+00 : f32
    %52 = vector.shape_cast %51 : vector<128x1xi1> to vector<128x1xi1>
    %53 = vector.broadcast %52 : vector<128x1xi1> to vector<128x16xi1>
    %54 = vector.broadcast %cst_27 : f32 to vector<128x16xf32>
    %55 = arith.select %53, %49, %54 : vector<128x16xi1>, vector<128x16xf32>
    %56 = vector.extract_strided_slice %43 {offsets = [0, 0], sizes = [1, 16], strides = [1, 1]} : vector<4x16xf32> to vector<1x16xf32>
    %57 = vector.broadcast %56 : vector<1x16xf32> to vector<128x16xf32>
    %58 = arith.mulf %55, %57 : vector<128x16xf32>
    %59 = arith.addf %48, %58 : vector<128x16xf32>
    %c2_i32 = arith.constant 2 : i32
    %60 = tpu.dynamic_rotate %17 by %c2_i32 dim 0 : vector<128x16xf32>, i32 -> vector<128x16xf32>
    %c2_i32_28 = arith.constant 2 : i32
    %61 = vector.broadcast %c2_i32_28 : i32 to vector<128x1xi32>
    %62 = arith.cmpi sge, %45, %61 : vector<128x1xi32>
    %cst_29 = arith.constant 0.000000e+00 : f32
    %63 = vector.shape_cast %62 : vector<128x1xi1> to vector<128x1xi1>
    %64 = vector.broadcast %63 : vector<128x1xi1> to vector<128x16xi1>
    %65 = vector.broadcast %cst_29 : f32 to vector<128x16xf32>
    %66 = arith.select %64, %60, %65 : vector<128x16xi1>, vector<128x16xf32>
    %67 = vector.extract_strided_slice %43 {offsets = [1, 0], sizes = [1, 16], strides = [1, 1]} : vector<4x16xf32> to vector<1x16xf32>
    %68 = vector.broadcast %67 : vector<1x16xf32> to vector<128x16xf32>
    %69 = arith.mulf %66, %68 : vector<128x16xf32>
    %70 = arith.addf %59, %69 : vector<128x16xf32>
    %c1_i32 = arith.constant 1 : i32
    %71 = tpu.dynamic_rotate %17 by %c1_i32 dim 0 : vector<128x16xf32>, i32 -> vector<128x16xf32>
    %c1_i32_30 = arith.constant 1 : i32
    %72 = vector.broadcast %c1_i32_30 : i32 to vector<128x1xi32>
    %73 = arith.cmpi sge, %45, %72 : vector<128x1xi32>
    %cst_31 = arith.constant 0.000000e+00 : f32
    %74 = vector.shape_cast %73 : vector<128x1xi1> to vector<128x1xi1>
    %75 = vector.broadcast %74 : vector<128x1xi1> to vector<128x16xi1>
    %76 = vector.broadcast %cst_31 : f32 to vector<128x16xf32>
    %77 = arith.select %75, %71, %76 : vector<128x16xi1>, vector<128x16xf32>
    %78 = vector.extract_strided_slice %43 {offsets = [2, 0], sizes = [1, 16], strides = [1, 1]} : vector<4x16xf32> to vector<1x16xf32>
    %79 = vector.broadcast %78 : vector<1x16xf32> to vector<128x16xf32>
    %80 = arith.mulf %77, %79 : vector<128x16xf32>
    %81 = arith.addf %70, %80 : vector<128x16xf32>
    %82 = vector.extract_strided_slice %43 {offsets = [3, 0], sizes = [1, 16], strides = [1, 1]} : vector<4x16xf32> to vector<1x16xf32>
    %83 = vector.broadcast %82 : vector<1x16xf32> to vector<128x16xf32>
    %84 = arith.mulf %17, %83 : vector<128x16xf32>
    %85 = arith.addf %81, %84 : vector<128x16xf32>
    %cst_32 = arith.constant 0.000000e+00 : f32
    %86 = vector.broadcast %cst_32 : f32 to vector<128x16xf32>
    %87 = vector.broadcast %44 : vector<1x16xf32> to vector<128x16xf32>
    %88 = arith.addf %86, %87 : vector<128x16xf32>
    %c3_i32_33 = arith.constant 3 : i32
    %89 = tpu.dynamic_rotate %18 by %c3_i32_33 dim 0 : vector<128x16xf32>, i32 -> vector<128x16xf32>
    %c3_i32_34 = arith.constant 3 : i32
    %90 = vector.broadcast %c3_i32_34 : i32 to vector<128x1xi32>
    %91 = arith.cmpi sge, %45, %90 : vector<128x1xi32>
    %cst_35 = arith.constant 0.000000e+00 : f32
    %92 = vector.shape_cast %91 : vector<128x1xi1> to vector<128x1xi1>
    %93 = vector.broadcast %92 : vector<128x1xi1> to vector<128x16xi1>
    %94 = vector.broadcast %cst_35 : f32 to vector<128x16xf32>
    %95 = arith.select %93, %89, %94 : vector<128x16xi1>, vector<128x16xf32>
    %96 = vector.extract_strided_slice %43 {offsets = [0, 0], sizes = [1, 16], strides = [1, 1]} : vector<4x16xf32> to vector<1x16xf32>
    %97 = vector.broadcast %96 : vector<1x16xf32> to vector<128x16xf32>
    %98 = arith.mulf %95, %97 : vector<128x16xf32>
    %99 = arith.addf %88, %98 : vector<128x16xf32>
    %c2_i32_36 = arith.constant 2 : i32
    %100 = tpu.dynamic_rotate %18 by %c2_i32_36 dim 0 : vector<128x16xf32>, i32 -> vector<128x16xf32>
    %c2_i32_37 = arith.constant 2 : i32
    %101 = vector.broadcast %c2_i32_37 : i32 to vector<128x1xi32>
    %102 = arith.cmpi sge, %45, %101 : vector<128x1xi32>
    %cst_38 = arith.constant 0.000000e+00 : f32
    %103 = vector.shape_cast %102 : vector<128x1xi1> to vector<128x1xi1>
    %104 = vector.broadcast %103 : vector<128x1xi1> to vector<128x16xi1>
    %105 = vector.broadcast %cst_38 : f32 to vector<128x16xf32>
    %106 = arith.select %104, %100, %105 : vector<128x16xi1>, vector<128x16xf32>
    %107 = vector.extract_strided_slice %43 {offsets = [1, 0], sizes = [1, 16], strides = [1, 1]} : vector<4x16xf32> to vector<1x16xf32>
    %108 = vector.broadcast %107 : vector<1x16xf32> to vector<128x16xf32>
    %109 = arith.mulf %106, %108 : vector<128x16xf32>
    %110 = arith.addf %99, %109 : vector<128x16xf32>
    %c1_i32_39 = arith.constant 1 : i32
    %111 = tpu.dynamic_rotate %18 by %c1_i32_39 dim 0 : vector<128x16xf32>, i32 -> vector<128x16xf32>
    %c1_i32_40 = arith.constant 1 : i32
    %112 = vector.broadcast %c1_i32_40 : i32 to vector<128x1xi32>
    %113 = arith.cmpi sge, %45, %112 : vector<128x1xi32>
    %cst_41 = arith.constant 0.000000e+00 : f32
    %114 = vector.shape_cast %113 : vector<128x1xi1> to vector<128x1xi1>
    %115 = vector.broadcast %114 : vector<128x1xi1> to vector<128x16xi1>
    %116 = vector.broadcast %cst_41 : f32 to vector<128x16xf32>
    %117 = arith.select %115, %111, %116 : vector<128x16xi1>, vector<128x16xf32>
    %118 = vector.extract_strided_slice %43 {offsets = [2, 0], sizes = [1, 16], strides = [1, 1]} : vector<4x16xf32> to vector<1x16xf32>
    %119 = vector.broadcast %118 : vector<1x16xf32> to vector<128x16xf32>
    %120 = arith.mulf %117, %119 : vector<128x16xf32>
    %121 = arith.addf %110, %120 : vector<128x16xf32>
    %122 = vector.extract_strided_slice %43 {offsets = [3, 0], sizes = [1, 16], strides = [1, 1]} : vector<4x16xf32> to vector<1x16xf32>
    %123 = vector.broadcast %122 : vector<1x16xf32> to vector<128x16xf32>
    %124 = arith.mulf %18, %123 : vector<128x16xf32>
    %125 = arith.addf %121, %124 : vector<128x16xf32>
    %cst_42 = arith.constant dense<0.000000e+00> : vector<128xf32>
    %126 = vector.multi_reduction <add>, %85, %cst_42 [1] : vector<128x16xf32> to vector<128xf32>
    %127 = vector.shape_cast %126 : vector<128xf32> to vector<128x1xf32>
    %cst_43 = arith.constant 1.600000e+01 : f32
    %128 = vector.broadcast %cst_43 : f32 to vector<128x1xf32>
    %129 = arith.divf %127, %128 : vector<128x1xf32>
    %130 = vector.broadcast %129 : vector<128x1xf32> to vector<128x16xf32>
    %131 = arith.subf %85, %130 : vector<128x16xf32>
    %132 = arith.mulf %131, %131 : vector<128x16xf32>
    %cst_44 = arith.constant dense<0.000000e+00> : vector<128xf32>
    %133 = vector.multi_reduction <add>, %132, %cst_44 [1] : vector<128x16xf32> to vector<128xf32>
    %134 = vector.shape_cast %133 : vector<128xf32> to vector<128x1xf32>
    %cst_45 = arith.constant 1.600000e+01 : f32
    %135 = vector.broadcast %cst_45 : f32 to vector<128x1xf32>
    %136 = arith.divf %134, %135 : vector<128x1xf32>
    %137 = vector.broadcast %129 : vector<128x1xf32> to vector<128x16xf32>
    %138 = arith.subf %85, %137 : vector<128x16xf32>
    %cst_46 = arith.constant 9.99999974E-6 : f32
    %139 = vector.broadcast %cst_46 : f32 to vector<128x1xf32>
    %140 = arith.addf %136, %139 : vector<128x1xf32>
    %141 = math.rsqrt %140 : vector<128x1xf32>
    %142 = vector.broadcast %141 : vector<128x1xf32> to vector<128x16xf32>
    %143 = arith.mulf %138, %142 : vector<128x16xf32>
    %c0_47 = arith.constant 0 : index
    %c0_48 = arith.constant 0 : index
    %c0_49 = arith.constant 0 : index
    %144 = vector.load %arg11[%c0_47, %c0_48, %c0_49] : memref<1x128x48xf32, #tpu.memory_space<vmem>>, vector<1x128x16xf32>
    %145 = vector.shape_cast %144 : vector<1x128x16xf32> to vector<128x16xf32>
    %146 = vector.shape_cast %143 : vector<128x16xf32> to vector<1x128x16xf32>
    tpu.vector_store %arg11[%c0_47, %c0_48, %c0_49], %146 {strides = array<i32>} : memref<1x128x48xf32, #tpu.memory_space<vmem>>, vector<1x128x16xf32>,
    %c0_50 = arith.constant 0 : index
    %c0_51 = arith.constant 0 : index
    %c16 = arith.constant 16 : index
    %147 = vector.load %arg11[%c0_50, %c0_51, %c16] : memref<1x128x48xf32, #tpu.memory_space<vmem>>, vector<1x128x16xf32>
    %148 = vector.shape_cast %147 : vector<1x128x16xf32> to vector<128x16xf32>
    %149 = vector.shape_cast %125 : vector<128x16xf32> to vector<1x128x16xf32>
    tpu.vector_store %arg11[%c0_50, %c0_51, %c16], %149 {strides = array<i32>} : memref<1x128x48xf32, #tpu.memory_space<vmem>>, vector<1x128x16xf32>,
    %c0_52 = arith.constant 0 : index
    %c0_53 = arith.constant 0 : index
    %c32 = arith.constant 32 : index
    %150 = vector.load %arg11[%c0_52, %c0_53, %c32] : memref<1x128x48xf32, #tpu.memory_space<vmem>>, vector<1x128x16xf32>
    %151 = vector.shape_cast %150 : vector<1x128x16xf32> to vector<128x16xf32>
    %152 = vector.shape_cast %32 : vector<128x16xf32> to vector<1x128x16xf32>
    tpu.vector_store %arg11[%c0_52, %c0_53, %c32], %152 {strides = array<i32>} : memref<1x128x48xf32, #tpu.memory_space<vmem>>, vector<1x128x16xf32>,
    %c0_54 = arith.constant 0 : index
    %c0_55 = arith.constant 0 : index
    %c0_56 = arith.constant 0 : index
    %153 = vector.load %arg2[%c0_54, %c0_55, %c0_56] : memref<1x2x32xf32, #tpu.memory_space<vmem>>, vector<1x2x32xf32>
    %154 = vector.shape_cast %153 : vector<1x2x32xf32> to vector<2x32xf32>
    %155 = arith.mulf %154, %154 : vector<2x32xf32>
    %cst_57 = arith.constant dense<0.000000e+00> : vector<2xf32>
    %156 = vector.multi_reduction <add>, %155, %cst_57 [1] : vector<2x32xf32> to vector<2xf32>
    %157 = vector.shape_cast %156 : vector<2xf32> to vector<2x1xf32>
    %cst_58 = arith.constant 3.200000e+01 : f32
    %158 = vector.broadcast %cst_58 : f32 to vector<2x1xf32>
    %159 = arith.divf %157, %158 : vector<2x1xf32>
    %cst_59 = arith.constant 1.1920929E-7 : f32
    %160 = vector.broadcast %cst_59 : f32 to vector<2x1xf32>
    %161 = arith.addf %159, %160 : vector<2x1xf32>
    %162 = math.rsqrt %161 : vector<2x1xf32>
    %163 = vector.broadcast %162 : vector<2x1xf32> to vector<2x32xf32>
    %164 = arith.mulf %154, %163 : vector<2x32xf32>
    %165 = vector.broadcast %2 : vector<1x32xf32> to vector<2x32xf32>
    %166 = arith.mulf %164, %165 : vector<2x32xf32>
    %c0_60 = arith.constant 0 : index
    %c0_61 = arith.constant 0 : index
    %167 = vector.load %arg6[%c0_60, %c0_61] : memref<32x32xf32, #tpu.memory_space<vmem>>, vector<32x32xf32>
    %cst_62 = arith.constant dense<0.000000e+00> : vector<2x32xf32>
    %168 = tpu.matmul %166, %167, %cst_62 {dimension_numbers = #tpu.dot_dimension_numbers<[1], [0], [0], [1], [0, 0, 1, 1], [], []>} : vector<2x32xf32>, vector<32x32xf32>, vector<2x32xf32> -> vector<2x32xf32>
    %169 = vector.extract_strided_slice %168 {offsets = [0, 0], sizes = [2, 16], strides = [1, 1]} : vector<2x32xf32> to vector<2x16xf32>
    %c0_63 = arith.constant 0 : index
    %c0_64 = arith.constant 0 : index
    %170 = vector.load %arg7[%c0_63, %c0_64] : memref<16x16xf32, #tpu.memory_space<vmem>>, vector<16x16xf32>
    %cst_65 = arith.constant dense<0.000000e+00> : vector<2x16xf32>
    %171 = tpu.matmul %169, %170, %cst_65 {dimension_numbers = #tpu.dot_dimension_numbers<[1], [0], [0], [1], [0, 0, 1, 1], [], []>} : vector<2x16xf32>, vector<16x16xf32>, vector<2x16xf32> -> vector<2x16xf32>
    %cst_66 = arith.constant 0.000000e+00 : f32
    %172 = vector.broadcast %cst_66 : f32 to vector<2x16xf32>
    %173 = arith.maximumf %171, %172 : vector<2x16xf32>
    %174 = math.absf %171 : vector<2x16xf32>
    %cst_67 = arith.constant 0.000000e+00 : f32
    %175 = vector.broadcast %cst_67 : f32 to vector<2x16xf32>
    %176 = arith.subf %175, %174 : vector<2x16xf32>
    %177 = math.exp %176 : vector<2x16xf32>
    %cst_68 = arith.constant 1.000000e+00 : f32
    %178 = vector.broadcast %cst_68 : f32 to vector<2x16xf32>
    %179 = arith.addf %178, %177 : vector<2x16xf32>
    %180 = math.log %179 : vector<2x16xf32>
    %181 = arith.addf %173, %180 : vector<2x16xf32>
    %182 = vector.extract_strided_slice %168 {offsets = [0, 16], sizes = [2, 16], strides = [1, 1]} : vector<2x32xf32> to vector<2x16xf32>
    %c0_69 = arith.constant 0 : index
    %c0_70 = arith.constant 0 : index
    %183 = vector.load %arg8[%c0_69, %c0_70] : memref<16x16xf32, #tpu.memory_space<vmem>>, vector<16x16xf32>
    %cst_71 = arith.constant dense<0.000000e+00> : vector<2x16xf32>
    %184 = tpu.matmul %182, %183, %cst_71 {dimension_numbers = #tpu.dot_dimension_numbers<[1], [0], [0], [1], [0, 0, 1, 1], [], []>} : vector<2x16xf32>, vector<16x16xf32>, vector<2x16xf32> -> vector<2x16xf32>
    %cst_72 = arith.constant 0.000000e+00 : f32
    %185 = vector.broadcast %cst_72 : f32 to vector<2x16xf32>
    %186 = arith.subf %185, %184 : vector<2x16xf32>
    %187 = math.exp %186 : vector<2x16xf32>
    %cst_73 = arith.constant 1.000000e+00 : f32
    %188 = vector.broadcast %cst_73 : f32 to vector<2x16xf32>
    %189 = arith.addf %188, %187 : vector<2x16xf32>
    %cst_74 = arith.constant 1.000000e+00 : f32
    %190 = vector.broadcast %cst_74 : f32 to vector<2x16xf32>
    %191 = arith.divf %190, %189 : vector<2x16xf32>
    %c0_75 = arith.constant 0 : index
    %c0_76 = arith.constant 0 : index
    %c0_77 = arith.constant 0 : index
    %192 = vector.load %arg13[%c0_75, %c0_76, %c0_77] : memref<1x2x32xf32, #tpu.memory_space<vmem>>, vector<1x2x16xf32>
    %193 = vector.shape_cast %192 : vector<1x2x16xf32> to vector<2x16xf32>
    %194 = vector.shape_cast %181 : vector<2x16xf32> to vector<1x2x16xf32>
    tpu.vector_store %arg13[%c0_75, %c0_76, %c0_77], %194 {strides = array<i32>} : memref<1x2x32xf32, #tpu.memory_space<vmem>>, vector<1x2x16xf32>,
    %c0_78 = arith.constant 0 : index
    %c0_79 = arith.constant 0 : index
    %c16_80 = arith.constant 16 : index
    %195 = vector.load %arg13[%c0_78, %c0_79, %c16_80] : memref<1x2x32xf32, #tpu.memory_space<vmem>>, vector<1x2x16xf32>
    %196 = vector.shape_cast %195 : vector<1x2x16xf32> to vector<2x16xf32>
    %197 = vector.shape_cast %191 : vector<2x16xf32> to vector<1x2x16xf32>
    tpu.vector_store %arg13[%c0_78, %c0_79, %c16_80], %197 {strides = array<i32>} : memref<1x2x32xf32, #tpu.memory_space<vmem>>, vector<1x2x16xf32>,
    return
  }
  func.func @transform_0(%arg0: i32) -> (i32, i32, i32) {
    %c0_i32 = arith.constant 0 : i32
    %c0_i32_0 = arith.constant 0 : i32
    %c0_i32_1 = arith.constant 0 : i32
    return %arg0, %c0_i32, %c0_i32_0 : i32, i32, i32
  }
  func.func @transform_1(%arg0: i32) -> (i32, i32, i32) {
    %c0_i32 = arith.constant 0 : i32
    %c0_i32_0 = arith.constant 0 : i32
    %c0_i32_1 = arith.constant 0 : i32
    return %arg0, %c0_i32, %c0_i32_0 : i32, i32, i32
  }
  func.func @transform_2(%arg0: i32) -> (i32, i32) {
    %c0_i32 = arith.constant 0 : i32
    %c0_i32_0 = arith.constant 0 : i32
    %c0_i32_1 = arith.constant 0 : i32
    return %c0_i32, %c0_i32_0 : i32, i32
  }
  func.func @transform_3(%arg0: i32) -> (i32, i32) {
    %c0_i32 = arith.constant 0 : i32
    %c0_i32_0 = arith.constant 0 : i32
    %c0_i32_1 = arith.constant 0 : i32
    return %c0_i32, %c0_i32_0 : i32, i32
  }
  func.func @transform_4(%arg0: i32) -> (i32, i32) {
    %c0_i32 = arith.constant 0 : i32
    %c0_i32_0 = arith.constant 0 : i32
    %c0_i32_1 = arith.constant 0 : i32
    return %c0_i32, %c0_i32_0 : i32, i32
  }
  func.func @transform_5(%arg0: i32) -> (i32, i32) {
    %c0_i32 = arith.constant 0 : i32
    %c0_i32_0 = arith.constant 0 : i32
    %c0_i32_1 = arith.constant 0 : i32
    return %c0_i32, %c0_i32_0 : i32, i32
  }
  func.func @transform_6(%arg0: i32) -> (i32, i32) {
    %c0_i32 = arith.constant 0 : i32
    %c0_i32_0 = arith.constant 0 : i32
    %c0_i32_1 = arith.constant 0 : i32
    return %c0_i32, %c0_i32_0 : i32, i32
  }
  func.func @transform_7(%arg0: i32) -> (i32, i32) {
    %c0_i32 = arith.constant 0 : i32
    %c0_i32_0 = arith.constant 0 : i32
    %c0_i32_1 = arith.constant 0 : i32
    return %c0_i32, %c0_i32_0 : i32, i32
  }
  func.func @transform_8(%arg0: i32) -> (i32, i32) {
    %c0_i32 = arith.constant 0 : i32
    %c0_i32_0 = arith.constant 0 : i32
    %c0_i32_1 = arith.constant 0 : i32
    return %c0_i32, %c0_i32_0 : i32, i32
  }
  func.func @transform_9(%arg0: i32) -> (i32, i32) {
    %c0_i32 = arith.constant 0 : i32
    %c0_i32_0 = arith.constant 0 : i32
    %c0_i32_1 = arith.constant 0 : i32
    return %c0_i32, %c0_i32_0 : i32, i32
  }
  func.func @transform_10(%arg0: i32) -> (i32, i32, i32) {
    %c0_i32 = arith.constant 0 : i32
    %c0_i32_0 = arith.constant 0 : i32
    %c0_i32_1 = arith.constant 0 : i32
    return %arg0, %c0_i32, %c0_i32_0 : i32, i32, i32
  }
  func.func @transform_11(%arg0: i32) -> (i32, i32, i32) {
    %c0_i32 = arith.constant 0 : i32
    %c0_i32_0 = arith.constant 0 : i32
    %c0_i32_1 = arith.constant 0 : i32
    return %arg0, %c0_i32, %c0_i32_0 : i32, i32, i32
  }
  func.func @transform_12(%arg0: i32) -> (i32, i32, i32) {
    %c0_i32 = arith.constant 0 : i32
    %c0_i32_0 = arith.constant 0 : i32
    %c0_i32_1 = arith.constant 0 : i32
    return %arg0, %c0_i32, %c0_i32_0 : i32, i32, i32
  }
}

</mosaic_0001>

<bundles_post_ra>
// kernel: yaad_block_forward.4
= control target key start
LH: loop header
LB: loop body
LE: loop exit
PB: predicated region body
PF: predicated region fallthrough
CT: control target
= control target key end

     0   :  { %s1953_s21 = smov 0   ;;  %s2383_s0 = inlined_call_operand.vmem [shape: f32[2,128,48], index: 0, kind: input, shape index: {}]   ;;  %s2384_s1 = inlined_call_operand.vmem [shape: f32[2,2,32], index: 1, kind: input, shape index: {}]   ;;  %s2385_s2 = inlined_call_operand.vmem [shape: f32[16,16], index: 2, kind: input, shape index: {}]   ;;  %s2386_s3 = inlined_call_operand.vmem [shape: f32[1,16], index: 3, kind: input, shape index: {}]   ;;  %s2387_s4 = inlined_call_operand.vmem [shape: f32[16,16], index: 4, kind: input, shape index: {}]   ;;  %s2388_s5 = inlined_call_operand.vmem [shape: f32[1,16], index: 5, kind: input, shape index: {}]   ;;  %s2389_s6 = inlined_call_operand.vmem [shape: f32[2,128,16], index: 6, kind: output, shape index: {}]  }
   0x1 LB: > { %s1596_s22 = sadd.s32 4294967295, %s1911_s21   ;;  %p1600_p0 = scmp.ge.s32.totalorder %s1911_s21, 1  ;;  %s1911_s21 = sphi %s1953_s21, %s16_s21  }
   0x2   : > { %p221_p1 = scmp.lt.s32.totalorder %s1911_s21, 3 }
   0x4   : > { %p222_p2 = pnand %p1600_p0, %p221_p1 }
   0x5   : > { %v1964_v0 = vld [vmem:[%s2385_s2] sm:$0xff] (!%p222_p2)  ;;  %v1969_v1 = vld [vmem:[%s2385_s2 + $0x8] sm:$0xff] (!%p222_p2)  ;;  %p255_p3 = scmp.lt.s32.totalorder (!%p222_p2), %s1596_s22, 1  ;;  %vm290_vm0 = vcmask (!%p222_p2), 130048   ;;  %s1913_s11 = smov (!%p222_p2), 112   ;;  %v285_v14 = vlaneseq (!%p222_p2) }
   0x6   : > { %225 = sbr.rel (%p222_p2) target bundleno = 1714 (0x6b2), region = 44  ;;  %v1799_v2 = vpack.c.bf16 (!%p222_p2), %v1969_v1, %v1964_v0  ;;  %v272_v11 = vld [vmem:[%s2387_s4] sm:$0xff] (!%p222_p2)  ;;  %v273_v12 = vld [vmem:[%s2387_s4 + $0x8] sm:$0xff] (!%p222_p2)  ;;  %s1914_s19 = smov (!%p222_p2), 32  }
   0x7   : > { %v2029_v13 = vpack.c.bf16 (!%p222_p2), %v273_v12, %v272_v11  ;;  %v286_v15 = vshrl.u32 (!%p222_p2), %v285_v14, 7  ;;  %v2054_v17 = vld [vmem:[%s2386_s3] sm:$0x1] (!%p222_p2)  ;;  %s1917_s26 = smov (!%p222_p2), 16  }
   0x8   : > { %1800 = vmatprep.subr.bf16.mxu0 (!%p222_p2), %v1799_v2  ;;  %1821 = vmatprep.subr.bf16.mxu1 (!%p222_p2), %v1799_v2 }
   0x9   : > { %1802 = vmatpush3.bf16.msra.mxu0 (!%p222_p2), %v1799_v2  ;;  %1822 = vmatpush3.bf16.msra.mxu1 (!%p222_p2), %v1799_v2  ;;  %v2049_v16 = vsub.s32 (!%p222_p2), 0, %v286_v15 }
   0xa   : > { %1804 = vmatprep.subr.bf16.mxu1 (!%p222_p2), %v2029_v13 }
   0xb   : > { %v288_v18 = vrot.slane (!%p222_p2), %v2054_v17, %v2049_v16 }
   0xd   : > { %s2391_s22 = smov (!%p255_p3, %s1596_s22), 1 }
   0xe   : > { %s1667_s27 = sshll.u32 %s2391_s22, 7  ;;  %s1603_s20 = sshll.u32 %s2391_s22, 1 }
   0xf   : > { %s1981_s30 = scalar_lea.vmem %s2383_s0, %s1667_s27  ;;  %s2086_s18 = scalar_lea.vmem %s2389_s6, %s1667_s27 }
  0x10   : > { %v1984_v3 = vld [vmem:[%s1981_s30] sm:$0xff]  ;;  %v1987_v4 = vld [vmem:[%s1981_s30 + $0x8] sm:$0xff]  ;;  %v1997_v6 = vld [vmem:[%s1981_s30 + $0x10] sm:$0xff]  ;;  %s263_s25 = scalar_lea.vmem %s2384_s1, %s1603_s20  ;;  %s1915_s22 = smov 96  }
  0x11   : > { %v1990_v5 = vld [vmem:[%s1981_s30 + $0x20] sm:$0xff]  ;;  %1723 = vmatprep.mubr.msk.f32.mxu0 %vm290_vm0, %v1984_v3  ;;  %v2000_v7 = vld [vmem:[%s1981_s30 + $0x28] sm:$0xff]  ;;  %v2007_v8 = vld [vmem:[%s1981_s30 + $0x30] sm:$0xff]  ;;  %603 = vrot.lane.b32.xlu0 %v1984_v3, %s1913_s11 }
  0x12   : > { %1729 = vmatprep.mubr.msk.f32.mxu1 %vm290_vm0, %v1990_v5  ;;  %1724 = vmatmul.mubr.msk.f32.vlgmr.msra.gmra.mrb[0].mxu0 %vm290_vm0, %v1987_v4  ;;  %v2012_v9 = vld [vmem:[%s1981_s30 + $0x18] sm:$0xff] }
  0x13   : > { %1730 = vmatmul.mubr.msk.f32.vlgmr.msra.gmra.mrb[0].mxu1 %vm290_vm0, %v2000_v7  ;;  %1726 = vmatprep.mubr.msk.f32.mxu0 %vm290_vm0, %v1997_v6  ;;  %v2017_v10 = vld [vmem:[%s1981_s30 + $0x38] sm:$0xff] }
  0x14   : > { %1732 = vmatprep.mubr.msk.f32.mxu1 %vm290_vm0, %v2007_v8  ;;  %1806 = vmatpush3.bf16.msra.mxu1 %v2029_v13 }
  0x15   : > { %607 = vrot.lane.b32.xlu1 %v1997_v6, %s1913_s11  ;;  %605 = vrot.lane.b32.xlu0 %v1987_v4, %s1913_s11 }
  0x16   : > { %1727 = vmatmul.mubr.msk.f32.gmra.mrb[2].mxu0 %vm290_vm0, %v2012_v9 }
  0x17   : > { %1733 = vmatmul.mubr.msk.f32.gmra.mrb[2].mxu1 %vm290_vm0, %v2017_v10 }
  0x19   : > { %609 = vrot.lane.b32.xlu1 %v2012_v9, %s1913_s11  ;;  %611 = vrot.lane.b32.xlu0 %v1990_v5, %s1913_s11 }
  0x1d   : > { %613 = vrot.lane.b32.xlu1 %v2000_v7, %s1913_s11  ;;  %615 = vrot.lane.b32.xlu0 %v2007_v8, %s1913_s11 }
  0x21   : > { %617 = vrot.lane.b32.xlu1 %v2017_v10, %s1913_s11 }
  0xe5   : > { %v1725_v19 = vpop.f32.mrb[0].mxu0 }
  0xe6   : > { %v1731_v20 = vpop.f32.mrb[0].mxu1  ;;  %v387_v21 = vadd.f32 %v1725_v19, %v288_v18  ;;  %v381_v22 = vpop.f32.mrb[1].mxu0 }
  0xe7   : > { %v407_v23 = vadd.f32 %v1731_v20, %v288_v18  ;;  %v401_v24 = vpop.f32.mrb[1].mxu1  ;;  %v382_v25 = vadd.f32 %v381_v22, %v288_v18 }
  0xe8   : > { %v402_v26 = vadd.f32 %v401_v24, %v288_v18  ;;  %v429_v27 = vmul.f32 0.70710677, %v387_v21  ;;  %v421_v45 = vmul.f32 0.5, %v387_v21 }
  0xe9   : > { %v433_v28 = vmul.f32 0.70710677, %v407_v23  ;;  %v428_v29 = vmul.f32 0.70710677, %v382_v25  ;;  %v1728_v30 = vpop.f32.mrb[2].mxu0  ;;  %v420_v48 = vmul.f32 0.5, %v382_v25 }
  0xea   : > { %v1734_v31 = vpop.f32.mrb[2].mxu1  ;;  %1839 = verf.f32 %v429_v27  ;;  %v397_v32 = vadd.f32 %v1728_v30, %v288_v18  ;;  %v432_v33 = vmul.f32 0.70710677, %v402_v26  ;;  %v391_v34 = vpop.f32.mrb[3].mxu0  ;;  %v424_v58 = vmul.f32 0.5, %v402_v26 }
  0xeb   : > { %v411_v35 = vpop.f32.mrb[3].mxu1  ;;  %1841 = verf.f32 %v428_v29  ;;  %v392_v36 = vadd.f32 %v391_v34, %v288_v18  ;;  %v417_v37 = vadd.f32 %v1734_v31, %v288_v18  ;;  %v425_v11 = vmul.f32 0.5, %v407_v23 }
  0xec   : > { %v412_v38 = vadd.f32 %v411_v35, %v288_v18  ;;  %1843 = verf.f32 %v433_v28  ;;  %v431_v39 = vmul.f32 0.70710677, %v397_v32  ;;  %v423_v56 = vmul.f32 0.5, %v397_v32 }
  0xed   : > { %1845 = verf.f32 %v432_v33  ;;  %v430_v40 = vmul.f32 0.70710677, %v392_v36  ;;  %v435_v42 = vmul.f32 0.70710677, %v417_v37  ;;  %v422_v61 = vmul.f32 0.5, %v392_v36 }
  0xee   : > { %1847 = verf.f32 %v431_v39  ;;  %v434_v41 = vmul.f32 0.70710677, %v412_v38  ;;  %v426_v12 = vmul.f32 0.5, %v412_v38  ;;  %v427_v25 = vmul.f32 0.5, %v417_v37  ;;  %v604_v39 = vpop.permute.xlu0 %603 }
  0xef   : > { %1849 = verf.f32 %v430_v40  ;;  %v608_v40 = vpop.permute.xlu1 %607 }
  0xf0   : > { %1851 = verf.f32 %v434_v41  ;;  %v2079_v41 = vld [vmem:[%s2388_s5] ss:$0 sm:$0xff] }
  0xf1   : > { %1853 = verf.f32 %v435_v42 }
  0xf2   : > { %v606_v42 = vpop.permute.xlu0 %605 }
  0xf4   : > { %v1840_v43 = vpop.eup %1839 }
  0xf5   : > { %v1842_v44 = vpop.eup %1841  ;;  %v445_v46 = vadd.f32 1.0, %v1840_v43 }
  0xf6   : > { %v1844_v47 = vpop.eup %1843  ;;  %v444_v49 = vadd.f32 1.0, %v1842_v44  ;;  %v610_v44 = vpop.permute.xlu1 %609 }
  0xf7   : > { %v1846_v50 = vpop.eup %1845  ;;  %v453_v51 = vmul.f32 %v445_v46, %v421_v45  ;;  %v449_v14 = vadd.f32 1.0, %v1844_v47 }
  0xf8   : > { %v1848_v52 = vpop.eup %1847  ;;  %v452_v53 = vmul.f32 %v444_v49, %v420_v48  ;;  %v448_v60 = vadd.f32 1.0, %v1846_v50 }
  0xf9   : > { %v1850_v54 = vpop.eup %1849  ;;  %v874_v55 = vsel %vm290_vm0, %v453_v51, 0.0  ;;  %v447_v57 = vadd.f32 1.0, %v1848_v52  ;;  %v457_v26 = vmul.f32 %v449_v14, %v425_v11 }
  0xfa   : > { %v873_v59 = vsel %vm290_vm0, %v452_v53, 0.0  ;;  %v446_v62 = vadd.f32 1.0, %v1850_v54  ;;  %1739 = vmatprep.mubr.msk.f32.mxu1 %vm290_vm0, %v452_v53  ;;  %v1852_v63 = vpop.eup %1851  ;;  %v456_v21 = vmul.f32 %v448_v60, %v424_v58 }
  0xfb   : > { %v875_v2 = vadd.f32 %v874_v55, %v873_v59  ;;  %1740 = vmatmul.mubr.msk.f32.vlgmr.msra.gmra.mrb[4].mxu1 %vm290_vm0, %v453_v51  ;;  %v455_v15 = vmul.f32 %v447_v57, %v423_v56  ;;  %v450_v19 = vadd.f32 1.0, %v1852_v63  ;;  %v1854_v20 = vpop.eup %1853  ;;  %v882_v32 = vsel %vm290_vm0, %v457_v26, 0.0  ;;  %v614_v56 = vpop.permute.xlu1 %613 }
  0xfc   : > { %v454_v18 = vmul.f32 %v446_v62, %v422_v61  ;;  %v451_v27 = vadd.f32 1.0, %v1854_v20  ;;  %v880_v30 = vsel %vm290_vm0, %v456_v21, 0.0  ;;  %v612_v59 = vpop.permute.xlu0 %611 }
  0xfd   : > { %v878_v23 = vsel %vm290_vm0, %v455_v15, 0.0  ;;  %v458_v28 = vmul.f32 %v450_v19, %v426_v12 }
  0xfe   : > { %v876_v22 = vsel %vm290_vm0, %v454_v18, 0.0  ;;  %1742 = vmatprep.mubr.msk.f32.mxu1 %vm290_vm0, %v454_v18  ;;  %v459_v33 = vmul.f32 %v451_v27, %v427_v25 }
  0xff   : > { %v877_v24 = vadd.f32 %v876_v22, %v875_v2  ;;  %1743 = vmatmul.mubr.msk.f32.gmra.mrb[6].mxu1 %vm290_vm0, %v455_v15  ;;  %v884_v34 = vsel %vm290_vm0, %v458_v28, 0.0 }
 0x100   : > { %1745 = vmatprep.mubr.msk.f32.mxu1 %vm290_vm0, %v456_v21  ;;  %v886_v37 = vsel %vm290_vm0, %v459_v33, 0.0  ;;  %v618_v21 = vpop.permute.xlu1 %617  ;;  %v616_v25 = vpop.permute.xlu0 %615 }
 0x101   : > { %v879_v29 = vadd.f32 %v878_v23, %v877_v24 }
 0x103   : > { %v881_v31 = vadd.f32 %v880_v30, %v879_v29  ;;  %1746 = vmatmul.mubr.msk.f32.gmra.mrb[8].mxu1 %vm290_vm0, %v457_v26 }
 0x104   : > { %1748 = vmatprep.mubr.msk.f32.mxu1 %vm290_vm0, %v458_v28 }
 0x105   : > { %v883_v35 = vadd.f32 %v882_v32, %v881_v31 }
 0x107   : > { %v885_v36 = vadd.f32 %v884_v34, %v883_v35  ;;  %1749 = vmatmul.mubr.msk.f32.gmra.mrb[10].mxu1 %vm290_vm0, %v459_v33 }
 0x109   : > { %v2074_v38 = vadd.f32 %v886_v37, %v885_v36 }
 0x1ce   : > { %v1741_v43 = vpop.f32.mrb[4].mxu1 }
 0x1cf   : > { %v562_v45 = vadd.f32 %v1741_v43, %v2079_v41  ;;  %v556_v46 = vpop.f32.mrb[5].mxu1 }
 0x1d0   : > { %v557_v47 = vadd.f32 %v2079_v41, %v556_v46 }
 0x1d1   : > { %596 = vst.msk [vmem:[%s2086_s18 + $0x8] sm:$0xff] %vm290_vm0, %v562_v45  ;;  %v2092_v48 = vsub.f32 %v562_v45, %v606_v42 }
 0x1d2   : > { %595 = vst.msk [vmem:[%s2086_s18] sm:$0xff] %vm290_vm0, %v557_v47  ;;  %v2096_v49 = vsub.f32 %v557_v47, %v604_v39  ;;  %v1744_v50 = vpop.f32.mrb[6].mxu1 }
 0x1d3   : > { %v572_v51 = vadd.f32 %v1744_v50, %v2079_v41  ;;  %v566_v52 = vpop.f32.mrb[7].mxu1  ;;  %v636_v53 = vmul.f32 %v2092_v48, %v2092_v48 }
 0x1d4   : > { %v567_v54 = vadd.f32 %v2079_v41, %v566_v52  ;;  %v635_v55 = vmul.f32 %v2096_v49, %v2096_v49 }
 0x1d5   : > { %598 = vst.msk [vmem:[%s2086_s18 + $0x18] sm:$0xff] %vm290_vm0, %v572_v51  ;;  %v2106_v57 = vsub.f32 %v572_v51, %v610_v44  ;;  %v646_v58 = vsel %vm290_vm0, %v636_v53, 0.0 }
 0x1d6   : > { %597 = vst.msk [vmem:[%s2086_s18 + $0x10] sm:$0xff] %vm290_vm0, %v567_v54  ;;  %v2111_v60 = vsub.f32 %v567_v54, %v608_v40  ;;  %647 = vadd.xlane.f32.xlu1 %v646_v58  ;;  %v1747_v61 = vpop.f32.mrb[8].mxu1  ;;  %v643_v62 = vsel %vm290_vm0, %v635_v55, 0.0 }
 0x1d7   : > { %v582_v63 = vadd.f32 %v1747_v61, %v2079_v41  ;;  %v576_v2 = vpop.f32.mrb[9].mxu1  ;;  %644 = vadd.xlane.f32.xlu0 %v643_v62  ;;  %v638_v14 = vmul.f32 %v2106_v57, %v2106_v57 }
 0x1d8   : > { %v577_v11 = vadd.f32 %v2079_v41, %v576_v2  ;;  %v637_v12 = vmul.f32 %v2111_v60, %v2111_v60 }
 0x1d9   : > { %600 = vst.msk [vmem:[%s2086_s18 + $0x28] sm:$0xff] %vm290_vm0, %v582_v63  ;;  %v2124_v15 = vsub.f32 %v582_v63, %v614_v56  ;;  %v652_v27 = vsel %vm290_vm0, %v638_v14, 0.0 }
 0x1da   : > { %599 = vst.msk [vmem:[%s2086_s18 + $0x20] sm:$0xff] %vm290_vm0, %v577_v11  ;;  %v2126_v18 = vsub.f32 %v577_v11, %v612_v59  ;;  %v1750_v19 = vpop.f32.mrb[10].mxu1  ;;  %v649_v20 = vsel %vm290_vm0, %v637_v12, 0.0 }
 0x1db   : > { %v592_v22 = vadd.f32 %v1750_v19, %v2079_v41  ;;  %v586_v24 = vpop.f32.mrb[11].mxu1  ;;  %650 = vadd.xlane.f32.xlu0 %v649_v20  ;;  %v640_v31 = vmul.f32 %v2124_v15, %v2124_v15 }
 0x1dc   : > { %v587_v26 = vadd.f32 %v2079_v41, %v586_v24  ;;  %v639_v23 = vmul.f32 %v2126_v18, %v2126_v18 }
 0x1dd   : > { %602 = vst.msk [vmem:[%s2086_s18 + $0x38] sm:$0xff] %vm290_vm0, %v592_v22  ;;  %v2138_v28 = vsub.f32 %v592_v22, %v618_v21  ;;  %v658_v34 = vsel %vm290_vm0, %v640_v31, 0.0 }
 0x1de   : > { %601 = vst.msk [vmem:[%s2086_s18 + $0x30] sm:$0xff] %vm290_vm0, %v587_v26  ;;  %v2140_v29 = vsub.f32 %v587_v26, %v616_v25  ;;  %v655_v30 = vsel %vm290_vm0, %v639_v23, 0.0 }
 0x1df   : > { %656 = vadd.xlane.f32.xlu1 %v655_v30  ;;  %653 = vadd.xlane.f32.xlu0 %v652_v27  ;;  %v642_v35 = vmul.f32 %v2138_v28, %v2138_v28 }
 0x1e0   : > { %v641_v32 = vmul.f32 %v2140_v29, %v2140_v29 }
 0x1e1   : > { %v664_v36 = vsel %vm290_vm0, %v642_v35, 0.0 }
 0x1e2   : > { %v661_v33 = vsel %vm290_vm0, %v641_v32, 0.0 }
 0x1e3   : > { %662 = vadd.xlane.f32.xlu1 %v661_v33  ;;  %659 = vadd.xlane.f32.xlu0 %v658_v34 }
 0x1e7   : > { %665 = vadd.xlane.f32.xlu0 %v664_v36 }
 0x1f4   : > { %803 = vrot.lane.b32.xlu1 %v2096_v49, %s1914_s19 }
 0x1fd   : > { %805 = vrot.lane.b32.xlu0 %v2092_v48, %s1914_s19 }
 0x201   : > { %807 = vrot.lane.b32.xlu0 %v2111_v60, %s1914_s19 }
 0x205   : > { %809 = vrot.lane.b32.xlu0 %v2106_v57, %s1914_s19 }
 0x263   : > { %v648_v37 = vpop.xlane.xlu1 %647 }
 0x264   : > { %1855 = vrsqrt.f32 %v648_v37  ;;  %v645_v39 = vpop.xlane.xlu0 %644  ;;  %vm676_vm1 = vcmp.eq.f32.partialorder %v648_v37, inf  ;;  %v679_v47 = vand.u32 2147483648, %v648_v37  ;;  %vm678_vm2 = vcmp.eq.f32.partialorder %v648_v37, 0.0 }
 0x265   : > { %1857 = vrsqrt.f32 %v645_v39  ;;  %vm669_vm3 = vcmp.eq.f32.partialorder %v645_v39, inf  ;;  %v672_v53 = vand.u32 2147483648, %v645_v39  ;;  %vm671_vm4 = vcmp.eq.f32.partialorder %v645_v39, 0.0 }
 0x268   : > { %v651_v40 = vpop.xlane.xlu0 %650 }
 0x269   : > { %1859 = vrsqrt.f32 %v651_v40  ;;  %vm683_vm5 = vcmp.eq.f32.partialorder %v651_v40, inf  ;;  %v686_v19 = vand.u32 2147483648, %v651_v40  ;;  %vm685_vm6 = vcmp.eq.f32.partialorder %v651_v40, 0.0 }
 0x26c   : > { %v2160_v42 = vpop.xlane.xlu1 %656  ;;  %v654_v43 = vpop.xlane.xlu0 %653 }
 0x26d   : > { %1861 = vrsqrt.f32 %v2160_v42  ;;  %vm690_vm7 = vcmp.eq.f32.partialorder %v654_v43, inf  ;;  %v693_v22 = vand.u32 2147483648, %v654_v43  ;;  %vm692_vm8 = vcmp.eq.f32.partialorder %v654_v43, 0.0 }
 0x26e   : > { %v1856_v44 = vpop.eup %1855  ;;  %1863 = vrsqrt.f32 %v654_v43  ;;  %vm697_vm9 = vcmp.eq.f32.partialorder %v2160_v42, inf  ;;  %vm699_vm12 = vcmp.eq.f32.partialorder %v2160_v42, 0.0 }
 0x26f   : > { %v1858_v45 = vpop.eup %1857  ;;  %v675_v46 = vmul.f32 %v1856_v44, %v648_v37 }
 0x270   : > { %v668_v50 = vmul.f32 %v1858_v45, %v645_v39  ;;  %v660_v51 = vpop.xlane.xlu0 %659  ;;  %v2163_v54 = vpop.xlane.xlu1 %662 }
 0x271   : > { %v677_v52 = vsel %vm676_vm1, %v648_v37, %v675_v46  ;;  %1865 = vrsqrt.f32 %v660_v51  ;;  %vm704_vm10 = vcmp.eq.f32.partialorder %v660_v51, inf  ;;  %v707_v33 = vand.u32 2147483648, %v660_v51 }
 0x272   : > { %v2165_v55 = vsel %vm678_vm2, %v679_v47, %v677_v52  ;;  %v670_v56 = vsel %vm669_vm3, %v645_v39, %v668_v50  ;;  %1867 = vrsqrt.f32 %v2163_v54  ;;  %vm706_vm11 = vcmp.eq.f32.partialorder %v660_v51, 0.0 }
 0x273   : > { %v1860_v58 = vpop.eup %1859  ;;  %v724_v59 = vadd.f32 1e-09, %v2165_v55  ;;  %v2168_v61 = vsel %vm671_vm4, %v672_v53, %v670_v56  ;;  %v700_v39 = vand.u32 2147483648, %v2160_v42  ;;  %vm711_vm15 = vcmp.eq.f32.partialorder %v2163_v54, inf }
 0x274   : > { %v723_v62 = vadd.f32 1e-09, %v2168_v61  ;;  %v682_v63 = vmul.f32 %v1860_v58, %v651_v40  ;;  %v666_v2 = vpop.xlane.xlu0 %665  ;;  %vm713_vm1 = vcmp.eq.f32.partialorder %v2163_v54, 0.0  ;;  %vm849_vm2 = vcmask 392448  }
 0x275   : > { %1869 = vrsqrt.f32 %v666_v2  ;;  %vm718_vm13 = vcmp.eq.f32.partialorder %v666_v2, inf  ;;  %v721_v53 = vand.u32 2147483648, %v666_v2  ;;  %vm720_vm14 = vcmp.eq.f32.partialorder %v666_v2, 0.0 }
 0x276   : > { %1871 = vrcp.f32 %v724_v59  ;;  %v684_v12 = vsel %vm683_vm5, %v651_v40, %v682_v63  ;;  %vm788_vm3 = vcmp.gt.f32.partialorder %v2165_v55, %v1987_v4  ;;  %vm787_vm4 = vcmp.gt.f32.partialorder %v2168_v61, %v1984_v3 }
 0x277   : > { %v1862_v11 = vpop.eup %1861  ;;  %1873 = vrcp.f32 %v723_v62  ;;  %v2172_v21 = vsel %vm685_vm6, %v686_v19, %v684_v12 }
 0x278   : > { %v1864_v14 = vpop.eup %1863  ;;  %v696_v24 = vmul.f32 %v1862_v11, %v2160_v42  ;;  %v725_v27 = vadd.f32 1e-09, %v2172_v21  ;;  %vm789_vm6 = vcmp.gt.f32.partialorder %v2172_v21, %v1997_v6 }
 0x279   : > { %v689_v20 = vmul.f32 %v1864_v14, %v654_v43 }
 0x27a   : > { %v698_v35 = vsel %vm697_vm9, %v2160_v42, %v696_v24 }
 0x27b   : > { %v691_v25 = vsel %vm690_vm7, %v654_v43, %v689_v20  ;;  %v1866_v26 = vpop.eup %1865  ;;  %v2187_v47 = vsel %vm699_vm12, %v700_v39, %v698_v35  ;;  %vm1808_vm12 = vmpackc.low %vm290_vm0, %vm290_vm0 }
 0x27c   : > { %v2175_v23 = vsel %vm692_vm8, %v693_v22, %v691_v25  ;;  %v703_v31 = vmul.f32 %v1866_v26, %v660_v51  ;;  %v1868_v32 = vpop.eup %1867  ;;  %v727_v42 = vadd.f32 1e-09, %v2187_v47  ;;  %vm791_vm8 = vcmp.gt.f32.partialorder %v2187_v47, %v1990_v5  ;;  %1809 = vmatprep.subr.msk.bf16.mxu0 %vm1808_vm12, %v2029_v13 }
 0x27d   : > { %v726_v30 = vadd.f32 1e-09, %v2175_v23  ;;  %vm790_vm5 = vcmp.gt.f32.partialorder %v2175_v23, %v2012_v9  ;;  %1812 = vmatpush3.bf16.xpose.msk.msra.mxu0 %vm1808_vm12, %v2029_v13 }
 0x27e   : > { %v705_v36 = vsel %vm704_vm10, %v660_v51, %v703_v31  ;;  %v710_v51 = vmul.f32 %v1868_v32, %v2163_v54 }
 0x27f   : > { %v1870_v34 = vpop.eup %1869  ;;  %1875 = vrcp.f32 %v726_v30  ;;  %v2182_v40 = vsel %vm706_vm11, %v707_v33, %v705_v36  ;;  %vm839_vm11 = vcmask 122880  }
 0x280   : > { %v1872_v37 = vpop.eup %1871  ;;  %v717_v43 = vmul.f32 %v1870_v34, %v666_v2  ;;  %v728_v45 = vadd.f32 1e-09, %v2182_v40  ;;  %1877 = vrcp.f32 %v725_v27  ;;  %v712_v56 = vsel %vm711_vm15, %v2163_v54, %v710_v51  ;;  %v804_v27 = vpop.permute.xlu1 %803 }
 0x281   : > { %v1874_v44 = vpop.eup %1873  ;;  %v734_v46 = vmul.f32 %v1872_v37, %v2092_v48  ;;  %vm792_vm7 = vcmp.gt.f32.partialorder %v2182_v40, %v2000_v7 }
 0x282   : > { %v732_v50 = vmul.f32 %v1874_v44, %v2096_v49  ;;  %v719_v52 = vsel %vm718_vm13, %v666_v2, %v717_v43  ;;  %1879 = vrcp.f32 %v728_v45  ;;  %v714_v49 = vand.u32 2147483648, %v2163_v54 }
 0x283   : > { %757 = vrot.lane.b32.xlu0 %v734_v46, %s1914_s19  ;;  %v2195_v48 = vsel %vm720_vm14, %v721_v53, %v719_v52  ;;  %1881 = vrcp.f32 %v727_v42 }
 0x284   : > { %755 = vrot.lane.b32.xlu1 %v732_v50, %s1914_s19  ;;  %v730_v59 = vadd.f32 1e-09, %v2195_v48  ;;  %v2203_v62 = vsel %vm713_vm1, %v714_v49, %v712_v56  ;;  %vm794_vm10 = vcmp.gt.f32.partialorder %v2195_v48, %v2017_v10  ;;  %v1916_v48 = vmov 0  }
 0x285   : > { %v729_v11 = vadd.f32 1e-09, %v2203_v62  ;;  %vm793_vm9 = vcmp.gt.f32.partialorder %v2203_v62, %v2007_v8  ;;  %1838 = vset.pattern.permute.xlu1 %v1916_v48 }
 0x286   : > { %1883 = vrcp.f32 %v730_v59 }
 0x287   : > { %811 = vrot.lane.b32.xlu0 %v2126_v18, %s1914_s19  ;;  %1885 = vrcp.f32 %v729_v11 }
 0x289   : > { %v1876_v58 = vpop.eup %1875 }
 0x28a   : > { %v738_v63 = vmul.f32 %v1876_v58, %v2106_v57  ;;  %v1878_v2 = vpop.eup %1877 }
 0x28b   : > { %813 = vrot.lane.b32.xlu0 %v2124_v15, %s1914_s19  ;;  %v736_v12 = vmul.f32 %v1878_v2, %v2111_v60 }
 0x28c   : > { %761 = vrot.lane.b32.xlu1 %v738_v63, %s1914_s19  ;;  %v1880_v54 = vpop.eup %1879 }
 0x28d   : > { %v742_v57 = vmul.f32 %v1880_v54, %v2124_v15  ;;  %v1882_v14 = vpop.eup %1881  ;;  %v2228_v15 = vld [vmem:[%s263_s25] sm:$0x1] }
 0x28e   : > { %v740_v19 = vmul.f32 %v1882_v14, %v2126_v18  ;;  %v806_v18 = vpop.permute.xlu0 %805 }
 0x28f   : > { %815 = vrot.lane.b32.xlu0 %v2140_v29, %s1914_s19 }
 0x290   : > { %759 = vrot.lane.b32.xlu1 %v736_v12, %s1914_s19  ;;  %v1884_v20 = vpop.eup %1883 }
 0x291   : > { %v746_v22 = vmul.f32 %v1884_v20, %v2138_v28  ;;  %v1886_v60 = vpop.eup %1885 }
 0x292   : > { %v744_v24 = vmul.f32 %v1886_v60, %v2140_v29  ;;  %v808_v25 = vpop.permute.xlu0 %807 }
 0x294   : > { %765 = vrot.lane.b32.xlu1 %v742_v57, %s1914_s19 }
 0x296   : > { %v810_v26 = vpop.permute.xlu0 %809 }
 0x298   : > { %763 = vrot.lane.b32.xlu1 %v740_v19, %s1914_s19 }
 0x29c   : > { %769 = vrot.lane.b32.xlu1 %v746_v22, %s1914_s19 }
 0x2a0   : > { %767 = vrot.lane.b32.xlu1 %v744_v24, %s1914_s19 }
 0x2a4   : > { %817 = vrot.lane.b32.xlu1 %v2138_v28, %s1914_s19 }
 0x2a8   : > { %836 = vrot.lane.b32.xlu1 %v2228_v15, %s1913_s11 }
 0x2f5   : > { %v758_v29 = vpop.permute.xlu0 %757 }
 0x2f6   : > { %v780_v30 = vmul.f32 %v758_v29, %v1987_v4  ;;  %v756_v31 = vpop.permute.xlu1 %755 }
 0x2f7   : > { %v779_v32 = vmul.f32 %v756_v31, %v1984_v3 }
 0x2f8   : > { %v828_v28 = vsel %vm788_vm3, %v780_v30, %v806_v18 }
 0x2f9   : > { %v851_v33 = vsel %vm849_vm2, %v828_v28, 0.0  ;;  %v827_v34 = vsel %vm787_vm4, %v779_v32, %v804_v27  ;;  %v812_v55 = vpop.permute.xlu0 %811 }
 0x2fa   : > { %v850_v35 = vsel %vm849_vm2, %v827_v34, 0.0 }
 0x2fb   : > { %v852_v36 = vadd.f32 %v851_v33, %v850_v35 }
 0x2fd   : > { %v814_v56 = vpop.permute.xlu0 %813 }
 0x2fe   : > { %v762_v37 = vpop.permute.xlu1 %761 }
 0x2ff   : > { %v782_v39 = vmul.f32 %v762_v37, %v2012_v9 }
 0x301   : > { %v830_v4 = vsel %vm790_vm5, %v782_v39, %v810_v26  ;;  %v816_v11 = vpop.permute.xlu0 %815  ;;  %v1633_v39 = vld [vmem:[%s1981_s30 + $0x40] sm:$0xff] }
 0x302   : > { %v760_v43 = vpop.permute.xlu1 %759  ;;  %v855_v50 = vsel %vm849_vm2, %v830_v4, 0.0  ;;  %1771 = vmatprep.mubr.msk.f32.mxu1 %vm290_vm0, %v1633_v39 }
 0x303   : > { %v781_v44 = vmul.f32 %v760_v43, %v1997_v6  ;;  %v888_v43 = vrot.slane %v2074_v38, 4 }
 0x305   : > { %v829_v3 = vsel %vm789_vm6, %v781_v44, %v808_v25  ;;  %v889_v44 = vadd.f32 %v888_v43, %v2074_v38  ;;  %v1638_v43 = vld [vmem:[%s1981_s30 + $0x68] sm:$0xff] }
 0x306   : > { %v853_v61 = vsel %vm849_vm2, %v829_v3, 0.0  ;;  %v766_v45 = vpop.permute.xlu1 %765 }
 0x307   : > { %v854_v46 = vadd.f32 %v853_v61, %v852_v36  ;;  %v784_v51 = vmul.f32 %v766_v45, %v2000_v7 }
 0x309   : > { %v856_v52 = vadd.f32 %v855_v50, %v854_v46  ;;  %v832_v6 = vsel %vm792_vm7, %v784_v51, %v814_v56 }
 0x30a   : > { %v764_v53 = vpop.permute.xlu1 %763  ;;  %v859_v58 = vsel %vm849_vm2, %v832_v6, 0.0 }
 0x30b   : > { %v783_v42 = vmul.f32 %v764_v53, %v1990_v5 }
 0x30d   : > { %v831_v9 = vsel %vm791_vm8, %v783_v42, %v812_v55 }
 0x30e   : > { %v857_v21 = vsel %vm849_vm2, %v831_v9, 0.0  ;;  %v770_v23 = vpop.permute.xlu1 %769 }
 0x30f   : > { %v858_v49 = vadd.f32 %v857_v21, %v856_v52  ;;  %v786_v7 = vmul.f32 %v770_v23, %v2017_v10  ;;  %v845_v10 = vsel %vm839_vm11, %v2228_v15, 0.0 }
 0x311   : > { %v860_v59 = vadd.f32 %v859_v58, %v858_v49 }
 0x312   : > { %v768_v63 = vpop.permute.xlu1 %767 }
 0x313   : > { %v785_v2 = vmul.f32 %v768_v63, %v2007_v8 }
 0x315   : > { %v833_v40 = vsel %vm793_vm9, %v785_v2, %v816_v11 }
 0x316   : > { %v861_v5 = vsel %vm849_vm2, %v833_v40, 0.0  ;;  %v818_v47 = vpop.permute.xlu1 %817 }
 0x317   : > { %v834_v12 = vsel %vm794_vm10, %v786_v7, %v818_v47  ;;  %v862_v54 = vadd.f32 %v861_v5, %v860_v59 }
 0x318   : > { %v863_v57 = vsel %vm849_vm2, %v834_v12, 0.0 }
 0x319   : > { %v864_v14 = vadd.f32 %v863_v57, %v862_v54 }
 0x31a   : > { %v837_v19 = vpop.permute.xlu1 %836 }
 0x31b   : > { %v865_v20 = vrot.slane %v864_v14, 4  ;;  %v840_v22 = vsel %vm839_vm11, %v837_v19, 0.0 }
 0x31c   : > { %841 = vadd.xlane.f32.xlu1 %v840_v22 }
 0x31d   : > { %v866_v8 = vadd.f32 %v865_v20, %v864_v14 }
 0x31f   : > { %v867_v62 = vrot.slane %v866_v8, 2 }
 0x321   : > { %v868_v60 = vadd.f32 %v867_v62, %v866_v8 }
 0x323   : > { %v869_v24 = vrot.slane %v868_v60, 1 }
 0x325   : > { %v870_v18 = vadd.f32 %v869_v24, %v868_v60 }
 0x327   : > { %v2265_v25 = vmul.f32 0.015625, %v870_v18 }
 0x329   : > { %902 = vrot.lane.b32.xlu0 %v2265_v25, %s1915_s22 }
 0x32d   : > { %1025 = vrot.lane.b32.xlu1 %v828_v28, %s1915_s22 }
 0x331   : > { %1023 = vrot.lane.b32.xlu1 %v827_v34, %s1915_s22 }
 0x335   : > { %1029 = vrot.lane.b32.xlu1 %v830_v4, %s1915_s22  ;;  %v890_v4 = vrot.slane %v889_v44, 2 }
 0x339   : > { %1027 = vrot.lane.b32.xlu1 %v829_v3, %s1915_s22  ;;  %v891_v3 = vadd.f32 %v890_v4, %v889_v44  ;;  %v1639_v44 = vld [vmem:[%s1981_s30 + $0x70] sm:$0xff] }
 0x33b   : > { %v892_v55 = vrot.slane %v891_v3, 1 }
 0x33d   : > { %1033 = vrot.lane.b32.xlu1 %v832_v6, %s1915_s22  ;;  %v893_v61 = vadd.f32 %v892_v55, %v891_v3  ;;  %v1640_v3 = vld [vmem:[%s1981_s30 + $0x78] sm:$0xff] }
 0x33f   : > { %v894_v45 = vmul.f32 0.015625, %v893_v61 }
 0x341   : > { %1031 = vrot.lane.b32.xlu1 %v831_v9, %s1915_s22 }
 0x345   : > { %1035 = vrot.lane.b32.xlu1 %v833_v40, %s1915_s22 }
 0x348   : > { %846 = vadd.xlane.f32.xlu0 %v845_v10 }
 0x349   : > { %1037 = vrot.lane.b32.xlu1 %v834_v12, %s1915_s22 }
 0x39b   : > { %v2283_v13 = vpop.permute.xlu0 %902 }
 0x39c   : > { %905 = vxpose.xlu0.b32.start.end [1/1] (short) (narrow) %v2283_v13, 16 }
 0x3a9   : > { %v842_v26 = vpop.xlane.xlu1 %841 }
 0x3aa   : > { %v844_v2 = vmul.f32 0.0625, %v842_v26 }
 0x3ac   : > { %v2305_v54 = vrot.slane %v844_v2, %v2049_v16 }
 0x3ad   : > { %v1026_v27 = vpop.permute.xlu1 %1025 }
 0x3ae   : > { %v899_v24 = vmul.f32 %v2305_v54, %v1964_v0  ;;  %v900_v18 = vmul.f32 %v2305_v54, %v1969_v1 }
 0x3b1   : > { %v1024_v29 = vpop.permute.xlu1 %1023 }
 0x3b2   : > { %1755 = vmatprep.mubr.msk.f32.mxu0 %vm290_vm0, %v1024_v29 }
 0x3b3   : > { %1756 = vmatmul.mubr.msk.f32.vlgmr.msra.gmra.mrb[4].mxu0 %vm290_vm0, %v1026_v27 }
 0x3b5   : > { %v1030_v30 = vpop.permute.xlu1 %1029 }
 0x3b9   : > { %v1028_v31 = vpop.permute.xlu1 %1027 }
 0x3ba   : > { %1758 = vmatprep.mubr.msk.f32.mxu0 %vm290_vm0, %v1028_v31 }
 0x3bb   : > { %1759 = vmatmul.mubr.msk.f32.gmra.mrb[6].mxu0 %vm290_vm0, %v1030_v30 }
 0x3bd   : > { %v1034_v32 = vpop.permute.xlu1 %1033 }
 0x3c1   : > { %v1032_v28 = vpop.permute.xlu1 %1031 }
 0x3c2   : > { %1761 = vmatprep.mubr.msk.f32.mxu0 %vm290_vm0, %v1032_v28  ;;  %v1634_v28 = vld [vmem:[%s1981_s30 + $0x48] sm:$0xff] }
 0x3c3   : > { %1762 = vmatmul.mubr.msk.f32.gmra.mrb[8].mxu0 %vm290_vm0, %v1034_v32 }
 0x3c5   : > { %v1036_v33 = vpop.permute.xlu1 %1035  ;;  %1837 = vset.pattern.permute.xlu0 %v1916_v48 }
 0x3c6   : > { %1764 = vmatprep.mubr.msk.f32.mxu0 %vm290_vm0, %v1036_v33  ;;  %v1635_v33 = vld [vmem:[%s1981_s30 + $0x50] sm:$0xff] }
 0x3c9   : > { %v1038_v34 = vpop.permute.xlu1 %1037 }
 0x3ca   : > { %1765 = vmatmul.mubr.msk.f32.gmra.mrb[10].mxu0 %vm290_vm0, %v1038_v34  ;;  %v1636_v34 = vld [vmem:[%s1981_s30 + $0x58] sm:$0xff] }
 0x3d5   : > { %v847_v35 = vpop.xlane.xlu0 %846 }
 0x3d6   : > { %v848_v11 = vmul.f32 0.0625, %v847_v35  ;;  %v1637_v35 = vld [vmem:[%s1981_s30 + $0x60] sm:$0xff] }
 0x3d8   : > { %v952_v57 = vrot.slane %v848_v11, %v2049_v16 }
 0x41c   : > { %v921_v36 = vpop.trf.xlu0 }
 0x41d   : > { %939 = vperm.xlu0 %1837, %v921_v36  }
 0x420   : > { %v922_v37 = vpop.trf.xlu0 }
 0x421   : > { %944 = vperm.xlu1 %1838, %v922_v37   ;;  %v1198_v37 = vmul.f32 %v844_v2, %v2054_v17 }
 0x44a   : > { %959 = vxpose.xlu1.b32.start.end [1/1] (short) (narrow) %v894_v45, 16 }
 0x486   : > { %v1757_v46 = vpop.f32.mrb[4].mxu0 }
 0x487   : > { %v1167_v50 = vsel %vm290_vm0, %v1757_v46, 0.0  ;;  %v1127_v51 = vpop.f32.mrb[5].mxu0 }
 0x488   : > { %v1166_v52 = vsel %vm290_vm0, %v1127_v51, 0.0 }
 0x489   : > { %v1168_v53 = vadd.f32 %v1167_v50, %v1166_v52 }
 0x48e   : > { %v1760_v42 = vpop.f32.mrb[6].mxu0 }
 0x48f   : > { %v1137_v56 = vpop.f32.mrb[7].mxu0  ;;  %v1171_v38 = vsel %vm290_vm0, %v1760_v42, 0.0 }
 0x490   : > { %v1169_v6 = vsel %vm290_vm0, %v1137_v56, 0.0 }
 0x491   : > { %v1170_v9 = vadd.f32 %v1169_v6, %v1168_v53  ;;  %v1192_v53 = vmul.f32 %v2283_v13, %v2228_v15 }
 0x493   : > { %v1172_v21 = vadd.f32 %v1171_v38, %v1170_v9 }
 0x496   : > { %v1763_v23 = vpop.f32.mrb[8].mxu0 }
 0x497   : > { %v1147_v49 = vpop.f32.mrb[9].mxu0  ;;  %v1175_v63 = vsel %vm290_vm0, %v1763_v23, 0.0 }
 0x498   : > { %v1173_v58 = vsel %vm290_vm0, %v1147_v49, 0.0 }
 0x499   : > { %v1174_v59 = vadd.f32 %v1173_v58, %v1172_v21 }
 0x49b   : > { %v1176_v7 = vadd.f32 %v1175_v63, %v1174_v59 }
 0x49c   : > { %v940_v40 = vpop.permute.xlu0 %939 }
 0x49d   : > { %v947_v5 = vmul.f32 %v940_v40, %v894_v45  ;;  %v1766_v47 = vpop.f32.mrb[10].mxu0 }
 0x49e   : > { %v1157_v12 = vpop.f32.mrb[11].mxu0  ;;  %v1179_v8 = vsel %vm290_vm0, %v1766_v47, 0.0 }
 0x49f   : > { %v1177_v14 = vsel %vm290_vm0, %v1157_v12, 0.0  ;;  %v953_v22 = vmul.f32 %v952_v57, %v947_v5 }
 0x4a0   : > { %v1178_v19 = vadd.f32 %v1177_v14, %v1176_v7  ;;  %v945_v20 = vpop.permute.xlu1 %944 }
 0x4a1   : > { %v948_v62 = vmul.f32 %v945_v20, %v894_v45  ;;  %v955_v26 = vsub.f32 %v899_v24, %v953_v22 }
 0x4a2   : > { %v1180_v60 = vadd.f32 %v1179_v8, %v1178_v19 }
 0x4a3   : > { %v954_v10 = vmul.f32 %v952_v57, %v948_v62 }
 0x4a4   : > { %v1181_v48 = vrot.slane %v1180_v60, 4 }
 0x4a5   : > { %v956_v27 = vsub.f32 %v900_v18, %v954_v10  ;;  %v1903_v18 = vld [vmem:[%s2387_s4] sm:$0xff] }
 0x4a6   : > { %v1182_v29 = vadd.f32 %v1181_v48, %v1180_v60  ;;  %v957_v10 = vmul.f32 %v1903_v18, %v2305_v54  ;;  %v1904_v48 = vld [vmem:[%s2387_s4 + $0x8] sm:$0xff] }
 0x4a7   : > { %v1813_v30 = vpack.c.bf16 %v956_v27, %v955_v26  ;;  %v958_v26 = vmul.f32 %v1904_v48, %v2305_v54 }
 0x4a8   : > { %v1183_v31 = vrot.slane %v1182_v29, 2 }
 0x4a9   : > { %1814 = vmatprep.subr.bf16.mxu1 %v1813_v30 }
 0x4aa   : > { %v1184_v32 = vadd.f32 %v1183_v31, %v1182_v29  ;;  %1816 = vmatpush3.bf16.msra.mxu1 %v1813_v30 }
 0x4ac   : > { %v1185_v0 = vrot.slane %v1184_v32, 1 }
 0x4ad   : > { %1772 = vmatmul.mubr.msk.f32.vlgmr.msra.gmra.mrb[12].mxu1 %vm290_vm0, %v1634_v28 }
 0x4ae   : > { %v1186_v1 = vadd.f32 %v1185_v0, %v1184_v32  ;;  %1774 = vmatprep.mubr.msk.f32.mxu1 %vm290_vm0, %v1635_v33 }
 0x4b0   : > { %v1187_v36 = vmul.f32 0.015625, %v1186_v1 }
 0x4b1   : > { %1775 = vmatmul.mubr.msk.f32.gmra.mrb[14].mxu1 %vm290_vm0, %v1636_v34 }
 0x4b2   : > { %v1199_v39 = vmul.f32 %v1187_v36, %v848_v11  ;;  %1777 = vmatprep.mubr.msk.f32.mxu1 %vm290_vm0, %v1637_v35 }
 0x4b4   : > { %v1200_v4 = vsub.f32 %v1198_v37, %v1199_v39 }
 0x4b5   : > { %1778 = vmatmul.mubr.msk.f32.gmra.mrb[16].mxu1 %vm290_vm0, %v1638_v43 }
 0x4b6   : > { %1780 = vmatprep.mubr.msk.f32.mxu1 %vm290_vm0, %v1639_v44  ;;  %v1213_v42 = vrot.slane %v1200_v4, %v2049_v16 }
 0x4b9   : > { %1781 = vmatmul.mubr.msk.f32.gmra.mrb[18].mxu1 %vm290_vm0, %v1640_v3 }
 0x4ca   : > { %v975_v55 = vpop.trf.xlu1 }
 0x4cb   : > { %993 = vperm.xlu0 %1837, %v975_v55  }
 0x4ce   : > { %v976_v61 = vpop.trf.xlu1 }
 0x4cf   : > { %998 = vperm.xlu1 %1838, %v976_v61  }
 0x54a   : > { %v994_v45 = vpop.permute.xlu0 %993 }
 0x54b   : > { %v1001_v17 = vmul.f32 %v994_v45, %v2265_v25 }
 0x54d   : > { %v1003_v46 = vmul.f32 %v1001_v17, %v952_v57 }
 0x54e   : > { %v999_v50 = vpop.permute.xlu1 %998 }
 0x54f   : > { %v1002_v51 = vmul.f32 %v999_v50, %v2265_v25  ;;  %1007 = vrot.lane.b32.xlu0 %v1003_v46, %s1915_s22 }
 0x551   : > { %v1004_v52 = vmul.f32 %v1002_v51, %v952_v57 }
 0x553   : > { %1009 = vrot.lane.b32.xlu0 %v1004_v52, %s1915_s22 }
 0x557   : > { %1188 = vrot.lane.b32.xlu0 %v2079_v41, %s1917_s26 }
 0x55b   : > { %1194 = vrot.lane.b32.xlu0 %v1192_v53, %s1917_s26 }
 0x580   : > { %v1773_v56 = vpop.f32.mrb[12].mxu1 }
 0x581   : > { %v1310_v6 = vadd.f32 %v1773_v56, %v1213_v42  ;;  %v1304_v9 = vpop.f32.mrb[13].mxu1 }
 0x582   : > { %v1305_v38 = vadd.f32 %v1304_v9, %v1213_v42 }
 0x583   : > { %v1352_v14 = vmul.f32 0.70710677, %v1310_v6  ;;  %v1344_v36 = vmul.f32 0.5, %v1310_v6 }
 0x584   : > { %v1351_v21 = vmul.f32 0.70710677, %v1305_v38  ;;  %v1776_v25 = vpop.f32.mrb[14].mxu1  ;;  %v1343_v47 = vmul.f32 0.5, %v1305_v38 }
 0x585   : > { %v1320_v23 = vadd.f32 %v1776_v25, %v1213_v42  ;;  %v1314_v49 = vpop.f32.mrb[15].mxu1 }
 0x586   : > { %1887 = verf.f32 %v1351_v21  ;;  %v1315_v58 = vadd.f32 %v1314_v49, %v1213_v42 }
 0x587   : > { %1889 = verf.f32 %v1352_v14  ;;  %v1354_v20 = vmul.f32 0.70710677, %v1320_v23  ;;  %v1346_v45 = vmul.f32 0.5, %v1320_v23 }
 0x588   : > { %v1779_v59 = vpop.f32.mrb[16].mxu1  ;;  %v1353_v19 = vmul.f32 0.70710677, %v1315_v58  ;;  %v1345_v39 = vmul.f32 0.5, %v1315_v58 }
 0x589   : > { %v2337_v63 = vadd.f32 %v1779_v59, %v1213_v42  ;;  %v1324_v41 = vpop.f32.mrb[17].mxu1 }
 0x58a   : > { %v1325_v2 = vadd.f32 %v1324_v41, %v1213_v42  ;;  %1891 = verf.f32 %v1353_v19 }
 0x58b   : > { %1893 = verf.f32 %v1354_v20  ;;  %v1356_v8 = vmul.f32 0.70710677, %v2337_v63  ;;  %v1348_v56 = vmul.f32 0.5, %v2337_v63 }
 0x58c   : > { %v1782_v11 = vpop.f32.mrb[18].mxu1  ;;  %v1355_v22 = vmul.f32 0.70710677, %v1325_v2  ;;  %v1347_v46 = vmul.f32 0.5, %v1325_v2 }
 0x58d   : > { %v2339_v13 = vadd.f32 %v1782_v11, %v1213_v42  ;;  %v1334_v7 = vpop.f32.mrb[19].mxu1 }
 0x58e   : > { %v1335_v40 = vadd.f32 %v1334_v7, %v1213_v42  ;;  %1895 = verf.f32 %v1355_v22 }
 0x58f   : > { %1897 = verf.f32 %v1356_v8  ;;  %v1358_v24 = vmul.f32 0.70710677, %v2339_v13  ;;  %v1350_v25 = vmul.f32 0.5, %v2339_v13 }
 0x590   : > { %v1888_v5 = vpop.eup %1887  ;;  %v1357_v62 = vmul.f32 0.70710677, %v1335_v40  ;;  %v1349_v6 = vmul.f32 0.5, %v1335_v40 }
 0x591   : > { %v1367_v12 = vadd.f32 1.0, %v1888_v5  ;;  %v1890_v27 = vpop.eup %1889 }
 0x592   : > { %1899 = verf.f32 %v1357_v62  ;;  %v1368_v28 = vadd.f32 1.0, %v1890_v27 }
 0x593   : > { %v1375_v57 = vmul.f32 %v1367_v12, %v1343_v47  ;;  %1901 = verf.f32 %v1358_v24 }
 0x594   : > { %v1892_v30 = vpop.eup %1891  ;;  %v1376_v43 = vmul.f32 %v1368_v28, %v1344_v36 }
 0x595   : > { %1787 = vmatprep.mubr.msk.f32.mxu0 %vm290_vm0, %v1375_v57  ;;  %v1894_v0 = vpop.eup %1893  ;;  %v1369_v1 = vadd.f32 1.0, %v1892_v30 }
 0x596   : > { %v1370_v54 = vadd.f32 1.0, %v1894_v0 }
 0x597   : > { %v1377_v4 = vmul.f32 %v1369_v1, %v1345_v39 }
 0x598   : > { %v1896_v35 = vpop.eup %1895  ;;  %v1378_v50 = vmul.f32 %v1370_v54, %v1346_v45 }
 0x599   : > { %v1898_v44 = vpop.eup %1897  ;;  %v1371_v3 = vadd.f32 1.0, %v1896_v35 }
 0x59a   : > { %v1372_v51 = vadd.f32 1.0, %v1898_v44 }
 0x59b   : > { %v1379_v53 = vmul.f32 %v1371_v3, %v1347_v46 }
 0x59c   : > { %v1900_v61 = vpop.eup %1899  ;;  %v1380_v9 = vmul.f32 %v1372_v51, %v1348_v56 }
 0x59d   : > { %v1902_v52 = vpop.eup %1901  ;;  %v1373_v42 = vadd.f32 1.0, %v1900_v61 }
 0x59e   : > { %v1374_v38 = vadd.f32 1.0, %v1902_v52 }
 0x59f   : > { %v1381_v21 = vmul.f32 %v1373_v42, %v1349_v6 }
 0x5c1   : > { %v1008_v60 = vpop.permute.xlu0 %1007 }
 0x5c2   : > { %v1013_v31 = vsub.f32 %v957_v10, %v1008_v60 }
 0x5c5   : > { %v1010_v29 = vpop.permute.xlu0 %1009 }
 0x5c6   : > { %v1014_v32 = vsub.f32 %v958_v26, %v1010_v29 }
 0x5c8   : > { %v1817_v33 = vpack.c.bf16 %v1014_v32, %v1013_v31 }
 0x5c9   : > { %v1189_v34 = vpop.permute.xlu0 %1188 }
 0x5ca   : > { %v1191_v37 = vmul.f32 %v1189_v34, %v2228_v15  ;;  %1818 = vmatprep.subr.bf16.mxu0 %v1817_v33 }
 0x5cb   : > { %1820 = vmatpush3.bf16.msra.mxu0 %v1817_v33 }
 0x5cd   : > { %v1195_v55 = vpop.permute.xlu0 %1194 }
 0x5ce   : > { %v1197_v17 = vsub.f32 %v1191_v37, %v1195_v55  ;;  %1788 = vmatmul.mubr.msk.f32.vlgmr.msra.gmra.mrb[12].mxu0 %vm290_vm0, %v1376_v43 }
 0x5cf   : > { %1790 = vmatprep.mubr.msk.f32.mxu0 %vm290_vm0, %v1377_v4 }
 0x5d0   : > { %v1386_v15 = vrot.slane %v1197_v17, %v2049_v16  ;;  %v1382_v16 = vmul.f32 %v1374_v38, %v1350_v25 }
 0x5d2   : > { %1791 = vmatmul.mubr.msk.f32.gmra.mrb[14].mxu0 %vm290_vm0, %v1378_v50  ;;  %1388 = vrot.lane.b32.xlu0 %v1386_v15, %s1913_s11 }
 0x5d3   : > { %1793 = vmatprep.mubr.msk.f32.mxu0 %vm290_vm0, %v1379_v53 }
 0x5d6   : > { %1794 = vmatmul.mubr.msk.f32.gmra.mrb[16].mxu0 %vm290_vm0, %v1380_v9 }
 0x5d7   : > { %1796 = vmatprep.mubr.msk.f32.mxu0 %vm290_vm0, %v1381_v21 }
 0x5da   : > { %1797 = vmatmul.mubr.msk.f32.gmra.mrb[18].mxu0 %vm290_vm0, %v1382_v16 }
 0x644   : > { %v1389_v23 = vpop.permute.xlu0 %1388 }
 0x6a1   : > { %v1789_v49 = vpop.f32.mrb[12].mxu0 }
 0x6a2   : > { %v1487_v58 = vadd.f32 %v1789_v49, %v1389_v23  ;;  %v1481_v59 = vpop.f32.mrb[13].mxu0 }
 0x6a3   : > { %v1482_v63 = vadd.f32 %v1481_v59, %v1389_v23 }
 0x6a4   : > { %1658 = vst.msk [vmem:[%s2086_s18 + $0x48] sm:$0xff] %vm290_vm0, %v1487_v58 }
 0x6a5   : > { %1657 = vst.msk [vmem:[%s2086_s18 + $0x40] sm:$0xff] %vm290_vm0, %v1482_v63  ;;  %v1792_v41 = vpop.f32.mrb[14].mxu0 }
 0x6a6   : > { %v1497_v2 = vadd.f32 %v1792_v41, %v1389_v23  ;;  %v1491_v11 = vpop.f32.mrb[15].mxu0 }
 0x6a7   : > { %v1492_v13 = vadd.f32 %v1491_v11, %v1389_v23 }
 0x6a8   : > { %1660 = vst.msk [vmem:[%s2086_s18 + $0x58] sm:$0xff] %vm290_vm0, %v1497_v2 }
 0x6a9   : > { %1659 = vst.msk [vmem:[%s2086_s18 + $0x50] sm:$0xff] %vm290_vm0, %v1492_v13  ;;  %v1795_v7 = vpop.f32.mrb[16].mxu0 }
 0x6aa   : > { %v1507_v40 = vadd.f32 %v1795_v7, %v1389_v23  ;;  %v1501_v5 = vpop.f32.mrb[17].mxu0 }
 0x6ab   : > { %v1502_v47 = vadd.f32 %v1501_v5, %v1389_v23 }
 0x6ac   : > { %1662 = vst.msk [vmem:[%s2086_s18 + $0x68] sm:$0xff] %vm290_vm0, %v1507_v40 }
 0x6ad   : > { %1661 = vst.msk [vmem:[%s2086_s18 + $0x60] sm:$0xff] %vm290_vm0, %v1502_v47  ;;  %v1798_v12 = vpop.f32.mrb[18].mxu0 }
 0x6ae   : > { %v1517_v57 = vadd.f32 %v1798_v12, %v1389_v23  ;;  %v1511_v14 = vpop.f32.mrb[19].mxu0 }
 0x6af   : > { %v1512_v19 = vadd.f32 %v1511_v14, %v1389_v23 }
 0x6b0   : > { %1664 = vst.msk [vmem:[%s2086_s18 + $0x78] sm:$0xff] %vm290_vm0, %v1517_v57 }
 0x6b1   : > { %1663 = vst.msk [vmem:[%s2086_s18 + $0x70] sm:$0xff] %vm290_vm0, %v1512_v19 }
 0x6b2 PF: > { %s16_s21 = sadd.s32 1, %s1911_s21  }
 0x6b3   : > { %p13_p4 = scmp.ge.s32.totalorder %s16_s21, 4  }
 0x6b5   :  { %15 = sbr.rel (!%p13_p4) target bundleno = 1 (0x1), region = 79 }

// kernel: yaad_block_forward.5
= control target key start
LH: loop header
LB: loop body
LE: loop exit
PB: predicated region body
PF: predicated region fallthrough
CT: control target
= control target key end

     0   :  { %vm92_vm0 = vcmask 130048   ;;  %vm543_vm1 = vcmask 261120   ;;  %s2516_s19 = smov 64   ;;  %vm1524_vm2 = vcmask 523264   ;;  %s3609_s3 = inlined_call_operand.vmem [shape: f32[16,32], index: 3, kind: input, shape index: {}]   ;;  %s3610_s1 = inlined_call_operand.vmem [shape: f32[256,16], index: 1, kind: input, shape index: {}]   ;;  %s3611_s5 = inlined_call_operand.vmem [shape: f32[32,128], index: 5, kind: input, shape index: {}]   ;;  %s3612_s2 = inlined_call_operand.vmem [shape: f32[256,32], index: 2, kind: input, shape index: {}]   ;;  %s3613_s0 = inlined_call_operand.vmem [shape: f32[256,32], index: 0, kind: input, shape index: {}]   ;;  %s3614_s4 = inlined_call_operand.vmem [shape: f32[1,32], index: 4, kind: input, shape index: {}]   ;;  %s3615_s6 = inlined_call_operand.vmem [shape: f32[64,32], index: 6, kind: input, shape index: {}]   ;;  %s3616_s7 = inlined_call_operand.vmem [shape: f32[256,32], index: 7, kind: output, shape index: {}]  }
   0x1   :  { %v90_v0 = vld [vmem:[%s3609_s3] sm:$0xff]  ;;  %v91_v1 = vld [vmem:[%s3609_s3 + $0x8] sm:$0xff]  ;;  %v60_v5 = vld [vmem:[%s3610_s1 + $0x10] sm:$0xff] }
   0x2   :  { %v58_v2 = vld [vmem:[%s3610_s1] sm:$0xff]  ;;  %v2293_v3 = vpack.c.bf16 %v91_v1, %v90_v0  ;;  %v59_v4 = vld [vmem:[%s3610_s1 + $0x8] sm:$0xff]  ;;  %v76_v8 = vld [vmem:[%s3610_s1 + $0x90] sm:$0xff] }
   0x3   :  { %2125 = vmatprep.mubr.msk.f32.mxu0 %vm92_vm0, %v58_v2  ;;  %v74_v6 = vld [vmem:[%s3610_s1 + $0x80] sm:$0xff]  ;;  %v75_v7 = vld [vmem:[%s3610_s1 + $0x88] sm:$0xff]  ;;  %v61_v9 = vld [vmem:[%s3610_s1 + $0x18] sm:$0xff] }
   0x4   :  { %2294 = vmatprep.subr.bf16.mxu0 %v2293_v3  ;;  %2321 = vmatprep.subr.bf16.mxu1 %v2293_v3  ;;  %v62_v10 = vld [vmem:[%s3610_s1 + $0x20] sm:$0xff]  ;;  %v77_v11 = vld [vmem:[%s3610_s1 + $0x98] sm:$0xff]  ;;  %v63_v13 = vld [vmem:[%s3610_s1 + $0x28] sm:$0xff] }
   0x5   :  { %2296 = vmatpush3.bf16.msra.mxu0 %v2293_v3  ;;  %2322 = vmatpush3.bf16.msra.mxu1 %v2293_v3  ;;  %v78_v12 = vld [vmem:[%s3610_s1 + $0xa0] sm:$0xff]  ;;  %v64_v14 = vld [vmem:[%s3610_s1 + $0x30] sm:$0xff]  ;;  %v79_v15 = vld [vmem:[%s3610_s1 + $0xa8] sm:$0xff] }
   0x6   :  { %2149 = vmatprep.mubr.msk.f32.mxu1 %vm92_vm0, %v74_v6  ;;  %v80_v16 = vld [vmem:[%s3610_s1 + $0xb0] sm:$0xff]  ;;  %v65_v17 = vld [vmem:[%s3610_s1 + $0x38] sm:$0xff]  ;;  %v66_v18 = vld [vmem:[%s3610_s1 + $0x40] sm:$0xff] }
   0x7   :  { %v81_v19 = vld [vmem:[%s3610_s1 + $0xb8] sm:$0xff]  ;;  %v82_v20 = vld [vmem:[%s3610_s1 + $0xc0] sm:$0xff]  ;;  %v67_v21 = vld [vmem:[%s3610_s1 + $0x48] sm:$0xff] }
   0x8   :  { %2126 = vmatmul.mubr.msk.f32.vlgmr.msra.gmra.mrb[0].mxu0 %vm92_vm0, %v59_v4  ;;  %2150 = vmatmul.mubr.msk.f32.vlgmr.msra.gmra.mrb[0].mxu1 %vm92_vm0, %v75_v7  ;;  %v68_v22 = vld [vmem:[%s3610_s1 + $0x50] sm:$0xff]  ;;  %v83_v23 = vld [vmem:[%s3610_s1 + $0xc8] sm:$0xff]  ;;  %v69_v25 = vld [vmem:[%s3610_s1 + $0x58] sm:$0xff] }
   0x9   :  { %2128 = vmatprep.mubr.msk.f32.mxu0 %vm92_vm0, %v60_v5  ;;  %2152 = vmatprep.mubr.msk.f32.mxu1 %vm92_vm0, %v76_v8  ;;  %v84_v24 = vld [vmem:[%s3610_s1 + $0xd0] sm:$0xff]  ;;  %v70_v26 = vld [vmem:[%s3610_s1 + $0x60] sm:$0xff]  ;;  %v85_v27 = vld [vmem:[%s3610_s1 + $0xd8] sm:$0xff] }
   0xa   :  { %v86_v28 = vld [vmem:[%s3610_s1 + $0xe0] sm:$0xff]  ;;  %v71_v29 = vld [vmem:[%s3610_s1 + $0x68] sm:$0xff]  ;;  %v72_v30 = vld [vmem:[%s3610_s1 + $0x70] sm:$0xff] }
   0xb   :  { %v87_v31 = vld [vmem:[%s3610_s1 + $0xe8] sm:$0xff]  ;;  %v88_v32 = vld [vmem:[%s3610_s1 + $0xf0] sm:$0xff]  ;;  %v73_v33 = vld [vmem:[%s3610_s1 + $0x78] sm:$0xff] }
   0xc   :  { %2129 = vmatmul.mubr.msk.f32.gmra.mrb[2].mxu0 %vm92_vm0, %v61_v9  ;;  %2153 = vmatmul.mubr.msk.f32.gmra.mrb[2].mxu1 %vm92_vm0, %v77_v11  ;;  %v89_v34 = vld [vmem:[%s3610_s1 + $0xf8] sm:$0xff]  ;;  %v807_v35 = vld [vmem:[%s3611_s5] sm:$0xff]  ;;  %v808_v36 = vld [vmem:[%s3611_s5 + $0x8] sm:$0xff] }
   0xd   :  { %2131 = vmatprep.mubr.msk.f32.mxu0 %vm92_vm0, %v62_v10  ;;  %2155 = vmatprep.mubr.msk.f32.mxu1 %vm92_vm0, %v78_v12  ;;  %v2297_v37 = vpack.c.bf16 %v808_v36, %v807_v35  ;;  %v415_v38 = vld [vmem:[%s3612_s2 + $0x8] sm:$0xff]  ;;  %v414_v39 = vld [vmem:[%s3612_s2] sm:$0xff]  ;;  %v417_v47 = vld [vmem:[%s3612_s2 + $0x18] sm:$0xff] }
   0xe   :  { %v27_v41 = vld [vmem:[%s3613_s0 + $0x8] sm:$0xff]  ;;  %v26_v43 = vld [vmem:[%s3613_s0] sm:$0xff]  ;;  %v416_v49 = vld [vmem:[%s3612_s2 + $0x10] sm:$0xff] }
   0xf   :  { %2298 = vmatprep.subr.bf16.mxu1 %v2297_v37  ;;  %v29_v53 = vld [vmem:[%s3613_s0 + $0x18] sm:$0xff]  ;;  %v28_v55 = vld [vmem:[%s3613_s0 + $0x10] sm:$0xff]  ;;  %v419_v59 = vld [vmem:[%s3612_s2 + $0x28] sm:$0xff] }
  0x10   :  { %2132 = vmatmul.mubr.msk.f32.gmra.mrb[4].mxu0 %vm92_vm0, %v63_v13  ;;  %2156 = vmatmul.mubr.msk.f32.gmra.mrb[4].mxu1 %vm92_vm0, %v79_v15  ;;  %v418_v62 = vld [vmem:[%s3612_s2 + $0x20] sm:$0xff]  ;;  %v31_v1 = vld [vmem:[%s3613_s0 + $0x28] sm:$0xff]  ;;  %v421_v10 = vld [vmem:[%s3612_s2 + $0x38] sm:$0xff] }
  0x11   :  { %2134 = vmatprep.mubr.msk.f32.mxu0 %vm92_vm0, %v64_v14  ;;  %2158 = vmatprep.mubr.msk.f32.mxu1 %vm92_vm0, %v80_v16  ;;  %v30_v6 = vld [vmem:[%s3613_s0 + $0x20] sm:$0xff]  ;;  %v420_v14 = vld [vmem:[%s3612_s2 + $0x30] sm:$0xff]  ;;  %v33_v16 = vld [vmem:[%s3613_s0 + $0x38] sm:$0xff] }
  0x12   :  { %2300 = vmatpush3.bf16.msra.mxu1 %v2297_v37 }
  0x14   :  { %2135 = vmatmul.mubr.msk.f32.gmra.mrb[6].mxu0 %vm92_vm0, %v65_v17  ;;  %2159 = vmatmul.mubr.msk.f32.gmra.mrb[6].mxu1 %vm92_vm0, %v81_v19 }
  0x15   :  { %2137 = vmatprep.mubr.msk.f32.mxu0 %vm92_vm0, %v66_v18  ;;  %2161 = vmatprep.mubr.msk.f32.mxu1 %vm92_vm0, %v82_v20 }
  0x18   :  { %2138 = vmatmul.mubr.msk.f32.gmra.mrb[8].mxu0 %vm92_vm0, %v67_v21  ;;  %2162 = vmatmul.mubr.msk.f32.gmra.mrb[8].mxu1 %vm92_vm0, %v83_v23 }
  0x19   :  { %2140 = vmatprep.mubr.msk.f32.mxu0 %vm92_vm0, %v68_v22  ;;  %2164 = vmatprep.mubr.msk.f32.mxu1 %vm92_vm0, %v84_v24  ;;  %v32_v22 = vld [vmem:[%s3613_s0 + $0x30] sm:$0xff] }
  0x1c   :  { %2141 = vmatmul.mubr.msk.f32.gmra.mrb[10].mxu0 %vm92_vm0, %v69_v25  ;;  %2165 = vmatmul.mubr.msk.f32.gmra.mrb[10].mxu1 %vm92_vm0, %v85_v27 }
  0x1d   :  { %2143 = vmatprep.mubr.msk.f32.mxu0 %vm92_vm0, %v70_v26  ;;  %2167 = vmatprep.mubr.msk.f32.mxu1 %vm92_vm0, %v86_v28  ;;  %v423_v26 = vld [vmem:[%s3612_s2 + $0x48] sm:$0xff] }
  0x20   :  { %2144 = vmatmul.mubr.msk.f32.gmra.mrb[12].mxu0 %vm92_vm0, %v71_v29  ;;  %2168 = vmatmul.mubr.msk.f32.gmra.mrb[12].mxu1 %vm92_vm0, %v87_v31  ;;  %v422_v31 = vld [vmem:[%s3612_s2 + $0x40] sm:$0xff] }
  0x21   :  { %2146 = vmatprep.mubr.msk.f32.mxu0 %vm92_vm0, %v72_v30  ;;  %2170 = vmatprep.mubr.msk.f32.mxu1 %vm92_vm0, %v88_v32 }
  0x24   :  { %2147 = vmatmul.mubr.msk.f32.gmra.mrb[14].mxu0 %vm92_vm0, %v73_v33  ;;  %2171 = vmatmul.mubr.msk.f32.gmra.mrb[14].mxu1 %vm92_vm0, %v89_v34  ;;  %v35_v33 = vld [vmem:[%s3613_s0 + $0x48] sm:$0xff] }
  0xdb   :  { %v2127_v40 = vpop.f32.mrb[0].mxu0  ;;  %v2709_v45 = vpop.f32.mrb[0].mxu1 }
  0xdc   :  { %v447_v42 = vmul.f32 %v2127_v40, %v415_v38  ;;  %v255_v44 = vpop.f32.mrb[1].mxu0  ;;  %v2714_v48 = vpop.f32.mrb[1].mxu1  ;;  %v34_v38 = vld [vmem:[%s3613_s0 + $0x40] sm:$0xff] }
  0xdd   :  { %v446_v46 = vmul.f32 %v414_v39, %v255_v44 }
  0xde   :  { %v2719_v50 = vadd.f32 %v447_v42, %v27_v41  ;;  %v425_v42 = vld [vmem:[%s3612_s2 + $0x58] sm:$0xff] }
  0xdf   :  { %v2721_v51 = vadd.f32 %v446_v46, %v26_v43  ;;  %v2130_v52 = vpop.f32.mrb[2].mxu0  ;;  %v2729_v57 = vpop.f32.mrb[2].mxu1 }
  0xe0   :  { %v449_v54 = vmul.f32 %v2130_v52, %v417_v47  ;;  %v265_v56 = vpop.f32.mrb[3].mxu0  ;;  %v2736_v61 = vpop.f32.mrb[3].mxu1  ;;  %v512_v4 = vmul.f32 %v2719_v50, %v2719_v50  ;;  %v424_v52 = vld [vmem:[%s3612_s2 + $0x50] sm:$0xff] }
  0xe1   :  { %v448_v58 = vmul.f32 %v416_v49, %v265_v56  ;;  %v511_v60 = vmul.f32 %v2721_v51, %v2721_v51 }
  0xe2   :  { %v2741_v63 = vadd.f32 %v449_v54, %v29_v53  ;;  %v547_v19 = vsel %vm543_vm1, %v512_v4, 0.0  ;;  %v37_v54 = vld [vmem:[%s3613_s0 + $0x58] sm:$0xff] }
  0xe3   :  { %v2743_v0 = vadd.f32 %v448_v58, %v28_v55  ;;  %v2133_v2 = vpop.f32.mrb[4].mxu0  ;;  %v544_v3 = vsel %vm543_vm1, %v511_v60, 0.0  ;;  %v2754_v8 = vpop.f32.mrb[4].mxu1 }
  0xe4   :  { %v451_v5 = vmul.f32 %v2133_v2, %v419_v59  ;;  %v275_v7 = vpop.f32.mrb[5].mxu0  ;;  %545 = vadd.xlane.f32.xlu0 %v544_v3  ;;  %v2761_v12 = vpop.f32.mrb[5].mxu1  ;;  %v514_v20 = vmul.f32 %v2741_v63, %v2741_v63  ;;  %v36_v59 = vld [vmem:[%s3613_s0 + $0x50] sm:$0xff]  ;;  %v427_v2 = vld [vmem:[%s3612_s2 + $0x68] sm:$0xff] }
  0xe5   :  { %v450_v9 = vmul.f32 %v418_v62, %v275_v7  ;;  %v513_v11 = vmul.f32 %v2743_v0, %v2743_v0 }
  0xe6   :  { %v2763_v13 = vadd.f32 %v451_v5, %v31_v1  ;;  %v553_v35 = vsel %vm543_vm1, %v514_v20, 0.0 }
  0xe7   :  { %v2768_v15 = vadd.f32 %v450_v9, %v30_v6  ;;  %v2136_v17 = vpop.f32.mrb[6].mxu0  ;;  %v550_v18 = vsel %vm543_vm1, %v513_v11, 0.0  ;;  %v2780_v24 = vpop.f32.mrb[6].mxu1  ;;  %v430_v6 = vld [vmem:[%s3612_s2 + $0x80] sm:$0xff] }
  0xe8   :  { %v453_v21 = vmul.f32 %v2136_v17, %v421_v10  ;;  %v285_v23 = vpop.f32.mrb[7].mxu0  ;;  %551 = vadd.xlane.f32.xlu1 %v550_v18  ;;  %548 = vadd.xlane.f32.xlu0 %v547_v19  ;;  %v516_v28 = vmul.f32 %v2763_v13, %v2763_v13  ;;  %v2789_v29 = vpop.f32.mrb[7].mxu1  ;;  %v426_v10 = vld [vmem:[%s3612_s2 + $0x60] sm:$0xff] }
  0xe9   :  { %v452_v25 = vmul.f32 %v420_v14, %v285_v23  ;;  %v515_v27 = vmul.f32 %v2768_v15, %v2768_v15  ;;  %v39_v14 = vld [vmem:[%s3613_s0 + $0x68] sm:$0xff]  ;;  %v38_v19 = vld [vmem:[%s3613_s0 + $0x60] sm:$0xff] }
  0xea   :  { %v2791_v30 = vadd.f32 %v453_v21, %v33_v16  ;;  %v559_v43 = vsel %vm543_vm1, %v516_v28, 0.0  ;;  %v431_v21 = vld [vmem:[%s3612_s2 + $0x88] sm:$0xff] }
  0xeb   :  { %v2796_v32 = vadd.f32 %v452_v25, %v32_v22  ;;  %v2139_v34 = vpop.f32.mrb[8].mxu0  ;;  %v556_v36 = vsel %vm543_vm1, %v515_v27, 0.0  ;;  %v2806_v40 = vpop.f32.mrb[8].mxu1  ;;  %v462_v22 = vmul.f32 %v430_v6, %v2714_v48  ;;  %v429_v27 = vld [vmem:[%s3612_s2 + $0x78] sm:$0xff]  ;;  %v432_v48 = vld [vmem:[%s3612_s2 + $0x90] sm:$0xff] }
  0xec   :  { %v455_v37 = vmul.f32 %v2139_v34, %v423_v26  ;;  %v295_v39 = vpop.f32.mrb[9].mxu0  ;;  %554 = vadd.xlane.f32.xlu1 %v553_v35  ;;  %557 = vadd.xlane.f32.xlu0 %v556_v36  ;;  %v518_v46 = vmul.f32 %v2791_v30, %v2791_v30  ;;  %v2816_v47 = vpop.f32.mrb[9].mxu1  ;;  %v428_v36 = vld [vmem:[%s3612_s2 + $0x70] sm:$0xff] }
  0xed   :  { %v454_v41 = vmul.f32 %v422_v31, %v295_v39  ;;  %v517_v44 = vmul.f32 %v2796_v32, %v2796_v32  ;;  %v41_v39 = vld [vmem:[%s3613_s0 + $0x78] sm:$0xff] }
  0xee   :  { %v2818_v49 = vadd.f32 %v455_v37, %v35_v33  ;;  %v565_v3 = vsel %vm543_vm1, %v518_v46, 0.0  ;;  %v42_v33 = vld [vmem:[%s3613_s0 + $0x80] sm:$0xff]  ;;  %v445_v37 = vld [vmem:[%s3612_s2 + $0xf8] sm:$0xff]  ;;  %v40_v46 = vld [vmem:[%s3613_s0 + $0x70] sm:$0xff] }
  0xef   :  { %v2823_v53 = vadd.f32 %v454_v41, %v34_v38  ;;  %v2142_v55 = vpop.f32.mrb[10].mxu0  ;;  %v562_v56 = vsel %vm543_vm1, %v517_v44, 0.0  ;;  %v2832_v62 = vpop.f32.mrb[10].mxu1 }
  0xf0   :  { %3641 = vst [vmem:[#allocation2_spill] sm:$0xff] %v2818_v49  ;;  %v457_v58 = vmul.f32 %v2142_v55, %v425_v42  ;;  %v305_v60 = vpop.f32.mrb[11].mxu0  ;;  %560 = vadd.xlane.f32.xlu1 %v559_v43  ;;  %563 = vadd.xlane.f32.xlu0 %v562_v56  ;;  %v520_v5 = vmul.f32 %v2818_v49, %v2818_v49  ;;  %v2845_v7 = vpop.f32.mrb[11].mxu1 }
  0xf1   :  { %3642 = vst [vmem:[#allocation3_spill] sm:$0xff] %v2823_v53  ;;  %v456_v1 = vmul.f32 %v424_v52, %v305_v60  ;;  %v519_v4 = vmul.f32 %v2823_v53, %v2823_v53  ;;  %v463_v43 = vmul.f32 %v2709_v45, %v431_v21  ;;  %v2904_v55 = vadd.f32 %v462_v22, %v42_v33  ;;  %v57_v45 = vld [vmem:[%s3613_s0 + $0xf8] sm:$0xff]  ;;  %v436_v33 = vld [vmem:[%s3612_s2 + $0xb0] sm:$0xff] }
  0xf2   :  { %v2847_v9 = vadd.f32 %v457_v58, %v37_v54  ;;  %v571_v28 = vsel %vm543_vm1, %v520_v5, 0.0  ;;  %v43_v54 = vld [vmem:[%s3613_s0 + $0x88] sm:$0xff]  ;;  %v464_v58 = vmul.f32 %v432_v48, %v2736_v61  ;;  %v45_v22 = vld [vmem:[%s3613_s0 + $0x98] sm:$0xff] }
  0xf3   :  { %v2852_v11 = vadd.f32 %v456_v1, %v36_v59  ;;  %v2145_v16 = vpop.f32.mrb[12].mxu0  ;;  %v568_v17 = vsel %vm543_vm1, %v519_v4, 0.0  ;;  %v2867_v25 = vpop.f32.mrb[12].mxu1  ;;  %3647 = vst [vmem:[#allocation8_spill] sm:$0xff] %v2904_v55  ;;  %v527_v21 = vmul.f32 %v2904_v55, %v2904_v55 }
  0xf4   :  { %3643 = vst [vmem:[#allocation4_spill] sm:$0xff] %v2847_v9  ;;  %v459_v18 = vmul.f32 %v2145_v16, %v427_v2  ;;  %v315_v20 = vpop.f32.mrb[13].mxu0  ;;  %566 = vadd.xlane.f32.xlu1 %v565_v3  ;;  %569 = vadd.xlane.f32.xlu0 %v568_v17  ;;  %v522_v23 = vmul.f32 %v2847_v9, %v2847_v9  ;;  %v2881_v34 = vpop.f32.mrb[13].mxu1  ;;  %v433_v2 = vld [vmem:[%s3612_s2 + $0x98] sm:$0xff]  ;;  %v44_v3 = vld [vmem:[%s3613_s0 + $0x90] sm:$0xff] }
  0xf5   :  { %3644 = vst [vmem:[#allocation5_spill] sm:$0xff] %v2852_v11  ;;  %v458_v26 = vmul.f32 %v426_v10, %v315_v20  ;;  %v521_v31 = vmul.f32 %v2852_v11, %v2852_v11  ;;  %v434_v10 = vld [vmem:[%s3612_s2 + $0xa0] sm:$0xff]  ;;  %v2930_v16 = vadd.f32 %v463_v43, %v43_v54  ;;  %v2936_v20 = vadd.f32 %v464_v58, %v44_v3  ;;  %v48_v54 = vld [vmem:[%s3613_s0 + $0xb0] sm:$0xff]  ;;  %v810_v58 = vld [vmem:[%s3611_s5 + $0x18] sm:$0xff] }
  0xf6   :  { %v2883_v35 = vadd.f32 %v459_v18, %v39_v14  ;;  %v577_v56 = vsel %vm543_vm1, %v522_v23, 0.0 }
  0xf7   :  { %v2891_v38 = vadd.f32 %v458_v26, %v38_v19  ;;  %v2148_v41 = vpop.f32.mrb[14].mxu0  ;;  %v574_v42 = vsel %vm543_vm1, %v521_v31, 0.0  ;;  %v2172_v59 = vpop.f32.mrb[14].mxu1  ;;  %3650 = vst [vmem:[#allocation11_spill] sm:$0xff] %v2930_v16  ;;  %v465_v19 = vmul.f32 %v2729_v57, %v433_v2  ;;  %3652 = vst [vmem:[#allocation13_spill] sm:$0xff] %v2936_v20  ;;  %v466_v57 = vmul.f32 %v434_v10, %v2761_v12  ;;  %v46_v31 = vld [vmem:[%s3613_s0 + $0xa0] sm:$0xff] }
  0xf8   :  { %3645 = vst [vmem:[#allocation6_spill] sm:$0xff] %v2883_v35  ;;  %v461_v44 = vmul.f32 %v2148_v41, %v429_v27  ;;  %v325_v52 = vpop.f32.mrb[15].mxu0  ;;  %572 = vadd.xlane.f32.xlu1 %v571_v28  ;;  %575 = vadd.xlane.f32.xlu0 %v574_v42  ;;  %v524_v61 = vmul.f32 %v2883_v35, %v2883_v35  ;;  %v2921_v5 = vpop.f32.mrb[15].mxu1  ;;  %v435_v27 = vld [vmem:[%s3612_s2 + $0xa8] sm:$0xff]  ;;  %v592_v12 = vsel %vm543_vm1, %v527_v21, 0.0  ;;  %v50_v10 = vld [vmem:[%s3613_s0 + $0xc0] sm:$0xff] }
  0xf9   :  { %3646 = vst [vmem:[#allocation7_spill] sm:$0xff] %v2891_v38  ;;  %v460_v60 = vmul.f32 %v428_v36, %v325_v52  ;;  %v523_v1 = vmul.f32 %v2891_v38, %v2891_v38  ;;  %v477_v4 = vmul.f32 %v2172_v59, %v445_v37  ;;  %v2959_v36 = vadd.f32 %v465_v19, %v45_v22  ;;  %v47_v52 = vld [vmem:[%s3613_s0 + $0xa8] sm:$0xff] }
  0xfa   :  { %v2923_v6 = vadd.f32 %v461_v44, %v41_v39  ;;  %v583_v23 = vsel %vm543_vm1, %v524_v61, 0.0  ;;  %v467_v37 = vmul.f32 %v2754_v8, %v435_v27  ;;  %v437_v39 = vld [vmem:[%s3612_s2 + $0xb8] sm:$0xff]  ;;  %v528_v41 = vmul.f32 %v2930_v16, %v2930_v16  ;;  %v438_v8 = vld [vmem:[%s3612_s2 + $0xc0] sm:$0xff] }
  0xfb   :  { %v2928_v14 = vadd.f32 %v460_v60, %v40_v46  ;;  %v580_v17 = vsel %vm543_vm1, %v523_v1, 0.0  ;;  %v2933_v18 = vadd.f32 %v477_v4, %v57_v45  ;;  %3653 = vst [vmem:[#allocation14_spill] sm:$0xff] %v2959_v36  ;;  %v2968_v42 = vadd.f32 %v466_v57, %v46_v31  ;;  %v49_v45 = vld [vmem:[%s3613_s0 + $0xb8] sm:$0xff]  ;;  %v439_v4 = vld [vmem:[%s3612_s2 + $0xc8] sm:$0xff] }
  0xfc   :  { %3648 = vst [vmem:[#allocation9_spill] sm:$0xff] %v2923_v6  ;;  %578 = vadd.xlane.f32.xlu1 %v577_v56  ;;  %581 = vadd.xlane.f32.xlu0 %v580_v17  ;;  %v526_v28 = vmul.f32 %v2923_v6, %v2923_v6  ;;  %v468_v44 = vmul.f32 %v436_v33, %v2789_v29  ;;  %v809_v29 = vld [vmem:[%s3611_s5 + $0x10] sm:$0xff]  ;;  %v595_v59 = vsel %vm543_vm1, %v528_v41, 0.0  ;;  %v441_v57 = vld [vmem:[%s3612_s2 + $0xd8] sm:$0xff] }
  0xfd   :  { %3649 = vst [vmem:[#allocation10_spill] sm:$0xff] %v2928_v14  ;;  %3651 = vst [vmem:[#allocation12_spill] sm:$0xff] %v2933_v18  ;;  %v525_v26 = vmul.f32 %v2928_v14, %v2928_v14  ;;  %v529_v46 = vmul.f32 %v2936_v20, %v2936_v20  ;;  %v469_v56 = vmul.f32 %v2780_v24, %v437_v39  ;;  %v440_v17 = vld [vmem:[%s3612_s2 + $0xd0] sm:$0xff]  ;;  %v53_v41 = vld [vmem:[%s3613_s0 + $0xd8] sm:$0xff] }
  0xfe   :  { %3654 = vst [vmem:[#allocation15_spill] sm:$0xff] %v2968_v42  ;;  %v589_v43 = vsel %vm543_vm1, %v526_v28, 0.0  ;;  %v470_v60 = vmul.f32 %v438_v8, %v2816_v47  ;;  %v530_v24 = vmul.f32 %v2959_v36, %v2959_v36  ;;  %v2301_v1 = vpack.c.bf16 %v810_v58, %v809_v29  ;;  %v52_v33 = vld [vmem:[%s3613_s0 + $0xd0] sm:$0xff] }
  0xff   :  { %v586_v48 = vsel %vm543_vm1, %v525_v26, 0.0  ;;  %v2997_v2 = vadd.f32 %v467_v37, %v47_v52  ;;  %v2999_v3 = vadd.f32 %v468_v44, %v48_v54  ;;  %v598_v61 = vsel %vm543_vm1, %v529_v46, 0.0  ;;  %v51_v26 = vld [vmem:[%s3613_s0 + $0xc8] sm:$0xff]  ;;  %v444_v54 = vld [vmem:[%s3612_s2 + $0xf0] sm:$0xff] }
 0x100   :  { %584 = vadd.xlane.f32.xlu1 %v583_v23  ;;  %587 = vadd.xlane.f32.xlu0 %v586_v48  ;;  %v531_v47 = vmul.f32 %v2968_v42, %v2968_v42  ;;  %v3013_v19 = vadd.f32 %v469_v56, %v49_v45  ;;  %v471_v21 = vmul.f32 %v2806_v40, %v439_v4  ;;  %v601_v23 = vsel %vm543_vm1, %v530_v24, 0.0  ;;  %v442_v48 = vld [vmem:[%s3612_s2 + $0xe0] sm:$0xff]  ;;  %v443_v52 = vld [vmem:[%s3612_s2 + $0xe8] sm:$0xff] }
 0x101   :  { %3655 = vst [vmem:[#allocation16_spill] sm:$0xff] %v2997_v2  ;;  %3656 = vst [vmem:[#allocation17_spill] sm:$0xff] %v2999_v3  ;;  %2302 = vmatprep.subr.bf16.mxu1 %v2301_v1  ;;  %v3016_v22 = vadd.f32 %v470_v60, %v50_v10  ;;  %v472_v28 = vmul.f32 %v440_v17, %v2845_v7  ;;  %v532_v31 = vmul.f32 %v2997_v2, %v2997_v2 }
 0x102   :  { %3657 = vst [vmem:[#allocation18_spill] sm:$0xff] %v3013_v19  ;;  %2304 = vmatpush3.bf16.msra.mxu1 %v2301_v1  ;;  %v604_v27 = vsel %vm543_vm1, %v531_v47, 0.0  ;;  %v533_v40 = vmul.f32 %v2999_v3, %v2999_v3  ;;  %v534_v37 = vmul.f32 %v3013_v19, %v3013_v19  ;;  %v473_v7 = vmul.f32 %v2832_v62, %v441_v57  ;;  %v54_v62 = vld [vmem:[%s3613_s0 + $0xe0] sm:$0xff]  ;;  %v55_v1 = vld [vmem:[%s3613_s0 + $0xe8] sm:$0xff] }
 0x103   :  { %3658 = vst [vmem:[#allocation19_spill] sm:$0xff] %v3016_v22  ;;  %v535_v39 = vmul.f32 %v3016_v22, %v3016_v22  ;;  %v607_v44 = vsel %vm543_vm1, %v532_v31, 0.0  ;;  %v474_v8 = vmul.f32 %v442_v48, %v2881_v34  ;;  %v475_v45 = vmul.f32 %v2867_v25, %v443_v52 }
 0x104   :  { %590 = vadd.xlane.f32.xlu1 %v589_v43  ;;  %593 = vadd.xlane.f32.xlu0 %v592_v12  ;;  %v3039_v12 = vadd.f32 %v471_v21, %v51_v26  ;;  %v3047_v43 = vadd.f32 %v472_v28, %v52_v33  ;;  %v610_v46 = vsel %vm543_vm1, %v533_v40, 0.0  ;;  %v3061_v56 = vadd.f32 %v473_v7, %v53_v41 }
 0x105   :  { %v613_v29 = vsel %vm543_vm1, %v534_v37, 0.0  ;;  %v616_v34 = vsel %vm543_vm1, %v535_v39, 0.0  ;;  %v476_v60 = vmul.f32 %v444_v54, %v2921_v5  ;;  %v3082_v10 = vadd.f32 %v475_v45, %v55_v1 }
 0x106   :  { %3659 = vst [vmem:[#allocation20_spill] sm:$0xff] %v3039_v12  ;;  %3660 = vst [vmem:[#allocation21_spill] sm:$0xff] %v3047_v43  ;;  %v536_v58 = vmul.f32 %v3039_v12, %v3039_v12  ;;  %v537_v24 = vmul.f32 %v3047_v43, %v3047_v43  ;;  %v538_v25 = vmul.f32 %v3061_v56, %v3061_v56 }
 0x107   :  { %3661 = vst [vmem:[#allocation22_spill] sm:$0xff] %v3061_v56  ;;  %3663 = vst [vmem:[#allocation24_spill] sm:$0xff] %v3082_v10  ;;  %v540_v26 = vmul.f32 %v3082_v10, %v3082_v10  ;;  %v542_v31 = vmul.f32 %v2933_v18, %v2933_v18 }
 0x108   :  { %596 = vadd.xlane.f32.xlu1 %v595_v59  ;;  %599 = vadd.xlane.f32.xlu0 %v598_v61  ;;  %v3068_v59 = vadd.f32 %v474_v8, %v54_v62  ;;  %v56_v61 = vld [vmem:[%s3613_s0 + $0xf0] sm:$0xff]  ;;  %v619_v4 = vsel %vm543_vm1, %v536_v58, 0.0  ;;  %v622_v47 = vsel %vm543_vm1, %v537_v24, 0.0  ;;  %v625_v21 = vsel %vm543_vm1, %v538_v25, 0.0 }
 0x109   :  { %v3084_v5 = vadd.f32 %v476_v60, %v56_v61  ;;  %v631_v57 = vsel %vm543_vm1, %v540_v26, 0.0  ;;  %v637_v40 = vsel %vm543_vm1, %v542_v31, 0.0 }
 0x10a   :  { %3662 = vst [vmem:[#allocation23_spill] sm:$0xff] %v3068_v59  ;;  %v539_v17 = vmul.f32 %v3068_v59, %v3068_v59 }
 0x10b   :  { %3664 = vst [vmem:[#allocation25_spill] sm:$0xff] %v3084_v5 }
 0x10c   :  { %602 = vadd.xlane.f32.xlu1 %v601_v23  ;;  %605 = vadd.xlane.f32.xlu0 %v604_v27  ;;  %v628_v23 = vsel %vm543_vm1, %v539_v17, 0.0  ;;  %v541_v27 = vmul.f32 %v3084_v5, %v3084_v5 }
 0x10e   :  { %v634_v28 = vsel %vm543_vm1, %v541_v27, 0.0 }
 0x110   :  { %608 = vadd.xlane.f32.xlu1 %v607_v44  ;;  %611 = vadd.xlane.f32.xlu0 %v610_v46 }
 0x114   :  { %614 = vadd.xlane.f32.xlu1 %v613_v29  ;;  %617 = vadd.xlane.f32.xlu0 %v616_v34 }
 0x118   :  { %620 = vadd.xlane.f32.xlu1 %v619_v4  ;;  %623 = vadd.xlane.f32.xlu0 %v622_v47  ;;  %v3103_v4 = vld [vmem:[%s3614_s4] ss:$0 sm:$0xff] }
 0x11c   :  { %626 = vadd.xlane.f32.xlu1 %v625_v21  ;;  %629 = vadd.xlane.f32.xlu0 %v628_v23 }
 0x120   :  { %632 = vadd.xlane.f32.xlu1 %v631_v57  ;;  %635 = vadd.xlane.f32.xlu0 %v634_v28 }
 0x124   :  { %638 = vadd.xlane.f32.xlu1 %v637_v40 }
 0x171   :  { %v546_v33 = vpop.xlane.xlu0 %545 }
 0x172   :  { %v641_v48 = vmul.f32 0.03125, %v546_v33 }
 0x174   :  { %v673_v37 = vadd.f32 1.1920929e-07, %v641_v48 }
 0x175   :  { %v552_v7 = vpop.xlane.xlu1 %551  ;;  %v549_v39 = vpop.xlane.xlu0 %548 }
 0x176   :  { %2324 = vrsqrt.f32 %v673_v37  ;;  %v643_v41 = vmul.f32 0.03125, %v552_v7  ;;  %v642_v44 = vmul.f32 0.03125, %v549_v39 }
 0x178   :  { %v675_v46 = vadd.f32 1.1920929e-07, %v643_v41  ;;  %v674_v8 = vadd.f32 1.1920929e-07, %v642_v44 }
 0x179   :  { %v555_v52 = vpop.xlane.xlu1 %554  ;;  %v558_v62 = vpop.xlane.xlu0 %557 }
 0x17a   :  { %2326 = vrsqrt.f32 %v675_v46  ;;  %v644_v54 = vmul.f32 0.03125, %v555_v52  ;;  %v645_v29 = vmul.f32 0.03125, %v558_v62 }
 0x17b   :  { %2328 = vrsqrt.f32 %v674_v8 }
 0x17c   :  { %v676_v34 = vadd.f32 1.1920929e-07, %v644_v54  ;;  %v677_v58 = vadd.f32 1.1920929e-07, %v645_v29 }
 0x17d   :  { %v561_v45 = vpop.xlane.xlu1 %560  ;;  %v564_v60 = vpop.xlane.xlu0 %563 }
 0x17e   :  { %2330 = vrsqrt.f32 %v676_v34  ;;  %v646_v24 = vmul.f32 0.03125, %v561_v45  ;;  %v647_v1 = vmul.f32 0.03125, %v564_v60 }
 0x17f   :  { %2332 = vrsqrt.f32 %v677_v58 }
 0x180   :  { %v2325_v61 = vpop.eup %2324  ;;  %v678_v25 = vadd.f32 1.1920929e-07, %v646_v24  ;;  %v679_v47 = vadd.f32 1.1920929e-07, %v647_v1 }
 0x181   :  { %v567_v17 = vpop.xlane.xlu1 %566  ;;  %v570_v21 = vpop.xlane.xlu0 %569  ;;  %v737_v23 = vmul.f32 %v2325_v61, %v2721_v51 }
 0x182   :  { %2334 = vrsqrt.f32 %v678_v25  ;;  %v648_v26 = vmul.f32 0.03125, %v567_v17  ;;  %v649_v27 = vmul.f32 0.03125, %v570_v21 }
 0x183   :  { %2336 = vrsqrt.f32 %v679_v47  ;;  %v775_v57 = vmul.f32 %v3103_v4, %v737_v23 }
 0x184   :  { %v2327_v28 = vpop.eup %2326  ;;  %v680_v31 = vadd.f32 1.1920929e-07, %v648_v26  ;;  %v681_v40 = vadd.f32 1.1920929e-07, %v649_v27 }
 0x185   :  { %v2329_v33 = vpop.eup %2328  ;;  %v573_v48 = vpop.xlane.xlu1 %572  ;;  %2181 = vmatprep.mubr.msk.f32.mxu1 %vm543_vm1, %v775_v57  ;;  %v739_v7 = vmul.f32 %v2327_v28, %v2743_v0 }
 0x186   :  { %v576_v37 = vpop.xlane.xlu0 %575  ;;  %v738_v39 = vmul.f32 %v2329_v33, %v2719_v50  ;;  %2338 = vrsqrt.f32 %v680_v31  ;;  %v650_v41 = vmul.f32 0.03125, %v573_v48 }
 0x187   :  { %v651_v44 = vmul.f32 0.03125, %v576_v37  ;;  %2340 = vrsqrt.f32 %v681_v40  ;;  %v777_v46 = vmul.f32 %v3103_v4, %v739_v7 }
 0x188   :  { %v2331_v8 = vpop.eup %2330  ;;  %v776_v52 = vmul.f32 %v3103_v4, %v738_v39  ;;  %v682_v62 = vadd.f32 1.1920929e-07, %v650_v41 }
 0x189   :  { %v683_v54 = vadd.f32 1.1920929e-07, %v651_v44  ;;  %v2333_v29 = vpop.eup %2332  ;;  %v579_v34 = vpop.xlane.xlu1 %578  ;;  %v740_v45 = vmul.f32 %v2331_v8, %v2741_v63 }
 0x18a   :  { %v582_v58 = vpop.xlane.xlu0 %581  ;;  %2342 = vrsqrt.f32 %v682_v62  ;;  %v652_v60 = vmul.f32 0.03125, %v579_v34  ;;  %2182 = vmatmul.mubr.msk.f32.vlgmr.msra.gmra.mrb[16].mxu1 %vm543_vm1, %v776_v52  ;;  %v741_v1 = vmul.f32 %v2333_v29, %v2768_v15 }
 0x18b   :  { %v653_v24 = vmul.f32 0.03125, %v582_v58  ;;  %2344 = vrsqrt.f32 %v683_v54  ;;  %2184 = vmatprep.mubr.msk.f32.mxu1 %vm543_vm1, %v777_v46  ;;  %v778_v61 = vmul.f32 %v3103_v4, %v740_v45 }
 0x18c   :  { %v2335_v25 = vpop.eup %2334  ;;  %v684_v47 = vadd.f32 1.1920929e-07, %v652_v60  ;;  %v779_v21 = vmul.f32 %v3103_v4, %v741_v1 }
 0x18d   :  { %v685_v17 = vadd.f32 1.1920929e-07, %v653_v24  ;;  %v2337_v23 = vpop.eup %2336  ;;  %v585_v26 = vpop.xlane.xlu1 %584  ;;  %v742_v57 = vmul.f32 %v2335_v25, %v2763_v13 }
 0x18e   :  { %v588_v27 = vpop.xlane.xlu0 %587  ;;  %2346 = vrsqrt.f32 %v684_v47  ;;  %v654_v28 = vmul.f32 0.03125, %v585_v26  ;;  %2185 = vmatmul.mubr.msk.f32.gmra.mrb[18].mxu1 %vm543_vm1, %v778_v61  ;;  %v743_v40 = vmul.f32 %v2337_v23, %v2796_v32 }
 0x18f   :  { %v655_v31 = vmul.f32 0.03125, %v588_v27  ;;  %2348 = vrsqrt.f32 %v685_v17  ;;  %2187 = vmatprep.mubr.msk.f32.mxu1 %vm543_vm1, %v779_v21  ;;  %v780_v33 = vmul.f32 %v3103_v4, %v742_v57 }
 0x190   :  { %v2339_v48 = vpop.eup %2338  ;;  %v686_v37 = vadd.f32 1.1920929e-07, %v654_v28  ;;  %v781_v39 = vmul.f32 %v3103_v4, %v743_v40 }
 0x191   :  { %v687_v7 = vadd.f32 1.1920929e-07, %v655_v31  ;;  %v2341_v41 = vpop.eup %2340  ;;  %v591_v44 = vpop.xlane.xlu1 %590  ;;  %v744_v8 = vmul.f32 %v2339_v48, %v2791_v30 }
 0x192   :  { %v594_v46 = vpop.xlane.xlu0 %593  ;;  %2350 = vrsqrt.f32 %v686_v37  ;;  %v656_v52 = vmul.f32 0.03125, %v591_v44  ;;  %2188 = vmatmul.mubr.msk.f32.gmra.mrb[20].mxu1 %vm543_vm1, %v780_v33  ;;  %v745_v54 = vmul.f32 %v2341_v41, %v2823_v53 }
 0x193   :  { %v657_v62 = vmul.f32 0.03125, %v594_v46  ;;  %2352 = vrsqrt.f32 %v687_v7  ;;  %2190 = vmatprep.mubr.msk.f32.mxu1 %vm543_vm1, %v781_v39  ;;  %v782_v29 = vmul.f32 %v3103_v4, %v744_v8 }
 0x194   :  { %v2343_v34 = vpop.eup %2342  ;;  %v688_v58 = vadd.f32 1.1920929e-07, %v656_v52  ;;  %v783_v60 = vmul.f32 %v3103_v4, %v745_v54 }
 0x195   :  { %v689_v45 = vadd.f32 1.1920929e-07, %v657_v62  ;;  %v2345_v24 = vpop.eup %2344  ;;  %v597_v1 = vpop.xlane.xlu1 %596  ;;  %v746_v25 = vmul.f32 %v2343_v34, %v2818_v49 }
 0x196   :  { %v600_v61 = vpop.xlane.xlu0 %599  ;;  %2354 = vrsqrt.f32 %v688_v58  ;;  %v658_v47 = vmul.f32 0.03125, %v597_v1  ;;  %2191 = vmatmul.mubr.msk.f32.gmra.mrb[22].mxu1 %vm543_vm1, %v782_v29  ;;  %v747_v21 = vmul.f32 %v2345_v24, %v2852_v11 }
 0x197   :  { %v659_v17 = vmul.f32 0.03125, %v600_v61  ;;  %2356 = vrsqrt.f32 %v689_v45  ;;  %2193 = vmatprep.mubr.msk.f32.mxu1 %vm543_vm1, %v783_v60  ;;  %v784_v23 = vmul.f32 %v3103_v4, %v746_v25 }
 0x198   :  { %v2347_v26 = vpop.eup %2346  ;;  %v690_v27 = vadd.f32 1.1920929e-07, %v658_v47  ;;  %v785_v28 = vmul.f32 %v3103_v4, %v747_v21 }
 0x199   :  { %v691_v57 = vadd.f32 1.1920929e-07, %v659_v17  ;;  %v2349_v31 = vpop.eup %2348  ;;  %v603_v40 = vpop.xlane.xlu1 %602  ;;  %v748_v48 = vmul.f32 %v2347_v26, %v2847_v9 }
 0x19a   :  { %v606_v33 = vpop.xlane.xlu0 %605  ;;  %2358 = vrsqrt.f32 %v690_v27  ;;  %v660_v37 = vmul.f32 0.03125, %v603_v40  ;;  %2194 = vmatmul.mubr.msk.f32.gmra.mrb[24].mxu1 %vm543_vm1, %v784_v23  ;;  %v749_v39 = vmul.f32 %v2349_v31, %v2891_v38 }
 0x19b   :  { %v661_v7 = vmul.f32 0.03125, %v606_v33  ;;  %2360 = vrsqrt.f32 %v691_v57  ;;  %2196 = vmatprep.mubr.msk.f32.mxu1 %vm543_vm1, %v785_v28  ;;  %v786_v41 = vmul.f32 %v3103_v4, %v748_v48 }
 0x19c   :  { %v2351_v44 = vpop.eup %2350  ;;  %v692_v46 = vadd.f32 1.1920929e-07, %v660_v37  ;;  %v787_v52 = vmul.f32 %v3103_v4, %v749_v39 }
 0x19d   :  { %v693_v8 = vadd.f32 1.1920929e-07, %v661_v7  ;;  %v2353_v62 = vpop.eup %2352  ;;  %v609_v54 = vpop.xlane.xlu1 %608  ;;  %v750_v34 = vmul.f32 %v2351_v44, %v2883_v35 }
 0x19e   :  { %v612_v29 = vpop.xlane.xlu0 %611  ;;  %2362 = vrsqrt.f32 %v692_v46  ;;  %v662_v58 = vmul.f32 0.03125, %v609_v54  ;;  %2197 = vmatmul.mubr.msk.f32.gmra.mrb[26].mxu1 %vm543_vm1, %v786_v41  ;;  %v751_v60 = vmul.f32 %v2353_v62, %v2928_v14 }
 0x19f   :  { %v663_v45 = vmul.f32 0.03125, %v612_v29  ;;  %2364 = vrsqrt.f32 %v693_v8  ;;  %2199 = vmatprep.mubr.msk.f32.mxu1 %vm543_vm1, %v787_v52  ;;  %v788_v24 = vmul.f32 %v3103_v4, %v750_v34 }
 0x1a0   :  { %v2355_v1 = vpop.eup %2354  ;;  %v694_v61 = vadd.f32 1.1920929e-07, %v662_v58  ;;  %v789_v47 = vmul.f32 %v3103_v4, %v751_v60 }
 0x1a1   :  { %v695_v25 = vadd.f32 1.1920929e-07, %v663_v45  ;;  %v2357_v17 = vpop.eup %2356  ;;  %v615_v21 = vpop.xlane.xlu1 %614  ;;  %v752_v26 = vmul.f32 %v2355_v1, %v2923_v6 }
 0x1a2   :  { %v618_v23 = vpop.xlane.xlu0 %617  ;;  %2366 = vrsqrt.f32 %v694_v61  ;;  %v664_v27 = vmul.f32 0.03125, %v615_v21  ;;  %2200 = vmatmul.mubr.msk.f32.gmra.mrb[28].mxu1 %vm543_vm1, %v788_v24  ;;  %v753_v28 = vmul.f32 %v2357_v17, %v2904_v55 }
 0x1a3   :  { %v665_v57 = vmul.f32 0.03125, %v618_v23  ;;  %2368 = vrsqrt.f32 %v695_v25  ;;  %2202 = vmatprep.mubr.msk.f32.mxu1 %vm543_vm1, %v789_v47  ;;  %v790_v31 = vmul.f32 %v3103_v4, %v752_v26 }
 0x1a4   :  { %v2359_v40 = vpop.eup %2358  ;;  %v696_v33 = vadd.f32 1.1920929e-07, %v664_v27  ;;  %v791_v37 = vmul.f32 %v3103_v4, %v753_v28 }
 0x1a5   :  { %v697_v48 = vadd.f32 1.1920929e-07, %v665_v57  ;;  %v2361_v7 = vpop.eup %2360  ;;  %v621_v39 = vpop.xlane.xlu1 %620  ;;  %v754_v44 = vmul.f32 %v2359_v40, %v2930_v16 }
 0x1a6   :  { %v624_v41 = vpop.xlane.xlu0 %623  ;;  %2370 = vrsqrt.f32 %v696_v33  ;;  %v666_v46 = vmul.f32 0.03125, %v621_v39  ;;  %2203 = vmatmul.mubr.msk.f32.gmra.mrb[30].mxu1 %vm543_vm1, %v790_v31  ;;  %v755_v52 = vmul.f32 %v2361_v7, %v2936_v20 }
 0x1a7   :  { %v667_v8 = vmul.f32 0.03125, %v624_v41  ;;  %2372 = vrsqrt.f32 %v697_v48  ;;  %2205 = vmatprep.mubr.msk.f32.mxu1 %vm543_vm1, %v791_v37  ;;  %v792_v62 = vmul.f32 %v3103_v4, %v754_v44 }
 0x1a8   :  { %v2363_v54 = vpop.eup %2362  ;;  %v698_v29 = vadd.f32 1.1920929e-07, %v666_v46  ;;  %v793_v58 = vmul.f32 %v3103_v4, %v755_v52 }
 0x1a9   :  { %v699_v34 = vadd.f32 1.1920929e-07, %v667_v8  ;;  %v2365_v45 = vpop.eup %2364  ;;  %v627_v60 = vpop.xlane.xlu1 %626  ;;  %v756_v1 = vmul.f32 %v2363_v54, %v2959_v36 }
 0x1aa   :  { %v630_v24 = vpop.xlane.xlu0 %629  ;;  %2374 = vrsqrt.f32 %v698_v29  ;;  %v668_v61 = vmul.f32 0.03125, %v627_v60  ;;  %2206 = vmatmul.mubr.msk.f32.gmra.mrb[32].mxu1 %vm543_vm1, %v792_v62  ;;  %v757_v47 = vmul.f32 %v2365_v45, %v2968_v42 }
 0x1ab   :  { %v669_v25 = vmul.f32 0.03125, %v630_v24  ;;  %2376 = vrsqrt.f32 %v699_v34  ;;  %2208 = vmatprep.mubr.msk.f32.mxu1 %vm543_vm1, %v793_v58  ;;  %v794_v17 = vmul.f32 %v3103_v4, %v756_v1 }
 0x1ac   :  { %v2367_v21 = vpop.eup %2366  ;;  %v700_v23 = vadd.f32 1.1920929e-07, %v668_v61  ;;  %v795_v27 = vmul.f32 %v3103_v4, %v757_v47 }
 0x1ad   :  { %v701_v26 = vadd.f32 1.1920929e-07, %v669_v25  ;;  %v2369_v57 = vpop.eup %2368  ;;  %v633_v28 = vpop.xlane.xlu1 %632  ;;  %v758_v40 = vmul.f32 %v2367_v21, %v2997_v2 }
 0x1ae   :  { %v636_v31 = vpop.xlane.xlu0 %635  ;;  %2378 = vrsqrt.f32 %v700_v23  ;;  %v670_v33 = vmul.f32 0.03125, %v633_v28  ;;  %2209 = vmatmul.mubr.msk.f32.gmra.mrb[34].mxu1 %vm543_vm1, %v794_v17  ;;  %v759_v37 = vmul.f32 %v2369_v57, %v2999_v3 }
 0x1af   :  { %v671_v48 = vmul.f32 0.03125, %v636_v31  ;;  %2380 = vrsqrt.f32 %v701_v26  ;;  %2211 = vmatprep.mubr.msk.f32.mxu1 %vm543_vm1, %v795_v27  ;;  %v796_v7 = vmul.f32 %v3103_v4, %v758_v40 }
 0x1b0   :  { %v2371_v39 = vpop.eup %2370  ;;  %v702_v41 = vadd.f32 1.1920929e-07, %v670_v33  ;;  %v797_v46 = vmul.f32 %v3103_v4, %v759_v37 }
 0x1b1   :  { %v703_v44 = vadd.f32 1.1920929e-07, %v671_v48  ;;  %v2373_v8 = vpop.eup %2372  ;;  %v639_v52 = vpop.xlane.xlu1 %638  ;;  %v760_v62 = vmul.f32 %v2371_v39, %v3013_v19 }
 0x1b2   :  { %2382 = vrsqrt.f32 %v702_v41  ;;  %v672_v54 = vmul.f32 0.03125, %v639_v52  ;;  %2212 = vmatmul.mubr.msk.f32.gmra.mrb[36].mxu1 %vm543_vm1, %v796_v7  ;;  %v761_v29 = vmul.f32 %v2373_v8, %v3016_v22  ;;  %v1518_v8 = vld [vmem:[%s3615_s6 + $0x10] sm:$0xff] }
 0x1b3   :  { %2384 = vrsqrt.f32 %v703_v44  ;;  %2214 = vmatprep.mubr.msk.f32.mxu1 %vm543_vm1, %v797_v46  ;;  %v798_v34 = vmul.f32 %v3103_v4, %v760_v62  ;;  %v1516_v44 = vld [vmem:[%s3615_s6] sm:$0xff]  ;;  %v1517_v46 = vld [vmem:[%s3615_s6 + $0x8] sm:$0xff]  ;;  %v1519_v62 = vld [vmem:[%s3615_s6 + $0x18] sm:$0xff] }
 0x1b4   :  { %v2375_v58 = vpop.eup %2374  ;;  %v704_v45 = vadd.f32 1.1920929e-07, %v672_v54  ;;  %v799_v60 = vmul.f32 %v3103_v4, %v761_v29  ;;  %v2305_v52 = vpack.c.bf16 %v1517_v46, %v1516_v44  ;;  %v1520_v54 = vld [vmem:[%s3615_s6 + $0x20] sm:$0xff]  ;;  %v1521_v29 = vld [vmem:[%s3615_s6 + $0x28] sm:$0xff] }
 0x1b5   :  { %v2377_v24 = vpop.eup %2376  ;;  %v762_v1 = vmul.f32 %v2375_v58, %v3039_v12  ;;  %v1522_v58 = vld [vmem:[%s3615_s6 + $0x30] sm:$0xff] }
 0x1b6   :  { %2386 = vrsqrt.f32 %v704_v45  ;;  %2215 = vmatmul.mubr.msk.f32.gmra.mrb[38].mxu1 %vm543_vm1, %v798_v34  ;;  %v763_v61 = vmul.f32 %v2377_v24, %v3047_v43  ;;  %2306 = vmatprep.subr.bf16.mxu0 %v2305_v52  ;;  %v2313_v34 = vpack.c.bf16 %v1521_v29, %v1520_v54  ;;  %v1523_v45 = vld [vmem:[%s3615_s6 + $0x38] sm:$0xff] }
 0x1b7   :  { %2217 = vmatprep.mubr.msk.f32.mxu1 %vm543_vm1, %v799_v60  ;;  %v800_v25 = vmul.f32 %v3103_v4, %v762_v1  ;;  %2308 = vmatpush3.bf16.msra.mxu0 %v2305_v52  ;;  %v2317_v60 = vpack.c.bf16 %v1523_v45, %v1522_v58 }
 0x1b8   :  { %v2379_v47 = vpop.eup %2378  ;;  %v801_v17 = vmul.f32 %v3103_v4, %v763_v61 }
 0x1b9   :  { %v2381_v21 = vpop.eup %2380  ;;  %v764_v23 = vmul.f32 %v2379_v47, %v3061_v56 }
 0x1ba   :  { %2218 = vmatmul.mubr.msk.f32.gmra.mrb[40].mxu1 %vm543_vm1, %v800_v25  ;;  %v765_v26 = vmul.f32 %v2381_v21, %v3068_v59 }
 0x1bb   :  { %2220 = vmatprep.mubr.msk.f32.mxu1 %vm543_vm1, %v801_v17  ;;  %v802_v27 = vmul.f32 %v3103_v4, %v764_v23 }
 0x1bc   :  { %v2383_v57 = vpop.eup %2382  ;;  %v803_v28 = vmul.f32 %v3103_v4, %v765_v26 }
 0x1bd   :  { %v2385_v31 = vpop.eup %2384  ;;  %v766_v40 = vmul.f32 %v2383_v57, %v3082_v10 }
 0x1be   :  { %2221 = vmatmul.mubr.msk.f32.gmra.mrb[42].mxu1 %vm543_vm1, %v802_v27  ;;  %v767_v33 = vmul.f32 %v2385_v31, %v3084_v5 }
 0x1bf   :  { %2223 = vmatprep.mubr.msk.f32.mxu1 %vm543_vm1, %v803_v28  ;;  %v804_v48 = vmul.f32 %v3103_v4, %v766_v40 }
 0x1c0   :  { %v2387_v37 = vpop.eup %2386  ;;  %v805_v7 = vmul.f32 %v3103_v4, %v767_v33 }
 0x1c1   :  { %v768_v39 = vmul.f32 %v2387_v37, %v2933_v18 }
 0x1c2   :  { %2224 = vmatmul.mubr.msk.f32.gmra.mrb[44].mxu1 %vm543_vm1, %v804_v48 }
 0x1c3   :  { %2226 = vmatprep.mubr.msk.f32.mxu1 %vm543_vm1, %v805_v7  ;;  %v806_v41 = vmul.f32 %v3103_v4, %v768_v39  ;;  %v2309_v4 = vpack.c.bf16 %v1519_v62, %v1518_v8 }
 0x1c5   :  { %2310 = vmatprep.subr.bf16.mxu0 %v2309_v4 }
 0x1c6   :  { %2227 = vmatmul.mubr.msk.f32.gmra.mrb[46].mxu1 %vm543_vm1, %v806_v41  ;;  %2312 = vmatpush3.bf16.msra.mxu0 %v2309_v4 }
 0x1c7   :  { %2314 = vmatprep.subr.bf16.mxu0 %v2313_v34 }
 0x1ca   :  { %2316 = vmatpush3.bf16.msra.mxu0 %v2313_v34 }
 0x1cb   :  { %2318 = vmatprep.subr.bf16.mxu0 %v2317_v60 }
 0x1ce   :  { %2320 = vmatpush3.bf16.msra.mxu0 %v2317_v60 }
 0x25d   :  { %v3225_v24 = vpop.f32.mrb[16].mxu1 }
 0x25e   :  { %1390 = vrot.lane.b32.xlu1 %v3225_v24, %s2516_s19  ;;  %v3229_v1 = vpop.f32.mrb[17].mxu1  ;;  %v1133_v5 = vsub.f32 0.0, %v3225_v24 }
 0x25f   :  { %1388 = vrot.lane.b32.xlu0 %v3229_v1, %s2516_s19  ;;  %v1132_v18 = vsub.f32 0.0, %v3229_v1 }
 0x260   :  { %v1166_v59 = vmul.f32 1.442695, %v1133_v5 }
 0x261   :  { %v3233_v61 = vpop.f32.mrb[18].mxu1  ;;  %v1164_v10 = vmul.f32 1.442695, %v1132_v18 }
 0x262   :  { %v3235_v25 = vpop.f32.mrb[19].mxu1  ;;  %2388 = vpow2.f32 %v1166_v59  ;;  %v1135_v56 = vsub.f32 0.0, %v3233_v61 }
 0x263   :  { %1392 = vrot.lane.b32.xlu1 %v3235_v25, %s2516_s19  ;;  %v1134_v43 = vsub.f32 0.0, %v3235_v25  ;;  %2390 = vpow2.f32 %v1164_v10 }
 0x264   :  { %v1170_v19 = vmul.f32 1.442695, %v1135_v56 }
 0x265   :  { %v3239_v47 = vpop.f32.mrb[20].mxu1  ;;  %v1168_v22 = vmul.f32 1.442695, %v1134_v43 }
 0x266   :  { %v3241_v17 = vpop.f32.mrb[21].mxu1  ;;  %v1137_v3 = vsub.f32 0.0, %v3239_v47 }
 0x267   :  { %1394 = vrot.lane.b32.xlu1 %v3233_v61, %s2516_s19  ;;  %1396 = vrot.lane.b32.xlu0 %v3241_v17, %s2516_s19  ;;  %v1136_v12 = vsub.f32 0.0, %v3241_v17  ;;  %2392 = vpow2.f32 %v1168_v22 }
 0x268   :  { %v1174_v5 = vmul.f32 1.442695, %v1137_v3  ;;  %2394 = vpow2.f32 %v1170_v19 }
 0x269   :  { %v3247_v21 = vpop.f32.mrb[22].mxu1  ;;  %v1172_v2 = vmul.f32 1.442695, %v1136_v12 }
 0x26a   :  { %v3249_v23 = vpop.f32.mrb[23].mxu1  ;;  %v1139_v42 = vsub.f32 0.0, %v3247_v21 }
 0x26b   :  { %1398 = vrot.lane.b32.xlu1 %v3239_v47, %s2516_s19  ;;  %1400 = vrot.lane.b32.xlu0 %v3249_v23, %s2516_s19  ;;  %v1138_v20 = vsub.f32 0.0, %v3249_v23  ;;  %2396 = vpow2.f32 %v1172_v2 }
 0x26c   :  { %v1178_v18 = vmul.f32 1.442695, %v1139_v42  ;;  %v2389_v36 = vpop.eup %2388  ;;  %2398 = vpow2.f32 %v1174_v5 }
 0x26d   :  { %v3255_v26 = vpop.f32.mrb[24].mxu1  ;;  %v1176_v10 = vmul.f32 1.442695, %v1138_v20  ;;  %v2391_v43 = vpop.eup %2390  ;;  %v1229_v22 = vadd.f32 1.0, %v2389_v36 }
 0x26e   :  { %v3257_v27 = vpop.f32.mrb[25].mxu1  ;;  %v1141_v55 = vsub.f32 0.0, %v3255_v26  ;;  %2400 = vpow2.f32 %v1178_v18  ;;  %v1228_v12 = vadd.f32 1.0, %v2391_v43 }
 0x26f   :  { %1402 = vrot.lane.b32.xlu1 %v3247_v21, %s2516_s19  ;;  %1404 = vrot.lane.b32.xlu0 %v3257_v27, %s2516_s19  ;;  %v1140_v59 = vsub.f32 0.0, %v3257_v27  ;;  %2402 = vpow2.f32 %v1176_v10 }
 0x270   :  { %v1182_v3 = vmul.f32 1.442695, %v1141_v55 }
 0x271   :  { %v3263_v57 = vpop.f32.mrb[26].mxu1  ;;  %v1180_v56 = vmul.f32 1.442695, %v1140_v59  ;;  %v2393_v14 = vpop.eup %2392 }
 0x272   :  { %v3265_v28 = vpop.f32.mrb[27].mxu1  ;;  %v1143_v42 = vsub.f32 0.0, %v3263_v57  ;;  %v2395_v20 = vpop.eup %2394  ;;  %v1230_v5 = vadd.f32 1.0, %v2393_v14 }
 0x273   :  { %1406 = vrot.lane.b32.xlu1 %v3255_v26, %s2516_s19  ;;  %1408 = vrot.lane.b32.xlu0 %v3265_v28, %s2516_s19  ;;  %v1142_v16 = vsub.f32 0.0, %v3265_v28  ;;  %2404 = vpow2.f32 %v1180_v56  ;;  %v1231_v43 = vadd.f32 1.0, %v2395_v20 }
 0x274   :  { %2406 = vrcp.f32 %v1229_v22  ;;  %v1186_v18 = vmul.f32 1.442695, %v1143_v42 }
 0x275   :  { %v3271_v31 = vpop.f32.mrb[28].mxu1  ;;  %v1184_v19 = vmul.f32 1.442695, %v1142_v16  ;;  %2408 = vrcp.f32 %v1228_v12  ;;  %v2397_v6 = vpop.eup %2396 }
 0x276   :  { %v3273_v40 = vpop.f32.mrb[29].mxu1  ;;  %2410 = vpow2.f32 %v1182_v3  ;;  %v1145_v59 = vsub.f32 0.0, %v3271_v31  ;;  %v2399_v10 = vpop.eup %2398  ;;  %v1232_v38 = vadd.f32 1.0, %v2397_v6 }
 0x277   :  { %1410 = vrot.lane.b32.xlu1 %v3263_v57, %s2516_s19  ;;  %1412 = vrot.lane.b32.xlu0 %v3273_v40, %s2516_s19  ;;  %v1144_v2 = vsub.f32 0.0, %v3273_v40  ;;  %2412 = vpow2.f32 %v1184_v19  ;;  %v1233_v35 = vadd.f32 1.0, %v2399_v10 }
 0x278   :  { %v2401_v55 = vpop.eup %2400  ;;  %2414 = vrcp.f32 %v1230_v5  ;;  %v1190_v56 = vmul.f32 1.442695, %v1145_v59 }
 0x279   :  { %v3279_v33 = vpop.f32.mrb[30].mxu1  ;;  %v1188_v36 = vmul.f32 1.442695, %v1144_v2  ;;  %2416 = vpow2.f32 %v1186_v18  ;;  %v2403_v22 = vpop.eup %2402  ;;  %v1235_v12 = vadd.f32 1.0, %v2401_v55 }
 0x27a   :  { %v3281_v48 = vpop.f32.mrb[31].mxu1  ;;  %v1147_v14 = vsub.f32 0.0, %v3279_v33  ;;  %v1234_v20 = vadd.f32 1.0, %v2403_v22 }
 0x27b   :  { %1414 = vrot.lane.b32.xlu1 %v3271_v31, %s2516_s19  ;;  %1416 = vrot.lane.b32.xlu0 %v3281_v48, %s2516_s19  ;;  %v1146_v16 = vsub.f32 0.0, %v3281_v48  ;;  %2418 = vpow2.f32 %v1188_v36 }
 0x27c   :  { %2420 = vrcp.f32 %v1231_v43  ;;  %v1194_v18 = vmul.f32 1.442695, %v1147_v14 }
 0x27d   :  { %v3287_v37 = vpop.f32.mrb[32].mxu1  ;;  %v2405_v3 = vpop.eup %2404  ;;  %2422 = vrcp.f32 %v1232_v38  ;;  %v1192_v42 = vmul.f32 1.442695, %v1146_v16 }
 0x27e   :  { %v3289_v7 = vpop.f32.mrb[33].mxu1  ;;  %v2407_v2 = vpop.eup %2406  ;;  %2424 = vpow2.f32 %v1190_v56  ;;  %v1149_v6 = vsub.f32 0.0, %v3287_v37  ;;  %v1236_v36 = vadd.f32 1.0, %v2405_v3 }
 0x27f   :  { %1418 = vrot.lane.b32.xlu1 %v3279_v33, %s2516_s19  ;;  %1420 = vrot.lane.b32.xlu0 %v3289_v7, %s2516_s19  ;;  %v1148_v19 = vsub.f32 0.0, %v3289_v7  ;;  %v2409_v5 = vpop.eup %2408  ;;  %2426 = vrcp.f32 %v1233_v35 }
 0x280   :  { %v2411_v59 = vpop.eup %2410  ;;  %2428 = vrcp.f32 %v1235_v12  ;;  %v1198_v38 = vmul.f32 1.442695, %v1149_v6  ;;  %v1324_v9 = vmul.f32 %v2409_v5, %v3229_v1  ;;  %v1325_v12 = vmul.f32 %v2407_v2, %v3225_v24 }
 0x281   :  { %v3295_v39 = vpop.f32.mrb[34].mxu1  ;;  %v2413_v10 = vpop.eup %2412  ;;  %2430 = vpow2.f32 %v1192_v42  ;;  %v1196_v43 = vmul.f32 1.442695, %v1148_v19  ;;  %v1237_v22 = vadd.f32 1.0, %v2411_v59 }
 0x282   :  { %v3297_v41 = vpop.f32.mrb[35].mxu1  ;;  %2432 = vrcp.f32 %v1234_v20  ;;  %v1151_v16 = vsub.f32 0.0, %v3295_v39  ;;  %v2415_v11 = vpop.eup %2414  ;;  %v1238_v14 = vadd.f32 1.0, %v2413_v10 }
 0x283   :  { %1422 = vrot.lane.b32.xlu1 %v3287_v37, %s2516_s19  ;;  %1424 = vrot.lane.b32.xlu0 %v3297_v41, %s2516_s19  ;;  %v1150_v55 = vsub.f32 0.0, %v3297_v41  ;;  %2434 = vpow2.f32 %v1194_v18  ;;  %v2417_v35 = vpop.eup %2416  ;;  %v1326_v24 = vmul.f32 %v2415_v11, %v3235_v25 }
 0x284   :  { %2436 = vrcp.f32 %v1236_v36  ;;  %v1202_v59 = vmul.f32 1.442695, %v1151_v16  ;;  %v1239_v5 = vadd.f32 1.0, %v2417_v35 }
 0x285   :  { %v3303_v44 = vpop.f32.mrb[36].mxu1  ;;  %v2419_v42 = vpop.eup %2418  ;;  %2438 = vpow2.f32 %v1196_v43  ;;  %v1200_v19 = vmul.f32 1.442695, %v1150_v55 }
 0x286   :  { %v3305_v46 = vpop.f32.mrb[37].mxu1  ;;  %v2421_v53 = vpop.eup %2420  ;;  %2440 = vpow2.f32 %v1198_v38  ;;  %v1153_v18 = vsub.f32 0.0, %v3303_v44  ;;  %v1240_v36 = vadd.f32 1.0, %v2419_v42 }
 0x287   :  { %1426 = vrot.lane.b32.xlu1 %v3295_v39, %s2516_s19  ;;  %1428 = vrot.lane.b32.xlu0 %v3305_v46, %s2516_s19  ;;  %v1152_v20 = vsub.f32 0.0, %v3305_v46  ;;  %v2423_v1 = vpop.eup %2422  ;;  %2442 = vrcp.f32 %v1237_v22 }
 0x288   :  { %v2425_v2 = vpop.eup %2424  ;;  %2444 = vrcp.f32 %v1238_v14  ;;  %v1206_v22 = vmul.f32 1.442695, %v1153_v18  ;;  %v1328_v14 = vmul.f32 %v2423_v1, %v3241_v17 }
 0x289   :  { %v3311_v8 = vpop.f32.mrb[38].mxu1  ;;  %2446 = vpow2.f32 %v1200_v19  ;;  %v1204_v55 = vmul.f32 1.442695, %v1152_v20  ;;  %v1241_v11 = vadd.f32 1.0, %v2425_v2 }
 0x28a   :  { %v3313_v52 = vpop.f32.mrb[39].mxu1  ;;  %2448 = vpow2.f32 %v1202_v59  ;;  %v1155_v25 = vsub.f32 0.0, %v3311_v8 }
 0x28b   :  { %1430 = vrot.lane.b32.xlu1 %v3303_v44, %s2516_s19  ;;  %1432 = vrot.lane.b32.xlu0 %v3313_v52, %s2516_s19  ;;  %v1154_v10 = vsub.f32 0.0, %v3313_v52  ;;  %2450 = vrcp.f32 %v1239_v5 }
 0x28c   :  { %2452 = vrcp.f32 %v1240_v36  ;;  %v1210_v5 = vmul.f32 1.442695, %v1155_v25 }
 0x28d   :  { %v3319_v62 = vpop.f32.mrb[40].mxu1  ;;  %2454 = vpow2.f32 %v1204_v55 }
 0x28e   :  { %v3321_v4 = vpop.f32.mrb[41].mxu1  ;;  %2456 = vpow2.f32 %v1206_v22  ;;  %v1157_v36 = vsub.f32 0.0, %v3319_v62 }
 0x28f   :  { %1434 = vrot.lane.b32.xlu1 %v3311_v8, %s2516_s19  ;;  %1436 = vrot.lane.b32.xlu0 %v3321_v4, %s2516_s19  ;;  %v1156_v20 = vsub.f32 0.0, %v3321_v4 }
 0x291   :  { %v3327_v54 = vpop.f32.mrb[42].mxu1 }
 0x292   :  { %v3329_v29 = vpop.f32.mrb[43].mxu1 }
 0x293   :  { %1438 = vrot.lane.b32.xlu1 %v3319_v62, %s2516_s19  ;;  %1440 = vrot.lane.b32.xlu0 %v3329_v29, %s2516_s19  ;;  %v1158_v22 = vsub.f32 0.0, %v3329_v29 }
 0x295   :  { %v3335_v34 = vpop.f32.mrb[44].mxu1 }
 0x296   :  { %v3337_v58 = vpop.f32.mrb[45].mxu1 }
 0x297   :  { %1442 = vrot.lane.b32.xlu1 %v3327_v54, %s2516_s19  ;;  %1444 = vrot.lane.b32.xlu0 %v3337_v58, %s2516_s19 }
 0x299   :  { %v3343_v45 = vpop.f32.mrb[46].mxu1 }
 0x29a   :  { %v3345_v60 = vpop.f32.mrb[47].mxu1 }
 0x29b   :  { %1446 = vrot.lane.b32.xlu1 %v3335_v34, %s2516_s19  ;;  %1448 = vrot.lane.b32.xlu0 %v3345_v60, %s2516_s19 }
 0x29f   :  { %1450 = vrot.lane.b32.xlu1 %v3343_v45, %s2516_s19 }
 0x2d0   :  { %v1391_v56 = vpop.permute.xlu1 %1390 }
 0x2d1   :  { %v1389_v3 = vpop.permute.xlu0 %1388  ;;  %v1485_v49 = vmul.f32 %v1391_v56, %v1325_v12  ;;  %v1327_v56 = vmul.f32 %v2421_v53, %v3233_v61 }
 0x2d2   :  { %v1484_v6 = vmul.f32 %v1389_v3, %v1324_v9  ;;  %v2427_v9 = vpop.eup %2426  ;;  %2458 = vrcp.f32 %v1241_v11 }
 0x2d3   :  { %v2429_v16 = vpop.eup %2428  ;;  %v1329_v17 = vmul.f32 %v2427_v9, %v3239_v47 }
 0x2d4   :  { %2245 = vmatprep.mubr.msk.f32.mxu0 %vm1524_vm2, %v1484_v6  ;;  %v2431_v35 = vpop.eup %2430  ;;  %v1331_v25 = vmul.f32 %v2429_v16, %v3247_v21 }
 0x2d5   :  { %v1393_v43 = vpop.permute.xlu1 %1392  ;;  %2246 = vmatmul.mubr.msk.f32.vlgmr.msra.gmra.mrb[16].mxu0 %vm1524_vm2, %v1485_v49  ;;  %v2433_v12 = vpop.eup %2432  ;;  %v1208_v49 = vmul.f32 1.442695, %v1154_v10  ;;  %v1242_v59 = vadd.f32 1.0, %v2431_v35 }
 0x2d6   :  { %v1486_v38 = vmul.f32 %v1393_v43, %v1326_v24  ;;  %v2435_v19 = vpop.eup %2434  ;;  %v1330_v1 = vmul.f32 %v2433_v12, %v3249_v23 }
 0x2d7   :  { %v2437_v61 = vpop.eup %2436  ;;  %v1243_v2 = vadd.f32 1.0, %v2435_v19  ;;  %2460 = vpow2.f32 %v1208_v49  ;;  %v1214_v49 = vmul.f32 1.442695, %v1157_v36 }
 0x2d8   :  { %2248 = vmatprep.mubr.msk.f32.mxu0 %vm1524_vm2, %v1486_v38  ;;  %v2439_v18 = vpop.eup %2438  ;;  %v1212_v38 = vmul.f32 1.442695, %v1156_v20  ;;  %2462 = vrcp.f32 %v1242_v59 }
 0x2d9   :  { %v1395_v3 = vpop.permute.xlu1 %1394  ;;  %v1397_v42 = vpop.permute.xlu0 %1396  ;;  %v1244_v47 = vadd.f32 1.0, %v2439_v18  ;;  %2464 = vpow2.f32 %v1210_v5 }
 0x2da   :  { %v1487_v6 = vmul.f32 %v1395_v3, %v1327_v56  ;;  %v1488_v53 = vmul.f32 %v1397_v42, %v1328_v14  ;;  %v2441_v24 = vpop.eup %2440  ;;  %v1332_v14 = vmul.f32 %v2437_v61, %v3257_v27  ;;  %2466 = vrcp.f32 %v1243_v2 }
 0x2db   :  { %v2443_v55 = vpop.eup %2442  ;;  %v1245_v23 = vadd.f32 1.0, %v2441_v24  ;;  %v1159_v3 = vsub.f32 0.0, %v3327_v54  ;;  %v1160_v42 = vsub.f32 0.0, %v3337_v58  ;;  %2468 = vpow2.f32 %v1212_v38 }
 0x2dc   :  { %2249 = vmatmul.mubr.msk.f32.gmra.mrb[18].mxu0 %vm1524_vm2, %v1487_v6  ;;  %v2445_v11 = vpop.eup %2444  ;;  %2470 = vrcp.f32 %v1244_v47  ;;  %v1333_v61 = vmul.f32 %v2443_v55, %v3255_v26  ;;  %v1161_v2 = vsub.f32 0.0, %v3335_v34 }
 0x2dd   :  { %v1399_v10 = vpop.permute.xlu1 %1398  ;;  %2251 = vmatprep.mubr.msk.f32.mxu0 %vm1524_vm2, %v1488_v53  ;;  %v1401_v43 = vpop.permute.xlu0 %1400  ;;  %v1216_v53 = vmul.f32 1.442695, %v1158_v22  ;;  %2472 = vrcp.f32 %v1245_v23  ;;  %v1218_v24 = vmul.f32 1.442695, %v1159_v3  ;;  %v1220_v36 = vmul.f32 1.442695, %v1160_v42 }
 0x2de   :  { %v1489_v56 = vmul.f32 %v1399_v10, %v1329_v17  ;;  %v1490_v35 = vmul.f32 %v1401_v43, %v1330_v1  ;;  %v2447_v9 = vpop.eup %2446  ;;  %v1334_v17 = vmul.f32 %v2445_v11, %v3265_v28  ;;  %2474 = vpow2.f32 %v1214_v49 }
 0x2df   :  { %v2449_v12 = vpop.eup %2448  ;;  %v1246_v21 = vadd.f32 1.0, %v2447_v9  ;;  %2476 = vpow2.f32 %v1216_v53  ;;  %v1162_v22 = vsub.f32 0.0, %v3345_v60  ;;  %v1222_v23 = vmul.f32 1.442695, %v1161_v2 }
 0x2e0   :  { %2252 = vmatmul.mubr.msk.f32.gmra.mrb[20].mxu0 %vm1524_vm2, %v1489_v56  ;;  %v2451_v6 = vpop.eup %2450  ;;  %v1247_v16 = vadd.f32 1.0, %v2449_v12 }
 0x2e1   :  { %v1403_v19 = vpop.permute.xlu1 %1402  ;;  %2254 = vmatprep.mubr.msk.f32.mxu0 %vm1524_vm2, %v1490_v35  ;;  %v1405_v20 = vpop.permute.xlu0 %1404  ;;  %2478 = vrcp.f32 %v1246_v21  ;;  %v1335_v55 = vmul.f32 %v2451_v6, %v3263_v57  ;;  %v1224_v3 = vmul.f32 1.442695, %v1162_v22 }
 0x2e2   :  { %v1491_v59 = vmul.f32 %v1403_v19, %v1331_v25  ;;  %v1492_v18 = vmul.f32 %v1405_v20, %v1332_v14  ;;  %v2453_v5 = vpop.eup %2452  ;;  %2480 = vrcp.f32 %v1247_v16  ;;  %v1163_v25 = vsub.f32 0.0, %v3343_v45 }
 0x2e3   :  { %v2455_v27 = vpop.eup %2454  ;;  %v1336_v11 = vmul.f32 %v2453_v5, %v3273_v40  ;;  %2482 = vpow2.f32 %v1218_v24 }
 0x2e4   :  { %2255 = vmatmul.mubr.msk.f32.gmra.mrb[22].mxu0 %vm1524_vm2, %v1491_v59  ;;  %v2457_v1 = vpop.eup %2456  ;;  %v1248_v26 = vadd.f32 1.0, %v2455_v27  ;;  %2484 = vpow2.f32 %v1220_v36  ;;  %v1226_v16 = vmul.f32 1.442695, %v1163_v25 }
 0x2e5   :  { %v1407_v10 = vpop.permute.xlu1 %1406  ;;  %2257 = vmatprep.mubr.msk.f32.mxu0 %vm1524_vm2, %v1492_v18  ;;  %v1409_v43 = vpop.permute.xlu0 %1408  ;;  %v1249_v28 = vadd.f32 1.0, %v2457_v1 }
 0x2e6   :  { %v2459_v38 = vpop.eup %2458  ;;  %v1493_v56 = vmul.f32 %v1407_v10, %v1333_v61  ;;  %v1494_v35 = vmul.f32 %v1409_v43, %v1334_v17  ;;  %2486 = vrcp.f32 %v1248_v26 }
 0x2e7   :  { %v2461_v47 = vpop.eup %2460  ;;  %2488 = vrcp.f32 %v1249_v28  ;;  %v1337_v40 = vmul.f32 %v2459_v38, %v3271_v31 }
 0x2e8   :  { %2258 = vmatmul.mubr.msk.f32.gmra.mrb[24].mxu0 %vm1524_vm2, %v1493_v56  ;;  %v2463_v9 = vpop.eup %2462  ;;  %v1250_v53 = vadd.f32 1.0, %v2461_v47  ;;  %2490 = vpow2.f32 %v1222_v23 }
 0x2e9   :  { %v1411_v14 = vpop.permute.xlu1 %1410  ;;  %2260 = vmatprep.mubr.msk.f32.mxu0 %vm1524_vm2, %v1494_v35  ;;  %v1413_v12 = vpop.permute.xlu0 %1412  ;;  %v1338_v6 = vmul.f32 %v2463_v9, %v3281_v48  ;;  %2492 = vpow2.f32 %v1224_v3 }
 0x2ea   :  { %v2465_v49 = vpop.eup %2464  ;;  %v1495_v42 = vmul.f32 %v1411_v14, %v1335_v55  ;;  %v1496_v19 = vmul.f32 %v1413_v12, %v1336_v11  ;;  %2494 = vrcp.f32 %v1250_v53 }
 0x2eb   :  { %v2467_v20 = vpop.eup %2466  ;;  %v1251_v18 = vadd.f32 1.0, %v2465_v49 }
 0x2ec   :  { %v2469_v57 = vpop.eup %2468  ;;  %2261 = vmatmul.mubr.msk.f32.gmra.mrb[26].mxu0 %vm1524_vm2, %v1495_v42  ;;  %v1339_v31 = vmul.f32 %v2467_v20, %v3279_v33 }
 0x2ed   :  { %v2471_v59 = vpop.eup %2470  ;;  %v1415_v5 = vpop.permute.xlu1 %1414  ;;  %2263 = vmatprep.mubr.msk.f32.mxu0 %vm1524_vm2, %v1496_v19  ;;  %v1252_v24 = vadd.f32 1.0, %v2469_v57  ;;  %2496 = vrcp.f32 %v1251_v18 }
 0x2ee   :  { %v1417_v21 = vpop.permute.xlu0 %1416  ;;  %v2473_v27 = vpop.eup %2472  ;;  %v1497_v61 = vmul.f32 %v1415_v5, %v1337_v40  ;;  %v1340_v48 = vmul.f32 %v2471_v59, %v3289_v7  ;;  %2498 = vpow2.f32 %v1226_v16 }
 0x2ef   :  { %v1498_v17 = vmul.f32 %v1417_v21, %v1338_v6  ;;  %v2475_v1 = vpop.eup %2474  ;;  %2500 = vrcp.f32 %v1252_v24  ;;  %v1341_v33 = vmul.f32 %v2473_v27, %v3287_v37 }
 0x2f0   :  { %v2477_v2 = vpop.eup %2476  ;;  %2264 = vmatmul.mubr.msk.f32.gmra.mrb[28].mxu0 %vm1524_vm2, %v1497_v61  ;;  %v1253_v22 = vadd.f32 1.0, %v2475_v1 }
 0x2f1   :  { %v2479_v36 = vpop.eup %2478  ;;  %v1419_v10 = vpop.permute.xlu1 %1418  ;;  %2266 = vmatprep.mubr.msk.f32.mxu0 %vm1524_vm2, %v1498_v17  ;;  %v1254_v26 = vadd.f32 1.0, %v2477_v2 }
 0x2f2   :  { %v1421_v43 = vpop.permute.xlu0 %1420  ;;  %v2481_v38 = vpop.eup %2480  ;;  %v1499_v56 = vmul.f32 %v1419_v10, %v1339_v31  ;;  %v1342_v7 = vmul.f32 %v2479_v36, %v3297_v41  ;;  %2502 = vrcp.f32 %v1253_v22 }
 0x2f3   :  { %v1500_v35 = vmul.f32 %v1421_v43, %v1340_v48  ;;  %v2483_v47 = vpop.eup %2482  ;;  %2504 = vrcp.f32 %v1254_v26  ;;  %v1343_v37 = vmul.f32 %v2481_v38, %v3295_v39 }
 0x2f4   :  { %v2485_v28 = vpop.eup %2484  ;;  %2267 = vmatmul.mubr.msk.f32.gmra.mrb[30].mxu0 %vm1524_vm2, %v1499_v56  ;;  %v1255_v25 = vadd.f32 1.0, %v2483_v47 }
 0x2f5   :  { %v2487_v55 = vpop.eup %2486  ;;  %v1423_v11 = vpop.permute.xlu1 %1422  ;;  %2269 = vmatprep.mubr.msk.f32.mxu0 %vm1524_vm2, %v1500_v35  ;;  %v1256_v3 = vadd.f32 1.0, %v2485_v28 }
 0x2f6   :  { %v1425_v9 = vpop.permute.xlu0 %1424  ;;  %v2489_v23 = vpop.eup %2488  ;;  %v1501_v14 = vmul.f32 %v1423_v11, %v1341_v33  ;;  %v1344_v41 = vmul.f32 %v2487_v55, %v3305_v46  ;;  %2506 = vrcp.f32 %v1255_v25 }
 0x2f7   :  { %v1502_v12 = vmul.f32 %v1425_v9, %v1342_v7  ;;  %v2491_v49 = vpop.eup %2490  ;;  %2508 = vrcp.f32 %v1256_v3  ;;  %v1345_v21 = vmul.f32 %v2489_v23, %v3303_v44 }
 0x2f8   :  { %v2493_v42 = vpop.eup %2492  ;;  %2270 = vmatmul.mubr.msk.f32.gmra.mrb[32].mxu0 %vm1524_vm2, %v1501_v14  ;;  %v1257_v57 = vadd.f32 1.0, %v2491_v49 }
 0x2f9   :  { %v2495_v19 = vpop.eup %2494  ;;  %v1427_v20 = vpop.permute.xlu1 %1426  ;;  %2272 = vmatprep.mubr.msk.f32.mxu0 %vm1524_vm2, %v1502_v12  ;;  %v1258_v18 = vadd.f32 1.0, %v2493_v42 }
 0x2fa   :  { %v1429_v53 = vpop.permute.xlu0 %1428  ;;  %v1503_v40 = vmul.f32 %v1427_v20, %v1343_v37  ;;  %v2497_v59 = vpop.eup %2496  ;;  %v1346_v39 = vmul.f32 %v2495_v19, %v3313_v52  ;;  %2510 = vrcp.f32 %v1257_v57 }
 0x2fb   :  { %v1504_v6 = vmul.f32 %v1429_v53, %v1344_v41  ;;  %v2499_v5 = vpop.eup %2498  ;;  %2512 = vrcp.f32 %v1258_v18  ;;  %v1347_v2 = vmul.f32 %v2497_v59, %v3311_v8 }
 0x2fc   :  { %2273 = vmatmul.mubr.msk.f32.gmra.mrb[34].mxu0 %vm1524_vm2, %v1503_v40  ;;  %v2501_v46 = vpop.eup %2500  ;;  %v1259_v1 = vadd.f32 1.0, %v2499_v5 }
 0x2fd   :  { %v1431_v27 = vpop.permute.xlu1 %1430  ;;  %2275 = vmatprep.mubr.msk.f32.mxu0 %vm1524_vm2, %v1504_v6  ;;  %v2503_v24 = vpop.eup %2502  ;;  %v1348_v31 = vmul.f32 %v2501_v46, %v3321_v4 }
 0x2fe   :  { %v1433_v16 = vpop.permute.xlu0 %1432  ;;  %v1505_v61 = vmul.f32 %v1431_v27, %v1345_v21  ;;  %v2505_v44 = vpop.eup %2504  ;;  %2514 = vrcp.f32 %v1259_v1  ;;  %v1349_v38 = vmul.f32 %v2503_v24, %v3319_v62  ;;  %v3666_v21 = vld [vmem:[#allocation3_spill] sm:$0xff]  ;;  %v3669_v1 = vld [vmem:[#allocation6_spill] sm:$0xff] }
 0x2ff   :  { %v1506_v17 = vmul.f32 %v1433_v16, %v1346_v39  ;;  %v1350_v22 = vmul.f32 %v2505_v44, %v3329_v29  ;;  %v3668_v16 = vld [vmem:[#allocation5_spill] sm:$0xff] }
 0x300   :  { %2276 = vmatmul.mubr.msk.f32.gmra.mrb[36].mxu0 %vm1524_vm2, %v1505_v61  ;;  %v2507_v43 = vpop.eup %2506 }
 0x301   :  { %v1435_v48 = vpop.permute.xlu1 %1434  ;;  %2278 = vmatprep.mubr.msk.f32.mxu0 %vm1524_vm2, %v1506_v17  ;;  %v2509_v56 = vpop.eup %2508  ;;  %v1351_v28 = vmul.f32 %v2507_v43, %v3327_v54  ;;  %v3672_v43 = vld [vmem:[#allocation10_spill] sm:$0xff] }
 0x302   :  { %v1437_v52 = vpop.permute.xlu0 %1436  ;;  %v1507_v36 = vmul.f32 %v1435_v48, %v1347_v2  ;;  %v1352_v33 = vmul.f32 %v2509_v56, %v3337_v58  ;;  %v3673_v56 = vld [vmem:[#allocation11_spill] sm:$0xff] }
 0x303   :  { %v1508_v10 = vmul.f32 %v1437_v52, %v1348_v31  ;;  %v3670_v31 = vld [vmem:[#allocation7_spill] sm:$0xff]  ;;  %v3671_v52 = vld [vmem:[#allocation9_spill] sm:$0xff] }
 0x304   :  { %2279 = vmatmul.mubr.msk.f32.gmra.mrb[38].mxu0 %vm1524_vm2, %v1507_v36  ;;  %v2511_v26 = vpop.eup %2510 }
 0x305   :  { %v1439_v35 = vpop.permute.xlu1 %1438  ;;  %2281 = vmatprep.mubr.msk.f32.mxu0 %vm1524_vm2, %v1508_v10  ;;  %v2513_v7 = vpop.eup %2512  ;;  %v1353_v23 = vmul.f32 %v2511_v26, %v3335_v34 }
 0x306   :  { %v1441_v8 = vpop.permute.xlu0 %1440  ;;  %v1509_v4 = vmul.f32 %v1439_v35, %v1349_v38  ;;  %v1354_v9 = vmul.f32 %v2513_v7, %v3345_v60 }
 0x307   :  { %v1510_v47 = vmul.f32 %v1441_v8, %v1350_v22 }
 0x308   :  { %2282 = vmatmul.mubr.msk.f32.gmra.mrb[40].mxu0 %vm1524_vm2, %v1509_v4  ;;  %v2515_v25 = vpop.eup %2514  ;;  %v3674_v4 = vld [vmem:[#allocation8_spill] sm:$0xff] }
 0x309   :  { %v1443_v55 = vpop.permute.xlu1 %1442  ;;  %2284 = vmatprep.mubr.msk.f32.mxu0 %vm1524_vm2, %v1510_v47  ;;  %v1355_v49 = vmul.f32 %v2515_v25, %v3343_v45  ;;  %v3678_v25 = vld [vmem:[#allocation15_spill] sm:$0xff] }
 0x30a   :  { %v1445_v62 = vpop.permute.xlu0 %1444  ;;  %v1511_v29 = vmul.f32 %v1443_v55, %v1351_v28  ;;  %v3675_v28 = vld [vmem:[#allocation14_spill] sm:$0xff]  ;;  %v3676_v55 = vld [vmem:[#allocation13_spill] sm:$0xff] }
 0x30b   :  { %v1512_v11 = vmul.f32 %v1445_v62, %v1352_v33 }
 0x30c   :  { %2285 = vmatmul.mubr.msk.f32.gmra.mrb[42].mxu0 %vm1524_vm2, %v1511_v29 }
 0x30d   :  { %v1447_v14 = vpop.permute.xlu1 %1446  ;;  %2287 = vmatprep.mubr.msk.f32.mxu0 %vm1524_vm2, %v1512_v11  ;;  %v3677_v11 = vld [vmem:[#allocation16_spill] sm:$0xff] }
 0x30e   :  { %v1449_v54 = vpop.permute.xlu0 %1448  ;;  %v1513_v12 = vmul.f32 %v1447_v14, %v1353_v23 }
 0x30f   :  { %v1514_v58 = vmul.f32 %v1449_v54, %v1354_v9 }
 0x310   :  { %2288 = vmatmul.mubr.msk.f32.gmra.mrb[44].mxu0 %vm1524_vm2, %v1513_v12  ;;  %v3679_v12 = vld [vmem:[#allocation18_spill] sm:$0xff] }
 0x311   :  { %v1451_v3 = vpop.permute.xlu1 %1450  ;;  %2290 = vmatprep.mubr.msk.f32.mxu0 %vm1524_vm2, %v1514_v58 }
 0x312   :  { %v1515_v42 = vmul.f32 %v1451_v3, %v1355_v49  ;;  %v3680_v3 = vld [vmem:[#allocation17_spill] sm:$0xff] }
 0x314   :  { %2291 = vmatmul.mubr.msk.f32.gmra.mrb[46].mxu0 %vm1524_vm2, %v1515_v42 }
 0x3a8   :  { %v2247_v60 = vpop.f32.mrb[16].mxu0 }
 0x3a9   :  { %v1847_v34 = vadd.f32 %v2247_v60, %v2719_v50  ;;  %v1687_v37 = vpop.f32.mrb[17].mxu0 }
 0x3aa   :  { %v1846_v41 = vadd.f32 %v1687_v37, %v2721_v51 }
 0x3ab   :  { %1879 = vst.msk [vmem:[%s3616_s7 + $0x8] sm:$0xff] %vm543_vm1, %v1847_v34  ;;  %v3681_v34 = vld [vmem:[#allocation20_spill] sm:$0xff] }
 0x3ac   :  { %1878 = vst.msk [vmem:[%s3616_s7] sm:$0xff] %vm543_vm1, %v1846_v41 }
 0x3af   :  { %v2250_v45 = vpop.f32.mrb[18].mxu0 }
 0x3b0   :  { %v1849_v19 = vadd.f32 %v2250_v45, %v2741_v63  ;;  %v1697_v20 = vpop.f32.mrb[19].mxu0  ;;  %v3682_v45 = vld [vmem:[#allocation19_spill] sm:$0xff] }
 0x3b1   :  { %v1848_v53 = vadd.f32 %v1697_v20, %v2743_v0 }
 0x3b2   :  { %1881 = vst.msk [vmem:[%s3616_s7 + $0x18] sm:$0xff] %vm543_vm1, %v1849_v19 }
 0x3b3   :  { %1880 = vst.msk [vmem:[%s3616_s7 + $0x10] sm:$0xff] %vm543_vm1, %v1848_v53  ;;  %v2253_v50 = vpop.f32.mrb[20].mxu0  ;;  %v3683_v53 = vld [vmem:[#allocation22_spill] sm:$0xff] }
 0x3b4   :  { %v1851_v51 = vadd.f32 %v2253_v50, %v2763_v13  ;;  %v1707_v57 = vpop.f32.mrb[21].mxu0 }
 0x3b5   :  { %v1850_v40 = vadd.f32 %v1707_v57, %v2768_v15  ;;  %v3665_v15 = vld [vmem:[#allocation2_spill] sm:$0xff]  ;;  %v3684_v57 = vld [vmem:[#allocation21_spill] sm:$0xff] }
 0x3b6   :  { %1883 = vst.msk [vmem:[%s3616_s7 + $0x28] sm:$0xff] %vm543_vm1, %v1851_v51 }
 0x3b7   :  { %1882 = vst.msk [vmem:[%s3616_s7 + $0x20] sm:$0xff] %vm543_vm1, %v1850_v40  ;;  %v2256_v63 = vpop.f32.mrb[22].mxu0 }
 0x3b8   :  { %v1853_v0 = vadd.f32 %v2256_v63, %v2791_v30  ;;  %v1717_v6 = vpop.f32.mrb[23].mxu0 }
 0x3b9   :  { %v1852_v59 = vadd.f32 %v1717_v6, %v2796_v32  ;;  %v3667_v32 = vld [vmem:[#allocation4_spill] sm:$0xff] }
 0x3ba   :  { %1885 = vst.msk [vmem:[%s3616_s7 + $0x38] sm:$0xff] %vm543_vm1, %v1853_v0  ;;  %v3685_v0 = vld [vmem:[#allocation24_spill] sm:$0xff] }
 0x3bb   :  { %1884 = vst.msk [vmem:[%s3616_s7 + $0x30] sm:$0xff] %vm543_vm1, %v1852_v59  ;;  %v2259_v13 = vpop.f32.mrb[24].mxu0 }
 0x3bc   :  { %v1855_v18 = vadd.f32 %v2259_v13, %v3665_v15  ;;  %v1727_v5 = vpop.f32.mrb[25].mxu0  ;;  %v3686_v13 = vld [vmem:[#allocation23_spill] sm:$0xff] }
 0x3bd   :  { %v1854_v39 = vadd.f32 %v1727_v5, %v3666_v21  ;;  %v3687_v5 = vld [vmem:[#allocation12_spill] sm:$0xff] }
 0x3be   :  { %1887 = vst.msk [vmem:[%s3616_s7 + $0x48] sm:$0xff] %vm543_vm1, %v1855_v18 }
 0x3bf   :  { %1886 = vst.msk [vmem:[%s3616_s7 + $0x40] sm:$0xff] %vm543_vm1, %v1854_v39  ;;  %v2262_v30 = vpop.f32.mrb[26].mxu0 }
 0x3c0   :  { %v1857_v46 = vadd.f32 %v2262_v30, %v3667_v32  ;;  %v1737_v27 = vpop.f32.mrb[27].mxu0  ;;  %v3688_v30 = vld [vmem:[#allocation25_spill] sm:$0xff] }
 0x3c1   :  { %v1856_v61 = vadd.f32 %v1737_v27, %v3668_v16 }
 0x3c2   :  { %1889 = vst.msk [vmem:[%s3616_s7 + $0x58] sm:$0xff] %vm543_vm1, %v1857_v46 }
 0x3c3   :  { %1888 = vst.msk [vmem:[%s3616_s7 + $0x50] sm:$0xff] %vm543_vm1, %v1856_v61  ;;  %v2265_v17 = vpop.f32.mrb[28].mxu0 }
 0x3c4   :  { %v1859_v24 = vadd.f32 %v2265_v17, %v3669_v1  ;;  %v1747_v2 = vpop.f32.mrb[29].mxu0 }
 0x3c5   :  { %v1858_v44 = vadd.f32 %v1747_v2, %v3670_v31 }
 0x3c6   :  { %1891 = vst.msk [vmem:[%s3616_s7 + $0x68] sm:$0xff] %vm543_vm1, %v1859_v24 }
 0x3c7   :  { %1890 = vst.msk [vmem:[%s3616_s7 + $0x60] sm:$0xff] %vm543_vm1, %v1858_v44  ;;  %v2268_v48 = vpop.f32.mrb[30].mxu0 }
 0x3c8   :  { %v1861_v36 = vadd.f32 %v2268_v48, %v3671_v52  ;;  %v1757_v10 = vpop.f32.mrb[31].mxu0 }
 0x3c9   :  { %v1860_v38 = vadd.f32 %v1757_v10, %v3672_v43 }
 0x3ca   :  { %1893 = vst.msk [vmem:[%s3616_s7 + $0x78] sm:$0xff] %vm543_vm1, %v1861_v36 }
 0x3cb   :  { %1892 = vst.msk [vmem:[%s3616_s7 + $0x70] sm:$0xff] %vm543_vm1, %v1860_v38  ;;  %v2271_v22 = vpop.f32.mrb[32].mxu0 }
 0x3cc   :  { %v1863_v35 = vadd.f32 %v2271_v22, %v3673_v56  ;;  %v1767_v8 = vpop.f32.mrb[33].mxu0 }
 0x3cd   :  { %v1862_v47 = vadd.f32 %v1767_v8, %v3674_v4 }
 0x3ce   :  { %1895 = vst.msk [vmem:[%s3616_s7 + $0x88] sm:$0xff] %vm543_vm1, %v1863_v35 }
 0x3cf   :  { %1894 = vst.msk [vmem:[%s3616_s7 + $0x80] sm:$0xff] %vm543_vm1, %v1862_v47  ;;  %v2274_v26 = vpop.f32.mrb[34].mxu0 }
 0x3d0   :  { %v1865_v33 = vadd.f32 %v2274_v26, %v3675_v28  ;;  %v1777_v7 = vpop.f32.mrb[35].mxu0 }
 0x3d1   :  { %v1864_v62 = vadd.f32 %v1777_v7, %v3676_v55 }
 0x3d2   :  { %1897 = vst.msk [vmem:[%s3616_s7 + $0x98] sm:$0xff] %vm543_vm1, %v1865_v33 }
 0x3d3   :  { %1896 = vst.msk [vmem:[%s3616_s7 + $0x90] sm:$0xff] %vm543_vm1, %v1864_v62  ;;  %v2277_v29 = vpop.f32.mrb[36].mxu0 }
 0x3d4   :  { %v1867_v9 = vadd.f32 %v2277_v29, %v3677_v11  ;;  %v1787_v23 = vpop.f32.mrb[37].mxu0 }
 0x3d5   :  { %v1866_v14 = vadd.f32 %v1787_v23, %v3678_v25 }
 0x3d6   :  { %1899 = vst.msk [vmem:[%s3616_s7 + $0xa8] sm:$0xff] %vm543_vm1, %v1867_v9 }
 0x3d7   :  { %1898 = vst.msk [vmem:[%s3616_s7 + $0xa0] sm:$0xff] %vm543_vm1, %v1866_v14  ;;  %v2280_v54 = vpop.f32.mrb[38].mxu0 }
 0x3d8   :  { %v1869_v58 = vadd.f32 %v2280_v54, %v3679_v12  ;;  %v1797_v49 = vpop.f32.mrb[39].mxu0 }
 0x3d9   :  { %v1868_v42 = vadd.f32 %v1797_v49, %v3680_v3 }
 0x3da   :  { %1901 = vst.msk [vmem:[%s3616_s7 + $0xb8] sm:$0xff] %vm543_vm1, %v1869_v58 }
 0x3db   :  { %1900 = vst.msk [vmem:[%s3616_s7 + $0xb0] sm:$0xff] %vm543_vm1, %v1868_v42  ;;  %v2283_v60 = vpop.f32.mrb[40].mxu0 }
 0x3dc   :  { %v1871_v37 = vadd.f32 %v2283_v60, %v3681_v34  ;;  %v1807_v41 = vpop.f32.mrb[41].mxu0 }
 0x3dd   :  { %v1870_v19 = vadd.f32 %v1807_v41, %v3682_v45 }
 0x3de   :  { %1903 = vst.msk [vmem:[%s3616_s7 + $0xc8] sm:$0xff] %vm543_vm1, %v1871_v37 }
 0x3df   :  { %1902 = vst.msk [vmem:[%s3616_s7 + $0xc0] sm:$0xff] %vm543_vm1, %v1870_v19  ;;  %v2286_v20 = vpop.f32.mrb[42].mxu0 }
 0x3e0   :  { %v1873_v50 = vadd.f32 %v2286_v20, %v3683_v53  ;;  %v1817_v51 = vpop.f32.mrb[43].mxu0 }
 0x3e1   :  { %v1872_v40 = vadd.f32 %v1817_v51, %v3684_v57 }
 0x3e2   :  { %1905 = vst.msk [vmem:[%s3616_s7 + $0xd8] sm:$0xff] %vm543_vm1, %v1873_v50 }
 0x3e3   :  { %1904 = vst.msk [vmem:[%s3616_s7 + $0xd0] sm:$0xff] %vm543_vm1, %v1872_v40  ;;  %v2289_v63 = vpop.f32.mrb[44].mxu0 }
 0x3e4   :  { %v1875_v6 = vadd.f32 %v2289_v63, %v3685_v0  ;;  %v1827_v59 = vpop.f32.mrb[45].mxu0 }
 0x3e5   :  { %v1874_v15 = vadd.f32 %v1827_v59, %v3686_v13 }
 0x3e6   :  { %1907 = vst.msk [vmem:[%s3616_s7 + $0xe8] sm:$0xff] %vm543_vm1, %v1875_v6 }
 0x3e7   :  { %1906 = vst.msk [vmem:[%s3616_s7 + $0xe0] sm:$0xff] %vm543_vm1, %v1874_v15  ;;  %v2292_v18 = vpop.f32.mrb[46].mxu0 }
 0x3e8   :  { %v1877_v21 = vadd.f32 %v2292_v18, %v3687_v5  ;;  %v1837_v39 = vpop.f32.mrb[47].mxu0 }
 0x3e9   :  { %v1876_v32 = vadd.f32 %v1837_v39, %v3688_v30 }
 0x3ea   :  { %1909 = vst.msk [vmem:[%s3616_s7 + $0xf8] sm:$0xff] %vm543_vm1, %v1877_v21 }
 0x3eb   :  { %1908 = vst.msk [vmem:[%s3616_s7 + $0xf0] sm:$0xff] %vm543_vm1, %v1876_v32 }

// kernel: yaad_block_forward.3
= control target key start
LH: loop header
LB: loop body
LE: loop exit
PB: predicated region body
PF: predicated region fallthrough
CT: control target
= control target key end

     0   :  { %s3512_s21 = smov 0   ;;  %s5229_s0 = inlined_call_operand.vmem [shape: f32[2,128,32], index: 0, kind: input, shape index: {}]   ;;  %s5230_s1 = inlined_call_operand.vmem [shape: f32[2,2,32], index: 1, kind: input, shape index: {}]   ;;  %s5231_s2 = inlined_call_operand.vmem [shape: f32[1,32], index: 2, kind: input, shape index: {}]   ;;  %s5232_s3 = inlined_call_operand.vmem [shape: f32[32,80], index: 3, kind: input, shape index: {}]   ;;  %s5233_s4 = inlined_call_operand.vmem [shape: f32[16,16], index: 4, kind: input, shape index: {}]   ;;  %s5234_s5 = inlined_call_operand.vmem [shape: f32[32,32], index: 5, kind: input, shape index: {}]   ;;  %s5235_s6 = inlined_call_operand.vmem [shape: f32[16,16], index: 6, kind: input, shape index: {}]   ;;  %s5236_s7 = inlined_call_operand.vmem [shape: f32[16,16], index: 7, kind: input, shape index: {}]   ;;  %s5237_s8 = inlined_call_operand.vmem [shape: f32[4,16], index: 8, kind: input, shape index: {}]   ;;  %s5238_s9 = inlined_call_operand.vmem [shape: f32[1,16], index: 9, kind: input, shape index: {}]   ;;  %s5239_s10 = inlined_call_operand.vmem [shape: f32[2,128,48], index: 10, kind: output, shape index: {0}]   ;;  %s5240_s11 = inlined_call_operand.vmem [shape: f32[2,128,32], index: 11, kind: output, shape index: {1}]   ;;  %s5241_s12 = inlined_call_operand.vmem [shape: f32[2,2,32], index: 12, kind: output, shape index: {2}]  }
   0x1 LB: > { %s2997_s22 = sadd.s32 4294967295, %s3437_s21   ;;  %p3001_p0 = scmp.ge.s32.totalorder %s3437_s21, 1  ;;  %s3437_s21 = sphi %s3512_s21, %s23_s21  }
   0x2   : > { %p376_p1 = scmp.lt.s32.totalorder %s3437_s21, 3 }
   0x4   : > { %p377_p2 = pnand %p3001_p0, %p376_p1 }
   0x6   : > { %380 = sbr.rel (%p377_p2) target bundleno = 1244 (0x4dc), region = 60 }
   0xd   : > { %p431_p3 = scmp.lt.s32.totalorder %s2997_s22, 1  ;;  %vm487_vm0 = vcmask 261120   ;;  %v623_v48 = vld [vmem:[%s5232_s3] sm:$0xff]  ;;  %v624_v49 = vld [vmem:[%s5232_s3 + $0x8] sm:$0xff]  ;;  %v625_v51 = vld [vmem:[%s5232_s3 + $0x10] sm:$0xff]  ;;  %vm2606_vm1 = vcmask 254976  }
   0xe   : > { %v3186_v50 = vpack.c.bf16 %v624_v49, %v623_v48  ;;  %v626_v52 = vld [vmem:[%s5232_s3 + $0x18] sm:$0xff]  ;;  %s3440_s14 = smov 96   ;;  %vm3441_vm5 = vmmov 0   ;;  %s3443_s18 = smov 80   ;;  %vm870_vm9 = vcmask 130048   ;;  %vm2858_vm10 = vcmask 123904  }
   0xf   : > { %s5381_s22 = smov (!%p431_p3, %s2997_s22), 1  ;;  %v3190_v53 = vpack.c.bf16 %v626_v52, %v625_v51  ;;  %s3444_s19 = smov 112   ;;  %vm2506_vm11 = vcmask 261248   ;;  %vm2587_vm12 = vcmask 392448   ;;  %vm2864_vm13 = vcmask 255104  }
  0x10   : > { %s3523_s23 = sshll.u32 %s5381_s22, 7  ;;  %3187 = vmatprep.subr.bf16.mxu0 %v3186_v50  ;;  %s3004_s17 = sshll.u32 %s5381_s22, 1 }
  0x11   : > { %s3529_s26 = scalar_lea.vmem %s5229_s0, %s3523_s23  ;;  %3189 = vmatpush3.bf16.msra.mxu0 %v3186_v50  ;;  %s3645_s20 = scalar_lea.vmem %s5230_s1, %s3004_s17 }
  0x12   : > { %v3532_v0 = vld [vmem:[%s3529_s26] sm:$0xff]  ;;  %v3535_v1 = vld [vmem:[%s3529_s26 + $0x10] sm:$0xff]  ;;  %v3538_v2 = vld [vmem:[%s3529_s26 + $0x8] sm:$0xff]  ;;  %3191 = vmatprep.subr.bf16.mxu0 %v3190_v53  ;;  %s3445_s24 = smov 16   ;;  %s4316_s25 = scalar_lea.vmem %s5240_s11, %s3523_s23 }
  0x13   : > { %v471_v3 = vmul.f32 %v3532_v0, %v3532_v0  ;;  %v473_v4 = vmul.f32 %v3535_v1, %v3535_v1  ;;  %v472_v5 = vmul.f32 %v3538_v2, %v3538_v2  ;;  %v3547_v6 = vld [vmem:[%s3529_s26 + $0x18] sm:$0xff]  ;;  %v3552_v8 = vld [vmem:[%s3529_s26 + $0x20] sm:$0xff]  ;;  %v3555_v9 = vld [vmem:[%s3529_s26 + $0x28] sm:$0xff]  ;;  %s4925_s28 = scalar_lea.vmem %s5241_s12, %s3004_s17  ;;  %s3446_s22 = smov 32  }
  0x14   : > { %v474_v7 = vmul.f32 %v3547_v6, %v3547_v6  ;;  %v475_v14 = vmul.f32 %v3552_v8, %v3552_v8  ;;  %v476_v15 = vmul.f32 %v3555_v9, %v3555_v9  ;;  %v3566_v16 = vld [vmem:[%s3529_s26 + $0x30] sm:$0xff]  ;;  %v3569_v17 = vld [vmem:[%s3529_s26 + $0x38] sm:$0xff]  ;;  %v3578_v22 = vld [vmem:[%s3529_s26 + $0x40] sm:$0xff] }
  0x15   : > { %v488_v10 = vsel %vm487_vm0, %v471_v3, 0.0  ;;  %v494_v11 = vsel %vm487_vm0, %v473_v4, 0.0  ;;  %v491_v12 = vsel %vm487_vm0, %v472_v5, 0.0  ;;  %v477_v20 = vmul.f32 %v3566_v16, %v3566_v16  ;;  %v3581_v23 = vld [vmem:[%s3529_s26 + $0x48] sm:$0xff]  ;;  %v3590_v28 = vld [vmem:[%s3529_s26 + $0x50] sm:$0xff]  ;;  %v3593_v29 = vld [vmem:[%s3529_s26 + $0x58] sm:$0xff]  ;;  %3193 = vmatpush3.bf16.msra.mxu0 %v3190_v53 }
  0x16   : > { %489 = vadd.xlane.f32.xlu0 %v488_v10  ;;  %495 = vadd.xlane.f32.xlu1 %v494_v11  ;;  %v497_v13 = vsel %vm487_vm0, %v474_v7, 0.0  ;;  %v500_v18 = vsel %vm487_vm0, %v475_v14, 0.0  ;;  %v503_v19 = vsel %vm487_vm0, %v476_v15, 0.0  ;;  %v478_v21 = vmul.f32 %v3569_v17, %v3569_v17  ;;  %v3602_v34 = vld [vmem:[%s3529_s26 + $0x60] sm:$0xff]  ;;  %v3605_v35 = vld [vmem:[%s3529_s26 + $0x68] sm:$0xff]  ;;  %v3614_v40 = vld [vmem:[%s3529_s26 + $0x70] sm:$0xff] }
  0x17   : > { %v506_v24 = vsel %vm487_vm0, %v477_v20, 0.0  ;;  %v479_v26 = vmul.f32 %v3578_v22, %v3578_v22  ;;  %v480_v27 = vmul.f32 %v3581_v23, %v3581_v23  ;;  %v481_v32 = vmul.f32 %v3590_v28, %v3590_v28  ;;  %v3617_v41 = vld [vmem:[%s3529_s26 + $0x78] sm:$0xff]  ;;  %v2604_v54 = vld [vmem:[%s3645_s20] sm:$0x3]  ;;  %s4885_s26 = scalar_lea.vmem %s5239_s10, %s3523_s23 }
  0x18   : > { %v509_v25 = vsel %vm487_vm0, %v478_v21, 0.0  ;;  %v482_v33 = vmul.f32 %v3593_v29, %v3593_v29  ;;  %v483_v38 = vmul.f32 %v3602_v34, %v3602_v34  ;;  %v484_v39 = vmul.f32 %v3605_v35, %v3605_v35 }
  0x19   : > { %v512_v30 = vsel %vm487_vm0, %v479_v26, 0.0  ;;  %v515_v31 = vsel %vm487_vm0, %v480_v27, 0.0  ;;  %v518_v36 = vsel %vm487_vm0, %v481_v32, 0.0  ;;  %v485_v44 = vmul.f32 %v3614_v40, %v3614_v40 }
  0x1a   : > { %492 = vadd.xlane.f32.xlu0 %v491_v12  ;;  %498 = vadd.xlane.f32.xlu1 %v497_v13  ;;  %v521_v37 = vsel %vm487_vm0, %v482_v33, 0.0  ;;  %v524_v42 = vsel %vm487_vm0, %v483_v38, 0.0  ;;  %v527_v43 = vsel %vm487_vm0, %v484_v39, 0.0  ;;  %v486_v45 = vmul.f32 %v3617_v41, %v3617_v41 }
  0x1b   : > { %v530_v46 = vsel %vm487_vm0, %v485_v44, 0.0  ;;  %v2605_v55 = vmul.f32 %v2604_v54, %v2604_v54 }
  0x1c   : > { %v533_v47 = vsel %vm487_vm0, %v486_v45, 0.0 }
  0x1d   : > { %v2607_v56 = vsel %vm2606_vm1, %v2605_v55, 0.0 }
  0x1e   : > { %501 = vadd.xlane.f32.xlu0 %v500_v18  ;;  %504 = vadd.xlane.f32.xlu1 %v503_v19 }
  0x22   : > { %507 = vadd.xlane.f32.xlu0 %v506_v24  ;;  %510 = vadd.xlane.f32.xlu1 %v509_v25 }
  0x26   : > { %513 = vadd.xlane.f32.xlu0 %v512_v30  ;;  %516 = vadd.xlane.f32.xlu1 %v515_v31  ;;  %v3651_v30 = vld [vmem:[%s5231_s2] ss:$0 sm:$0xff] }
  0x2a   : > { %519 = vadd.xlane.f32.xlu0 %v518_v36  ;;  %522 = vadd.xlane.f32.xlu1 %v521_v37 }
  0x2e   : > { %525 = vadd.xlane.f32.xlu0 %v524_v42  ;;  %528 = vadd.xlane.f32.xlu1 %v527_v43 }
  0x32   : > { %531 = vadd.xlane.f32.xlu0 %v530_v46  ;;  %534 = vadd.xlane.f32.xlu1 %v533_v47 }
  0x36   : > { %2608 = vadd.xlane.f32.xlu1 %v2607_v56 }
  0xa3   : > { %v490_v57 = vpop.xlane.xlu0 %489  ;;  %v496_v58 = vpop.xlane.xlu1 %495 }
  0xa4   : > { %v537_v59 = vmul.f32 0.03125, %v490_v57  ;;  %v539_v60 = vmul.f32 0.03125, %v496_v58 }
  0xa6   : > { %v553_v61 = vadd.f32 1.1920929e-07, %v537_v59  ;;  %v555_v62 = vadd.f32 1.1920929e-07, %v539_v60 }
  0xa7   : > { %v493_v63 = vpop.xlane.xlu0 %492  ;;  %v499_v3 = vpop.xlane.xlu1 %498 }
  0xa8   : > { %3226 = vrsqrt.f32 %v553_v61  ;;  %v538_v4 = vmul.f32 0.03125, %v493_v63  ;;  %v540_v5 = vmul.f32 0.03125, %v499_v3 }
  0xa9   : > { %3228 = vrsqrt.f32 %v555_v62 }
  0xaa   : > { %v554_v7 = vadd.f32 1.1920929e-07, %v538_v4  ;;  %v556_v10 = vadd.f32 1.1920929e-07, %v540_v5 }
  0xab   : > { %v502_v11 = vpop.xlane.xlu0 %501  ;;  %v505_v12 = vpop.xlane.xlu1 %504 }
  0xac   : > { %3230 = vrsqrt.f32 %v554_v7  ;;  %v541_v13 = vmul.f32 0.03125, %v502_v11  ;;  %v542_v14 = vmul.f32 0.03125, %v505_v12 }
  0xad   : > { %3232 = vrsqrt.f32 %v556_v10 }
  0xae   : > { %v557_v15 = vadd.f32 1.1920929e-07, %v541_v13  ;;  %v558_v18 = vadd.f32 1.1920929e-07, %v542_v14 }
  0xaf   : > { %v508_v19 = vpop.xlane.xlu0 %507  ;;  %v511_v20 = vpop.xlane.xlu1 %510 }
  0xb0   : > { %3234 = vrsqrt.f32 %v557_v15  ;;  %v543_v21 = vmul.f32 0.03125, %v508_v19  ;;  %v544_v24 = vmul.f32 0.03125, %v511_v20 }
  0xb1   : > { %3236 = vrsqrt.f32 %v558_v18 }
  0xb2   : > { %v3227_v25 = vpop.eup %3226  ;;  %v559_v26 = vadd.f32 1.1920929e-07, %v543_v21  ;;  %v560_v27 = vadd.f32 1.1920929e-07, %v544_v24 }
  0xb3   : > { %v3229_v31 = vpop.eup %3228  ;;  %v514_v32 = vpop.xlane.xlu0 %513  ;;  %v585_v36 = vmul.f32 %v3227_v25, %v3532_v0 }
  0xb4   : > { %v517_v33 = vpop.xlane.xlu1 %516  ;;  %3238 = vrsqrt.f32 %v559_v26  ;;  %v545_v37 = vmul.f32 0.03125, %v514_v32  ;;  %v587_v39 = vmul.f32 %v3229_v31, %v3535_v1 }
  0xb5   : > { %v546_v38 = vmul.f32 0.03125, %v517_v33  ;;  %3240 = vrsqrt.f32 %v560_v27  ;;  %v607_v42 = vmul.f32 %v3651_v30, %v585_v36 }
  0xb6   : > { %v3231_v43 = vpop.eup %3230  ;;  %v561_v44 = vadd.f32 1.1920929e-07, %v545_v37  ;;  %v609_v0 = vmul.f32 %v3651_v30, %v587_v39 }
  0xb7   : > { %v562_v45 = vadd.f32 1.1920929e-07, %v546_v38  ;;  %v3233_v46 = vpop.eup %3232  ;;  %3109 = vmatprep.mubr.msk.f32.mxu0 %vm487_vm0, %v607_v42  ;;  %v520_v47 = vpop.xlane.xlu0 %519  ;;  %v586_v49 = vmul.f32 %v3231_v43, %v3538_v2 }
  0xb8   : > { %v523_v48 = vpop.xlane.xlu1 %522  ;;  %3242 = vrsqrt.f32 %v561_v44  ;;  %v547_v50 = vmul.f32 0.03125, %v520_v47  ;;  %v588_v1 = vmul.f32 %v3233_v46, %v3547_v6 }
  0xb9   : > { %v548_v51 = vmul.f32 0.03125, %v523_v48  ;;  %3244 = vrsqrt.f32 %v562_v45  ;;  %v608_v52 = vmul.f32 %v3651_v30, %v586_v49  ;;  %v1370_v45 = vlaneseq }
  0xba   : > { %v3235_v53 = vpop.eup %3234  ;;  %v563_v54 = vadd.f32 1.1920929e-07, %v547_v50  ;;  %v610_v2 = vmul.f32 %v3651_v30, %v588_v1  ;;  %v820_v50 = vld [vmem:[%s5233_s4] sm:$0xff] }
  0xbb   : > { %v564_v55 = vadd.f32 1.1920929e-07, %v548_v51  ;;  %v3237_v56 = vpop.eup %3236  ;;  %3110 = vmatmul.mubr.msk.f32.vlgmr.msra.gmra.mrb[0].mxu0 %vm487_vm0, %v608_v52  ;;  %v526_v57 = vpop.xlane.xlu0 %525  ;;  %v589_v59 = vmul.f32 %v3235_v53, %v3552_v8  ;;  %v3701_v46 = vshrl.u32 %v1370_v45, 7  ;;  %v821_v51 = vld [vmem:[%s5233_s4 + $0x8] sm:$0xff]  ;;  %v5244_v52 = vmov 0.0|0.0  }
  0xbc   : > { %v529_v58 = vpop.xlane.xlu1 %528  ;;  %3246 = vrsqrt.f32 %v563_v54  ;;  %3112 = vmatprep.mubr.msk.f32.mxu0 %vm487_vm0, %v609_v0  ;;  %v549_v60 = vmul.f32 0.03125, %v526_v57  ;;  %v590_v61 = vmul.f32 %v3237_v56, %v3555_v9  ;;  %v3194_v1 = vpack.c.bf16 %v821_v51, %v820_v50  ;;  %3204 = vmatprep.subr.bf16.mxu0 %v5244_v52 }
  0xbd   : > { %v550_v6 = vmul.f32 0.03125, %v529_v58  ;;  %3248 = vrsqrt.f32 %v564_v55  ;;  %v611_v62 = vmul.f32 %v3651_v30, %v589_v59  ;;  %v1493_v47 = vsub.s32 0, %v3701_v46 }
  0xbe   : > { %v3239_v63 = vpop.eup %3238  ;;  %v565_v3 = vadd.f32 1.1920929e-07, %v549_v60  ;;  %v612_v8 = vmul.f32 %v3651_v30, %v590_v61  ;;  %v1759_v48 = vsub.s32 2, %v3701_v46  ;;  %3195 = vmatprep.subr.bf16.mxu1 %v3194_v1  ;;  %v1795_v53 = vsub.s32 3, %v3701_v46 }
  0xbf   : > { %v566_v4 = vadd.f32 1.1920929e-07, %v550_v6  ;;  %v3241_v5 = vpop.eup %3240  ;;  %3113 = vmatmul.mubr.msk.f32.gmra.mrb[2].mxu0 %vm487_vm0, %v610_v2  ;;  %v532_v7 = vpop.xlane.xlu0 %531  ;;  %v591_v11 = vmul.f32 %v3239_v63, %v3566_v16  ;;  %3197 = vmatpush3.bf16.msra.mxu1 %v3194_v1  ;;  %vm1410_vm2 = vcmp.lt.s32.totalorder %v3701_v46, 3  ;;  %vm1543_vm3 = vcmp.lt.s32.totalorder %v3701_v46, 2 }
  0xc0   : > { %v535_v10 = vpop.xlane.xlu1 %534  ;;  %3250 = vrsqrt.f32 %v565_v3  ;;  %3115 = vmatprep.mubr.msk.f32.mxu0 %vm487_vm0, %v611_v62  ;;  %v551_v12 = vmul.f32 0.03125, %v532_v7  ;;  %v592_v13 = vmul.f32 %v3241_v5, %v3569_v17  ;;  %3198 = vmatprep.subr.bf16.mxu1 %v5244_v52  ;;  %vm1676_vm4 = vcmp.lt.s32.totalorder %v3701_v46, 1  ;;  %v3750_v5 = vld [vmem:[%s5238_s9] ss:$0 sm:$0xff] }
  0xc1   : > { %v552_v9 = vmul.f32 0.03125, %v535_v10  ;;  %3252 = vrsqrt.f32 %v566_v4  ;;  %v613_v14 = vmul.f32 %v3651_v30, %v591_v11  ;;  %vm1427_vm6 = vcmp.ge.s32.totalorder %v3701_v46, 3 }
  0xc2   : > { %v3243_v15 = vpop.eup %3242  ;;  %v567_v18 = vadd.f32 1.1920929e-07, %v551_v12  ;;  %v614_v21 = vmul.f32 %v3651_v30, %v592_v13  ;;  %vm1560_vm7 = vcmp.ge.s32.totalorder %v3701_v46, 2  ;;  %vm1693_vm8 = vcmp.ge.s32.totalorder %v3701_v46, 1 }
  0xc3   : > { %v568_v19 = vadd.f32 1.1920929e-07, %v552_v9  ;;  %v3245_v20 = vpop.eup %3244  ;;  %3116 = vmatmul.mubr.msk.f32.gmra.mrb[4].mxu0 %vm487_vm0, %v612_v8  ;;  %v593_v16 = vmul.f32 %v3243_v15, %v3578_v22 }
  0xc4   : > { %3254 = vrsqrt.f32 %v567_v18  ;;  %3118 = vmatprep.mubr.msk.f32.mxu0 %vm487_vm0, %v613_v14  ;;  %v594_v24 = vmul.f32 %v3245_v20, %v3581_v23 }
  0xc5   : > { %3256 = vrsqrt.f32 %v568_v19  ;;  %v615_v17 = vmul.f32 %v3651_v30, %v593_v16 }
  0xc6   : > { %v3247_v25 = vpop.eup %3246  ;;  %v616_v27 = vmul.f32 %v3651_v30, %v594_v24 }
  0xc7   : > { %v3249_v26 = vpop.eup %3248  ;;  %3119 = vmatmul.mubr.msk.f32.gmra.mrb[6].mxu0 %vm487_vm0, %v614_v21  ;;  %v595_v31 = vmul.f32 %v3247_v25, %v3590_v28 }
  0xc8   : > { %3121 = vmatprep.mubr.msk.f32.mxu0 %vm487_vm0, %v615_v17  ;;  %v596_v22 = vmul.f32 %v3249_v26, %v3593_v29 }
  0xc9   : > { %v617_v32 = vmul.f32 %v3651_v30, %v595_v31 }
  0xca   : > { %v3251_v33 = vpop.eup %3250  ;;  %v618_v23 = vmul.f32 %v3651_v30, %v596_v22 }
  0xcb   : > { %v3253_v36 = vpop.eup %3252  ;;  %3122 = vmatmul.mubr.msk.f32.gmra.mrb[8].mxu0 %vm487_vm0, %v616_v27  ;;  %v597_v37 = vmul.f32 %v3251_v33, %v3602_v34 }
  0xcc   : > { %3124 = vmatprep.mubr.msk.f32.mxu0 %vm487_vm0, %v617_v32  ;;  %v598_v38 = vmul.f32 %v3253_v36, %v3605_v35 }
  0xcd   : > { %v619_v28 = vmul.f32 %v3651_v30, %v597_v37 }
  0xce   : > { %v3255_v39 = vpop.eup %3254  ;;  %v620_v29 = vmul.f32 %v3651_v30, %v598_v38 }
  0xcf   : > { %v3257_v42 = vpop.eup %3256  ;;  %3125 = vmatmul.mubr.msk.f32.gmra.mrb[10].mxu0 %vm487_vm0, %v618_v23  ;;  %v599_v43 = vmul.f32 %v3255_v39, %v3614_v40  ;;  %v1626_v40 = vsub.s32 1, %v3701_v46 }
  0xd0   : > { %3127 = vmatprep.mubr.msk.f32.mxu0 %vm487_vm0, %v619_v28  ;;  %v600_v44 = vmul.f32 %v3257_v42, %v3617_v41  ;;  %v1368_v41 = vld [vmem:[%s5237_s8] sm:$0xf] }
  0xd1   : > { %v621_v34 = vmul.f32 %v3651_v30, %v599_v43  ;;  %v3709_v49 = vrot.slane %v1368_v41, %v1493_v47  ;;  %v3713_v0 = vrot.slane %v1368_v41, %v1759_v48  ;;  %v3729_v55 = vrot.slane %v1368_v41, %v1795_v53 }
  0xd2   : > { %v622_v35 = vmul.f32 %v3651_v30, %v600_v44  ;;  %v3711_v30 = vrot.slane %v1368_v41, %v1626_v40 }
  0xd3   : > { %3128 = vmatmul.mubr.msk.f32.gmra.mrb[12].mxu0 %vm487_vm0, %v620_v29 }
  0xd4   : > { %3130 = vmatprep.mubr.msk.f32.mxu0 %vm487_vm0, %v621_v34 }
  0xd7   : > { %3131 = vmatmul.mubr.msk.f32.gmra.mrb[14].mxu0 %vm487_vm0, %v622_v35 }
 0x18e   : > { %v3724_v54 = vpop.f32.mrb[0].mxu0 }
 0x18f   : > { %v1193_v56 = vsub.f32 0.0, %v3724_v54  ;;  %840 = vrot.lane.b32.xlu1 %v3724_v54, %s3440_s14  ;;  %v3734_v57 = vpop.f32.mrb[1].mxu0  ;;  %v1395_v58 = vrot.slane %v3724_v54, 5  ;;  %v1528_v2 = vrot.slane %v3724_v54, 6  ;;  %v1661_v59 = vrot.slane %v3724_v54, 7 }
 0x190   : > { %v1192_v60 = vsub.f32 0.0, %v3734_v57  ;;  %838 = vrot.lane.b32.xlu0 %v3734_v57, %s3440_s14  ;;  %v1394_v6 = vrot.slane %v3734_v57, 5  ;;  %v1527_v61 = vrot.slane %v3734_v57, 6  ;;  %v1660_v62 = vrot.slane %v3734_v57, 7 }
 0x191   : > { %v1210_v63 = vmul.f32 1.442695, %v1193_v56  ;;  %v1798_v14 = vmul.f32 %v3724_v54, %v3729_v55 }
 0x192   : > { %v1208_v3 = vmul.f32 1.442695, %v1192_v60  ;;  %v3745_v4 = vpop.f32.mrb[2].mxu0  ;;  %v1425_v7 = vsel %vm1410_vm2, %v1394_v6, %v1395_v58  ;;  %v1558_v10 = vsel %vm1543_vm3, %v1527_v61, %v1528_v2  ;;  %v1691_v8 = vsel %vm1676_vm4, %v1660_v62, %v1661_v59 }
 0x193   : > { %3258 = vpow2.f32 %v1210_v63  ;;  %v1195_v11 = vsub.f32 0.0, %v3745_v4  ;;  %v3765_v12 = vpop.f32.mrb[3].mxu0  ;;  %v1496_v9 = vmul.f32 %v3709_v49, %v1425_v7  ;;  %v1629_v20 = vmul.f32 %v3711_v30, %v1558_v10 }
 0x194   : > { %3260 = vpow2.f32 %v1208_v3  ;;  %v1194_v13 = vsub.f32 0.0, %v3765_v12  ;;  %844 = vrot.lane.b32.xlu0 %v3745_v4, %s3440_s14  ;;  %842 = vrot.lane.b32.xlu1 %v3765_v12, %s3440_s14  ;;  %v1396_v15 = vrot.slane %v3765_v12, 5  ;;  %v1529_v21 = vrot.slane %v3765_v12, 6 }
 0x195   : > { %v1214_v18 = vmul.f32 1.442695, %v1195_v11  ;;  %v1512_v19 = vadd.f32 %v3750_v5, %v1496_v9  ;;  %v1762_v17 = vmul.f32 %v3713_v0, %v1691_v8  ;;  %v1662_v26 = vrot.slane %v3765_v12, 7 }
 0x196   : > { %v1212_v16 = vmul.f32 1.442695, %v1194_v13  ;;  %v3779_v24 = vpop.f32.mrb[4].mxu0  ;;  %v1424_v25 = vsel %vm1410_vm2, %v1395_v58, %v1396_v15  ;;  %v1557_v36 = vsel %vm1543_vm3, %v1528_v2, %v1529_v21  ;;  %v1397_v44 = vrot.slane %v3745_v4, 5 }
 0x197   : > { %3262 = vpow2.f32 %v1214_v18  ;;  %v1197_v27 = vsub.f32 0.0, %v3779_v24  ;;  %v3786_v31 = vpop.f32.mrb[5].mxu0  ;;  %v1645_v22 = vadd.f32 %v1629_v20, %v1512_v19  ;;  %v1497_v32 = vmul.f32 %v3709_v49, %v1424_v25 }
 0x198   : > { %3264 = vpow2.f32 %v1212_v16  ;;  %v1196_v33 = vsub.f32 0.0, %v3786_v31  ;;  %848 = vrot.lane.b32.xlu0 %v3779_v24, %s3440_s14  ;;  %846 = vrot.lane.b32.xlu1 %v3786_v31, %s3440_s14  ;;  %v1690_v23 = vsel %vm1676_vm4, %v1661_v59, %v1662_v26  ;;  %v1630_v39 = vmul.f32 %v3711_v30, %v1557_v36 }
 0x199   : > { %v1218_v37 = vmul.f32 1.442695, %v1197_v27  ;;  %v1778_v38 = vadd.f32 %v1762_v17, %v1645_v22  ;;  %v1513_v28 = vadd.f32 %v3750_v5, %v1497_v32  ;;  %v1763_v43 = vmul.f32 %v3713_v0, %v1690_v23 }
 0x19a   : > { %v1216_v42 = vmul.f32 1.442695, %v1196_v33  ;;  %v3800_v29 = vpop.f32.mrb[6].mxu0  ;;  %v1530_v34 = vrot.slane %v3745_v4, 6  ;;  %v1423_v41 = vsel %vm1410_vm2, %v1396_v15, %v1397_v44  ;;  %v1799_v56 = vmul.f32 %v3729_v55, %v3765_v12 }
 0x19b   : > { %3266 = vpow2.f32 %v1218_v37  ;;  %v1199_v35 = vsub.f32 0.0, %v3800_v29  ;;  %v3806_v45 = vpop.f32.mrb[7].mxu0  ;;  %v3808_v47 = vadd.f32 %v1798_v14, %v1778_v38  ;;  %v1646_v40 = vadd.f32 %v1630_v39, %v1513_v28 }
 0x19c   : > { %3268 = vpow2.f32 %v1216_v42  ;;  %v1198_v48 = vsub.f32 0.0, %v3806_v45  ;;  %852 = vrot.lane.b32.xlu0 %v3800_v29, %s3440_s14  ;;  %850 = vrot.lane.b32.xlu1 %v3806_v45, %s3440_s14  ;;  %v1556_v50 = vsel %vm1543_vm3, %v1529_v21, %v1530_v34  ;;  %v1498_v58 = vmul.f32 %v3709_v49, %v1423_v41 }
 0x19d   : > { %v3259_v51 = vpop.eup %3258  ;;  %v1222_v1 = vmul.f32 1.442695, %v1199_v35  ;;  %v1779_v53 = vadd.f32 %v1763_v43, %v1646_v40  ;;  %v1663_v3 = vrot.slane %v3745_v4, 7  ;;  %v1631_v13 = vmul.f32 %v3711_v30, %v1556_v50 }
 0x19e   : > { %v3261_v2 = vpop.eup %3260  ;;  %v1241_v59 = vadd.f32 1.0, %v3259_v51  ;;  %v1220_v60 = vmul.f32 1.442695, %v1198_v48  ;;  %v3826_v63 = vpop.f32.mrb[8].mxu0  ;;  %v1514_v9 = vadd.f32 %v3750_v5, %v1498_v58  ;;  %v1800_v23 = vmul.f32 %v3745_v4, %v3729_v55 }
 0x19f   : > { %3270 = vpow2.f32 %v1222_v1  ;;  %v1201_v7 = vsub.f32 0.0, %v3826_v63  ;;  %v3830_v10 = vpop.f32.mrb[9].mxu0  ;;  %v3832_v8 = vadd.f32 %v1799_v56, %v1779_v53  ;;  %v1689_v14 = vsel %vm1676_vm4, %v1662_v26, %v1663_v3 }
 0x1a0   : > { %v1200_v11 = vsub.f32 0.0, %v3830_v10  ;;  %856 = vrot.lane.b32.xlu0 %v3826_v63, %s3440_s14  ;;  %854 = vrot.lane.b32.xlu1 %v3830_v10, %s3440_s14  ;;  %3272 = vrcp.f32 %v1241_v59  ;;  %v1240_v18 = vadd.f32 1.0, %v3261_v2  ;;  %v1647_v17 = vadd.f32 %v1631_v13, %v1514_v9 }
 0x1a1   : > { %v3263_v15 = vpop.eup %3262  ;;  %v1226_v19 = vmul.f32 1.442695, %v1201_v7  ;;  %3274 = vpow2.f32 %v1220_v60  ;;  %v1764_v25 = vmul.f32 %v3713_v0, %v1689_v14  ;;  %v1398_v37 = vrot.slane %v3786_v31, 5 }
 0x1a2   : > { %v3265_v20 = vpop.eup %3264  ;;  %v1224_v21 = vmul.f32 1.442695, %v1200_v11  ;;  %v3845_v16 = vpop.f32.mrb[10].mxu0  ;;  %v1243_v27 = vadd.f32 1.0, %v3263_v15  ;;  %v5242_v38 = vmov 0.0   ;;  %v1399_v35 = vrot.slane %v3779_v24, 5 }
 0x1a3   : > { %v1242_v22 = vadd.f32 1.0, %v3265_v20  ;;  %3276 = vpow2.f32 %v1226_v19  ;;  %v3848_v32 = vpop.f32.mrb[11].mxu0  ;;  %v1780_v26 = vadd.f32 %v1764_v25, %v1647_v17  ;;  %3176 = vmatprep.mubr.msk.f32.mxu0 %vm3441_vm5, %v5242_v38  ;;  %v1531_v1 = vrot.slane %v3786_v31, 6 }
 0x1a4   : > { %v1202_v33 = vsub.f32 0.0, %v3848_v32  ;;  %860 = vrot.lane.b32.xlu0 %v3845_v16, %s3440_s14  ;;  %858 = vrot.lane.b32.xlu1 %v3848_v32, %s3440_s14  ;;  %3278 = vrcp.f32 %v1240_v18  ;;  %v1421_v51 = vsel %vm1410_vm2, %v1398_v37, %v1399_v35  ;;  %v1532_v59 = vrot.slane %v3779_v24, 6 }
 0x1a5   : > { %v3267_v36 = vpop.eup %3266  ;;  %3280 = vpow2.f32 %v1224_v21  ;;  %v3865_v41 = vadd.f32 %v1800_v23, %v1780_v26  ;;  %v1500_v56 = vmul.f32 %v3709_v49, %v1421_v51  ;;  %v1664_v9 = vrot.slane %v3786_v31, 7 }
 0x1a6   : > { %v3269_v28 = vpop.eup %3268  ;;  %v1245_v39 = vadd.f32 1.0, %v3267_v36  ;;  %v1228_v42 = vmul.f32 1.442695, %v1202_v33  ;;  %v3860_v43 = vpop.f32.mrb[12].mxu0  ;;  %3282 = vrcp.f32 %v1243_v27  ;;  %v1554_v18 = vsel %vm1543_vm3, %v1531_v1, %v1532_v59 }
 0x1a7   : > { %v1244_v40 = vadd.f32 1.0, %v3269_v28  ;;  %v3863_v48 = vpop.f32.mrb[13].mxu0  ;;  %3284 = vrcp.f32 %v1242_v22  ;;  %v1516_v11 = vadd.f32 %v3750_v5, %v1500_v56  ;;  %v1665_v19 = vrot.slane %v3779_v24, 7 }
 0x1a8   : > { %v1204_v50 = vsub.f32 0.0, %v3863_v48  ;;  %864 = vrot.lane.b32.xlu0 %v3860_v43, %s3440_s14  ;;  %862 = vrot.lane.b32.xlu1 %v3863_v48, %s3440_s14  ;;  %3286 = vrcp.f32 %v1245_v39  ;;  %v1633_v17 = vmul.f32 %v3711_v30, %v1554_v18  ;;  %v1400_v23 = vrot.slane %v3806_v45, 5 }
 0x1a9   : > { %v3271_v53 = vpop.eup %3270  ;;  %3288 = vpow2.f32 %v1228_v42  ;;  %v1687_v27 = vsel %vm1676_vm4, %v1664_v9, %v1665_v19  ;;  %v1401_v39 = vrot.slane %v3800_v29, 5  ;;  %v1533_v42 = vrot.slane %v3806_v45, 6 }
 0x1aa   : > { %v1232_v58 = vmul.f32 1.442695, %v1204_v50  ;;  %v3880_v2 = vpop.f32.mrb[14].mxu0  ;;  %v3273_v60 = vpop.eup %3272  ;;  %3290 = vrcp.f32 %v1244_v40  ;;  %v1247_v14 = vadd.f32 1.0, %v3271_v53  ;;  %v1649_v26 = vadd.f32 %v1633_v17, %v1516_v11 }
 0x1ab   : > { %v3883_v7 = vpop.f32.mrb[15].mxu0  ;;  %v3275_v13 = vpop.eup %3274  ;;  %v1766_v36 = vmul.f32 %v3713_v0, %v1687_v27  ;;  %v5261_v40 = vrot.slane %v3800_v29, 6  ;;  %v1802_v56 = vmul.f32 %v3779_v24, %v3729_v55  ;;  %v1402_v17 = vrot.slane %v3830_v10, 5 }
 0x1ac   : > { %v1206_v15 = vsub.f32 0.0, %v3883_v7  ;;  %868 = vrot.lane.b32.xlu0 %v3880_v2, %s3440_s14  ;;  %866 = vrot.lane.b32.xlu1 %v3883_v7, %s3440_s14  ;;  %v1246_v21 = vadd.f32 1.0, %v3275_v13  ;;  %3292 = vpow2.f32 %v1232_v58  ;;  %v1666_v13 = vrot.slane %v3806_v45, 7 }
 0x1ad   : > { %v3277_v20 = vpop.eup %3276  ;;  %3294 = vrcp.f32 %v1247_v14  ;;  %v1782_v53 = vadd.f32 %v1766_v36, %v1649_v26  ;;  %v1552_v11 = vsel %vm1543_vm3, %v1533_v42, %v5261_v40  ;;  %v5247_v26 = vrot.slane %v3826_v63, 5 }
 0x1ae   : > { %v1236_v25 = vmul.f32 1.442695, %v1206_v15  ;;  %v3279_v22 = vpop.eup %3278  ;;  %v1249_v33 = vadd.f32 1.0, %v3277_v20  ;;  %3296 = vrcp.f32 %v1246_v21  ;;  %v5249_v21 = vrot.slane %v3800_v29, 7 }
 0x1af   : > { %v3281_v28 = vpop.eup %3280  ;;  %v3928_v15 = vadd.f32 %v1802_v56, %v1782_v53 }
 0x1b0   : > { %1304 = vrot.lane.b32.xlu0 %v3279_v22, %s3443_s18  ;;  %1306 = vrot.lane.b32.xlu1 %v3273_v60, %s3443_s18  ;;  %v3283_v50 = vpop.eup %3282  ;;  %v1248_v51 = vadd.f32 1.0, %v3281_v28  ;;  %3298 = vpow2.f32 %v1236_v25  ;;  %v1419_v60 = vsel %vm1410_vm2, %v1400_v23, %v1401_v39  ;;  %v1685_v36 = vsel %vm1676_vm4, %v1666_v13, %v5249_v21 }
 0x1b1   : > { %v3285_v58 = vpop.eup %3284  ;;  %3300 = vrcp.f32 %v1249_v33  ;;  %v1502_v18 = vmul.f32 %v3709_v49, %v1419_v60  ;;  %v1635_v33 = vmul.f32 %v3711_v30, %v1552_v11  ;;  %v1535_v28 = vrot.slane %v3830_v10, 6 }
 0x1b2   : > { %v3287_v14 = vpop.eup %3286  ;;  %3302 = vrcp.f32 %v1248_v51  ;;  %v1768_v56 = vmul.f32 %v3713_v0, %v1685_v36  ;;  %v1804_v60 = vmul.f32 %v3800_v29, %v3729_v55  ;;  %v5256_v21 = vrot.slane %v3848_v32, 7 }
 0x1b3   : > { %v3289_v20 = vpop.eup %3288  ;;  %v1518_v22 = vadd.f32 %v3750_v5, %v1502_v18 }
 0x1b4   : > { %1308 = vrot.lane.b32.xlu0 %v3285_v58, %s3443_s18  ;;  %1310 = vrot.lane.b32.xlu1 %v3283_v50, %s3443_s18  ;;  %v3291_v25 = vpop.eup %3290  ;;  %v1250_v27 = vadd.f32 1.0, %v3289_v20  ;;  %v5246_v50 = vrot.slane %v3826_v63, 6  ;;  %v1417_v58 = vsel %vm1410_vm2, %v1402_v17, %v5247_v26 }
 0x1b5   : > { %v1651_v53 = vadd.f32 %v1635_v33, %v1518_v22  ;;  %v1504_v11 = vmul.f32 %v3709_v49, %v1417_v58  ;;  %v5260_v58 = vrot.slane %v3848_v32, 5 }
 0x1b6   : > { %v3293_v51 = vpop.eup %3292  ;;  %3304 = vrcp.f32 %v1250_v27  ;;  %v1550_v18 = vsel %vm1543_vm3, %v1535_v28, %v5246_v50  ;;  %v5250_v27 = vrot.slane %v3830_v10, 7 }
 0x1b7   : > { %v1252_v20 = vadd.f32 1.0, %v3293_v51  ;;  %v1784_v22 = vadd.f32 %v1768_v56, %v1651_v53  ;;  %v3295_v33 = vpop.eup %3294  ;;  %v1637_v36 = vmul.f32 %v3711_v30, %v1550_v18  ;;  %v5253_v53 = vrot.slane %v3845_v16, 5 }
 0x1b8   : > { %1312 = vrot.lane.b32.xlu0 %v3291_v25, %s3443_s18  ;;  %1314 = vrot.lane.b32.xlu1 %v3287_v14, %s3443_s18  ;;  %v5248_v25 = vrot.slane %v3826_v63, 7  ;;  %v1520_v14 = vadd.f32 %v3750_v5, %v1504_v11  ;;  %v3297_v38 = vpop.eup %3296  ;;  %v5259_v56 = vrot.slane %v3848_v32, 6  ;;  %v5251_v18 = vrot.slane %v3845_v16, 6 }
 0x1b9   : > { %v3969_v52 = vadd.f32 %v1804_v60, %v1784_v22  ;;  %3306 = vrcp.f32 %v1252_v20 }
 0x1ba   : > { %v1683_v51 = vsel %vm1676_vm4, %v5250_v27, %v5248_v25  ;;  %v3299_v50 = vpop.eup %3298  ;;  %v1653_v11 = vadd.f32 %v1637_v36, %v1520_v14  ;;  %v1415_v25 = vsel %vm1410_vm2, %v5260_v58, %v5253_v53  ;;  %v5252_v36 = vrot.slane %v3845_v16, 7 }
 0x1bb   : > { %v1770_v60 = vmul.f32 %v3713_v0, %v1683_v51  ;;  %v3301_v22 = vpop.eup %3300  ;;  %v1254_v26 = vadd.f32 1.0, %v3299_v50  ;;  %v1506_v14 = vmul.f32 %v3709_v49, %v1415_v25  ;;  %v1548_v50 = vsel %vm1543_vm3, %v5259_v56, %v5251_v18 }
 0x1bc   : > { %1316 = vrot.lane.b32.xlu0 %v3297_v38, %s3443_s18  ;;  %1318 = vrot.lane.b32.xlu1 %v3295_v33, %s3443_s18  ;;  %v3303_v38 = vpop.eup %3302  ;;  %v1806_v33 = vmul.f32 %v3826_v63, %v3729_v55  ;;  %v1639_v20 = vmul.f32 %v3711_v30, %v1548_v50  ;;  %v5258_v50 = vrot.slane %v3863_v48, 6 }
 0x1bd   : > { %v1786_v27 = vadd.f32 %v1770_v60, %v1653_v11  ;;  %3308 = vrcp.f32 %v1254_v26  ;;  %v1522_v25 = vadd.f32 %v3750_v5, %v1506_v14  ;;  %v5255_v11 = vrot.slane %v3863_v48, 5 }
 0x1be   : > { %v5254_v60 = vrot.slane %v3860_v43, 5  ;;  %v1681_v26 = vsel %vm1676_vm4, %v5256_v21, %v5252_v36  ;;  %v1808_v36 = vmul.f32 %v3845_v16, %v3729_v55  ;;  %v1409_v21 = vrot.slane %v3880_v2, 5 }
 0x1bf   : > { %v4004_v51 = vadd.f32 %v1806_v33, %v1786_v27  ;;  %v5265_v27 = vrot.slane %v3863_v48, 7  ;;  %v1655_v33 = vadd.f32 %v1639_v20, %v1522_v25  ;;  %v1772_v14 = vmul.f32 %v3713_v0, %v1681_v26 }
 0x1c0   : > { %1320 = vrot.lane.b32.xlu0 %v3303_v38, %s3443_s18  ;;  %1322 = vrot.lane.b32.xlu1 %v3301_v22, %s3443_s18  ;;  %v5257_v38 = vrot.slane %v3860_v43, 6  ;;  %v3305_v22 = vpop.eup %3304  ;;  %v1413_v18 = vsel %vm1410_vm2, %v5255_v11, %v5254_v60  ;;  %v5262_v25 = vrot.slane %v3860_v43, 7  ;;  %v5264_v11 = vrot.slane %v3883_v7, 5 }
 0x1c1   : > { %v1508_v53 = vmul.f32 %v3709_v49, %v1413_v18  ;;  %v1788_v26 = vadd.f32 %v1772_v14, %v1655_v33 }
 0x1c2   : > { %v1546_v20 = vsel %vm1543_vm3, %v5258_v50, %v5257_v38  ;;  %v1679_v38 = vsel %vm1676_vm4, %v5265_v27, %v5262_v25  ;;  %v5263_v50 = vrot.slane %v3883_v7, 6 }
 0x1c3   : > { %v1641_v60 = vmul.f32 %v3711_v30, %v1546_v20  ;;  %v1524_v18 = vadd.f32 %v3750_v5, %v1508_v53  ;;  %v4049_v33 = vadd.f32 %v1808_v36, %v1788_v26  ;;  %v1774_v14 = vmul.f32 %v3713_v0, %v1679_v38  ;;  %v3307_v56 = vpop.eup %3306 }
 0x1c4   : > { %1324 = vrot.lane.b32.xlu0 %v3305_v22, %s3443_s18  ;;  %v1542_v22 = vrot.slane %v3880_v2, 6  ;;  %v1411_v53 = vsel %vm1410_vm2, %v5264_v11, %v1409_v21  ;;  %v1674_v20 = vrot.slane %v3883_v7, 7  ;;  %v1675_v36 = vrot.slane %v3880_v2, 7 }
 0x1c5   : > { %v1657_v58 = vadd.f32 %v1641_v60, %v1524_v18  ;;  %v1510_v40 = vmul.f32 %v3709_v49, %v1411_v53  ;;  %v1810_v38 = vmul.f32 %v3860_v43, %v3729_v55  ;;  %v1426_v60 = vsel %vm1410_vm2, %v1409_v21, %v1394_v6 }
 0x1c6   : > { %v1544_v25 = vsel %vm1543_vm3, %v5263_v50, %v1542_v22  ;;  %v1475_v11 = vsel %vm1427_vm6, %v1426_v60, 0.0  ;;  %v1559_v6 = vsel %vm1543_vm3, %v1542_v22, %v1527_v61  ;;  %v1812_v22 = vmul.f32 %v3880_v2, %v3729_v55 }
 0x1c7   : > { %v1643_v26 = vmul.f32 %v3711_v30, %v1544_v25  ;;  %v3309_v18 = vpop.eup %3308  ;;  %v1790_v53 = vadd.f32 %v1774_v14, %v1657_v58  ;;  %v1526_v50 = vadd.f32 %v3750_v5, %v1510_v40  ;;  %v1495_v27 = vmul.f32 %v3709_v49, %v1475_v11 }
 0x1c8   : > { %1328 = vrot.lane.b32.xlu0 %v3307_v56, %s3443_s18  ;;  %v1677_v56 = vsel %vm1676_vm4, %v1674_v20, %v1675_v36  ;;  %v1692_v40 = vsel %vm1676_vm4, %v1675_v36, %v1660_v62  ;;  %v1608_v14 = vsel %vm1560_vm7, %v1559_v6, 0.0  ;;  %v1422_v62 = vsel %vm1410_vm2, %v1397_v44, %v1398_v37 }
 0x1c9   : > { %v1776_v25 = vmul.f32 %v3713_v0, %v1677_v56  ;;  %v4089_v21 = vadd.f32 %v1810_v38, %v1790_v53  ;;  %v1659_v58 = vadd.f32 %v1643_v26, %v1526_v50  ;;  %v1741_v60 = vsel %vm1693_vm8, %v1692_v40, 0.0 }
 0x1ca   : > { %v1511_v11 = vadd.f32 %v3750_v5, %v1495_v27  ;;  %v1628_v61 = vmul.f32 %v3711_v30, %v1608_v14  ;;  %v1499_v36 = vmul.f32 %v3709_v49, %v1422_v62  ;;  %v1555_v27 = vsel %vm1543_vm3, %v1530_v34, %v1531_v1 }
 0x1cb   : > { %v1792_v50 = vadd.f32 %v1776_v25, %v1659_v58  ;;  %v1761_v26 = vmul.f32 %v3713_v0, %v1741_v60  ;;  %v1688_v44 = vsel %vm1676_vm4, %v1663_v3, %v1664_v9  ;;  %v1632_v56 = vmul.f32 %v3711_v30, %v1555_v27 }
 0x1cc   : > { %1332 = vrot.lane.b32.xlu0 %v3309_v18, %s3443_s18  ;;  %v1644_v38 = vadd.f32 %v1628_v61, %v1511_v11  ;;  %v1797_v18 = vmul.f32 %v3729_v55, %v3734_v57  ;;  %v1515_v53 = vadd.f32 %v3750_v5, %v1499_v36  ;;  %v1420_v34 = vsel %vm1410_vm2, %v1399_v35, %v1400_v23 }
 0x1cd   : > { %v4122_v37 = vadd.f32 %v1812_v22, %v1792_v50  ;;  %v1501_v3 = vmul.f32 %v3709_v49, %v1420_v34  ;;  %v1553_v9 = vsel %vm1543_vm3, %v1532_v59, %v1533_v42  ;;  %v1686_v35 = vsel %vm1676_vm4, %v1665_v19, %v1666_v13 }
 0x1ce   : > { %v1777_v1 = vadd.f32 %v1761_v26, %v1644_v38  ;;  %v1648_v23 = vadd.f32 %v1632_v56, %v1515_v53  ;;  %v1765_v25 = vmul.f32 %v3713_v0, %v1688_v44  ;;  %v1801_v6 = vmul.f32 %v3729_v55, %v3786_v31 }
 0x1cf   : > { %v1517_v58 = vadd.f32 %v3750_v5, %v1501_v3  ;;  %v1634_v14 = vmul.f32 %v3711_v30, %v1553_v9  ;;  %v1418_v59 = vsel %vm1410_vm2, %v1401_v39, %v1402_v17  ;;  %v5292_v13 = vrot.slane %v3800_v29, 6 }
 0x1d0   : > { %1829 = vrot.lane.b32.xlu0 %v3734_v57, %s3444_s19  ;;  %v4150_v40 = vadd.f32 %v1797_v18, %v1777_v1  ;;  %v1781_v19 = vadd.f32 %v1765_v25, %v1648_v23  ;;  %v1503_v42 = vmul.f32 %v3709_v49, %v1418_v59  ;;  %v5293_v11 = vrot.slane %v3830_v10, 7 }
 0x1d1   : > { %v1551_v60 = vsel %vm1543_vm3, %v5292_v13, %v1535_v28  ;;  %v5294_v61 = vrot.slane %v3800_v29, 7  ;;  %v1650_v39 = vadd.f32 %v1634_v14, %v1517_v58  ;;  %v1767_v17 = vmul.f32 %v3713_v0, %v1686_v35 }
 0x1d2   : > { %v1803_v50 = vmul.f32 %v3729_v55, %v3806_v45  ;;  %v4178_v22 = vadd.f32 %v1801_v6, %v1781_v19  ;;  %v1519_v28 = vadd.f32 %v3750_v5, %v1503_v42  ;;  %v1636_v36 = vmul.f32 %v3711_v30, %v1551_v60 }
 0x1d3   : > { %v1684_v62 = vsel %vm1676_vm4, %v5294_v61, %v5293_v11  ;;  %v5295_v27 = vrot.slane %v3848_v32, 5  ;;  %v5296_v38 = vrot.slane %v3826_v63, 5  ;;  %v1783_v18 = vadd.f32 %v1767_v17, %v1650_v39 }
 0x1d4   : > { %1833 = vrot.lane.b32.xlu0 %v3765_v12, %s3444_s19  ;;  %v5297_v53 = vrot.slane %v3848_v32, 6  ;;  %v5298_v56 = vrot.slane %v3826_v63, 6  ;;  %v5299_v1 = vrot.slane %v3848_v32, 7  ;;  %v5300_v3 = vrot.slane %v3826_v63, 7 }
 0x1d5   : > { %v1416_v26 = vsel %vm1410_vm2, %v5296_v38, %v5295_v27  ;;  %v1652_v35 = vadd.f32 %v1636_v36, %v1519_v28  ;;  %v1769_v23 = vmul.f32 %v3713_v0, %v1684_v62  ;;  %v1805_v25 = vmul.f32 %v3729_v55, %v3830_v10 }
 0x1d6   : > { %v1505_v44 = vmul.f32 %v3709_v49, %v1416_v26  ;;  %v1549_v34 = vsel %vm1543_vm3, %v5298_v56, %v5297_v53  ;;  %v1682_v9 = vsel %vm1676_vm4, %v5300_v3, %v5299_v1  ;;  %v4206_v6 = vadd.f32 %v1803_v50, %v1783_v18 }
 0x1d7   : > { %v1638_v14 = vmul.f32 %v3711_v30, %v1549_v34  ;;  %v5301_v59 = vrot.slane %v3863_v48, 5  ;;  %v5302_v19 = vrot.slane %v3845_v16, 5  ;;  %v1785_v13 = vadd.f32 %v1769_v23, %v1652_v35 }
 0x1d8   : > { %1837 = vrot.lane.b32.xlu0 %v3786_v31, %s3444_s19  ;;  %v1521_v58 = vadd.f32 %v3750_v5, %v1505_v44  ;;  %v5303_v11 = vrot.slane %v3863_v48, 6  ;;  %v5304_v61 = vrot.slane %v3845_v16, 6  ;;  %v5305_v39 = vrot.slane %v3863_v48, 7 }
 0x1d9   : > { %v1414_v42 = vsel %vm1410_vm2, %v5302_v19, %v5301_v59  ;;  %v5306_v17 = vrot.slane %v3845_v16, 7  ;;  %v1771_v36 = vmul.f32 %v3713_v0, %v1682_v9  ;;  %v1807_v27 = vmul.f32 %v3729_v55, %v3848_v32 }
 0x1da   : > { %v1507_v60 = vmul.f32 %v3709_v49, %v1414_v42  ;;  %v1547_v62 = vsel %vm1543_vm3, %v5304_v61, %v5303_v11  ;;  %v1654_v28 = vadd.f32 %v1638_v14, %v1521_v58  ;;  %v4232_v38 = vadd.f32 %v1805_v25, %v1785_v13 }
 0x1db   : > { %v1680_v50 = vsel %vm1676_vm4, %v5306_v17, %v5305_v39  ;;  %v1640_v18 = vmul.f32 %v3711_v30, %v1547_v62  ;;  %v5307_v44 = vrot.slane %v3883_v7, 5  ;;  %v5308_v53 = vrot.slane %v3860_v43, 5  ;;  %v2609_v17 = vpop.xlane.xlu1 %2608 }
 0x1dc   : > { %v1523_v26 = vadd.f32 %v3750_v5, %v1507_v60  ;;  %1841 = vrot.lane.b32.xlu0 %v3806_v45, %s3444_s19  ;;  %v1787_v34 = vadd.f32 %v1771_v36, %v1654_v28  ;;  %v5309_v3 = vrot.slane %v3883_v7, 6  ;;  %v5310_v9 = vrot.slane %v3860_v43, 6  ;;  %v2616_v28 = vld [vmem:[%s5234_s5 + $0x8] sm:$0xff] }
 0x1dd   : > { %v1412_v56 = vsel %vm1410_vm2, %v5308_v53, %v5307_v44  ;;  %v5311_v23 = vrot.slane %v3860_v43, 7  ;;  %v1773_v14 = vmul.f32 %v3713_v0, %v1680_v50  ;;  %v1809_v60 = vmul.f32 %v3729_v55, %v3863_v48  ;;  %v2615_v50 = vld [vmem:[%s5234_s5] sm:$0xff] }
 0x1de   : > { %v1509_v1 = vmul.f32 %v3709_v49, %v1412_v56  ;;  %v1545_v35 = vsel %vm1543_vm3, %v5310_v9, %v5309_v3  ;;  %v1656_v58 = vadd.f32 %v1640_v18, %v1523_v26  ;;  %v4258_v59 = vadd.f32 %v1807_v27, %v1787_v34  ;;  %v2617_v18 = vld [vmem:[%s5234_s5 + $0x10] sm:$0xff] }
 0x1df   : > { %v1678_v25 = vsel %vm1676_vm4, %v5311_v23, %v1674_v20  ;;  %v1642_v42 = vmul.f32 %v3711_v30, %v1545_v35  ;;  %v1811_v39 = vmul.f32 %v3729_v55, %v3883_v7  ;;  %v3199_v27 = vpack.c.bf16 %v2616_v28, %v2615_v50  ;;  %v3429_v28 = vld [vmem:[%s5231_s2] ss:$0 sm:$0xff] }
 0x1e0   : > { %v1525_v19 = vadd.f32 %v3750_v5, %v1509_v1  ;;  %v1789_v13 = vadd.f32 %v1773_v14, %v1656_v58  ;;  %1845 = vrot.lane.b32.xlu0 %v3830_v10, %s3444_s19  ;;  %v1775_v61 = vmul.f32 %v3713_v0, %v1678_v25  ;;  %v5313_v34 = vmov 0.0|0.0  }
 0x1e1   : > { %v2610_v1 = vmul.f32 0.03125, %v2609_v17  ;;  %v5314_v50 = vmov 0.0  }
 0x1e2   : > { %v1658_v11 = vadd.f32 %v1642_v42, %v1525_v19  ;;  %v4267_v20 = vadd.f32 %v1809_v60, %v1789_v13 }
 0x1e3   : > { %v2611_v35 = vadd.f32 1.1920929e-07, %v2610_v1 }
 0x1e4   : > { %v1791_v62 = vadd.f32 %v1775_v61, %v1658_v11  ;;  %1849 = vrot.lane.b32.xlu0 %v3848_v32, %s3444_s19  ;;  %v3428_v61 = vld [vmem:[%s3645_s20] sm:$0x3] }
 0x1e5   : > { %3310 = vrsqrt.f32 %v2611_v35 }
 0x1e6   : > { %v4273_v5 = vadd.f32 %v1811_v39, %v1791_v62 }
 0x1e8   : > { %5312 = vst [vmem:[#allocation2_spill] sm:$0xff] %v4273_v5  ;;  %1853 = vrot.lane.b32.xlu0 %v3863_v48, %s3444_s19 }
 0x1ec   : > { %1857 = vrot.lane.b32.xlu0 %v3883_v7, %s3444_s19 }
 0x1ef   : > { %v3311_v11 = vpop.eup %3310 }
 0x1f0   : > { %2118 = vrot.lane.b32.xlu0 %v3729_v55, %s3445_s24  ;;  %v2618_v55 = vld [vmem:[%s5234_s5 + $0x18] sm:$0xff]  ;;  %v2613_v62 = vmul.f32 %v3428_v61, %v3311_v11 }
 0x1f1   : > { %v3202_v44 = vpack.c.bf16 %v2618_v55, %v2617_v18 }
 0x201   : > { %v841_v36 = vpop.permute.xlu1 %840 }
 0x202   : > { %v839_v26 = vpop.permute.xlu0 %838 }
 0x203   : > { %3137 = vmatprep.mubr.msk.f32.mxu1 %vm870_vm9, %v839_v26 }
 0x204   : > { %3138 = vmatmul.mubr.msk.f32.vlgmr.msra.gmra.mrb[0].mxu1 %vm870_vm9, %v841_v36  ;;  %v2614_v36 = vmul.f32 %v3429_v28, %v2613_v62  ;;  %v2220_v28 = vsel %vm870_vm9, %v3808_v47, 0.0 }
 0x205   : > { %3200 = vmatpush3.bf16.msra.mxu1 %v3199_v27 }
 0x206   : > { %v843_v53 = vpop.permute.xlu1 %842  ;;  %v845_v56 = vpop.permute.xlu0 %844  ;;  %3201 = vmatprep.subr.bf16.mxu1 %v5313_v34 }
 0x207   : > { %3140 = vmatprep.mubr.msk.f32.mxu1 %vm870_vm9, %v843_v53 }
 0x208   : > { %3141 = vmatmul.mubr.msk.f32.gmra.mrb[2].mxu1 %vm870_vm9, %v845_v56 }
 0x209   : > { %3203 = vmatpush3.bf16.msra.mxu1 %v3202_v44 }
 0x20a   : > { %v847_v3 = vpop.permute.xlu1 %846  ;;  %v849_v9 = vpop.permute.xlu0 %848  ;;  %3207 = vmatprep.subr.bf16.mxu1 %v5313_v34 }
 0x20b   : > { %3143 = vmatprep.mubr.msk.f32.mxu1 %vm870_vm9, %v847_v3 }
 0x20c   : > { %3144 = vmatmul.mubr.msk.f32.gmra.mrb[4].mxu1 %vm870_vm9, %v849_v9 }
 0x20e   : > { %v851_v23 = vpop.permute.xlu1 %850  ;;  %v853_v25 = vpop.permute.xlu0 %852 }
 0x20f   : > { %3146 = vmatprep.mubr.msk.f32.mxu1 %vm870_vm9, %v851_v23 }
 0x210   : > { %3147 = vmatmul.mubr.msk.f32.gmra.mrb[6].mxu1 %vm870_vm9, %v853_v25 }
 0x212   : > { %v855_v58 = vpop.permute.xlu1 %854  ;;  %v857_v14 = vpop.permute.xlu0 %856 }
 0x213   : > { %3149 = vmatprep.mubr.msk.f32.mxu1 %vm870_vm9, %v855_v58 }
 0x214   : > { %3150 = vmatmul.mubr.msk.f32.gmra.mrb[8].mxu1 %vm870_vm9, %v857_v14 }
 0x216   : > { %v859_v19 = vpop.permute.xlu1 %858  ;;  %v861_v42 = vpop.permute.xlu0 %860 }
 0x217   : > { %3152 = vmatprep.mubr.msk.f32.mxu1 %vm870_vm9, %v859_v19 }
 0x218   : > { %3153 = vmatmul.mubr.msk.f32.gmra.mrb[10].mxu1 %vm870_vm9, %v861_v42 }
 0x21a   : > { %v863_v13 = vpop.permute.xlu1 %862  ;;  %v865_v60 = vpop.permute.xlu0 %864 }
 0x21b   : > { %3155 = vmatprep.mubr.msk.f32.mxu1 %vm870_vm9, %v863_v13 }
 0x21c   : > { %3156 = vmatmul.mubr.msk.f32.gmra.mrb[12].mxu1 %vm870_vm9, %v865_v60 }
 0x21e   : > { %v867_v39 = vpop.permute.xlu1 %866  ;;  %v869_v17 = vpop.permute.xlu0 %868 }
 0x21f   : > { %3158 = vmatprep.mubr.msk.f32.mxu1 %vm870_vm9, %v867_v39 }
 0x220   : > { %3159 = vmatmul.mubr.msk.f32.gmra.mrb[14].mxu1 %vm870_vm9, %v869_v17 }
 0x221   : > { %3169 = vmatprep.mubr.msk.f32.mxu1 %vm3441_vm5, %v5314_v50 }
 0x222   : > { %v1307_v27 = vpop.permute.xlu1 %1306  ;;  %v1305_v26 = vpop.permute.xlu0 %1304 }
 0x223   : > { %1353 = vst.msk [vmem:[%s4316_s25 + $0x8] sm:$0xff] %vm487_vm0, %v1307_v27  ;;  %1352 = vst.msk [vmem:[%s4316_s25] sm:$0xff] %vm487_vm0, %v1305_v26  ;;  %v2693_v27 = vld [vmem:[%s5235_s6 + $0x8] sm:$0xff] }
 0x224   : > { %3170 = vmatmul.mubr.msk.f32.vlgmr.msra.gmra.mrb[16].mxu1 %vm487_vm0, %v2614_v36  ;;  %v2692_v36 = vld [vmem:[%s5235_s6] sm:$0xff] }
 0x225   : > { %3183 = vmatprep.mubr.msk.f32.mxu1 %vm3441_vm5, %v5314_v50  ;;  %v3205_v26 = vpack.c.bf16 %v2693_v27, %v2692_v36  ;;  %v1205_v36 = vsub.f32 0.0, %v3860_v43 }
 0x226   : > { %v1311_v18 = vpop.permute.xlu1 %1310  ;;  %v1309_v55 = vpop.permute.xlu0 %1308 }
 0x227   : > { %1355 = vst.msk [vmem:[%s4316_s25 + $0x18] sm:$0xff] %vm487_vm0, %v1311_v18  ;;  %1354 = vst.msk [vmem:[%s4316_s25 + $0x10] sm:$0xff] %vm487_vm0, %v1309_v55  ;;  %3206 = vmatpush3.bf16.msra.mxu0 %v3205_v26  ;;  %v2223_v18 = vsel %vm870_vm9, %v3832_v8, 0.0  ;;  %v2226_v55 = vsel %vm870_vm9, %v3865_v41, 0.0 }
 0x22a   : > { %v1315_v44 = vpop.permute.xlu1 %1314  ;;  %v1313_v53 = vpop.permute.xlu0 %1312 }
 0x22b   : > { %1357 = vst.msk [vmem:[%s4316_s25 + $0x28] sm:$0xff] %vm487_vm0, %v1315_v44  ;;  %1356 = vst.msk [vmem:[%s4316_s25 + $0x20] sm:$0xff] %vm487_vm0, %v1313_v53  ;;  %v2232_v44 = vsel %vm870_vm9, %v3928_v15, 0.0  ;;  %v2238_v53 = vsel %vm870_vm9, %v3969_v52, 0.0 }
 0x22e   : > { %v1319_v56 = vpop.permute.xlu1 %1318  ;;  %v1317_v34 = vpop.permute.xlu0 %1316 }
 0x22f   : > { %1359 = vst.msk [vmem:[%s4316_s25 + $0x38] sm:$0xff] %vm487_vm0, %v1319_v56  ;;  %1358 = vst.msk [vmem:[%s4316_s25 + $0x30] sm:$0xff] %vm487_vm0, %v1317_v34  ;;  %v2244_v56 = vsel %vm870_vm9, %v4004_v51, 0.0  ;;  %v2250_v34 = vsel %vm870_vm9, %v4049_v33, 0.0 }
 0x232   : > { %v1323_v1 = vpop.permute.xlu1 %1322  ;;  %v1321_v3 = vpop.permute.xlu0 %1320 }
 0x233   : > { %1361 = vst.msk [vmem:[%s4316_s25 + $0x48] sm:$0xff] %vm487_vm0, %v1323_v1  ;;  %1360 = vst.msk [vmem:[%s4316_s25 + $0x40] sm:$0xff] %vm487_vm0, %v1321_v3  ;;  %v2256_v1 = vsel %vm870_vm9, %v4089_v21, 0.0  ;;  %v2262_v3 = vsel %vm870_vm9, %v4122_v37, 0.0 }
 0x236   : > { %v1325_v9 = vpop.permute.xlu0 %1324 }
 0x237   : > { %1362 = vst.msk [vmem:[%s4316_s25 + $0x50] sm:$0xff] %vm487_vm0, %v1325_v9 }
 0x23a   : > { %v1329_v35 = vpop.permute.xlu0 %1328 }
 0x23b   : > { %1364 = vst.msk [vmem:[%s4316_s25 + $0x60] sm:$0xff] %vm487_vm0, %v1329_v35 }
 0x23e   : > { %v1333_v23 = vpop.permute.xlu0 %1332 }
 0x23f   : > { %1366 = vst.msk [vmem:[%s4316_s25 + $0x70] sm:$0xff] %vm487_vm0, %v1333_v23 }
 0x242   : > { %v4352_v25 = vpop.permute.xlu0 %1829 }
 0x246   : > { %v4354_v58 = vpop.permute.xlu0 %1833 }
 0x24a   : > { %v4356_v14 = vpop.permute.xlu0 %1837 }
 0x24e   : > { %v4358_v19 = vpop.permute.xlu0 %1841 }
 0x252   : > { %v4360_v42 = vpop.permute.xlu0 %1845 }
 0x256   : > { %v4362_v13 = vpop.permute.xlu0 %1849 }
 0x25a   : > { %v4364_v60 = vpop.permute.xlu0 %1853 }
 0x25b   : > { %5315 = vst [vmem:[#allocation3_spill] sm:$0xff] %v4364_v60 }
 0x25e   : > { %v4366_v11 = vpop.permute.xlu0 %1857 }
 0x262   : > { %v4368_v61 = vpop.permute.xlu0 %2118 }
 0x263   : > { %v2122_v62 = vmul.f32 %v3724_v54, %v4368_v61  ;;  %v2124_v39 = vmul.f32 %v3745_v4, %v4368_v61  ;;  %v2126_v17 = vmul.f32 %v3779_v24, %v4368_v61  ;;  %v2128_v50 = vmul.f32 %v3800_v29, %v4368_v61 }
 0x264   : > { %v2130_v9 = vmul.f32 %v3826_v63, %v4368_v61  ;;  %v2134_v35 = vmul.f32 %v3860_v43, %v4368_v61  ;;  %v2136_v23 = vmul.f32 %v3880_v2, %v4368_v61 }
 0x265   : > { %2155 = vrot.lane.b32.xlu0 %v2122_v62, %s3444_s19 }
 0x269   : > { %2159 = vrot.lane.b32.xlu0 %v2124_v39, %s3444_s19  ;;  %v1203_v39 = vsub.f32 0.0, %v3845_v16 }
 0x26d   : > { %2163 = vrot.lane.b32.xlu0 %v2126_v17, %s3444_s19 }
 0x271   : > { %2167 = vrot.lane.b32.xlu0 %v2128_v50, %s3444_s19 }
 0x290   : > { %2221 = vadd.xlane.f32.xlu0 %v2220_v28  ;;  %v1230_v28 = vmul.f32 1.442695, %v1203_v39 }
 0x292   : > { %3312 = vpow2.f32 %v1230_v28 }
 0x294   : > { %2224 = vadd.xlane.f32.xlu0 %v2223_v18  ;;  %v1234_v18 = vmul.f32 1.442695, %v1205_v36 }
 0x296   : > { %3314 = vpow2.f32 %v1234_v18 }
 0x298   : > { %2227 = vadd.xlane.f32.xlu0 %v2226_v55  ;;  %v1207_v55 = vsub.f32 0.0, %v3880_v2 }
 0x29c   : > { %2233 = vadd.xlane.f32.xlu0 %v2232_v44  ;;  %v3313_v39 = vpop.eup %3312 }
 0x29d   : > { %v1251_v18 = vadd.f32 1.0, %v3313_v39 }
 0x2a0   : > { %2239 = vadd.xlane.f32.xlu0 %v2238_v53 }
 0x2a4   : > { %2245 = vadd.xlane.f32.xlu0 %v2244_v56  ;;  %v1238_v56 = vmul.f32 1.442695, %v1207_v55  ;;  %v3315_v55 = vpop.eup %3314 }
 0x2a6   : > { %3316 = vpow2.f32 %v1238_v56 }
 0x2a7   : > { %3318 = vrcp.f32 %v1251_v18 }
 0x2a8   : > { %2251 = vadd.xlane.f32.xlu0 %v2250_v34 }
 0x2ac   : > { %2257 = vadd.xlane.f32.xlu0 %v2256_v1  ;;  %v2776_v1 = vld [vmem:[%s5236_s7] sm:$0xff] }
 0x2b0   : > { %2263 = vadd.xlane.f32.xlu0 %v2262_v3  ;;  %v2777_v3 = vld [vmem:[%s5236_s7 + $0x8] sm:$0xff] }
 0x2c6   : > { %2171 = vrot.lane.b32.xlu0 %v2130_v9, %s3444_s19 }
 0x2ca   : > { %2179 = vrot.lane.b32.xlu0 %v2134_v35, %s3444_s19  ;;  %v3208_v35 = vpack.c.bf16 %v2777_v3, %v2776_v1 }
 0x2cc   : > { %3209 = vmatpush3.bf16.msra.mxu1 %v3208_v35 }
 0x2ce   : > { %2183 = vrot.lane.b32.xlu0 %v2136_v23, %s3444_s19 }
 0x2d7   : > { %v4415_v62 = vpop.f32.mrb[0].mxu1 }
 0x2d8   : > { %v4418_v17 = vpop.f32.mrb[1].mxu1 }
 0x2d9   : > { %5316 = vst [vmem:[#allocation4_spill] sm:$0xff] %v4418_v17  ;;  %v3317_v17 = vpop.eup %3316 }
 0x2da   : > { %v1255_v1 = vadd.f32 1.0, %v3317_v17  ;;  %v3319_v39 = vpop.eup %3318 }
 0x2db   : > { %v4420_v50 = vpop.f32.mrb[2].mxu1 }
 0x2dc   : > { %v4423_v27 = vpop.f32.mrb[3].mxu1 }
 0x2dd   : > { %5317 = vst [vmem:[#allocation5_spill] sm:$0xff] %v4423_v27  ;;  %v1253_v27 = vadd.f32 1.0, %v3315_v55  ;;  %v4461_v55 = vpop.permute.xlu0 %2155 }
 0x2df   : > { %v4425_v26 = vpop.f32.mrb[4].mxu1  ;;  %3320 = vrcp.f32 %v1253_v27 }
 0x2e0   : > { %v4428_v44 = vpop.f32.mrb[5].mxu1  ;;  %3322 = vrcp.f32 %v1255_v1 }
 0x2e1   : > { %5318 = vst [vmem:[#allocation6_spill] sm:$0xff] %v4428_v44  ;;  %v4467_v17 = vpop.permute.xlu0 %2159 }
 0x2e2   : > { %5326 = vst [vmem:[#allocation14_spill] sm:$0xff] %v4467_v17 }
 0x2e3   : > { %v4430_v53 = vpop.f32.mrb[6].mxu1 }
 0x2e4   : > { %v4432_v34 = vpop.f32.mrb[7].mxu1 }
 0x2e5   : > { %5319 = vst [vmem:[#allocation7_spill] sm:$0xff] %v4432_v34  ;;  %v4471_v27 = vpop.permute.xlu0 %2163 }
 0x2e7   : > { %v4440_v9 = vpop.f32.mrb[8].mxu1 }
 0x2e8   : > { %v4442_v23 = vpop.f32.mrb[9].mxu1 }
 0x2e9   : > { %5320 = vst [vmem:[#allocation8_spill] sm:$0xff] %v4442_v23 }
 0x2eb   : > { %v4444_v28 = vpop.f32.mrb[10].mxu1 }
 0x2ec   : > { %v4446_v36 = vpop.f32.mrb[11].mxu1 }
 0x2ed   : > { %5321 = vst [vmem:[#allocation9_spill] sm:$0xff] %v4446_v36 }
 0x2ef   : > { %v4448_v34 = vpop.f32.mrb[12].mxu1 }
 0x2f0   : > { %5322 = vst [vmem:[#allocation10_spill] sm:$0xff] %v4448_v34  ;;  %v4450_v44 = vpop.f32.mrb[13].mxu1 }
 0x2f1   : > { %5323 = vst [vmem:[#allocation11_spill] sm:$0xff] %v4450_v44  ;;  %v3321_v44 = vpop.eup %3320 }
 0x2f2   : > { %v3323_v18 = vpop.eup %3322 }
 0x2f3   : > { %v4452_v60 = vpop.f32.mrb[14].mxu1 }
 0x2f4   : > { %5324 = vst [vmem:[#allocation12_spill] sm:$0xff] %v4452_v60  ;;  %v4454_v56 = vpop.f32.mrb[15].mxu1 }
 0x2f5   : > { %5325 = vst [vmem:[#allocation13_spill] sm:$0xff] %v4454_v56 }
 0x2f7   : > { %v2688_v3 = vpop.f32.mrb[16].mxu1 }
 0x2f8   : > { %2778 = vrot.lane.b32.xlu1 %v2688_v3, %s3444_s19  ;;  %v3171_v35 = vpop.f32.mrb[17].mxu1  ;;  %3177 = vmatmul.mubr.msk.f32.vlgmr.msra.gmra.mrb[16].mxu0 %vm870_vm9, %v2688_v3 }
 0x2fc   : > { %1326 = vrot.lane.b32.xlu1 %v3319_v39, %s3443_s18 }
 0x300   : > { %1330 = vrot.lane.b32.xlu1 %v3321_v44, %s3443_s18  ;;  %v4477_v44 = vpop.permute.xlu0 %2167 }
 0x304   : > { %1334 = vrot.lane.b32.xlu1 %v3323_v18, %s3443_s18  ;;  %v2121_v18 = vmul.f32 %v4368_v61, %v3734_v57 }
 0x308   : > { %1831 = vrot.lane.b32.xlu1 %v3724_v54, %s3444_s19 }
 0x30c   : > { %1835 = vrot.lane.b32.xlu1 %v3745_v4, %s3444_s19 }
 0x310   : > { %1839 = vrot.lane.b32.xlu1 %v3779_v24, %s3444_s19 }
 0x314   : > { %1843 = vrot.lane.b32.xlu1 %v3800_v29, %s3444_s19 }
 0x318   : > { %1847 = vrot.lane.b32.xlu1 %v3826_v63, %s3444_s19 }
 0x31c   : > { %1851 = vrot.lane.b32.xlu1 %v3845_v16, %s3444_s19 }
 0x31d   : > { %v2222_v54 = vpop.xlane.xlu0 %2221 }
 0x31e   : > { %v2267_v4 = vmul.f32 0.0625, %v2222_v54 }
 0x320   : > { %v4482_v1 = vsub.f32 %v3808_v47, %v2267_v4  ;;  %1855 = vrot.lane.b32.xlu1 %v3860_v43, %s3444_s19 }
 0x321   : > { %v2225_v24 = vpop.xlane.xlu0 %2224 }
 0x322   : > { %v2268_v3 = vmul.f32 0.0625, %v2225_v24  ;;  %v2299_v29 = vmul.f32 %v4482_v1, %v4482_v1  ;;  %v2123_v24 = vmul.f32 %v4368_v61, %v3765_v12 }
 0x324   : > { %v4489_v63 = vsub.f32 %v3832_v8, %v2268_v3  ;;  %1859 = vrot.lane.b32.xlu1 %v3880_v2, %s3444_s19  ;;  %v2317_v35 = vsel %vm870_vm9, %v2299_v29, 0.0 }
 0x325   : > { %2318 = vadd.xlane.f32.xlu0 %v2317_v35  ;;  %v2228_v39 = vpop.xlane.xlu0 %2227 }
 0x326   : > { %v2269_v47 = vmul.f32 0.0625, %v2228_v39  ;;  %v2300_v43 = vmul.f32 %v4489_v63, %v4489_v63  ;;  %v2125_v39 = vmul.f32 %v4368_v61, %v3786_v31 }
 0x328   : > { %v4499_v54 = vsub.f32 %v3865_v41, %v2269_v47  ;;  %2153 = vrot.lane.b32.xlu1 %v2121_v18, %s3444_s19  ;;  %v2320_v8 = vsel %vm870_vm9, %v2300_v43, 0.0 }
 0x329   : > { %2321 = vadd.xlane.f32.xlu0 %v2320_v8  ;;  %v2234_v2 = vpop.xlane.xlu0 %2233  ;;  %v2127_v8 = vmul.f32 %v4368_v61, %v3806_v45 }
 0x32a   : > { %v2271_v4 = vmul.f32 0.0625, %v2234_v2  ;;  %v2301_v3 = vmul.f32 %v4499_v54, %v4499_v54 }
 0x32c   : > { %v4508_v57 = vsub.f32 %v3928_v15, %v2271_v4  ;;  %2157 = vrot.lane.b32.xlu1 %v2123_v24, %s3444_s19  ;;  %v2323_v41 = vsel %vm870_vm9, %v2301_v3, 0.0 }
 0x32d   : > { %2324 = vadd.xlane.f32.xlu0 %v2323_v41  ;;  %v2240_v29 = vpop.xlane.xlu0 %2239 }
 0x32e   : > { %v2273_v35 = vmul.f32 0.0625, %v2240_v29  ;;  %v2303_v47 = vmul.f32 %v4508_v57, %v4508_v57 }
 0x330   : > { %v4517_v12 = vsub.f32 %v3969_v52, %v2273_v35  ;;  %2161 = vrot.lane.b32.xlu1 %v2125_v39, %s3444_s19  ;;  %v2329_v15 = vsel %vm870_vm9, %v2303_v47, 0.0 }
 0x331   : > { %2330 = vadd.xlane.f32.xlu0 %v2329_v15  ;;  %v2246_v18 = vpop.xlane.xlu0 %2245 }
 0x332   : > { %v2275_v43 = vmul.f32 0.0625, %v2246_v18  ;;  %v2305_v2 = vmul.f32 %v4517_v12, %v4517_v12 }
 0x334   : > { %v4526_v31 = vsub.f32 %v4004_v51, %v2275_v43  ;;  %2165 = vrot.lane.b32.xlu1 %v2127_v8, %s3444_s19  ;;  %v2335_v52 = vsel %vm870_vm9, %v2305_v2, 0.0 }
 0x335   : > { %2336 = vadd.xlane.f32.xlu0 %v2335_v52  ;;  %v2252_v4 = vpop.xlane.xlu0 %2251  ;;  %v2217_v52 = vsel %vm870_vm9, %v4150_v40, 0.0 }
 0x336   : > { %v2277_v24 = vmul.f32 0.0625, %v2252_v4  ;;  %v2307_v3 = vmul.f32 %v4526_v31, %v4526_v31  ;;  %v2229_v4 = vsel %vm870_vm9, %v4178_v22, 0.0 }
 0x338   : > { %v4533_v41 = vsub.f32 %v4049_v33, %v2277_v24  ;;  %v2341_v45 = vsel %vm870_vm9, %v2307_v3, 0.0  ;;  %v2241_v24 = vsel %vm870_vm9, %v4232_v38, 0.0  ;;  %v2247_v3 = vsel %vm870_vm9, %v4258_v59, 0.0 }
 0x339   : > { %2342 = vadd.xlane.f32.xlu0 %v2341_v45  ;;  %v2258_v29 = vpop.xlane.xlu0 %2257 }
 0x33a   : > { %v2279_v35 = vmul.f32 0.0625, %v2258_v29  ;;  %v2309_v51 = vmul.f32 %v4533_v41, %v4533_v41  ;;  %v2253_v29 = vsel %vm870_vm9, %v4267_v20, 0.0 }
 0x33c   : > { %v4539_v39 = vsub.f32 %v4089_v21, %v2279_v35  ;;  %v2347_v47 = vsel %vm870_vm9, %v2309_v51, 0.0  ;;  %v2259_v51 = vsel %vm870_vm9, %v4273_v5, 0.0  ;;  %v2132_v5 = vmul.f32 %v3845_v16, %v4368_v61 }
 0x33d   : > { %2348 = vadd.xlane.f32.xlu0 %v2347_v47  ;;  %v2264_v15 = vpop.xlane.xlu0 %2263 }
 0x33e   : > { %v2281_v18 = vmul.f32 0.0625, %v2264_v15  ;;  %v2311_v33 = vmul.f32 %v4539_v39, %v4539_v39 }
 0x340   : > { %v4545_v43 = vsub.f32 %v4122_v37, %v2281_v18  ;;  %v2353_v8 = vsel %vm870_vm9, %v2311_v33, 0.0  ;;  %v2235_v37 = vsel %vm870_vm9, %v4206_v6, 0.0  ;;  %v5273_v18 = vrot.slane %v4352_v25, 5 }
 0x341   : > { %2354 = vadd.xlane.f32.xlu0 %v2353_v8  ;;  %v2131_v33 = vmul.f32 %v4368_v61, %v3848_v32 }
 0x342   : > { %v2313_v2 = vmul.f32 %v4545_v43, %v4545_v43 }
 0x344   : > { %v2359_v21 = vsel %vm870_vm9, %v2313_v2, 0.0  ;;  %v1879_v2 = vrot.slane %v4354_v58, 5 }
 0x345   : > { %2360 = vadd.xlane.f32.xlu0 %v2359_v21  ;;  %v1959_v21 = vrot.slane %v4354_v58, 6 }
 0x358   : > { %2218 = vadd.xlane.f32.xlu1 %v2217_v52  ;;  %v2039_v52 = vrot.slane %v4354_v58, 7 }
 0x35c   : > { %2230 = vadd.xlane.f32.xlu1 %v2229_v4  ;;  %v1881_v4 = vrot.slane %v4356_v14, 5 }
 0x360   : > { %2236 = vadd.xlane.f32.xlu1 %v2235_v37  ;;  %v5328_v37 = vrot.slane %v4352_v25, 7 }
 0x364   : > { %2242 = vadd.xlane.f32.xlu1 %v2241_v24  ;;  %v2129_v24 = vmul.f32 %v4368_v61, %v3830_v10 }
 0x368   : > { %2248 = vadd.xlane.f32.xlu1 %v2247_v3 }
 0x36a   : > { %v2779_v45 = vpop.permute.xlu1 %2778 }
 0x36b   : > { %3184 = vmatmul.mubr.msk.f32.vlgmr.msra.gmra.mrb[18].mxu1 %vm870_vm9, %v2779_v45 }
 0x36c   : > { %2254 = vadd.xlane.f32.xlu1 %v2253_v29 }
 0x36e   : > { %v1327_v35 = vpop.permute.xlu1 %1326 }
 0x36f   : > { %1363 = vst.msk [vmem:[%s4316_s25 + $0x58] sm:$0xff] %vm487_vm0, %v1327_v35 }
 0x370   : > { %2260 = vadd.xlane.f32.xlu1 %v2259_v51  ;;  %v5327_v51 = vrot.slane %v4352_v25, 6 }
 0x372   : > { %v1331_v47 = vpop.permute.xlu1 %1330 }
 0x373   : > { %1365 = vst.msk [vmem:[%s4316_s25 + $0x68] sm:$0xff] %vm487_vm0, %v1331_v47 }
 0x376   : > { %v1335_v15 = vpop.permute.xlu1 %1334 }
 0x377   : > { %1367 = vst.msk [vmem:[%s4316_s25 + $0x78] sm:$0xff] %vm487_vm0, %v1335_v15 }
 0x37a   : > { %v1832_v35 = vpop.permute.xlu1 %1831 }
 0x37b   : > { %v1878_v47 = vrot.slane %v1832_v35, 5  ;;  %v1958_v15 = vrot.slane %v1832_v35, 6  ;;  %v2038_v8 = vrot.slane %v1832_v35, 7 }
 0x37d   : > { %v1906_v45 = vsel %vm1410_vm2, %v1878_v47, %v1879_v2  ;;  %v1907_v29 = vsel %vm1410_vm2, %v5273_v18, %v1878_v47  ;;  %v1987_v35 = vsel %vm1543_vm3, %v5327_v51, %v1958_v15  ;;  %v2067_v3 = vsel %vm1676_vm4, %v5328_v37, %v2038_v8 }
 0x37e   : > { %v1926_v58 = vmul.f32 %v1907_v29, %v3709_v49  ;;  %v2006_v10 = vmul.f32 %v1987_v35, %v3711_v30  ;;  %v4608_v56 = vpop.permute.xlu1 %1835  ;;  %v1927_v47 = vmul.f32 %v1906_v45, %v3709_v49  ;;  %v1986_v32 = vsel %vm1543_vm3, %v1958_v15, %v1959_v21  ;;  %v4619_v29 = vld [vmem:[%s5238_s9] ss:$0 sm:$0xff] }
 0x37f   : > { %v1880_v18 = vrot.slane %v4608_v56, 5  ;;  %v1960_v51 = vrot.slane %v4608_v56, 6  ;;  %v2040_v17 = vrot.slane %v4608_v56, 7  ;;  %v2007_v45 = vmul.f32 %v1986_v32, %v3711_v30 }
 0x380   : > { %v1942_v37 = vadd.f32 %v4619_v29, %v1926_v58  ;;  %v1943_v35 = vadd.f32 %v4619_v29, %v1927_v47  ;;  %v2066_v36 = vsel %vm1676_vm4, %v2038_v8, %v2039_v52  ;;  %v2086_v47 = vmul.f32 %v2067_v3, %v3713_v0 }
 0x381   : > { %v1904_v56 = vsel %vm1410_vm2, %v1880_v18, %v1881_v4  ;;  %v1905_v15 = vsel %vm1410_vm2, %v1879_v2, %v1880_v18  ;;  %v1985_v23 = vsel %vm1543_vm3, %v1959_v21, %v1960_v51  ;;  %v4634_v60 = vsel %vm1676_vm4, %v2039_v52, %v2040_v17  ;;  %2169 = vrot.lane.b32.xlu1 %v2129_v24, %s3444_s19 }
 0x382   : > { %v2022_v58 = vadd.f32 %v2006_v10, %v1942_v37  ;;  %v1928_v8 = vmul.f32 %v1905_v15, %v3709_v49  ;;  %v4639_v32 = vpop.permute.xlu1 %1839  ;;  %v2023_v52 = vadd.f32 %v2007_v45, %v1943_v35  ;;  %v2008_v24 = vmul.f32 %v1985_v23, %v3711_v30 }
 0x383   : > { %v1882_v18 = vrot.slane %v4639_v32, 5  ;;  %v5280_v2 = vrot.slane %v4639_v32, 6  ;;  %v5279_v21 = vrot.slane %v4639_v32, 7  ;;  %v2133_v3 = vmul.f32 %v4368_v61, %v3863_v48 }
 0x384   : > { %v1944_v34 = vadd.f32 %v4619_v29, %v1928_v8  ;;  %v2102_v10 = vadd.f32 %v2086_v47, %v2022_v58  ;;  %v5329_v37 = vrot.slane %v4358_v19, 5  ;;  %v5330_v35 = vrot.slane %v4356_v14, 6 }
 0x385   : > { %v1903_v15 = vsel %vm1410_vm2, %v1881_v4, %v1882_v18  ;;  %2173 = vrot.lane.b32.xlu1 %v2131_v33, %s3444_s19  ;;  %v2087_v23 = vmul.f32 %v2066_v36, %v3713_v0  ;;  %v5331_v47 = vrot.slane %v4356_v14, 7 }
 0x386   : > { %v1902_v16 = vsel %vm1410_vm2, %v1882_v18, %v5329_v37  ;;  %v1983_v45 = vsel %vm1543_vm3, %v5330_v35, %v5280_v2  ;;  %v4664_v48 = vadd.f32 %v2008_v24, %v1944_v34  ;;  %v1930_v58 = vmul.f32 %v1903_v15, %v3709_v49  ;;  %v4673_v8 = vpop.permute.xlu1 %1843 }
 0x387   : > { %v2063_v4 = vsel %vm1676_vm4, %v5331_v47, %v5279_v21  ;;  %v1929_v18 = vmul.f32 %v1904_v56, %v3709_v49  ;;  %v1884_v37 = vrot.slane %v4673_v8, 5  ;;  %v5281_v33 = vrot.slane %v4673_v8, 6 }
 0x388   : > { %v2202_v36 = vadd.f32 %v4461_v55, %v2102_v10  ;;  %v1946_v24 = vadd.f32 %v4619_v29, %v1930_v58  ;;  %v2010_v15 = vmul.f32 %v1983_v45, %v3711_v30  ;;  %v4682_v35 = vadd.f32 %v2087_v23, %v2023_v52 }
 0x389   : > { %v5333_v47 = vrot.slane %v4356_v14, 6  ;;  %v5334_v56 = vrot.slane %v4360_v42, 5  ;;  %v5335_v34 = vrot.slane %v4358_v19, 5  ;;  %v5336_v52 = vrot.slane %v4358_v19, 6  ;;  %2175 = vrot.lane.b32.xlu1 %v2132_v5, %s3444_s19 }
 0x38a   : > { %5332 = vst [vmem:[#allocation15_spill] sm:$0xff] %v4682_v35  ;;  %v5337_v45 = vrot.slane %v4673_v8, 7  ;;  %2460 = vrot.lane.b32.xlu0 %v2202_v36, %s3445_s24  ;;  %v2026_v58 = vadd.f32 %v2010_v15, %v1946_v24  ;;  %v5339_v15 = vrot.slane %v4356_v14, 7 }
 0x38b   : > { %v1984_v21 = vsel %vm1543_vm3, %v1960_v51, %v5333_v47  ;;  %v1900_v2 = vsel %vm1410_vm2, %v1884_v37, %v5334_v56  ;;  %v1901_v55 = vsel %vm1410_vm2, %v5335_v34, %v1884_v37  ;;  %v1981_v10 = vsel %vm1543_vm3, %v5336_v52, %v5281_v33  ;;  %v4712_v34 = vpop.permute.xlu1 %1847 }
 0x38c   : > { %v5338_v51 = vrot.slane %v4358_v19, 7  ;;  %v2090_v47 = vmul.f32 %v2063_v4, %v3713_v0  ;;  %v1932_v37 = vmul.f32 %v1901_v55, %v3709_v49  ;;  %v1945_v56 = vadd.f32 %v4619_v29, %v1929_v18 }
 0x38d   : > { %v2012_v52 = vmul.f32 %v1981_v10, %v3711_v30  ;;  %v1886_v33 = vrot.slane %v4712_v34, 5  ;;  %v5282_v35 = vrot.slane %v4712_v34, 6  ;;  %v2064_v5 = vsel %vm1676_vm4, %v2040_v17, %v5339_v15  ;;  %2177 = vrot.lane.b32.xlu1 %v2133_v3, %s3444_s19 }
 0x38e   : > { %v2061_v23 = vsel %vm1676_vm4, %v5338_v51, %v5337_v45  ;;  %v2046_v45 = vrot.slane %v4712_v34, 7  ;;  %v1948_v36 = vadd.f32 %v4619_v29, %v1932_v37  ;;  %v2106_v24 = vadd.f32 %v2090_v47, %v2026_v58 }
 0x38f   : > { %v2092_v4 = vmul.f32 %v2061_v23, %v3713_v0  ;;  %v5340_v18 = vrot.slane %v4362_v13, 5  ;;  %v5341_v10 = vrot.slane %v4360_v42, 5  ;;  %v5342_v23 = vrot.slane %v4360_v42, 6 }
 0x390   : > { %v1931_v17 = vmul.f32 %v1902_v16, %v3709_v49  ;;  %v2028_v58 = vadd.f32 %v2012_v52, %v1948_v36  ;;  %v5343_v37 = vrot.slane %v4360_v42, 7  ;;  %v2206_v16 = vadd.f32 %v4471_v27, %v2106_v24 }
 0x391   : > { %v4729_v55 = vsel %vm1410_vm2, %v1886_v33, %v5340_v18  ;;  %v1899_v51 = vsel %vm1410_vm2, %v5341_v10, %v1886_v33  ;;  %v1979_v14 = vsel %vm1543_vm3, %v5342_v23, %v5282_v35  ;;  %v4750_v33 = vpop.permute.xlu1 %1851  ;;  %v2009_v18 = vmul.f32 %v1984_v21, %v3711_v30 }
 0x392   : > { %v1934_v47 = vmul.f32 %v1899_v51, %v3709_v49  ;;  %v2059_v15 = vsel %vm1676_vm4, %v5343_v37, %v2046_v45  ;;  %v2014_v10 = vmul.f32 %v1979_v14, %v3711_v30  ;;  %v2135_v52 = vmul.f32 %v4368_v61, %v3883_v7  ;;  %2468 = vrot.lane.b32.xlu0 %v2206_v16, %s3445_s24 }
 0x393   : > { %v2108_v51 = vadd.f32 %v2092_v4, %v2028_v58  ;;  %v2025_v23 = vadd.f32 %v2009_v18, %v1945_v56  ;;  %v2089_v35 = vmul.f32 %v2064_v5, %v3713_v0  ;;  %v2094_v37 = vmul.f32 %v2059_v15, %v3713_v0  ;;  %v2172_v18 = vpop.permute.xlu0 %2171 }
 0x394   : > { %v1950_v36 = vadd.f32 %v4619_v29, %v1934_v47  ;;  %v1947_v3 = vadd.f32 %v4619_v29, %v1931_v17  ;;  %v5344_v21 = vrot.slane %v4358_v19, 6  ;;  %v5345_v14 = vrot.slane %v4639_v32, 6  ;;  %2181 = vrot.lane.b32.xlu1 %v2135_v52, %s3444_s19 }
 0x395   : > { %v4769_v61 = vpop.permute.xlu1 %1855  ;;  %v2208_v56 = vadd.f32 %v4477_v44, %v2108_v51  ;;  %v2105_v4 = vadd.f32 %v2089_v35, %v2025_v23  ;;  %v5346_v5 = vrot.slane %v4358_v19, 7  ;;  %v5347_v17 = vrot.slane %v4639_v32, 7 }
 0x396   : > { %v1982_v27 = vsel %vm1543_vm3, %v5345_v14, %v5344_v21  ;;  %v2030_v7 = vadd.f32 %v2014_v10, %v1950_v36  ;;  %v1891_v16 = vrot.slane %v4366_v11, 5  ;;  %v1933_v52 = vmul.f32 %v1900_v2, %v3709_v49 }
 0x397   : > { %v2011_v24 = vmul.f32 %v1982_v27, %v3711_v30  ;;  %v2062_v58 = vsel %vm1676_vm4, %v5347_v17, %v5346_v5  ;;  %2472 = vrot.lane.b32.xlu0 %v2208_v56, %s3445_s24  ;;  %v5348_v23 = vrot.slane %v4360_v42, 6  ;;  %v5350_v21 = vrot.slane %v4360_v42, 7 }
 0x398   : > { %v2110_v47 = vadd.f32 %v2094_v37, %v2030_v7  ;;  %v2091_v10 = vmul.f32 %v2062_v58, %v3713_v0  ;;  %v5349_v37 = vrot.slane %v4673_v8, 6  ;;  %v5351_v14 = vrot.slane %v4673_v8, 7 }
 0x399   : > { %v2027_v15 = vadd.f32 %v2011_v24, %v1947_v3  ;;  %v1860_v44 = vpop.permute.xlu1 %1859  ;;  %v5352_v7 = vrot.slane %v4352_v25, 5  ;;  %v5353_v24 = vrot.slane %v4352_v25, 6  ;;  %v1967_v8 = vrot.slane %v4362_v13, 6 }
 0x39a   : > { %v2210_v35 = vadd.f32 %v2172_v18, %v2110_v47  ;;  %v1892_v36 = vrot.slane %v1860_v44, 5  ;;  %v1972_v19 = vrot.slane %v1860_v44, 6  ;;  %v2052_v51 = vrot.slane %v1860_v44, 7 }
 0x39b   : > { %v2107_v32 = vadd.f32 %v2091_v10, %v2027_v15  ;;  %v1980_v3 = vsel %vm1543_vm3, %v5349_v37, %v5348_v23  ;;  %v2060_v27 = vsel %vm1676_vm4, %v5351_v14, %v5350_v21  ;;  %v5354_v15 = vrot.slane %v4352_v25, 7 }
 0x39c   : > { %v1893_v2 = vsel %vm1410_vm2, %v1891_v16, %v1892_v36  ;;  %v1908_v56 = vsel %vm1410_vm2, %v1892_v36, %v5352_v7  ;;  %v1988_v42 = vsel %vm1543_vm3, %v1972_v19, %v5353_v24  ;;  %2476 = vrot.lane.b32.xlu0 %v2210_v35, %s3445_s24  ;;  %v1949_v10 = vadd.f32 %v4619_v29, %v1933_v52 }
 0x39d   : > { %v1909_v5 = vsel %vm1427_vm6, %v1908_v56, 0.0  ;;  %v4811_v17 = vpop.permute.xlu1 %2153  ;;  %v1989_v47 = vsel %vm1560_vm7, %v1988_v42, 0.0  ;;  %v2068_v18 = vsel %vm1676_vm4, %v2052_v51, %v5354_v15  ;;  %v2047_v44 = vrot.slane %v4362_v13, 7 }
 0x39e   : > { %v1925_v58 = vmul.f32 %v1909_v5, %v3709_v49  ;;  %v5285_v35 = vrot.slane %v4366_v11, 6  ;;  %v1940_v36 = vmul.f32 %v1893_v2, %v3709_v49  ;;  %v2069_v23 = vsel %vm1693_vm8, %v2068_v18, 0.0 }
 0x39f   : > { %v2005_v21 = vmul.f32 %v1989_v47, %v3711_v30  ;;  %v2013_v25 = vmul.f32 %v1980_v3, %v3711_v30  ;;  %v1935_v7 = vmul.f32 %v4729_v55, %v3709_v49  ;;  %v5355_v2 = vrot.slane %v4712_v34, 6 }
 0x3a0   : > { %v1941_v37 = vadd.f32 %v4619_v29, %v1925_v58  ;;  %v1973_v52 = vsel %vm1543_vm3, %v5285_v35, %v1972_v19  ;;  %v2058_v3 = vsel %vm1676_vm4, %v2046_v45, %v2047_v44  ;;  %v2085_v24 = vmul.f32 %v2069_v23, %v3713_v0  ;;  %v4861_v23 = vpop.permute.xlu0 %2179 }
 0x3a1   : > { %v4833_v14 = vpop.permute.xlu1 %2157  ;;  %v1978_v56 = vsel %vm1543_vm3, %v5355_v2, %v1967_v8  ;;  %v2029_v42 = vadd.f32 %v2013_v25, %v1949_v10  ;;  %v2093_v55 = vmul.f32 %v2060_v27, %v3713_v0  ;;  %v1956_v5 = vadd.f32 %v4619_v29, %v1940_v36 }
 0x3a2   : > { %v2021_v19 = vadd.f32 %v2005_v21, %v1941_v37  ;;  %v1951_v58 = vadd.f32 %v4619_v29, %v1935_v7  ;;  %v2015_v47 = vmul.f32 %v1978_v56, %v3711_v30  ;;  %v5283_v15 = vrot.slane %v4366_v11, 7 }
 0x3a3   : > { %v4857_v34 = vadd.f32 %v2093_v55, %v2029_v42  ;;  %v2020_v45 = vmul.f32 %v1973_v52, %v3711_v30  ;;  %v2095_v10 = vmul.f32 %v2058_v3, %v3713_v0  ;;  %v2088_v2 = vmul.f32 %v4634_v60, %v3713_v0 }
 0x3a4   : > { %v4855_v18 = vadd.f32 %v2085_v24, %v2021_v19  ;;  %v2031_v21 = vadd.f32 %v2015_v47, %v1951_v58  ;;  %v2053_v27 = vsel %vm1676_vm4, %v5283_v15, %v2052_v51  ;;  %v2184_v42 = vpop.permute.xlu0 %2183  ;;  %v5360_v15 = vld [vmem:[#allocation12_spill] sm:$0xff] }
 0x3a5   : > { %v2162_v37 = vpop.permute.xlu1 %2161  ;;  %v2036_v25 = vadd.f32 %v2020_v45, %v1956_v5  ;;  %v2100_v52 = vmul.f32 %v2053_v27, %v3713_v0  ;;  %v4877_v24 = vadd.f32 %v2088_v2, %v4664_v48 }
 0x3a6   : > { %v4867_v36 = vadd.f32 %v2162_v37, %v2105_v4  ;;  %v4869_v7 = vadd.f32 %v2095_v10, %v2031_v21 }
 0x3a7   : > { %v2116_v3 = vadd.f32 %v2100_v52, %v2036_v25 }
 0x3a9   : > { %v2166_v56 = vpop.permute.xlu1 %2165  ;;  %v4879_v55 = vadd.f32 %v2184_v42, %v2116_v3 }
 0x3aa   : > { %v4874_v19 = vadd.f32 %v2166_v56, %v2107_v32 }
 0x3b2   : > { %v2319_v4 = vpop.xlane.xlu0 %2318 }
 0x3b3   : > { %v2363_v51 = vmul.f32 0.0625, %v2319_v4 }
 0x3b5   : > { %v2379_v5 = vadd.f32 1e-05, %v2363_v51 }
 0x3b6   : > { %v2322_v58 = vpop.xlane.xlu0 %2321 }
 0x3b7   : > { %3324 = vrsqrt.f32 %v2379_v5  ;;  %v2364_v47 = vmul.f32 0.0625, %v2322_v58 }
 0x3b9   : > { %v2380_v60 = vadd.f32 1e-05, %v2364_v47 }
 0x3ba   : > { %v2325_v45 = vpop.xlane.xlu0 %2324 }
 0x3bb   : > { %3326 = vrsqrt.f32 %v2380_v60  ;;  %v2365_v37 = vmul.f32 0.0625, %v2325_v45 }
 0x3bd   : > { %v2381_v32 = vadd.f32 1e-05, %v2365_v37 }
 0x3be   : > { %v2331_v21 = vpop.xlane.xlu0 %2330 }
 0x3bf   : > { %3328 = vrsqrt.f32 %v2381_v32  ;;  %v2367_v10 = vmul.f32 0.0625, %v2331_v21 }
 0x3c1   : > { %v3325_v48 = vpop.eup %3324  ;;  %v2383_v27 = vadd.f32 1e-05, %v2367_v10 }
 0x3c2   : > { %v2337_v25 = vpop.xlane.xlu0 %2336  ;;  %v2411_v2 = vmul.f32 %v3325_v48, %v4482_v1 }
 0x3c3   : > { %3330 = vrsqrt.f32 %v2383_v27  ;;  %v2369_v52 = vmul.f32 0.0625, %v2337_v25 }
 0x3c4   : > { %2427 = vst.msk [vmem:[%s4885_s26 + $0x8] sm:$0xff] %vm870_vm9, %v2411_v2 }
 0x3c5   : > { %v3327_v56 = vpop.eup %3326  ;;  %v2385_v3 = vadd.f32 1e-05, %v2369_v52 }
 0x3c6   : > { %v2343_v42 = vpop.xlane.xlu0 %2342  ;;  %v2412_v4 = vmul.f32 %v3327_v56, %v4489_v63 }
 0x3c7   : > { %3332 = vrsqrt.f32 %v2385_v3  ;;  %v2371_v51 = vmul.f32 0.0625, %v2343_v42 }
 0x3c8   : > { %2428 = vst.msk [vmem:[%s4885_s26 + $0x10] sm:$0xff] %vm870_vm9, %v2412_v4 }
 0x3c9   : > { %v3329_v5 = vpop.eup %3328  ;;  %v2387_v58 = vadd.f32 1e-05, %v2371_v51 }
 0x3ca   : > { %v2349_v47 = vpop.xlane.xlu0 %2348  ;;  %v2413_v1 = vmul.f32 %v3329_v5, %v4499_v54 }
 0x3cb   : > { %3334 = vrsqrt.f32 %v2387_v58  ;;  %v2373_v60 = vmul.f32 0.0625, %v2349_v47  ;;  %v2763_v45 = vpop.f32.mrb[16].mxu0 }
 0x3cc   : > { %v2768_v37 = vand.u32 2147483647, %v2763_v45  ;;  %v3178_v32 = vpop.f32.mrb[17].mxu0  ;;  %2429 = vst.msk [vmem:[%s4885_s26 + $0x18] sm:$0xff] %vm870_vm9, %v2413_v1 }
 0x3cd   : > { %v3331_v21 = vpop.eup %3330  ;;  %v2389_v63 = vadd.f32 1e-05, %v2373_v60 }
 0x3ce   : > { %v2769_v10 = vsub.f32 0.0, %v2768_v37  ;;  %v2355_v48 = vpop.xlane.xlu0 %2354  ;;  %v2415_v27 = vmul.f32 %v3331_v21, %v4508_v57 }
 0x3cf   : > { %3336 = vrsqrt.f32 %v2389_v63  ;;  %v2375_v25 = vmul.f32 0.0625, %v2355_v48 }
 0x3d0   : > { %v2770_v2 = vmul.f32 1.442695, %v2769_v10  ;;  %2431 = vst.msk [vmem:[%s4885_s26 + $0x28] sm:$0xff] %vm870_vm9, %v2415_v27  ;;  %v2767_v27 = vmax.f32 %v2763_v45, 0.0 }
 0x3d1   : > { %v3333_v54 = vpop.eup %3332  ;;  %v2391_v52 = vadd.f32 1e-05, %v2375_v25 }
 0x3d2   : > { %3338 = vpow2.f32 %v2770_v2  ;;  %v2361_v56 = vpop.xlane.xlu0 %2360  ;;  %v2417_v3 = vmul.f32 %v3333_v54, %v4517_v12 }
 0x3d3   : > { %3340 = vrsqrt.f32 %v2391_v52  ;;  %v2377_v42 = vmul.f32 0.0625, %v2361_v56 }
 0x3d4   : > { %2433 = vst.msk [vmem:[%s4885_s26 + $0x38] sm:$0xff] %vm870_vm9, %v2417_v3 }
 0x3d5   : > { %v3335_v4 = vpop.eup %3334  ;;  %v2393_v57 = vadd.f32 1e-05, %v2377_v42 }
 0x3d6   : > { %v2419_v51 = vmul.f32 %v3335_v4, %v4526_v31 }
 0x3d7   : > { %3342 = vrsqrt.f32 %v2393_v57  ;;  %v1069_v57 = vand.u32 2147483647, %v4425_v26 }
 0x3d8   : > { %2435 = vst.msk [vmem:[%s4885_s26 + $0x48] sm:$0xff] %vm870_vm9, %v2419_v51 }
 0x3d9   : > { %v3337_v5 = vpop.eup %3336 }
 0x3da   : > { %v2421_v58 = vmul.f32 %v3337_v5, %v4533_v41  ;;  %v1065_v41 = vand.u32 2147483647, %v4415_v62 }
 0x3dc   : > { %v3339_v47 = vpop.eup %3338  ;;  %2437 = vst.msk [vmem:[%s4885_s26 + $0x58] sm:$0xff] %vm870_vm9, %v2421_v58 }
 0x3dd   : > { %v3341_v12 = vpop.eup %3340  ;;  %v2772_v1 = vadd.f32 1.0, %v3339_v47 }
 0x3de   : > { %v2423_v60 = vmul.f32 %v3341_v12, %v4539_v39 }
 0x3df   : > { %3344 = vlog2.f32 %v2772_v1  ;;  %v1085_v1 = vsub.f32 0.0, %v1069_v57  ;;  %v5289_v57 = vrot.slane %v4750_v33, 6 }
 0x3e0   : > { %2439 = vst.msk [vmem:[%s4885_s26 + $0x68] sm:$0xff] %vm870_vm9, %v2423_v60 }
 0x3e1   : > { %v3343_v37 = vpop.eup %3342 }
 0x3e2   : > { %v2425_v31 = vmul.f32 %v3343_v37, %v4545_v43  ;;  %v1081_v43 = vsub.f32 0.0, %v1065_v41  ;;  %v1071_v37 = vand.u32 2147483647, %v4430_v53  ;;  %v1073_v41 = vand.u32 2147483647, %v4440_v9 }
 0x3e4   : > { %2441 = vst.msk [vmem:[%s4885_s26 + $0x78] sm:$0xff] %vm870_vm9, %v2425_v31  ;;  %v1098_v4 = vmul.f32 1.442695, %v1081_v43  ;;  %v5356_v43 = vld [vmem:[#allocation3_spill] sm:$0xff] }
 0x3e5   : > { %v2219_v32 = vpop.xlane.xlu1 %2218 }
 0x3e6   : > { %v2266_v21 = vmul.f32 0.0625, %v2219_v32  ;;  %3346 = vpow2.f32 %v1098_v4  ;;  %v1075_v4 = vand.u32 2147483647, %v4444_v28 }
 0x3e8   : > { %v4916_v63 = vsub.f32 %v4150_v40, %v2266_v21  ;;  %v1067_v40 = vand.u32 2147483647, %v4420_v50 }
 0x3e9   : > { %v3345_v10 = vpop.eup %3344  ;;  %v2231_v48 = vpop.xlane.xlu1 %2230 }
 0x3ea   : > { %v2774_v39 = vmul.f32 0.6931472, %v3345_v10  ;;  %v2270_v25 = vmul.f32 0.0625, %v2231_v48  ;;  %v2298_v2 = vmul.f32 %v4916_v63, %v4916_v63  ;;  %v1083_v51 = vsub.f32 0.0, %v1067_v40 }
 0x3eb   : > { %v1889_v40 = vrot.slane %v5356_v43, 5 }
 0x3ec   : > { %v2775_v54 = vadd.f32 %v2774_v39, %v2767_v27  ;;  %v4929_v52 = vsub.f32 %v4178_v22, %v2270_v25  ;;  %v2314_v45 = vsel %vm870_vm9, %v2298_v2, 0.0  ;;  %v1102_v60 = vmul.f32 1.442695, %v1083_v51 }
 0x3ed   : > { %2315 = vadd.xlane.f32.xlu1 %v2314_v45  ;;  %v2237_v56 = vpop.xlane.xlu1 %2236  ;;  %v1106_v27 = vmul.f32 1.442695, %v1085_v1  ;;  %v5291_v39 = vrot.slane %v4769_v61, 5  ;;  %v1087_v25 = vsub.f32 0.0, %v1071_v37  ;;  %v5290_v37 = vrot.slane %v5356_v43, 6 }
 0x3ee   : > { %v2272_v3 = vmul.f32 0.0625, %v2237_v56  ;;  %v2302_v42 = vmul.f32 %v4929_v52, %v4929_v52  ;;  %2859 = vst.msk [vmem:[%s4925_s28] sm:$0x3] %vm2858_vm10, %v2775_v54  ;;  %3348 = vpow2.f32 %v1102_v60  ;;  %v5357_v54 = vrot.slane %v4362_v13, 5 }
 0x3ef   : > { %3350 = vpow2.f32 %v1106_v27  ;;  %v1895_v51 = vsel %vm1410_vm2, %v1889_v40, %v5291_v39  ;;  %v1091_v27 = vsub.f32 0.0, %v1075_v4 }
 0x3f0   : > { %v4937_v5 = vsub.f32 %v4206_v6, %v2272_v3  ;;  %v2326_v58 = vsel %vm870_vm9, %v2302_v42, 0.0  ;;  %v1888_v6 = vrot.slane %v4750_v33, 5  ;;  %v1089_v3 = vsub.f32 0.0, %v1073_v41  ;;  %v3347_v60 = vpop.eup %3346 }
 0x3f1   : > { %2327 = vadd.xlane.f32.xlu1 %v2326_v58  ;;  %v2243_v22 = vpop.xlane.xlu1 %2242  ;;  %v1129_v4 = vadd.f32 1.0, %v3347_v60 }
 0x3f2   : > { %v2274_v47 = vmul.f32 0.0625, %v2243_v22  ;;  %v2304_v12 = vmul.f32 %v4937_v5, %v4937_v5  ;;  %v1897_v45 = vsel %vm1410_vm2, %v5357_v54, %v1888_v6  ;;  %v1110_v22 = vmul.f32 1.442695, %v1087_v25  ;;  %v5358_v25 = vld [vmem:[#allocation10_spill] sm:$0xff] }
 0x3f3   : > { %v1936_v1 = vmul.f32 %v1897_v45, %v3709_v49  ;;  %v1114_v41 = vmul.f32 1.442695, %v1089_v3  ;;  %v5286_v54 = vrot.slane %v4750_v33, 7  ;;  %v1977_v45 = vsel %vm1543_vm3, %v1967_v8, %v5289_v57 }
 0x3f4   : > { %v4944_v31 = vsub.f32 %v4232_v38, %v2274_v47  ;;  %v2332_v32 = vsel %vm870_vm9, %v2304_v12, 0.0  ;;  %3352 = vpow2.f32 %v1110_v22  ;;  %v2016_v60 = vmul.f32 %v1977_v45, %v3711_v30 }
 0x3f5   : > { %2333 = vadd.xlane.f32.xlu1 %v2332_v32  ;;  %v2249_v21 = vpop.xlane.xlu1 %2248  ;;  %v5284_v32 = vrot.slane %v4769_v61, 6  ;;  %3354 = vpow2.f32 %v1114_v41 }
 0x3f6   : > { %v2276_v10 = vmul.f32 0.0625, %v2249_v21  ;;  %v2306_v48 = vmul.f32 %v4944_v31, %v4944_v31  ;;  %3356 = vlog2.f32 %v1129_v4 }
 0x3f8   : > { %v4953_v38 = vsub.f32 %v4258_v59, %v2276_v10  ;;  %v2338_v2 = vsel %vm870_vm9, %v2306_v48, 0.0  ;;  %v1938_v10 = vmul.f32 %v1895_v51, %v3709_v49  ;;  %v1975_v51 = vsel %vm1543_vm3, %v5290_v37, %v5284_v32  ;;  %v3349_v22 = vpop.eup %3348  ;;  %v5362_v37 = vld [vmem:[#allocation5_spill] sm:$0xff] }
 0x3f9   : > { %2339 = vadd.xlane.f32.xlu1 %v2338_v2  ;;  %v2255_v56 = vpop.xlane.xlu1 %2254  ;;  %v1077_v2 = vand.u32 2147483647, %v5358_v25  ;;  %v1079_v32 = vand.u32 2147483647, %v5360_v15  ;;  %v1066_v39 = vand.u32 2147483647, %v5362_v37 }
 0x3fa   : > { %v2278_v42 = vmul.f32 0.0625, %v2255_v56  ;;  %v2308_v59 = vmul.f32 %v4953_v38, %v4953_v38  ;;  %v5359_v56 = vld [vmem:[#allocation2_spill] sm:$0xff] }
 0x3fb   : > { %v1095_v4 = vsub.f32 0.0, %v1079_v32 }
 0x3fc   : > { %v2461_v58 = vpop.permute.xlu0 %2460  ;;  %v4974_v47 = vsub.f32 %v4267_v20, %v2278_v42  ;;  %v2344_v12 = vsel %vm870_vm9, %v2308_v59, 0.0  ;;  %v1952_v59 = vadd.f32 %v4619_v29, %v1936_v1 }
 0x3fd   : > { %2508 = vst.msk [vmem:[%s4885_s26 + $0x8] sm:$0xff] %vm2506_vm11, %v2461_v58  ;;  %2345 = vadd.xlane.f32.xlu1 %v2344_v12  ;;  %v2261_v21 = vpop.xlane.xlu1 %2260  ;;  %v5287_v58 = vrot.slane %v4769_v61, 7  ;;  %v5288_v12 = vrot.slane %v5356_v43, 7 }
 0x3fe   : > { %v2280_v48 = vmul.f32 0.0625, %v2261_v21  ;;  %v2310_v20 = vmul.f32 %v4974_v47, %v4974_v47  ;;  %v1954_v21 = vadd.f32 %v4619_v29, %v1938_v10  ;;  %v2018_v10 = vmul.f32 %v1975_v51, %v3711_v30 }
 0x3ff   : > { %v2032_v41 = vadd.f32 %v2016_v60, %v1952_v59  ;;  %v2055_v13 = vsel %vm1676_vm4, %v5288_v12, %v5287_v58 }
 0x400   : > { %v4994_v3 = vsub.f32 %v5359_v56, %v2280_v48  ;;  %v2350_v42 = vsel %vm870_vm9, %v2310_v20, 0.0  ;;  %v1118_v48 = vmul.f32 1.442695, %v1091_v27  ;;  %v1093_v20 = vsub.f32 0.0, %v1077_v2  ;;  %v3351_v27 = vpop.eup %3350 }
 0x401   : > { %2351 = vadd.xlane.f32.xlu1 %v2350_v42  ;;  %v5005_v8 = vpop.permute.xlu1 %2169  ;;  %v2057_v42 = vsel %vm1676_vm4, %v2047_v44, %v5286_v54  ;;  %v1131_v2 = vadd.f32 1.0, %v3349_v22  ;;  %v2034_v45 = vadd.f32 %v2018_v10, %v1954_v21  ;;  %v2098_v22 = vmul.f32 %v2055_v13, %v3713_v0  ;;  %v3353_v12 = vpop.eup %3352 }
 0x402   : > { %v2312_v1 = vmul.f32 %v4994_v3, %v4994_v3  ;;  %v2096_v51 = vmul.f32 %v2057_v42, %v3713_v0  ;;  %3358 = vpow2.f32 %v1118_v48  ;;  %v1122_v60 = vmul.f32 1.442695, %v1093_v20  ;;  %v3355_v32 = vpop.eup %3354 }
 0x403   : > { %3360 = vlog2.f32 %v1131_v2  ;;  %v1133_v58 = vadd.f32 1.0, %v3351_v27  ;;  %v2114_v21 = vadd.f32 %v2098_v22, %v2034_v45  ;;  %v1126_v48 = vmul.f32 1.442695, %v1095_v4  ;;  %v3357_v27 = vpop.eup %3356 }
 0x404   : > { %v2469_v56 = vpop.permute.xlu0 %2468  ;;  %v2356_v35 = vsel %vm870_vm9, %v2312_v1, 0.0  ;;  %v2112_v54 = vadd.f32 %v2096_v51, %v2032_v41  ;;  %3362 = vpow2.f32 %v1122_v60  ;;  %v1135_v20 = vadd.f32 1.0, %v3353_v12 }
 0x405   : > { %2512 = vst.msk [vmem:[%s4885_s26 + $0x28] sm:$0xff] %vm2506_vm11, %v2469_v56  ;;  %2357 = vadd.xlane.f32.xlu1 %v2356_v35  ;;  %v5029_v44 = vpop.permute.xlu1 %2173  ;;  %v5361_v56 = vld [vmem:[#allocation4_spill] sm:$0xff]  ;;  %3364 = vlog2.f32 %v1133_v58  ;;  %v2214_v41 = vadd.f32 %v4861_v23, %v2114_v21  ;;  %v1082_v13 = vsub.f32 0.0, %v1066_v39  ;;  %v1137_v45 = vadd.f32 1.0, %v3355_v32  ;;  %v5364_v21 = vld [vmem:[#allocation7_spill] sm:$0xff] }
 0x406   : > { %v1064_v1 = vand.u32 2147483647, %v5361_v56  ;;  %3366 = vpow2.f32 %v1126_v48  ;;  %v1147_v51 = vmul.f32 0.6931472, %v3357_v27  ;;  %v2201_v23 = vadd.f32 %v4811_v17, %v4855_v18  ;;  %v5365_v48 = vld [vmem:[#allocation15_spill] sm:$0xff]  ;;  %v5366_v18 = vld [vmem:[#allocation8_spill] sm:$0xff] }
 0x407   : > { %3368 = vlog2.f32 %v1135_v20  ;;  %v1100_v58 = vmul.f32 1.442695, %v1082_v13  ;;  %v2203_v17 = vadd.f32 %v4833_v14, %v5365_v48  ;;  %v5368_v14 = vld [vmem:[#allocation14_spill] sm:$0xff] }
 0x408   : > { %v1080_v42 = vsub.f32 0.0, %v1064_v1  ;;  %v5363_v1 = vld [vmem:[#allocation6_spill] sm:$0xff] }
 0x409   : > { %v2473_v59 = vpop.permute.xlu0 %2472  ;;  %v2176_v35 = vpop.permute.xlu1 %2175 }
 0x40a   : > { %2514 = vst.msk [vmem:[%s4885_s26 + $0x38] sm:$0xff] %vm2506_vm11, %v2473_v59  ;;  %v2212_v57 = vadd.f32 %v2176_v35, %v2112_v54  ;;  %v1096_v2 = vmul.f32 1.442695, %v1080_v42  ;;  %v1068_v59 = vand.u32 2147483647, %v5363_v1 }
 0x40c   : > { %2480 = vrot.lane.b32.xlu0 %v2212_v57, %s3445_s24  ;;  %v3359_v54 = vpop.eup %3358  ;;  %v1049_v57 = vmax.f32 %v4415_v62, 0.0  ;;  %3370 = vpow2.f32 %v1096_v2  ;;  %v1084_v35 = vsub.f32 0.0, %v1068_v59  ;;  %v1051_v62 = vmax.f32 %v4420_v50, 0.0 }
 0x40d   : > { %v3361_v60 = vpop.eup %3360  ;;  %3372 = vlog2.f32 %v1137_v45  ;;  %v1139_v39 = vadd.f32 1.0, %v3359_v54  ;;  %v1053_v50 = vmax.f32 %v4425_v26, 0.0  ;;  %v5367_v45 = vld [vmem:[#allocation9_spill] sm:$0xff]  ;;  %v2204_v59 = vadd.f32 %v5368_v14, %v4877_v24 }
 0x40e   : > { %v2477_v10 = vpop.permute.xlu0 %2476  ;;  %v3363_v12 = vpop.eup %3362  ;;  %v1177_v4 = vadd.f32 %v1147_v51, %v1049_v57  ;;  %v1151_v22 = vmul.f32 0.6931472, %v3361_v60  ;;  %3374 = vpow2.f32 %v1100_v58  ;;  %v1104_v2 = vmul.f32 1.442695, %v1084_v35 }
 0x40f   : > { %2516 = vst.msk [vmem:[%s4885_s26 + $0x48] sm:$0xff] %vm2506_vm11, %v2477_v10  ;;  %v1070_v10 = vand.u32 2147483647, %v5364_v21  ;;  %v3365_v42 = vpop.eup %3364  ;;  %3376 = vlog2.f32 %v1139_v39  ;;  %v1141_v32 = vadd.f32 1.0, %v3363_v12  ;;  %v1074_v51 = vand.u32 2147483647, %v5367_v45 }
 0x410   : > { %2484 = vrot.lane.b32.xlu0 %v2214_v41, %s3445_s24  ;;  %v3367_v20 = vpop.eup %3366  ;;  %v1179_v41 = vadd.f32 %v1151_v22, %v1051_v62  ;;  %v1155_v27 = vmul.f32 0.6931472, %v3365_v42  ;;  %v1896_v26 = vsel %vm1410_vm2, %v1888_v6, %v1889_v40  ;;  %v1055_v24 = vmax.f32 %v4430_v53, 0.0 }
 0x411   : > { %v1086_v13 = vsub.f32 0.0, %v1070_v10  ;;  %v3369_v54 = vpop.eup %3368  ;;  %3378 = vlog2.f32 %v1141_v32  ;;  %v1143_v57 = vadd.f32 1.0, %v3367_v20  ;;  %v1090_v22 = vsub.f32 0.0, %v1074_v51  ;;  %v5369_v10 = vld [vmem:[#allocation11_spill] sm:$0xff] }
 0x412   : > { %3380 = vpow2.f32 %v1104_v2  ;;  %v1159_v39 = vmul.f32 0.6931472, %v3369_v54  ;;  %v1076_v42 = vand.u32 2147483647, %v5369_v10  ;;  %v5370_v53 = vrot.slane %v4769_v61, 5  ;;  %v5371_v2 = vld [vmem:[#allocation13_spill] sm:$0xff] }
 0x413   : > { %v1108_v12 = vmul.f32 1.442695, %v1086_v13  ;;  %3382 = vlog2.f32 %v1143_v57  ;;  %v1057_v20 = vmax.f32 %v4440_v9, 0.0  ;;  %v1078_v13 = vand.u32 2147483647, %v5371_v2 }
 0x414   : > { %2488 = vrot.lane.b32.xlu0 %v4879_v55, %s3445_s24  ;;  %v1072_v55 = vand.u32 2147483647, %v5366_v18  ;;  %v1183_v48 = vadd.f32 %v1159_v39, %v1055_v24  ;;  %v1894_v40 = vsel %vm1410_vm2, %v5370_v53, %v1891_v16  ;;  %v5373_v54 = vrot.slane %v4750_v33, 6 }
 0x415   : > { %3384 = vpow2.f32 %v1108_v12  ;;  %v1939_v9 = vmul.f32 %v1894_v40, %v3709_v49  ;;  %v5376_v24 = vrot.slane %v4366_v11, 6  ;;  %v5378_v53 = vrot.slane %v4366_v11, 7 }
 0x416   : > { %2458 = vrot.lane.b32.xlu1 %v2201_v23, %s3445_s24  ;;  %v1088_v60 = vsub.f32 0.0, %v1072_v55  ;;  %v3371_v58 = vpop.eup %3370  ;;  %v1181_v23 = vadd.f32 %v1155_v27, %v1053_v50  ;;  %v1937_v55 = vmul.f32 %v1896_v26, %v3709_v49  ;;  %v1092_v27 = vsub.f32 0.0, %v1076_v42 }
 0x417   : > { %v1128_v6 = vadd.f32 1.0, %v3371_v58  ;;  %v1059_v58 = vmax.f32 %v4444_v28, 0.0  ;;  %v5374_v49 = vrot.slane %v5356_v43, 7  ;;  %v5377_v28 = vrot.slane %v4769_v61, 6 }
 0x418   : > { %2541 = vrot.lane.b32.xlu0 %v1177_v4, %s3446_s22  ;;  %v3373_v4 = vpop.eup %3372  ;;  %v1112_v35 = vmul.f32 1.442695, %v1088_v60  ;;  %v1953_v16 = vadd.f32 %v4619_v29, %v1937_v55  ;;  %v1120_v12 = vmul.f32 1.442695, %v1092_v27  ;;  %v1955_v42 = vadd.f32 %v4619_v29, %v1939_v9 }
 0x419   : > { %v3375_v62 = vpop.eup %3374  ;;  %v2211_v55 = vadd.f32 %v5029_v44, %v4869_v7  ;;  %v5379_v40 = vrot.slane %v4769_v61, 7  ;;  %v1063_v44 = vmax.f32 %v5360_v15, 0.0 }
 0x41a   : > { %2462 = vrot.lane.b32.xlu1 %v2203_v17, %s3445_s24  ;;  %v1163_v17 = vmul.f32 0.6931472, %v3373_v4  ;;  %v3377_v32 = vpop.eup %3376  ;;  %3386 = vpow2.f32 %v1112_v35  ;;  %v1130_v60 = vadd.f32 1.0, %v3375_v62  ;;  %v1094_v4 = vsub.f32 0.0, %v1078_v13  ;;  %v2178_v62 = vpop.permute.xlu1 %2177 }
 0x41b   : > { %v1167_v14 = vmul.f32 0.6931472, %v3377_v32  ;;  %3388 = vlog2.f32 %v1128_v6 }
 0x41c   : > { %2545 = vrot.lane.b32.xlu0 %v1179_v41, %s3446_s22  ;;  %v1116_v41 = vmul.f32 1.442695, %v1090_v22  ;;  %v1185_v51 = vadd.f32 %v1163_v17, %v1057_v20  ;;  %v1061_v17 = vmax.f32 %v5358_v25, 0.0  ;;  %v1124_v29 = vmul.f32 1.442695, %v1094_v4 }
 0x41d   : > { %v2054_v20 = vsel %vm1676_vm4, %v5379_v40, %v5378_v53 }
 0x41e   : > { %2464 = vrot.lane.b32.xlu1 %v2204_v59, %s3445_s24  ;;  %v3379_v59 = vpop.eup %3378  ;;  %3390 = vpow2.f32 %v1116_v41  ;;  %v2182_v46 = vpop.permute.xlu1 %2181 }
 0x41f   : > { %v3381_v57 = vpop.eup %3380  ;;  %v1171_v22 = vmul.f32 0.6931472, %v3379_v59  ;;  %3392 = vlog2.f32 %v1130_v60  ;;  %v1048_v59 = vmax.f32 %v5361_v56, 0.0  ;;  %v1052_v56 = vmax.f32 %v5363_v1, 0.0 }
 0x420   : > { %2549 = vrot.lane.b32.xlu0 %v1181_v23, %s3446_s22  ;;  %v2209_v23 = vadd.f32 %v5005_v8, %v4857_v34  ;;  %v1974_v34 = vsel %vm1543_vm3, %v5377_v28, %v5376_v24  ;;  %v1187_v8 = vadd.f32 %v1167_v14, %v1059_v58  ;;  %3394 = vpow2.f32 %v1120_v12 }
 0x421   : > { %v2019_v6 = vmul.f32 %v1974_v34, %v3711_v30  ;;  %v1189_v41 = vadd.f32 %v1171_v22, %v1061_v17 }
 0x422   : > { %2466 = vrot.lane.b32.xlu1 %v4867_v36, %s3445_s24  ;;  %v5372_v36 = vrot.slane %v5356_v43, 6  ;;  %v3383_v43 = vpop.eup %3382 }
 0x423   : > { %v1175_v25 = vmul.f32 0.6931472, %v3383_v43  ;;  %v2035_v13 = vadd.f32 %v2019_v6, %v1955_v42  ;;  %v1054_v43 = vmax.f32 %v5364_v21, 0.0  ;;  %v1058_v6 = vmax.f32 %v5367_v45, 0.0 }
 0x424   : > { %2553 = vrot.lane.b32.xlu0 %v1183_v48, %s3446_s22  ;;  %v1976_v50 = vsel %vm1543_vm3, %v5373_v54, %v5372_v36  ;;  %v3385_v48 = vpop.eup %3384  ;;  %v2099_v54 = vmul.f32 %v2054_v20, %v3713_v0  ;;  %v1060_v20 = vmax.f32 %v5369_v10, 0.0 }
 0x425   : > { %v2017_v39 = vmul.f32 %v1976_v50, %v3711_v30  ;;  %v3387_v7 = vpop.eup %3386  ;;  %v1134_v30 = vadd.f32 1.0, %v3385_v48  ;;  %v1191_v50 = vadd.f32 %v1175_v25, %v1063_v44  ;;  %v1056_v48 = vmax.f32 %v5366_v18, 0.0 }
 0x426   : > { %2470 = vrot.lane.b32.xlu1 %v4874_v19, %s3445_s24  ;;  %v5375_v19 = vrot.slane %v4750_v33, 7  ;;  %v1132_v33 = vadd.f32 1.0, %v3381_v57  ;;  %v3389_v11 = vpop.eup %3388  ;;  %v1136_v14 = vadd.f32 1.0, %v3387_v7 }
 0x427   : > { %v2033_v35 = vadd.f32 %v2017_v39, %v1953_v16  ;;  %v1145_v16 = vmul.f32 0.6931472, %v3389_v11  ;;  %v1050_v39 = vmax.f32 %v5362_v37, 0.0 }
 0x428   : > { %2557 = vrot.lane.b32.xlu0 %v1185_v51, %s3446_s22  ;;  %v2056_v26 = vsel %vm1676_vm4, %v5375_v19, %v5374_v49  ;;  %3396 = vlog2.f32 %v1132_v33  ;;  %v3391_v61 = vpop.eup %3390  ;;  %v2115_v51 = vadd.f32 %v2099_v54, %v2035_v13 }
 0x429   : > { %v2097_v32 = vmul.f32 %v2056_v26, %v3713_v0  ;;  %3398 = vpow2.f32 %v1124_v29  ;;  %v3393_v15 = vpop.eup %3392  ;;  %v1138_v60 = vadd.f32 1.0, %v3391_v61  ;;  %v1176_v57 = vadd.f32 %v1145_v16, %v1048_v59 }
 0x42a   : > { %2474 = vrot.lane.b32.xlu1 %v2209_v23, %s3445_s24  ;;  %3400 = vlog2.f32 %v1134_v30  ;;  %v2215_v9 = vadd.f32 %v2182_v46, %v2115_v51  ;;  %v3395_v0 = vpop.eup %3394  ;;  %v1149_v58 = vmul.f32 0.6931472, %v3393_v15 }
 0x42b   : > { %v2113_v27 = vadd.f32 %v2097_v32, %v2033_v35  ;;  %3402 = vlog2.f32 %v1136_v14  ;;  %v1140_v4 = vadd.f32 1.0, %v3395_v0 }
 0x42c   : > { %2561 = vrot.lane.b32.xlu0 %v1187_v8, %s3446_s22  ;;  %3404 = vlog2.f32 %v1138_v60  ;;  %v1178_v49 = vadd.f32 %v1149_v58, %v1050_v39 }
 0x42d   : > { %v2213_v36 = vadd.f32 %v2178_v62, %v2113_v27  ;;  %3406 = vlog2.f32 %v1140_v4  ;;  %v1062_v27 = vmax.f32 %v5371_v2, 0.0 }
 0x42e   : > { %2478 = vrot.lane.b32.xlu1 %v2211_v55, %s3445_s24 }
 0x430   : > { %2565 = vrot.lane.b32.xlu0 %v1189_v41, %s3446_s22 }
 0x432   : > { %2482 = vrot.lane.b32.xlu1 %v2213_v36, %s3445_s24  ;;  %v3397_v23 = vpop.eup %3396 }
 0x433   : > { %v3399_v12 = vpop.eup %3398  ;;  %v1153_v19 = vmul.f32 0.6931472, %v3397_v23 }
 0x434   : > { %2569 = vrot.lane.b32.xlu0 %v1191_v50, %s3446_s22  ;;  %v3401_v26 = vpop.eup %3400  ;;  %v1142_v24 = vadd.f32 1.0, %v3399_v12 }
 0x435   : > { %v1180_v22 = vadd.f32 %v1153_v19, %v1052_v56  ;;  %v1157_v35 = vmul.f32 0.6931472, %v3401_v26  ;;  %v3403_v37 = vpop.eup %3402 }
 0x436   : > { %2486 = vrot.lane.b32.xlu1 %v2215_v9, %s3445_s24  ;;  %3408 = vlog2.f32 %v1142_v24  ;;  %v1161_v62 = vmul.f32 0.6931472, %v3403_v37  ;;  %v3405_v1 = vpop.eup %3404 }
 0x437   : > { %v1182_v33 = vadd.f32 %v1157_v35, %v1054_v43  ;;  %v1165_v55 = vmul.f32 0.6931472, %v3405_v1  ;;  %v3407_v32 = vpop.eup %3406 }
 0x438   : > { %v1184_v17 = vadd.f32 %v1161_v62, %v1056_v48  ;;  %v1169_v53 = vmul.f32 0.6931472, %v3407_v32 }
 0x439   : > { %v1186_v21 = vadd.f32 %v1165_v55, %v1058_v6 }
 0x43a   : > { %2539 = vrot.lane.b32.xlu1 %v1176_v57, %s3446_s22  ;;  %v1188_v18 = vadd.f32 %v1169_v53, %v1060_v20 }
 0x43e   : > { %v2848_v28 = vpop.f32.mrb[18].mxu1  ;;  %2543 = vrot.lane.b32.xlu1 %v1178_v49, %s3446_s22 }
 0x43f   : > { %v2852_v34 = vsub.f32 0.0, %v2848_v28  ;;  %v3185_v8 = vpop.f32.mrb[19].mxu1 }
 0x440   : > { %v3409_v29 = vpop.eup %3408 }
 0x441   : > { %v2853_v42 = vmul.f32 1.442695, %v2852_v34  ;;  %v1173_v25 = vmul.f32 0.6931472, %v3409_v29 }
 0x442   : > { %2547 = vrot.lane.b32.xlu1 %v1180_v22, %s3446_s22 }
 0x443   : > { %3410 = vpow2.f32 %v2853_v42  ;;  %v1190_v45 = vadd.f32 %v1173_v25, %v1062_v27 }
 0x446   : > { %2551 = vrot.lane.b32.xlu1 %v1182_v33, %s3446_s22 }
 0x44a   : > { %2555 = vrot.lane.b32.xlu1 %v1184_v17, %s3446_s22 }
 0x44d   : > { %v3411_v40 = vpop.eup %3410 }
 0x44e   : > { %v2855_v41 = vadd.f32 1.0, %v3411_v40  ;;  %2559 = vrot.lane.b32.xlu1 %v1186_v21, %s3446_s22 }
 0x450   : > { %3412 = vrcp.f32 %v2855_v41 }
 0x452   : > { %2563 = vrot.lane.b32.xlu1 %v1188_v18, %s3446_s22 }
 0x456   : > { %2567 = vrot.lane.b32.xlu1 %v1190_v45, %s3446_s22 }
 0x45a   : > { %v3413_v13 = vpop.eup %3412 }
 0x45b   : > { %2861 = vrot.lane.b32.xlu1 %v3413_v13, %s3445_s24 }
 0x47a   : > { %v2316_v7 = vpop.xlane.xlu1 %2315 }
 0x47b   : > { %v2362_v10 = vmul.f32 0.0625, %v2316_v7 }
 0x47d   : > { %v2378_v30 = vadd.f32 1e-05, %v2362_v10 }
 0x47e   : > { %v2481_v44 = vpop.permute.xlu0 %2480  ;;  %v2328_v36 = vpop.xlane.xlu1 %2327 }
 0x47f   : > { %3414 = vrsqrt.f32 %v2378_v30  ;;  %2518 = vst.msk [vmem:[%s4885_s26 + $0x58] sm:$0xff] %vm2506_vm11, %v2481_v44  ;;  %v2366_v54 = vmul.f32 0.0625, %v2328_v36 }
 0x481   : > { %v2382_v2 = vadd.f32 1e-05, %v2366_v54 }
 0x482   : > { %v2485_v11 = vpop.permute.xlu0 %2484  ;;  %v2334_v46 = vpop.xlane.xlu1 %2333 }
 0x483   : > { %3416 = vrsqrt.f32 %v2382_v2  ;;  %2520 = vst.msk [vmem:[%s4885_s26 + $0x68] sm:$0xff] %vm2506_vm11, %v2485_v11  ;;  %v2368_v61 = vmul.f32 0.0625, %v2334_v46 }
 0x485   : > { %v2384_v50 = vadd.f32 1e-05, %v2368_v61 }
 0x486   : > { %v2489_v51 = vpop.permute.xlu0 %2488  ;;  %v2340_v14 = vpop.xlane.xlu1 %2339 }
 0x487   : > { %3418 = vrsqrt.f32 %v2384_v50  ;;  %2522 = vst.msk [vmem:[%s4885_s26 + $0x78] sm:$0xff] %vm2506_vm11, %v2489_v51  ;;  %v2370_v16 = vmul.f32 0.0625, %v2340_v14 }
 0x489   : > { %v3415_v9 = vpop.eup %3414  ;;  %v2386_v15 = vadd.f32 1e-05, %v2370_v16 }
 0x48a   : > { %v2542_v59 = vpop.permute.xlu0 %2541  ;;  %v2346_v0 = vpop.xlane.xlu1 %2345  ;;  %v2410_v60 = vmul.f32 %v3415_v9, %v4916_v63 }
 0x48b   : > { %3420 = vrsqrt.f32 %v2386_v15  ;;  %2589 = vst.msk [vmem:[%s4885_s26 + $0x8] sm:$0xff] %vm2587_vm12, %v2542_v59  ;;  %v2372_v57 = vmul.f32 0.0625, %v2346_v0 }
 0x48c   : > { %2426 = vst.msk [vmem:[%s4885_s26] sm:$0xff] %vm870_vm9, %v2410_v60 }
 0x48d   : > { %v3417_v58 = vpop.eup %3416  ;;  %v2388_v23 = vadd.f32 1e-05, %v2372_v57 }
 0x48e   : > { %v2546_v39 = vpop.permute.xlu0 %2545  ;;  %v2352_v12 = vpop.xlane.xlu1 %2351  ;;  %v2414_v4 = vmul.f32 %v3417_v58, %v4929_v52 }
 0x48f   : > { %3422 = vrsqrt.f32 %v2388_v23  ;;  %v2374_v49 = vmul.f32 0.0625, %v2352_v12 }
 0x490   : > { %2430 = vst.msk [vmem:[%s4885_s26 + $0x20] sm:$0xff] %vm870_vm9, %v2414_v4 }
 0x491   : > { %v3419_v63 = vpop.eup %3418  ;;  %v2390_v19 = vadd.f32 1e-05, %v2374_v49 }
 0x492   : > { %v2550_v26 = vpop.permute.xlu0 %2549  ;;  %v2358_v56 = vpop.xlane.xlu1 %2357  ;;  %v2416_v24 = vmul.f32 %v3419_v63, %v4937_v5 }
 0x493   : > { %3424 = vrsqrt.f32 %v2390_v19  ;;  %2593 = vst.msk [vmem:[%s4885_s26 + $0x28] sm:$0xff] %vm2587_vm12, %v2550_v26  ;;  %v2376_v28 = vmul.f32 0.0625, %v2358_v56 }
 0x494   : > { %2432 = vst.msk [vmem:[%s4885_s26 + $0x30] sm:$0xff] %vm870_vm9, %v2416_v24 }
 0x495   : > { %v3421_v52 = vpop.eup %3420  ;;  %v2392_v34 = vadd.f32 1e-05, %v2376_v28 }
 0x496   : > { %v2554_v8 = vpop.permute.xlu0 %2553  ;;  %v2459_v22 = vpop.permute.xlu1 %2458  ;;  %v2418_v35 = vmul.f32 %v3421_v52, %v4944_v31 }
 0x497   : > { %3426 = vrsqrt.f32 %v2392_v34  ;;  %2595 = vst.msk [vmem:[%s4885_s26 + $0x38] sm:$0xff] %vm2587_vm12, %v2554_v8 }
 0x498   : > { %2507 = vst.msk [vmem:[%s4885_s26] sm:$0xff] %vm2506_vm11, %v2459_v22 }
 0x499   : > { %2434 = vst.msk [vmem:[%s4885_s26 + $0x40] sm:$0xff] %vm870_vm9, %v2418_v35  ;;  %v3423_v5 = vpop.eup %3422 }
 0x49a   : > { %v2558_v37 = vpop.permute.xlu0 %2557  ;;  %v2463_v42 = vpop.permute.xlu1 %2462  ;;  %v2420_v43 = vmul.f32 %v3423_v5, %v4953_v38 }
 0x49b   : > { %2597 = vst.msk [vmem:[%s4885_s26 + $0x48] sm:$0xff] %vm2587_vm12, %v2558_v37 }
 0x49c   : > { %2509 = vst.msk [vmem:[%s4885_s26 + $0x10] sm:$0xff] %vm2506_vm11, %v2463_v42 }
 0x49d   : > { %2436 = vst.msk [vmem:[%s4885_s26 + $0x50] sm:$0xff] %vm870_vm9, %v2420_v43  ;;  %v3425_v31 = vpop.eup %3424 }
 0x49e   : > { %v2562_v33 = vpop.permute.xlu0 %2561  ;;  %v2465_v62 = vpop.permute.xlu1 %2464  ;;  %v2422_v1 = vmul.f32 %v3425_v31, %v4974_v47 }
 0x49f   : > { %2599 = vst.msk [vmem:[%s4885_s26 + $0x58] sm:$0xff] %vm2587_vm12, %v2562_v33 }
 0x4a0   : > { %2510 = vst.msk [vmem:[%s4885_s26 + $0x18] sm:$0xff] %vm2506_vm11, %v2465_v62 }
 0x4a1   : > { %2591 = vst.msk [vmem:[%s4885_s26 + $0x18] sm:$0xff] %vm2587_vm12, %v2546_v39  ;;  %v3427_v38 = vpop.eup %3426 }
 0x4a2   : > { %2438 = vst.msk [vmem:[%s4885_s26 + $0x60] sm:$0xff] %vm870_vm9, %v2422_v1  ;;  %v2566_v48 = vpop.permute.xlu0 %2565  ;;  %v2467_v17 = vpop.permute.xlu1 %2466  ;;  %v2424_v55 = vmul.f32 %v3427_v38, %v4994_v3 }
 0x4a3   : > { %2601 = vst.msk [vmem:[%s4885_s26 + $0x68] sm:$0xff] %vm2587_vm12, %v2566_v48 }
 0x4a4   : > { %2511 = vst.msk [vmem:[%s4885_s26 + $0x20] sm:$0xff] %vm2506_vm11, %v2467_v17 }
 0x4a5   : > { %2440 = vst.msk [vmem:[%s4885_s26 + $0x70] sm:$0xff] %vm870_vm9, %v2424_v55 }
 0x4a6   : > { %v2570_v47 = vpop.permute.xlu0 %2569  ;;  %v2471_v32 = vpop.permute.xlu1 %2470 }
 0x4a7   : > { %2603 = vst.msk [vmem:[%s4885_s26 + $0x78] sm:$0xff] %vm2587_vm12, %v2570_v47 }
 0x4a8   : > { %2513 = vst.msk [vmem:[%s4885_s26 + $0x30] sm:$0xff] %vm2506_vm11, %v2471_v32 }
 0x4aa   : > { %v2475_v6 = vpop.permute.xlu1 %2474 }
 0x4ab   : > { %2515 = vst.msk [vmem:[%s4885_s26 + $0x40] sm:$0xff] %vm2506_vm11, %v2475_v6 }
 0x4ae   : > { %v2479_v3 = vpop.permute.xlu1 %2478 }
 0x4af   : > { %2517 = vst.msk [vmem:[%s4885_s26 + $0x50] sm:$0xff] %vm2506_vm11, %v2479_v3 }
 0x4b2   : > { %v2483_v29 = vpop.permute.xlu1 %2482 }
 0x4b3   : > { %2519 = vst.msk [vmem:[%s4885_s26 + $0x60] sm:$0xff] %vm2506_vm11, %v2483_v29 }
 0x4b6   : > { %v2487_v21 = vpop.permute.xlu1 %2486 }
 0x4b7   : > { %2521 = vst.msk [vmem:[%s4885_s26 + $0x70] sm:$0xff] %vm2506_vm11, %v2487_v21 }
 0x4ba   : > { %v2540_v53 = vpop.permute.xlu1 %2539 }
 0x4bb   : > { %2588 = vst.msk [vmem:[%s4885_s26] sm:$0xff] %vm2587_vm12, %v2540_v53 }
 0x4be   : > { %v2544_v40 = vpop.permute.xlu1 %2543 }
 0x4bf   : > { %2590 = vst.msk [vmem:[%s4885_s26 + $0x10] sm:$0xff] %vm2587_vm12, %v2544_v40 }
 0x4c2   : > { %v2548_v20 = vpop.permute.xlu1 %2547 }
 0x4c3   : > { %2592 = vst.msk [vmem:[%s4885_s26 + $0x20] sm:$0xff] %vm2587_vm12, %v2548_v20 }
 0x4c6   : > { %v2552_v41 = vpop.permute.xlu1 %2551 }
 0x4c7   : > { %2594 = vst.msk [vmem:[%s4885_s26 + $0x30] sm:$0xff] %vm2587_vm12, %v2552_v41 }
 0x4ca   : > { %v2556_v18 = vpop.permute.xlu1 %2555 }
 0x4cb   : > { %2596 = vst.msk [vmem:[%s4885_s26 + $0x40] sm:$0xff] %vm2587_vm12, %v2556_v18 }
 0x4ce   : > { %v2560_v25 = vpop.permute.xlu1 %2559 }
 0x4cf   : > { %2598 = vst.msk [vmem:[%s4885_s26 + $0x50] sm:$0xff] %vm2587_vm12, %v2560_v25 }
 0x4d2   : > { %v2564_v27 = vpop.permute.xlu1 %2563 }
 0x4d3   : > { %2600 = vst.msk [vmem:[%s4885_s26 + $0x60] sm:$0xff] %vm2587_vm12, %v2564_v27 }
 0x4d6   : > { %v2568_v45 = vpop.permute.xlu1 %2567 }
 0x4d7   : > { %2602 = vst.msk [vmem:[%s4885_s26 + $0x70] sm:$0xff] %vm2587_vm12, %v2568_v45 }
 0x4da   : > { %v2862_v13 = vpop.permute.xlu1 %2861 }
 0x4db   : > { %2865 = vst.msk [vmem:[%s4925_s28] sm:$0x3] %vm2864_vm13, %v2862_v13 }
 0x4dc PF: > { %s23_s21 = sadd.s32 1, %s3437_s21  }
 0x4dd   : > { %p20_p4 = scmp.ge.s32.totalorder %s23_s21, 4  }
 0x4df   :  { %22 = sbr.rel (!%p20_p4) target bundleno = 1 (0x1), region = 117 }

</bundles_post_ra>
